<compile_context>
chip_gen: v6e
topology: v6e:2x2x1
jax: 0.10.0
libtpu: 0.0.40
codegen_flags: <defaults>
</compile_context>

<pallas_src>
import functools

import jax
import jax.numpy as jnp
from jax import lax
from jax.experimental import pallas as pl
from jax.experimental.pallas import tpu as pltpu


def _round_up(a, b):
    return -(-a // b) * b


def _vmem_limit_bytes(*, l_x, l_tile, p_out, dim_p, c2p, hidden_p):
    # Double-buffered blocks + in-body temporaries, with ~30% headroom.
    w_bytes = dim_p * c2p * 2 + hidden_p * dim_p * 2 + (2 * c2p + 9 * c2p + dim_p) * 4
    blocks = 2 * (l_x * dim_p * 2 + l_x * 4 + w_bytes + p_out * dim_p * 4)
    temps = (l_tile * dim_p * 2          # x tile (bf16)
             + 3 * l_tile * c2p * 4      # y + two column-shifted views (f32)
             + p_out * c2p * 4           # dwconv accumulator
             + p_out * hidden_p * 4      # gate
             + 2 * p_out * dim_p * 4)    # projected output (f32 + bf16 staging)
    need = int((blocks + temps) * 1.3)
    try:
        cap = int(pltpu.get_tpu_info().vmem_capacity_bytes)
    except Exception:
        cap = 64 * 1024 * 1024           # conservative (v7x-sized) fallback
    return max(32 * 1024 * 1024, min(need, (cap * 9) // 10))


# ----------------------------------------------------------------------------
# Fused kernel: project_in GEMM -> 3x3 depthwise conv -> GELU gate -> project_out
# One grid step = one (batch, row-tile) pair, all work in flat pixel space.
# ----------------------------------------------------------------------------
def _ffn_fused_kernel(x_ref, m_ref, w_in_ref, b_in_ref, w_dw_ref, b_dw_ref,
                      w_out_ref, b_out_ref, o_ref, *, th, wt, hidden_p, l_tile):
    c2p = 2 * hidden_p
    p_out = th * wt            # output pixels per tile (incl. discarded pad cols)
    p_f = (th + 2) * wt        # pixels covered by the three dh-shifted views

    t = pl.program_id(1)
    start = pl.multiple_of(t * (th * wt), 8)   # flat-pixel offset of this row tile

    # --- project_in: (l_tile, dim_p) @ (dim_p, c2p) on the MXU, f32 accum ----
    xf = x_ref[0, pl.ds(start, l_tile), :]                       # bf16 pixels (with halo)
    m = m_ref[pl.ds(start, l_tile), :]                           # (l_tile, 1) 1=inside image
    y = jnp.dot(xf, w_in_ref[...], preferred_element_type=jnp.float32)
    y = y + b_in_ref[...] * m     # halo pixels outside the image stay exactly 0

    # --- depthwise 3x3 conv + bias (flat pixel space, f32 on the VPU) --------
    # Precompute the three column-shifted views once (dw=1,2 are the only
    # unaligned slices in the kernel); the per-dh slices below are 8-aligned.
    shifted = (y[0:p_f, :], y[1:1 + p_f, :], y[2:2 + p_f, :])
    d = jnp.broadcast_to(b_dw_ref[...], (p_out, c2p))
    for dh in range(3):
        base = dh * wt
        for dw in range(3):
            tap = w_dw_ref[dh * 3 + dw:dh * 3 + dw + 1, :]       # (1, c2p)
            d = d + shifted[dw][base:base + p_out, :] * tap
    # TODO(synk): on v6e/v7x the 9-tap MAC could run in packed bf16 (and the gate
    # could use the tanh-approx GELU on the EUP) for more VPU headroom.

    # --- GELU(x1) * x2 (exact erf, matches torch F.gelu default) -------------
    x1 = d[:, :hidden_p]
    x2 = d[:, hidden_p:]
    g = 0.5 * x1 * (1.0 + lax.erf(x1 * 0.7071067811865476)) * x2

    # --- project_out: (p_out, hidden_p) @ (hidden_p, dim_p) on the MXU -------
    out = jnp.dot(g.astype(w_out_ref.dtype), w_out_ref[...],
                  preferred_element_type=jnp.float32)
    o_ref[0] = out + b_out_ref[...]


# ----------------------------------------------------------------------------
# Full FeedForward forward pass (NCHW in / NCHW out, flat NHWC-bf16 internally)
# ----------------------------------------------------------------------------
def feed_forward_apply(x, params, *, dim, hidden, dim_p, hidden_p, tile_rows=None):
    N, C, H, W = x.shape
    assert C == dim
    c2p = 2 * hidden_p

    wt = _round_up(W + 2, 8)                     # padded row width (sublane-aligned)
    if tile_rows is None:
        tile_rows = max(8, 2048 // wt)           # aim for ~2K flat pixels per tile
    th = max(1, min(tile_rows, H))
    n_t = pl.cdiv(H, th)
    hp = n_t * th
    l_x = (hp + 2) * wt + 8                      # +8 so the last tile's window fits
    l_tile = (th + 2) * wt + 8
    p_out = th * wt

    # NCHW -> NHWC once; zero-pad (1-px halo, bottom rows to a tile multiple,
    # channels to a lane-dense multiple of 128); flatten pixels; cast to bf16.
    # TODO(synk): for very large images, stream x per-tile via halo DMA instead
    # of keeping the whole bf16 image resident in VMEM.
    xh = jnp.transpose(x, (0, 2, 3, 1))
    xh = jnp.pad(xh, ((0, 0), (1, hp - H + 1), (1, wt - W - 1), (0, dim_p - C)))
    xf = xh.reshape(N, (hp + 2) * wt, dim_p)
    xf = jnp.pad(xf, ((0, 0), (0, 8), (0, 0))).astype(jnp.bfloat16)

    # {0,1} mask over flat padded pixels: 1 inside the real image, 0 in the halo.
    rows = jnp.arange(hp + 2)
    cols = jnp.arange(wt)
    inside = ((rows[:, None] >= 1) & (rows[:, None] <= H)
              & (cols[None, :] >= 1) & (cols[None, :] <= W))
    mask = inside.astype(jnp.float32).reshape((hp + 2) * wt, 1)
    mask = jnp.pad(mask, ((0, 8), (0, 0)))

    flops = N * n_t * (2 * l_tile * dim_p * c2p            # project_in
                       + 18 * p_out * c2p                  # 9-tap dwconv MAC
                       + 2 * p_out * hidden_p * dim_p)     # project_out
    bytes_accessed = (N * l_x * dim_p * 2 + l_x * 4
                      + dim_p * c2p * 2 + hidden_p * dim_p * 2
                      + (2 * c2p + 9 * c2p + dim_p) * 4
                      + N * hp * wt * dim_p * 4)

    kern = functools.partial(_ffn_fused_kernel, th=th, wt=wt,
                             hidden_p=hidden_p, l_tile=l_tile)
    out = pl.pallas_call(
        kern,
        out_shape=jax.ShapeDtypeStruct((N, hp * wt, dim_p), jnp.float32),
        grid_spec=pltpu.PrefetchScalarGridSpec(
            num_scalar_prefetch=0,
            grid=(N, n_t),
            in_specs=[
                pl.BlockSpec((1, l_x, dim_p), lambda n, t: (n, 0, 0)),   # x (resident per batch)
                pl.BlockSpec((l_x, 1), lambda n, t: (0, 0)),             # validity mask
                pl.BlockSpec((dim_p, c2p), lambda n, t: (0, 0)),         # W_in  (bf16)
                pl.BlockSpec((1, c2p), lambda n, t: (0, 0)),             # b_in
                pl.BlockSpec((9, c2p), lambda n, t: (0, 0)),             # W_dw taps
                pl.BlockSpec((1, c2p), lambda n, t: (0, 0)),             # b_dw
                pl.BlockSpec((hidden_p, dim_p), lambda n, t: (0, 0)),    # W_out (bf16)
                pl.BlockSpec((1, dim_p), lambda n, t: (0, 0)),           # b_out
            ],
            out_specs=pl.BlockSpec((1, p_out, dim_p), lambda n, t: (n, t, 0)),
        ),
        compiler_params=pltpu.CompilerParams(
            dimension_semantics=("parallel", "parallel"),
            vmem_limit_bytes=_vmem_limit_bytes(
                l_x=l_x, l_tile=l_tile, p_out=p_out,
                dim_p=dim_p, c2p=c2p, hidden_p=hidden_p),
        ),
        cost_estimate=pl.CostEstimate(
            flops=flops,
            transcendentals=N * n_t * p_out * hidden_p,
            bytes_accessed=bytes_accessed),
    )(xf, mask, params["w_in"], params["b_in"], params["w_dw"],
      params["b_dw"], params["w_out"], params["b_out"])

    out = out.reshape(N, hp, wt, dim_p)[:, :H, :W, :C]
    return jnp.transpose(out, (0, 3, 1, 2))                 # back to NCHW


# ----------------------------------------------------------------------------
# Parameters: PyTorch-layout weights (raw) + kernel-ready packed/padded weights
# ----------------------------------------------------------------------------
def init_params(key, dim, ffn_expansion_factor, bias=True):
    hidden = int(dim * ffn_expansion_factor)
    c2 = 2 * hidden
    dim_p = _round_up(dim, 128)
    hidden_p = _round_up(hidden, 128)
    c2p = 2 * hidden_p

    ks = jax.random.split(key, 6)
    z = lambda *s: jnp.zeros(s, jnp.float32)
    raw = {
        "w_in":  0.05 * jax.random.normal(ks[0], (c2, dim), jnp.float32),
        "b_in":  0.05 * jax.random.normal(ks[1], (c2,), jnp.float32) if bias else z(c2),
        "w_dw":  0.20 * jax.random.normal(ks[2], (c2, 3, 3), jnp.float32),
        "b_dw":  0.05 * jax.random.normal(ks[3], (c2,), jnp.float32) if bias else z(c2),
        "w_out": 0.05 * jax.random.normal(ks[4], (dim, hidden), jnp.float32),
        "b_out": 0.05 * jax.random.normal(ks[5], (dim,), jnp.float32) if bias else z(dim),
    }

    def split_pad_last(a):
        # (..., 2*hidden) -> (..., 2*hidden_p): pad the x1 and x2 halves separately.
        pad = [(0, 0)] * (a.ndim - 1) + [(0, hidden_p - hidden)]
        return jnp.concatenate(
            [jnp.pad(a[..., :hidden], pad), jnp.pad(a[..., hidden:], pad)], axis=-1)

    w_in_p = jnp.zeros((dim_p, c2p), jnp.float32).at[:dim].set(split_pad_last(raw["w_in"].T))
    w_out_p = jnp.zeros((hidden_p, dim_p), jnp.float32).at[:hidden, :dim].set(raw["w_out"].T)
    w_dw_p = split_pad_last(jnp.transpose(raw["w_dw"], (1, 2, 0))).reshape(9, c2p)

    packed = {
        "w_in": w_in_p.astype(jnp.bfloat16),
        "b_in": split_pad_last(raw["b_in"]).reshape(1, c2p).astype(jnp.float32),
        "w_dw": w_dw_p.astype(jnp.float32),
        "b_dw": split_pad_last(raw["b_dw"]).reshape(1, c2p).astype(jnp.float32),
        "w_out": w_out_p.astype(jnp.bfloat16),
        "b_out": jnp.zeros((dim_p,), jnp.float32).at[:dim].set(raw["b_out"]).reshape(1, dim_p),
    }
    cfg = dict(dim=dim, hidden=hidden, dim_p=dim_p, hidden_p=hidden_p)
    return raw, packed, cfg


def _reference_forward(x, raw):
    """Pure-JAX reference of the PyTorch FeedForward forward pass (NCHW)."""
    N, C, H, W = x.shape
    y = jnp.einsum("nchw,oc->nohw", x, raw["w_in"]) + raw["b_in"][None, :, None, None]
    yp = jnp.pad(y, ((0, 0), (0, 0), (1, 1), (1, 1)))
    d = jnp.zeros_like(y)
    for dh in range(3):
        for dw in range(3):
            d = d + yp[:, :, dh:dh + H, dw:dw + W] * raw["w_dw"][None, :, dh, dw, None, None]
    d = d + raw["b_dw"][None, :, None, None]
    h = y.shape[1] // 2
    x1, x2 = d[:, :h], d[:, h:]
    g = 0.5 * x1 * (1.0 + jax.lax.erf(x1 / jnp.sqrt(2.0))) * x2
    return jnp.einsum("nchw,oc->nohw", g, raw["w_out"]) + raw["b_out"][None, :, None, None]


# ----------------------------------------------------------------------------
if __name__ == "__main__":
    dim, ffn_expansion_factor, bias = 32, 2.0, True   # hidden=64, 2*hidden=128
    N, H, W = 2, 16, 16

    key = jax.random.PRNGKey(0)
    kx, kp = jax.random.split(key)
    x = jax.random.normal(kx, (N, dim, H, W), jnp.float32)

    raw, packed, cfg = init_params(kp, dim, ffn_expansion_factor, bias)
    ref = _reference_forward(x, raw)

    # Default tiling (one row tile at this small size).
    fwd = jax.jit(functools.partial(feed_forward_apply, **cfg))
    out = jax.block_until_ready(fwd(x, packed))
    assert out.shape == (N, dim, H, W), out.shape
    assert bool(jnp.all(jnp.isfinite(out)))
    max_err = float(jnp.max(jnp.abs(out - ref)))
    assert jnp.allclose(out, ref, rtol=2e-2, atol=2e-2), max_err

    # Multi-tile config (3 row tiles with halos, H not divisible by the tile) to
    # exercise the halo + boundary-mask path.
    fwd_t = jax.jit(functools.partial(feed_forward_apply, tile_rows=6, **cfg))
    out_t = jax.block_until_ready(fwd_t(x, packed))
    max_err_t = float(jnp.max(jnp.abs(out_t - ref)))
    assert jnp.allclose(out_t, ref, rtol=2e-2, atol=2e-2), max_err_t

    print("KERNEL_OK")
</pallas_src>

<mosaic_0001>
module attributes {stable_mosaic.version = 11 : i64} {
  func.func @_ffn_fused_kernel(%arg0: i32, %arg1: i32, %arg2: memref<1x440x128xbf16, #tpu.memory_space<vmem>>, %arg3: memref<440x1xf32, #tpu.memory_space<vmem>>, %arg4: memref<128x256xbf16, #tpu.memory_space<vmem>>, %arg5: memref<1x256xf32, #tpu.memory_space<vmem>>, %arg6: memref<9x256xf32, #tpu.memory_space<vmem>>, %arg7: memref<1x256xf32, #tpu.memory_space<vmem>>, %arg8: memref<128x128xbf16, #tpu.memory_space<vmem>>, %arg9: memref<1x128xf32, #tpu.memory_space<vmem>>, %arg10: memref<1x384x128xf32, #tpu.memory_space<vmem>>) attributes {dimension_semantics = [#tpu.dimension_semantics<parallel>, #tpu.dimension_semantics<parallel>], iteration_bounds = array<i64: 2, 1>, scalar_prefetch = 0 : i64, scratch_operands = 0 : i64, tpu.core_type = #tpu.core_type<tc>, window_params = [{transform_indices = @transform_0, window_bounds = array<i64: 1, 440, 128>}, {pipeline_mode = #tpu.pipeline_mode<synchronous>, transform_indices = @transform_1, window_bounds = array<i64: 440, 1>}, {pipeline_mode = #tpu.pipeline_mode<synchronous>, transform_indices = @transform_2, window_bounds = array<i64: 128, 256>}, {pipeline_mode = #tpu.pipeline_mode<synchronous>, transform_indices = @transform_3, window_bounds = array<i64: 1, 256>}, {pipeline_mode = #tpu.pipeline_mode<synchronous>, transform_indices = @transform_4, window_bounds = array<i64: 9, 256>}, {pipeline_mode = #tpu.pipeline_mode<synchronous>, transform_indices = @transform_5, window_bounds = array<i64: 1, 256>}, {pipeline_mode = #tpu.pipeline_mode<synchronous>, transform_indices = @transform_6, window_bounds = array<i64: 128, 128>}, {pipeline_mode = #tpu.pipeline_mode<synchronous>, transform_indices = @transform_7, window_bounds = array<i64: 1, 128>}, {transform_indices = @transform_8, window_bounds = array<i64: 1, 384, 128>}]} {
    %c384_i32 = arith.constant 384 : i32
    %0 = arith.muli %arg1, %c384_i32 : i32
    %1 = tpu.assume_multiple %0, 8 : i32
    %c0 = arith.constant 0 : index
    %2 = arith.index_cast %1 : i32 to index
    %c0_0 = arith.constant 0 : index
    %3 = vector.load %arg2[%c0, %2, %c0_0] : memref<1x440x128xbf16, #tpu.memory_space<vmem>>, vector<1x440x128xbf16>
    %4 = vector.shape_cast %3 : vector<1x440x128xbf16> to vector<440x128xbf16>
    %5 = arith.index_cast %1 : i32 to index
    %c0_1 = arith.constant 0 : index
    %6 = vector.load %arg3[%5, %c0_1] : memref<440x1xf32, #tpu.memory_space<vmem>>, vector<440x1xf32>
    %c0_2 = arith.constant 0 : index
    %c0_3 = arith.constant 0 : index
    %7 = vector.load %arg4[%c0_2, %c0_3] : memref<128x256xbf16, #tpu.memory_space<vmem>>, vector<128x256xbf16>
    %cst = arith.constant dense<0.000000e+00> : vector<440x256xf32>
    %8 = tpu.matmul %4, %7, %cst {dimension_numbers = #tpu.dot_dimension_numbers<[1], [0], [0], [1], [0, 0, 1, 1], [], []>} : vector<440x128xbf16>, vector<128x256xbf16>, vector<440x256xf32> -> vector<440x256xf32>
    %c0_4 = arith.constant 0 : index
    %c0_5 = arith.constant 0 : index
    %9 = vector.load %arg5[%c0_4, %c0_5] : memref<1x256xf32, #tpu.memory_space<vmem>>, vector<1x256xf32>
    %10 = vector.broadcast %9 : vector<1x256xf32> to vector<440x256xf32>
    %11 = vector.broadcast %6 : vector<440x1xf32> to vector<440x256xf32>
    %12 = arith.mulf %10, %11 : vector<440x256xf32>
    %13 = arith.addf %8, %12 : vector<440x256xf32>
    %14 = vector.extract_strided_slice %13 {offsets = [0, 0], sizes = [432, 256], strides = [1, 1]} : vector<440x256xf32> to vector<432x256xf32>
    %15 = vector.extract_strided_slice %13 {offsets = [1, 0], sizes = [432, 256], strides = [1, 1]} : vector<440x256xf32> to vector<432x256xf32>
    %16 = vector.extract_strided_slice %13 {offsets = [2, 0], sizes = [432, 256], strides = [1, 1]} : vector<440x256xf32> to vector<432x256xf32>
    %c0_6 = arith.constant 0 : index
    %c0_7 = arith.constant 0 : index
    %17 = vector.load %arg7[%c0_6, %c0_7] : memref<1x256xf32, #tpu.memory_space<vmem>>, vector<1x256xf32>
    %18 = vector.shape_cast %17 : vector<1x256xf32> to vector<1x256xf32>
    %19 = vector.broadcast %18 : vector<1x256xf32> to vector<384x256xf32>
    %c0_8 = arith.constant 0 : index
    %c0_9 = arith.constant 0 : index
    %20 = vector.load %arg6[%c0_8, %c0_9] : memref<9x256xf32, #tpu.memory_space<vmem>>, vector<1x256xf32>
    %21 = vector.extract_strided_slice %14 {offsets = [0, 0], sizes = [384, 256], strides = [1, 1]} : vector<432x256xf32> to vector<384x256xf32>
    %22 = vector.broadcast %20 : vector<1x256xf32> to vector<384x256xf32>
    %23 = arith.mulf %21, %22 : vector<384x256xf32>
    %24 = arith.addf %19, %23 : vector<384x256xf32>
    %c1 = arith.constant 1 : index
    %c0_10 = arith.constant 0 : index
    %25 = vector.load %arg6[%c1, %c0_10] : memref<9x256xf32, #tpu.memory_space<vmem>>, vector<1x256xf32>
    %26 = vector.extract_strided_slice %15 {offsets = [0, 0], sizes = [384, 256], strides = [1, 1]} : vector<432x256xf32> to vector<384x256xf32>
    %27 = vector.broadcast %25 : vector<1x256xf32> to vector<384x256xf32>
    %28 = arith.mulf %26, %27 : vector<384x256xf32>
    %29 = arith.addf %24, %28 : vector<384x256xf32>
    %c2 = arith.constant 2 : index
    %c0_11 = arith.constant 0 : index
    %30 = vector.load %arg6[%c2, %c0_11] : memref<9x256xf32, #tpu.memory_space<vmem>>, vector<1x256xf32>
    %31 = vector.extract_strided_slice %16 {offsets = [0, 0], sizes = [384, 256], strides = [1, 1]} : vector<432x256xf32> to vector<384x256xf32>
    %32 = vector.broadcast %30 : vector<1x256xf32> to vector<384x256xf32>
    %33 = arith.mulf %31, %32 : vector<384x256xf32>
    %34 = arith.addf %29, %33 : vector<384x256xf32>
    %c3 = arith.constant 3 : index
    %c0_12 = arith.constant 0 : index
    %35 = vector.load %arg6[%c3, %c0_12] : memref<9x256xf32, #tpu.memory_space<vmem>>, vector<1x256xf32>
    %36 = vector.extract_strided_slice %14 {offsets = [24, 0], sizes = [384, 256], strides = [1, 1]} : vector<432x256xf32> to vector<384x256xf32>
    %37 = vector.broadcast %35 : vector<1x256xf32> to vector<384x256xf32>
    %38 = arith.mulf %36, %37 : vector<384x256xf32>
    %39 = arith.addf %34, %38 : vector<384x256xf32>
    %c4 = arith.constant 4 : index
    %c0_13 = arith.constant 0 : index
    %40 = vector.load %arg6[%c4, %c0_13] : memref<9x256xf32, #tpu.memory_space<vmem>>, vector<1x256xf32>
    %41 = vector.extract_strided_slice %15 {offsets = [24, 0], sizes = [384, 256], strides = [1, 1]} : vector<432x256xf32> to vector<384x256xf32>
    %42 = vector.broadcast %40 : vector<1x256xf32> to vector<384x256xf32>
    %43 = arith.mulf %41, %42 : vector<384x256xf32>
    %44 = arith.addf %39, %43 : vector<384x256xf32>
    %c5 = arith.constant 5 : index
    %c0_14 = arith.constant 0 : index
    %45 = vector.load %arg6[%c5, %c0_14] : memref<9x256xf32, #tpu.memory_space<vmem>>, vector<1x256xf32>
    %46 = vector.extract_strided_slice %16 {offsets = [24, 0], sizes = [384, 256], strides = [1, 1]} : vector<432x256xf32> to vector<384x256xf32>
    %47 = vector.broadcast %45 : vector<1x256xf32> to vector<384x256xf32>
    %48 = arith.mulf %46, %47 : vector<384x256xf32>
    %49 = arith.addf %44, %48 : vector<384x256xf32>
    %c6 = arith.constant 6 : index
    %c0_15 = arith.constant 0 : index
    %50 = vector.load %arg6[%c6, %c0_15] : memref<9x256xf32, #tpu.memory_space<vmem>>, vector<1x256xf32>
    %51 = vector.extract_strided_slice %14 {offsets = [48, 0], sizes = [384, 256], strides = [1, 1]} : vector<432x256xf32> to vector<384x256xf32>
    %52 = vector.broadcast %50 : vector<1x256xf32> to vector<384x256xf32>
    %53 = arith.mulf %51, %52 : vector<384x256xf32>
    %54 = arith.addf %49, %53 : vector<384x256xf32>
    %c7 = arith.constant 7 : index
    %c0_16 = arith.constant 0 : index
    %55 = vector.load %arg6[%c7, %c0_16] : memref<9x256xf32, #tpu.memory_space<vmem>>, vector<1x256xf32>
    %56 = vector.extract_strided_slice %15 {offsets = [48, 0], sizes = [384, 256], strides = [1, 1]} : vector<432x256xf32> to vector<384x256xf32>
    %57 = vector.broadcast %55 : vector<1x256xf32> to vector<384x256xf32>
    %58 = arith.mulf %56, %57 : vector<384x256xf32>
    %59 = arith.addf %54, %58 : vector<384x256xf32>
    %c8 = arith.constant 8 : index
    %c0_17 = arith.constant 0 : index
    %60 = vector.load %arg6[%c8, %c0_17] : memref<9x256xf32, #tpu.memory_space<vmem>>, vector<1x256xf32>
    %61 = vector.extract_strided_slice %16 {offsets = [48, 0], sizes = [384, 256], strides = [1, 1]} : vector<432x256xf32> to vector<384x256xf32>
    %62 = vector.broadcast %60 : vector<1x256xf32> to vector<384x256xf32>
    %63 = arith.mulf %61, %62 : vector<384x256xf32>
    %64 = arith.addf %59, %63 : vector<384x256xf32>
    %65 = vector.extract_strided_slice %64 {offsets = [0, 0], sizes = [384, 128], strides = [1, 1]} : vector<384x256xf32> to vector<384x128xf32>
    %66 = vector.extract_strided_slice %64 {offsets = [0, 128], sizes = [384, 128], strides = [1, 1]} : vector<384x256xf32> to vector<384x128xf32>
    %cst_18 = arith.constant 5.000000e-01 : f32
    %67 = vector.broadcast %cst_18 : f32 to vector<384x128xf32>
    %68 = arith.mulf %67, %65 : vector<384x128xf32>
    %cst_19 = arith.constant 0.707106769 : f32
    %69 = vector.broadcast %cst_19 : f32 to vector<384x128xf32>
    %70 = arith.mulf %65, %69 : vector<384x128xf32>
    %71 = math.erf %70 : vector<384x128xf32>
    %cst_20 = arith.constant 1.000000e+00 : f32
    %72 = vector.broadcast %cst_20 : f32 to vector<384x128xf32>
    %73 = arith.addf %72, %71 : vector<384x128xf32>
    %74 = arith.mulf %68, %73 : vector<384x128xf32>
    %75 = arith.mulf %74, %66 : vector<384x128xf32>
    %76 = arith.truncf %75 : vector<384x128xf32> to vector<384x128xbf16>
    %c0_21 = arith.constant 0 : index
    %c0_22 = arith.constant 0 : index
    %77 = vector.load %arg8[%c0_21, %c0_22] : memref<128x128xbf16, #tpu.memory_space<vmem>>, vector<128x128xbf16>
    %cst_23 = arith.constant dense<0.000000e+00> : vector<384x128xf32>
    %78 = tpu.matmul %76, %77, %cst_23 {dimension_numbers = #tpu.dot_dimension_numbers<[1], [0], [0], [1], [0, 0, 1, 1], [], []>} : vector<384x128xbf16>, vector<128x128xbf16>, vector<384x128xf32> -> vector<384x128xf32>
    %c0_24 = arith.constant 0 : index
    %c0_25 = arith.constant 0 : index
    %79 = vector.load %arg9[%c0_24, %c0_25] : memref<1x128xf32, #tpu.memory_space<vmem>>, vector<1x128xf32>
    %80 = vector.broadcast %79 : vector<1x128xf32> to vector<384x128xf32>
    %81 = arith.addf %78, %80 : vector<384x128xf32>
    %c0_26 = arith.constant 0 : index
    %c0_27 = arith.constant 0 : index
    %c0_28 = arith.constant 0 : index
    %82 = vector.load %arg10[%c0_26, %c0_27, %c0_28] : memref<1x384x128xf32, #tpu.memory_space<vmem>>, vector<1x384x128xf32>
    %83 = vector.shape_cast %82 : vector<1x384x128xf32> to vector<384x128xf32>
    %84 = vector.shape_cast %81 : vector<384x128xf32> to vector<1x384x128xf32>
    tpu.vector_store %arg10[%c0_26, %c0_27, %c0_28], %84 {strides = array<i32>} : memref<1x384x128xf32, #tpu.memory_space<vmem>>, vector<1x384x128xf32>,
    return
  }
  func.func @transform_0(%arg0: i32, %arg1: i32) -> (i32, i32, i32) {
    %c0_i32 = arith.constant 0 : i32
    %c0_i32_0 = arith.constant 0 : i32
    %c0_i32_1 = arith.constant 0 : i32
    return %arg0, %c0_i32, %c0_i32_0 : i32, i32, i32
  }
  func.func @transform_1(%arg0: i32, %arg1: i32) -> (i32, i32) {
    %c0_i32 = arith.constant 0 : i32
    %c0_i32_0 = arith.constant 0 : i32
    %c0_i32_1 = arith.constant 0 : i32
    return %c0_i32, %c0_i32_0 : i32, i32
  }
  func.func @transform_2(%arg0: i32, %arg1: i32) -> (i32, i32) {
    %c0_i32 = arith.constant 0 : i32
    %c0_i32_0 = arith.constant 0 : i32
    %c0_i32_1 = arith.constant 0 : i32
    return %c0_i32, %c0_i32_0 : i32, i32
  }
  func.func @transform_3(%arg0: i32, %arg1: i32) -> (i32, i32) {
    %c0_i32 = arith.constant 0 : i32
    %c0_i32_0 = arith.constant 0 : i32
    %c0_i32_1 = arith.constant 0 : i32
    return %c0_i32, %c0_i32_0 : i32, i32
  }
  func.func @transform_4(%arg0: i32, %arg1: i32) -> (i32, i32) {
    %c0_i32 = arith.constant 0 : i32
    %c0_i32_0 = arith.constant 0 : i32
    %c0_i32_1 = arith.constant 0 : i32
    return %c0_i32, %c0_i32_0 : i32, i32
  }
  func.func @transform_5(%arg0: i32, %arg1: i32) -> (i32, i32) {
    %c0_i32 = arith.constant 0 : i32
    %c0_i32_0 = arith.constant 0 : i32
    %c0_i32_1 = arith.constant 0 : i32
    return %c0_i32, %c0_i32_0 : i32, i32
  }
  func.func @transform_6(%arg0: i32, %arg1: i32) -> (i32, i32) {
    %c0_i32 = arith.constant 0 : i32
    %c0_i32_0 = arith.constant 0 : i32
    %c0_i32_1 = arith.constant 0 : i32
    return %c0_i32, %c0_i32_0 : i32, i32
  }
  func.func @transform_7(%arg0: i32, %arg1: i32) -> (i32, i32) {
    %c0_i32 = arith.constant 0 : i32
    %c0_i32_0 = arith.constant 0 : i32
    %c0_i32_1 = arith.constant 0 : i32
    return %c0_i32, %c0_i32_0 : i32, i32
  }
  func.func @transform_8(%arg0: i32, %arg1: i32) -> (i32, i32, i32) {
    %c0_i32 = arith.constant 0 : i32
    %c0_i32_0 = arith.constant 0 : i32
    return %arg0, %arg1, %c0_i32 : i32, i32, i32
  }
}

</mosaic_0001>

<bundles_post_ra>
// kernel: feed_forward_apply.1
= control target key start
LH: loop header
LB: loop body
LE: loop exit
PB: predicated region body
PF: predicated region fallthrough
CT: control target
= control target key end

     0   :  { %s6792_s27 = smov 0   ;;  %s6794_s28 = smov 0   ;;  %s13026_s0 = inlined_call_operand.vmem [shape: bf16[2,440,128], index: 0, kind: input, shape index: {}]   ;;  %s13027_s1 = inlined_call_operand.vmem [shape: f32[440,1], index: 1, kind: input, shape index: {}]   ;;  %s13028_s2 = inlined_call_operand.vmem [shape: bf16[128,256], index: 2, kind: input, shape index: {}]   ;;  %s13029_s3 = inlined_call_operand.vmem [shape: f32[1,256], index: 3, kind: input, shape index: {}]   ;;  %s13030_s4 = inlined_call_operand.vmem [shape: f32[9,256], index: 4, kind: input, shape index: {}]   ;;  %s13031_s5 = inlined_call_operand.vmem [shape: f32[1,256], index: 5, kind: input, shape index: {}]   ;;  %s13032_s6 = inlined_call_operand.vmem [shape: bf16[128,128], index: 6, kind: input, shape index: {}]   ;;  %s13033_s7 = inlined_call_operand.vmem [shape: f32[1,128], index: 7, kind: input, shape index: {}]   ;;  %s13034_s8 = inlined_call_operand.vmem [shape: f32[2,384,128], index: 8, kind: output, shape index: {}]  }
   0x1   :  { %s6796_s29 = smov 0  }
   0x2 LB: > { %s30_s30 = sadd.s32 1, %s6740_s28  ;;  %p6359_p0 = scmp.ge.s32.totalorder %s6744_s29, 1  ;;  %s6744_s29 = sphi %s6796_s29, %s18_s29   ;;  %s6740_s28 = sphi %s6794_s28, %s14760_s28   ;;  %s6736_s27 = sphi %s6792_s27, %s14759_s27  }
   0x3   : > { %p32_p1 = scmp.ge.s32.totalorder %s30_s30, 2  ;;  %p276_p2 = scmp.lt.s32.totalorder %s6744_s29, 3 }
   0x5   : > { %s14762_s30 = smov (%p32_p1, %s30_s30), 0  ;;  %p277_p3 = pnand %p6359_p0, %p276_p2 }
   0x7   : > { %280 = sbr.rel (%p277_p3) target bundleno = 1382 (0x566), region = 52 }
   0xc   : > { %v6566_v0 = vld [vmem:[%s13028_s2 + $0x74] ss:$8 sps:$4 sm:$0xff]   ;;  %p314_p4 = scmp.lt.s32.totalorder %s6736_s27, 1  ;;  %v6568_v1 = vld [vmem:[%s13028_s2 + $0x70] ss:$8 sps:$4 sm:$0xff]   ;;  %v6746_v2 = vmov 0  }
   0xd   : > { %1137 = vmatprep.mubr.bf16.mxu0 %v6746_v2  ;;  %1337 = vmatprep.mubr.bf16.mxu1 %v6746_v2  ;;  %v6569_v3 = vld [vmem:[%s13028_s2 + $0x64] ss:$8 sps:$4 sm:$0xff]   ;;  %v6571_v4 = vld [vmem:[%s13028_s2 + $0x60] ss:$8 sps:$4 sm:$0xff]   ;;  %v6572_v5 = vld [vmem:[%s13028_s2 + $0x54] ss:$8 sps:$4 sm:$0xff]  }
   0xe   : > { %1105 = vmatprep.subr.bf16.mxu0 %v6566_v0  ;;  %6521 = vmatprep.subr.bf16.mxu1 %v6566_v0  ;;  %s14764_s27 = smov (!%p314_p4, %s6736_s27), 1  ;;  %v6574_v6 = vld [vmem:[%s13028_s2 + $0x50] ss:$8 sps:$4 sm:$0xff]   ;;  %v6575_v7 = vld [vmem:[%s13028_s2 + $0x44] ss:$8 sps:$4 sm:$0xff]   ;;  %vm1841_vm0 = vcmask 1046528  }
   0xf   : > { %1106 = vmatpush1.bf16.msra.mxu0 %v6568_v1  ;;  %6529 = vmatpush1.bf16.msra.mxu1 %v6568_v1  ;;  %s6537_s19 = smul.u32 220, %s14764_s27  ;;  %v6577_v8 = vld [vmem:[%s13028_s2 + $0x40] ss:$8 sps:$4 sm:$0xff]   ;;  %v6578_v9 = vld [vmem:[%s13028_s2 + $0x34] ss:$8 sps:$4 sm:$0xff]   ;;  %vm2437_vm1 = vcmask 1045504  }
  0x10   : > { %1107 = vmatprep.subr.bf16.mxu0 %v6569_v3  ;;  %6522 = vmatprep.subr.bf16.mxu1 %v6569_v3  ;;  %v391_v10 = vld [vmem:[%s13027_s1] sm:$0xff]  ;;  %v6580_v11 = vld [vmem:[%s13028_s2 + $0x30] ss:$8 sps:$4 sm:$0xff]   ;;  %v392_v15 = vld [vmem:[%s13027_s1 + $0x8] sm:$0xff]  ;;  %s6538_s20 = smul.u32 384, %s14764_s27 }
  0x11   : > { %6564 = vset.pattern.permute.xlu0 %v6746_v2  ;;  %6565 = vset.pattern.permute.xlu1 %v6746_v2  ;;  %s6841_s26 = scalar_lea.vmem %s13026_s0, %s6537_s19  ;;  %v6581_v12 = vld [vmem:[%s13028_s2 + $0x24] ss:$8 sps:$4 sm:$0xff]   ;;  %v6583_v13 = vld [vmem:[%s13028_s2 + $0x20] ss:$8 sps:$4 sm:$0xff]   ;;  %v393_v14 = vld [vmem:[%s13027_s1 + $0x10] sm:$0xff] }
  0x12   : > { %476 = vperm.xlu0 %6564, %v391_v10   ;;  %486 = vperm.xlu1 %6565, %v393_v14   ;;  %v394_v16 = vld [vmem:[%s13027_s1 + $0x18] sm:$0xff]  ;;  %v395_v18 = vld [vmem:[%s13027_s1 + $0x20] sm:$0xff]  ;;  %v396_v20 = vld [vmem:[%s13027_s1 + $0x28] sm:$0xff]  ;;  %s12878_s24 = scalar_lea.vmem %s13034_s8, %s6538_s20 }
  0x13   : > { %1108 = vmatpush1.bf16.msra.mxu0 %v6571_v4  ;;  %6530 = vmatpush1.bf16.msra.mxu1 %v6571_v4  ;;  %v6584_v17 = vld [vmem:[%s13028_s2 + $0x14] ss:$8 sps:$4 sm:$0xff]   ;;  %v6586_v19 = vld [vmem:[%s13028_s2 + $0x10] ss:$8 sps:$4 sm:$0xff]   ;;  %v6587_v21 = vld [vmem:[%s13028_s2 + $0x4] ss:$8 sps:$4 sm:$0xff]  }
  0x14   : > { %1109 = vmatprep.subr.bf16.mxu0 %v6572_v5  ;;  %6523 = vmatprep.subr.bf16.mxu1 %v6572_v5  ;;  %v397_v22 = vld [vmem:[%s13027_s1 + $0x30] sm:$0xff]  ;;  %v6589_v23 = vld [vmem:[%s13028_s2] ss:$8 sps:$4 sm:$0xff]   ;;  %v398_v24 = vld [vmem:[%s13027_s1 + $0x38] sm:$0xff] }
  0x15   : > { %v6590_v25 = vld [vmem:[%s6841_s26] sm:$0xff]   ;;  %v400_v28 = vld [vmem:[%s13027_s1 + $0x48] sm:$0xff]  ;;  %v401_v29 = vld [vmem:[%s13027_s1 + $0x50] sm:$0xff] }
  0x16   : > { %481 = vperm.xlu0 %6564, %v392_v15   ;;  %491 = vperm.xlu1 %6565, %v394_v16   ;;  %v6591_v26 = vld [vmem:[%s6841_s26 + $0xa0] sm:$0xff]   ;;  %v402_v30 = vld [vmem:[%s13027_s1 + $0x58] sm:$0xff]  ;;  %v6592_v31 = vld [vmem:[%s6841_s26 + $0x8] sm:$0xff]  }
  0x17   : > { %1110 = vmatpush1.bf16.msra.mxu0 %v6574_v6  ;;  %6531 = vmatpush1.bf16.msra.mxu1 %v6574_v6  ;;  %v399_v27 = vld [vmem:[%s13027_s1 + $0x40] sm:$0xff]  ;;  %v6593_v32 = vld [vmem:[%s6841_s26 + $0xa8] sm:$0xff]   ;;  %v405_v35 = vld [vmem:[%s13027_s1 + $0x70] sm:$0xff] }
  0x18   : > { %1111 = vmatprep.subr.bf16.mxu0 %v6575_v7  ;;  %6524 = vmatprep.subr.bf16.mxu1 %v6575_v7  ;;  %v403_v33 = vld [vmem:[%s13027_s1 + $0x60] sm:$0xff]  ;;  %v404_v34 = vld [vmem:[%s13027_s1 + $0x68] sm:$0xff]  ;;  %v6594_v36 = vld [vmem:[%s6841_s26 + $0x10] sm:$0xff]  }
  0x19   : > { %v6595_v37 = vld [vmem:[%s6841_s26 + $0xb0] sm:$0xff]   ;;  %v406_v38 = vld [vmem:[%s13027_s1 + $0x78] sm:$0xff]  ;;  %v407_v39 = vld [vmem:[%s13027_s1 + $0x80] sm:$0xff] }
  0x1a   : > { %496 = vperm.xlu0 %6564, %v395_v18   ;;  %501 = vperm.xlu1 %6565, %v396_v20   ;;  %v408_v40 = vld [vmem:[%s13027_s1 + $0x88] sm:$0xff]  ;;  %v409_v41 = vld [vmem:[%s13027_s1 + $0x90] sm:$0xff]  ;;  %v6596_v42 = vld [vmem:[%s6841_s26 + $0x18] sm:$0xff]  }
  0x1b   : > { %1112 = vmatpush1.bf16.msra.mxu0 %v6577_v8  ;;  %6532 = vmatpush1.bf16.msra.mxu1 %v6577_v8  ;;  %v410_v43 = vld [vmem:[%s13027_s1 + $0x98] sm:$0xff]  ;;  %v411_v45 = vld [vmem:[%s13027_s1 + $0xa0] sm:$0xff]  ;;  %v412_v46 = vld [vmem:[%s13027_s1 + $0xa8] sm:$0xff] }
  0x1c   : > { %1113 = vmatprep.subr.bf16.mxu0 %v6578_v9  ;;  %6525 = vmatprep.subr.bf16.mxu1 %v6578_v9  ;;  %v6597_v44 = vld [vmem:[%s6841_s26 + $0xb8] sm:$0xff]   ;;  %v413_v47 = vld [vmem:[%s13027_s1 + $0xb0] sm:$0xff]  ;;  %v6598_v49 = vld [vmem:[%s6841_s26 + $0x20] sm:$0xff]  }
  0x1d   : > { %v414_v48 = vld [vmem:[%s13027_s1 + $0xb8] sm:$0xff]  ;;  %v6599_v50 = vld [vmem:[%s6841_s26 + $0xc0] sm:$0xff]   ;;  %v416_v52 = vld [vmem:[%s13027_s1 + $0xc8] sm:$0xff] }
  0x1e   : > { %506 = vperm.xlu0 %6564, %v397_v22   ;;  %511 = vperm.xlu1 %6565, %v398_v24   ;;  %v415_v51 = vld [vmem:[%s13027_s1 + $0xc0] sm:$0xff]  ;;  %v417_v53 = vld [vmem:[%s13027_s1 + $0xd0] sm:$0xff]  ;;  %v418_v54 = vld [vmem:[%s13027_s1 + $0xd8] sm:$0xff] }
  0x1f   : > { %1114 = vmatpush1.bf16.msra.mxu0 %v6580_v11  ;;  %6533 = vmatpush1.bf16.msra.mxu1 %v6580_v11  ;;  %v6600_v55 = vld [vmem:[%s6841_s26 + $0x28] sm:$0xff]   ;;  %v419_v57 = vld [vmem:[%s13027_s1 + $0xe0] sm:$0xff]  ;;  %v421_v59 = vld [vmem:[%s13027_s1 + $0xf0] sm:$0xff] }
  0x20   : > { %1115 = vmatprep.subr.bf16.mxu0 %v6581_v12  ;;  %6526 = vmatprep.subr.bf16.mxu1 %v6581_v12  ;;  %v6601_v56 = vld [vmem:[%s6841_s26 + $0xc8] sm:$0xff]   ;;  %v422_v60 = vld [vmem:[%s13027_s1 + $0xf8] sm:$0xff]  ;;  %v6602_v61 = vld [vmem:[%s6841_s26 + $0x30] sm:$0xff]  }
  0x21   : > { %v420_v58 = vld [vmem:[%s13027_s1 + $0xe8] sm:$0xff]  ;;  %v6603_v62 = vld [vmem:[%s6841_s26 + $0xd0] sm:$0xff]   ;;  %v423_v63 = vld [vmem:[%s13027_s1 + $0x100] sm:$0xff] }
  0x22   : > { %516 = vperm.xlu0 %6564, %v399_v27   ;;  %521 = vperm.xlu1 %6565, %v400_v28   ;;  %v424_v0 = vld [vmem:[%s13027_s1 + $0x108] sm:$0xff]  ;;  %v425_v1 = vld [vmem:[%s13027_s1 + $0x110] sm:$0xff]  ;;  %v426_v3 = vld [vmem:[%s13027_s1 + $0x118] sm:$0xff] }
  0x23   : > { %1116 = vmatpush1.bf16.msra.mxu0 %v6583_v13  ;;  %6534 = vmatpush1.bf16.msra.mxu1 %v6583_v13  ;;  %v6604_v4 = vld [vmem:[%s6841_s26 + $0x38] sm:$0xff]   ;;  %v427_v6 = vld [vmem:[%s13027_s1 + $0x120] sm:$0xff]  ;;  %v428_v7 = vld [vmem:[%s13027_s1 + $0x128] sm:$0xff] }
  0x24   : > { %1117 = vmatprep.subr.bf16.mxu0 %v6584_v17  ;;  %6527 = vmatprep.subr.bf16.mxu1 %v6584_v17  ;;  %v6605_v5 = vld [vmem:[%s6841_s26 + $0xd8] ss:$0 sps:$4 sm:$0xff]   ;;  %v429_v8 = vld [vmem:[%s13027_s1 + $0x130] sm:$0xff]  ;;  %v6606_v10 = vld [vmem:[%s6841_s26 + $0x40] sm:$0xff]  }
  0x25   : > { %v430_v9 = vld [vmem:[%s13027_s1 + $0x138] sm:$0xff]  ;;  %v431_v11 = vld [vmem:[%s13027_s1 + $0x140] sm:$0xff]  ;;  %v432_v12 = vld [vmem:[%s13027_s1 + $0x148] sm:$0xff] }
  0x26   : > { %526 = vperm.xlu0 %6564, %v401_v29   ;;  %531 = vperm.xlu1 %6565, %v402_v30   ;;  %v433_v13 = vld [vmem:[%s13027_s1 + $0x150] sm:$0xff]  ;;  %v434_v14 = vld [vmem:[%s13027_s1 + $0x158] sm:$0xff]  ;;  %v6607_v15 = vld [vmem:[%s6841_s26 + $0x48] sm:$0xff]  }
  0x27   : > { %1118 = vmatpush1.bf16.msra.mxu0 %v6586_v19  ;;  %6535 = vmatpush1.bf16.msra.mxu1 %v6586_v19  ;;  %v435_v16 = vld [vmem:[%s13027_s1 + $0x160] sm:$0xff]  ;;  %v436_v17 = vld [vmem:[%s13027_s1 + $0x168] sm:$0xff]  ;;  %v437_v18 = vld [vmem:[%s13027_s1 + $0x170] sm:$0xff] }
  0x28   : > { %1119 = vmatprep.subr.bf16.mxu0 %v6587_v21  ;;  %6528 = vmatprep.subr.bf16.mxu1 %v6587_v21  ;;  %v438_v19 = vld [vmem:[%s13027_s1 + $0x178] sm:$0xff]  ;;  %v6608_v20 = vld [vmem:[%s6841_s26 + $0x50] sm:$0xff]   ;;  %v439_v21 = vld [vmem:[%s13027_s1 + $0x180] sm:$0xff] }
  0x29   : > { %v440_v22 = vld [vmem:[%s13027_s1 + $0x188] sm:$0xff]  ;;  %v442_v24 = vld [vmem:[%s13027_s1 + $0x198] sm:$0xff]  ;;  %v445_v28 = vld [vmem:[%s13027_s1 + $0x1b0] sm:$0xff] }
  0x2a   : > { %536 = vperm.xlu0 %6564, %v403_v33   ;;  %541 = vperm.xlu1 %6565, %v404_v34   ;;  %v444_v27 = vld [vmem:[%s13027_s1 + $0x1a8] sm:$0xff]  ;;  %v6610_v29 = vld [vmem:[%s6841_s26 + $0x60] sm:$0xff]   ;;  %v6612_v33 = vld [vmem:[%s6841_s26 + $0x70] sm:$0xff]  }
  0x2b   : > { %1120 = vmatpush1.bf16.msra.mxu0 %v6589_v23  ;;  %6536 = vmatpush1.bf16.msra.mxu1 %v6589_v23  ;;  %v441_v23 = vld [vmem:[%s13027_s1 + $0x190] sm:$0xff]  ;;  %v6611_v30 = vld [vmem:[%s6841_s26 + $0x68] sm:$0xff]  }
  0x2e   : > { %1138 = vmatmul.mubr.bf16.vlgmr.msra.gmra.mxu0 %v6590_v25  ;;  %1338 = vmatmul.mubr.bf16.vlgmr.msra.gmra.mxu1 %v6591_v26  ;;  %v6609_v25 = vld [vmem:[%s6841_s26 + $0x58] sm:$0xff]   ;;  %v443_v26 = vld [vmem:[%s13027_s1 + $0x1a0] sm:$0xff] }
  0x2f   : > { %1147 = vmatprep.mubr.bf16.mxu0 %v6746_v2  ;;  %1347 = vmatprep.mubr.bf16.mxu1 %v6746_v2 }
  0x30   : > { %546 = vperm.xlu0 %6564, %v405_v35   ;;  %551 = vperm.xlu1 %6565, %v406_v38   ;;  %v6618_v38 = vld [vmem:[%s13032_s6 + $0x38] sm:$0xff]  }
  0x31   : > { %6457 = vmatprep.subr.bf16.mxu1 %v6618_v38 }
  0x32   : > { %6458 = vmatpush3.bf16.msra.mxu1 %v6618_v38 }
  0x34   : > { %556 = vperm.xlu0 %6564, %v407_v39   ;;  %561 = vperm.xlu1 %6565, %v408_v40   ;;  %v6613_v39 = vld [vmem:[%s6841_s26 + $0x78] sm:$0xff]  }
  0x36   : > { %1148 = vmatmul.mubr.bf16.gmra.mxu0 %v6592_v31  ;;  %1348 = vmatmul.mubr.bf16.gmra.mxu1 %v6593_v32 }
  0x37   : > { %1157 = vmatprep.mubr.bf16.mxu0 %v6746_v2  ;;  %1357 = vmatprep.mubr.bf16.mxu1 %v6746_v2 }
  0x38   : > { %566 = vperm.xlu0 %6564, %v409_v41   ;;  %571 = vperm.xlu1 %6565, %v410_v43   ;;  %v6619_v43 = vld [vmem:[%s13032_s6 + $0x30] sm:$0xff]  }
  0x39   : > { %6459 = vmatprep.subr.bf16.mxu1 %v6619_v43 }
  0x3a   : > { %6460 = vmatpush3.bf16.msra.mxu1 %v6619_v43 }
  0x3c   : > { %576 = vperm.xlu0 %6564, %v411_v45   ;;  %581 = vperm.xlu1 %6565, %v412_v46  }
  0x3e   : > { %1158 = vmatmul.mubr.bf16.gmra.mxu0 %v6594_v36  ;;  %1358 = vmatmul.mubr.bf16.gmra.mxu1 %v6595_v37 }
  0x3f   : > { %1167 = vmatprep.mubr.bf16.mxu0 %v6746_v2  ;;  %1367 = vmatprep.mubr.bf16.mxu1 %v6746_v2 }
  0x40   : > { %586 = vperm.xlu0 %6564, %v413_v47   ;;  %591 = vperm.xlu1 %6565, %v414_v48  }
  0x44   : > { %596 = vperm.xlu0 %6564, %v415_v51   ;;  %601 = vperm.xlu1 %6565, %v416_v52   ;;  %v6620_v52 = vld [vmem:[%s13032_s6 + $0x28] sm:$0xff]  }
  0x45   : > { %6461 = vmatprep.subr.bf16.mxu1 %v6620_v52 }
  0x46   : > { %1168 = vmatmul.mubr.bf16.gmra.mxu0 %v6596_v42  ;;  %1368 = vmatmul.mubr.bf16.gmra.mxu1 %v6597_v44  ;;  %v6614_v44 = vld [vmem:[%s6841_s26 + $0x80] sm:$0xff]  }
  0x47   : > { %1177 = vmatprep.mubr.bf16.mxu0 %v6746_v2  ;;  %1377 = vmatprep.mubr.bf16.mxu1 %v6746_v2 }
  0x48   : > { %606 = vperm.xlu0 %6564, %v417_v53   ;;  %611 = vperm.xlu1 %6565, %v418_v54  }
  0x49   : > { %6462 = vmatpush3.bf16.msra.mxu1 %v6620_v52  ;;  %v6413_v52 = vld [vmem:[%s13030_s4 + $0x10] ss:$8 sm:$0x3] }
  0x4c   : > { %616 = vperm.xlu0 %6564, %v419_v57   ;;  %621 = vperm.xlu1 %6565, %v420_v58  }
  0x4e   : > { %1178 = vmatmul.mubr.bf16.gmra.mxu0 %v6598_v49  ;;  %1378 = vmatmul.mubr.bf16.gmra.mxu1 %v6599_v50  ;;  %v6615_v49 = vld [vmem:[%s6841_s26 + $0x88] sm:$0xff]  }
  0x4f   : > { %1187 = vmatprep.mubr.bf16.mxu0 %v6746_v2  ;;  %1387 = vmatprep.mubr.bf16.mxu1 %v6746_v2 }
  0x50   : > { %626 = vperm.xlu0 %6564, %v421_v59   ;;  %631 = vperm.xlu1 %6565, %v422_v60   ;;  %v6617_v60 = vld [vmem:[%s6841_s26 + $0x98] sm:$0xff]  }
  0x54   : > { %636 = vperm.xlu0 %6564, %v423_v63   ;;  %641 = vperm.xlu1 %6565, %v424_v0  }
  0x56   : > { %1188 = vmatmul.mubr.bf16.gmra.mxu0 %v6600_v55  ;;  %1388 = vmatmul.mubr.bf16.gmra.mxu1 %v6601_v56  ;;  %v6616_v55 = vld [vmem:[%s6841_s26 + $0x90] sm:$0xff]  }
  0x57   : > { %1197 = vmatprep.mubr.bf16.mxu0 %v6746_v2  ;;  %1397 = vmatprep.mubr.bf16.mxu1 %v6746_v2 }
  0x58   : > { %646 = vperm.xlu0 %6564, %v425_v1   ;;  %651 = vperm.xlu1 %6565, %v426_v3   ;;  %v464_v3 = vlaneseq }
  0x5c   : > { %656 = vperm.xlu0 %6564, %v427_v6   ;;  %661 = vperm.xlu1 %6565, %v428_v7   ;;  %v465_v7 = vshrl.u32 %v464_v3, 7 }
  0x5e   : > { %1198 = vmatmul.mubr.bf16.gmra.mxu0 %v6602_v61  ;;  %1398 = vmatmul.mubr.bf16.gmra.mxu1 %v6603_v62  ;;  %v6621_v62 = vld [vmem:[%s13032_s6 + $0x20] sm:$0xff]  }
  0x5f   : > { %1207 = vmatprep.mubr.bf16.mxu0 %v6746_v2  ;;  %1407 = vmatprep.mubr.bf16.mxu1 %v6746_v2 }
  0x60   : > { %666 = vperm.xlu0 %6564, %v429_v8   ;;  %671 = vperm.xlu1 %6565, %v430_v9   ;;  %v6624_v9 = vld [vmem:[%s13032_s6 + $0x8] sm:$0xff]  }
  0x61   : > { %6463 = vmatprep.subr.bf16.mxu1 %v6621_v62 }
  0x62   : > { %6464 = vmatpush3.bf16.msra.mxu1 %v6621_v62 }
  0x64   : > { %676 = vperm.xlu0 %6564, %v431_v11   ;;  %681 = vperm.xlu1 %6565, %v432_v12   ;;  %v462_v11 = vld [vmem:[%s13029_s3] sm:$0x3]  ;;  %v466_v12 = vsub.s32 0, %v465_v7 }
  0x66   : > { %1208 = vmatmul.mubr.bf16.gmra.mxu0 %v6604_v4  ;;  %1408 = vmatmul.mubr.bf16.gmra.mxu1 %v6605_v5  ;;  %v6623_v5 = vld [vmem:[%s13032_s6 + $0x10] sm:$0xff]  }
  0x67   : > { %1217 = vmatprep.mubr.bf16.mxu0 %v6746_v2 }
  0x68   : > { %686 = vperm.xlu0 %6564, %v433_v13   ;;  %691 = vperm.xlu1 %6565, %v434_v14   ;;  %v470_v13 = vsub.s32 1, %v465_v7  ;;  %v1428_v14 = vld [vmem:[%s13030_s4] ss:$8 sm:$0x3] }
  0x6c   : > { %696 = vperm.xlu0 %6564, %v435_v16   ;;  %701 = vperm.xlu1 %6565, %v436_v17   ;;  %v1416_v16 = vld [vmem:[%s13031_s5] sm:$0x3]  ;;  %v6407_v17 = vld [vmem:[%s13030_s4 + $0x2] ss:$8 sm:$0x3] }
  0x6e   : > { %1218 = vmatmul.mubr.bf16.gmra.mxu0 %v6606_v10 }
  0x6f   : > { %1227 = vmatprep.mubr.bf16.mxu0 %v6746_v2 }
  0x70   : > { %706 = vperm.xlu0 %6564, %v437_v18   ;;  %711 = vperm.xlu1 %6565, %v438_v19  }
  0x74   : > { %716 = vperm.xlu0 %6564, %v439_v21   ;;  %721 = vperm.xlu1 %6565, %v440_v22   ;;  %v7190_v21 = vrot.slane %v462_v11, %v466_v12  ;;  %v7192_v22 = vrot.slane %v462_v11, %v470_v13 }
  0x76   : > { %1228 = vmatmul.mubr.bf16.gmra.mxu0 %v6607_v15  ;;  %v6406_v15 = vld [vmem:[%s13030_s4 + $0x1] ss:$8 sm:$0x3]  ;;  %13650 = vst [vmem:[#allocation2_spill] sm:$0xff] %v7190_v21 }
  0x77   : > { %1237 = vmatprep.mubr.bf16.mxu0 %v6746_v2  ;;  %v7215_v38 = vrot.slane %v6406_v15, %v470_v13 }
  0x78   : > { %726 = vperm.xlu0 %6564, %v441_v23   ;;  %731 = vperm.xlu1 %6565, %v442_v24   ;;  %v7194_v23 = vrot.slane %v1428_v14, %v466_v12  ;;  %v6409_v24 = vld [vmem:[%s13030_s4 + $0x4] ss:$8 sm:$0x3] }
  0x79   : > { %v7237_v3 = vrot.slane %v6409_v24, %v470_v13 }
  0x7a   : > { %13651 = vst [vmem:[#allocation3_spill] sm:$0xff] %v7194_v23 }
  0x7b   : > { %13659 = vst [vmem:[#allocation11_spill] sm:$0xff] %v7237_v3 }
  0x7c   : > { %736 = vperm.xlu0 %6564, %v443_v26   ;;  %741 = vperm.xlu1 %6565, %v444_v27   ;;  %v7202_v26 = vrot.slane %v1416_v16, %v466_v12  ;;  %v7204_v27 = vrot.slane %v6406_v15, %v466_v12 }
  0x7e   : > { %1238 = vmatmul.mubr.bf16.gmra.mxu0 %v6608_v20  ;;  %v6408_v20 = vld [vmem:[%s13030_s4 + $0x3] ss:$8 sm:$0x3]  ;;  %13652 = vst [vmem:[#allocation4_spill] sm:$0xff] %v7202_v26  ;;  %13653 = vst [vmem:[#allocation5_spill] sm:$0xff] %v7204_v27 }
  0x7f   : > { %1247 = vmatprep.mubr.bf16.mxu0 %v6746_v2 }
  0x80   : > { %746 = vperm.xlu0 %6564, %v445_v28   ;;  %v7206_v28 = vrot.slane %v6407_v17, %v466_v12 }
  0x86   : > { %1248 = vmatmul.mubr.bf16.gmra.mxu0 %v6609_v25  ;;  %v6410_v25 = vld [vmem:[%s13030_s4 + $0x5] ss:$8 sm:$0x3] }
  0x87   : > { %1257 = vmatprep.mubr.bf16.mxu0 %v6746_v2  ;;  %v7233_v62 = vrot.slane %v6410_v25, %v466_v12 }
  0x89   : > { %13657 = vst [vmem:[#allocation9_spill] sm:$0xff] %v7233_v62 }
  0x8d   : > { %v7078_v31 = vpop.permute.xlu0 %476  ;;  %v7080_v32 = vpop.permute.xlu1 %486 }
  0x8e   : > { %1258 = vmatmul.mubr.bf16.gmra.mxu0 %v6610_v29  ;;  %v7208_v29 = vrot.slane %v1428_v14, %v470_v13  ;;  %v7245_v7 = vmul.f32 %v7078_v31, %v7192_v22  ;;  %v7253_v14 = vmul.f32 %v7080_v32, %v7190_v21  ;;  %v7257_v15 = vmul.f32 %v7080_v32, %v7192_v22 }
  0x8f   : > { %1267 = vmatprep.mubr.bf16.mxu0 %v6746_v2 }
  0x90   : > { %13654 = vst [vmem:[#allocation6_spill] sm:$0xff] %v7208_v29 }
  0x91   : > { %v7083_v34 = vpop.permute.xlu0 %481  ;;  %v7085_v35 = vpop.permute.xlu1 %491 }
  0x92   : > { %v7277_v32 = vmul.f32 %v7083_v34, %v7192_v22 }
  0x95   : > { %v7088_v36 = vpop.permute.xlu0 %496  ;;  %v7090_v37 = vpop.permute.xlu1 %501 }
  0x96   : > { %1268 = vmatmul.mubr.bf16.gmra.mxu0 %v6611_v30  ;;  %v6411_v30 = vld [vmem:[%s13030_s4 + $0x6] ss:$8 sm:$0x3] }
  0x97   : > { %1277 = vmatprep.mubr.bf16.mxu0 %v6746_v2  ;;  %v7249_v11 = vrot.slane %v6411_v30, %v466_v12 }
  0x99   : > { %v7096_v40 = vpop.permute.xlu0 %506  ;;  %v7098_v41 = vpop.permute.xlu1 %511  ;;  %13661 = vst [vmem:[#allocation13_spill] sm:$0xff] %v7249_v11  ;;  %v7273_v11 = vrot.slane %v6413_v52, %v470_v13 }
  0x9b   : > { %13666 = vst [vmem:[#allocation18_spill] sm:$0xff] %v7273_v11  ;;  %v7311_v11 = vmul.f32 %v7096_v40, %v7192_v22 }
  0x9d   : > { %v7101_v42 = vpop.permute.xlu0 %516  ;;  %v7107_v45 = vpop.permute.xlu1 %521 }
  0x9e   : > { %1278 = vmatmul.mubr.bf16.gmra.mxu0 %v6612_v33  ;;  %v7213_v33 = vrot.slane %v1416_v16, %v470_v13 }
  0x9f   : > { %1287 = vmatprep.mubr.bf16.mxu0 %v6746_v2 }
  0xa0   : > { %13655 = vst [vmem:[#allocation7_spill] sm:$0xff] %v7213_v33 }
  0xa1   : > { %v7109_v46 = vpop.permute.xlu0 %526  ;;  %v7112_v47 = vpop.permute.xlu1 %531 }
  0xa5   : > { %v7114_v48 = vpop.permute.xlu0 %536  ;;  %v7117_v50 = vpop.permute.xlu1 %541 }
  0xa6   : > { %1288 = vmatmul.mubr.bf16.gmra.mxu0 %v6613_v39  ;;  %v7217_v39 = vrot.slane %v6407_v17, %v470_v13  ;;  %v7261_v17 = vrot.slane %v6413_v52, %v466_v12  ;;  %v7303_v52 = vmul.f32 %v7090_v37, %v7192_v22 }
  0xa7   : > { %1297 = vmatprep.mubr.bf16.mxu0 %v6746_v2 }
  0xa8   : > { %13663 = vst [vmem:[#allocation15_spill] sm:$0xff] %v7261_v17  ;;  %v7285_v17 = vmul.f32 %v7085_v35, %v7192_v22 }
  0xab   : > { %v7119_v51 = vpop.permute.xlu0 %546  ;;  %v7125_v53 = vpop.permute.xlu1 %551 }
  0xae   : > { %1298 = vmatmul.mubr.bf16.gmra.mxu0 %v6614_v44  ;;  %v7221_v44 = vrot.slane %v6408_v20, %v466_v12 }
  0xaf   : > { %1307 = vmatprep.mubr.bf16.mxu0 %v6746_v2  ;;  %v7127_v54 = vpop.permute.xlu0 %556  ;;  %v7130_v56 = vpop.permute.xlu1 %561 }
  0xb3   : > { %v7132_v57 = vpop.permute.xlu0 %566  ;;  %v7135_v58 = vpop.permute.xlu1 %571 }
  0xb6   : > { %1308 = vmatmul.mubr.bf16.gmra.mxu0 %v6615_v49  ;;  %v6412_v49 = vld [vmem:[%s13030_s4 + $0x7] ss:$8 sm:$0x3] }
  0xb7   : > { %1317 = vmatprep.mubr.bf16.mxu0 %v6746_v2  ;;  %v7137_v59 = vpop.permute.xlu0 %576  ;;  %v7140_v61 = vpop.permute.xlu1 %581  ;;  %v7259_v16 = vrot.slane %v6412_v49, %v466_v12 }
  0xb9   : > { %13662 = vst [vmem:[#allocation14_spill] sm:$0xff] %v7259_v16  ;;  %v7335_v16 = vmul.f32 %v7107_v45, %v7192_v22 }
  0xbb   : > { %v7145_v63 = vpop.permute.xlu0 %586  ;;  %v7147_v0 = vpop.permute.xlu1 %591  ;;  %13670 = vst [vmem:[#allocation22_spill] sm:$0xff] %v7335_v16 }
  0xbe   : > { %1318 = vmatmul.mubr.bf16.gmra.mxu0 %v6616_v55 }
  0xbf   : > { %1327 = vmatprep.mubr.bf16.mxu0 %v6746_v2  ;;  %v6622_v2 = vld [vmem:[%s13032_s6 + $0x18] sm:$0xff]   ;;  %v7152_v1 = vpop.permute.xlu0 %596  ;;  %v7154_v4 = vpop.permute.xlu1 %601 }
  0xc0   : > { %6465 = vmatprep.subr.bf16.mxu1 %v6622_v2 }
  0xc1   : > { %6466 = vmatpush3.bf16.msra.mxu1 %v6622_v2  ;;  %v7235_v2 = vrot.slane %v6408_v20, %v470_v13 }
  0xc2   : > { %6467 = vmatprep.subr.bf16.mxu1 %v6623_v5 }
  0xc3   : > { %v7159_v6 = vpop.permute.xlu0 %606  ;;  %v7161_v8 = vpop.permute.xlu1 %611  ;;  %13658 = vst [vmem:[#allocation10_spill] sm:$0xff] %v7235_v2 }
  0xc5   : > { %6468 = vmatpush3.bf16.msra.mxu1 %v6623_v5  ;;  %v7241_v5 = vmul.f32 %v7078_v31, %v7190_v21  ;;  %v7265_v31 = vmul.f32 %v7083_v34, %v7190_v21  ;;  %v7299_v34 = vmul.f32 %v7090_v37, %v7190_v21  ;;  %v7323_v37 = vmul.f32 %v7101_v42, %v7190_v21 }
  0xc6   : > { %1328 = vmatmul.mubr.bf16.gmra.mxu0 %v6617_v60  ;;  %6469 = vmatprep.subr.bf16.mxu1 %v6624_v9  ;;  %v7231_v60 = vrot.slane %v6409_v24, %v466_v12  ;;  %v7269_v24 = vrot.slane %v6411_v30, %v470_v13  ;;  %v7281_v12 = vmul.f32 %v7085_v35, %v7190_v21 }
  0xc7   : > { %v7166_v10 = vpop.permute.xlu0 %616  ;;  %v7183_v18 = vpop.permute.xlu1 %621  ;;  %v7289_v30 = vmul.f32 %v7088_v36, %v7190_v21  ;;  %v7307_v35 = vmul.f32 %v7096_v40, %v7190_v21  ;;  %13668 = vst [vmem:[#allocation20_spill] sm:$0xff] %v7323_v37  ;;  %v7331_v40 = vmul.f32 %v7107_v45, %v7190_v21  ;;  %v7343_v37 = vmul.f32 %v7109_v46, %v7192_v22 }
  0xc8   : > { %13656 = vst [vmem:[#allocation8_spill] sm:$0xff] %v7231_v60  ;;  %13664 = vst [vmem:[#allocation16_spill] sm:$0xff] %v7269_v24  ;;  %v7327_v24 = vmul.f32 %v7101_v42, %v7192_v22  ;;  %v7347_v42 = vmul.f32 %v7112_v47, %v7190_v21  ;;  %v7355_v45 = vmul.f32 %v7114_v48, %v7190_v21 }
  0xc9   : > { %6470 = vmatpush3.bf16.msra.mxu1 %v6624_v9  ;;  %v7247_v9 = vrot.slane %v6410_v25, %v470_v13  ;;  %v7271_v25 = vrot.slane %v6412_v49, %v470_v13  ;;  %v7295_v13 = vmul.f32 %v7088_v36, %v7192_v22  ;;  %v7315_v36 = vmul.f32 %v7098_v41, %v7190_v21 }
  0xca   : > { %13669 = vst [vmem:[#allocation21_spill] sm:$0xff] %v7331_v40  ;;  %13672 = vst [vmem:[#allocation24_spill] sm:$0xff] %v7343_v37  ;;  %v7351_v40 = vmul.f32 %v7112_v47, %v7192_v22  ;;  %v7371_v47 = vmul.f32 %v7119_v51, %v7190_v21 }
  0xcb   : > { %v7185_v19 = vpop.permute.xlu0 %626  ;;  %v7219_v43 = vpop.permute.xlu1 %631  ;;  %13660 = vst [vmem:[#allocation12_spill] sm:$0xff] %v7247_v9  ;;  %13665 = vst [vmem:[#allocation17_spill] sm:$0xff] %v7271_v25  ;;  %v7319_v25 = vmul.f32 %v7098_v41, %v7192_v22  ;;  %v7339_v41 = vmul.f32 %v7109_v46, %v7190_v21  ;;  %v7363_v46 = vmul.f32 %v7117_v50, %v7190_v21 }
  0xcc   : > { %13673 = vst [vmem:[#allocation25_spill] sm:$0xff] %v7347_v42  ;;  %13674 = vst [vmem:[#allocation26_spill] sm:$0xff] %v7351_v40  ;;  %v7367_v42 = vmul.f32 %v7117_v50, %v7192_v22  ;;  %v7387_v50 = vmul.f32 %v7127_v54, %v7190_v21 }
  0xcd   : > { %13667 = vst [vmem:[#allocation19_spill] sm:$0xff] %v7319_v25  ;;  %13671 = vst [vmem:[#allocation23_spill] sm:$0xff] %v7339_v41  ;;  %v7359_v41 = vmul.f32 %v7114_v48, %v7192_v22  ;;  %v7379_v48 = vmul.f32 %v7125_v53, %v7190_v21 }
  0xce   : > { %13675 = vst [vmem:[#allocation27_spill] sm:$0xff] %v7355_v45  ;;  %13677 = vst [vmem:[#allocation29_spill] sm:$0xff] %v7363_v46  ;;  %v7375_v45 = vmul.f32 %v7119_v51, %v7192_v22  ;;  %v7395_v51 = vmul.f32 %v7130_v56, %v7190_v21 }
  0xcf   : > { %v7229_v55 = vpop.permute.xlu0 %636  ;;  %v7267_v20 = vpop.permute.xlu1 %641  ;;  %13676 = vst [vmem:[#allocation28_spill] sm:$0xff] %v7359_v41  ;;  %13678 = vst [vmem:[#allocation30_spill] sm:$0xff] %v7367_v42  ;;  %v7383_v41 = vmul.f32 %v7125_v53, %v7192_v22  ;;  %v7391_v42 = vmul.f32 %v7127_v54, %v7192_v22  ;;  %v7403_v53 = vmul.f32 %v7132_v57, %v7190_v21 }
  0xd0   : > { %13679 = vst [vmem:[#allocation31_spill] sm:$0xff] %v7371_v47  ;;  %13680 = vst [vmem:[#allocation32_spill] sm:$0xff] %v7375_v45  ;;  %v7399_v45 = vmul.f32 %v7130_v56, %v7192_v22  ;;  %v7411_v54 = vmul.f32 %v7135_v58, %v7190_v21  ;;  %v7419_v56 = vmul.f32 %v7137_v59, %v7190_v21 }
  0xd1   : > { %13681 = vst [vmem:[#allocation33_spill] sm:$0xff] %v7379_v48  ;;  %13682 = vst [vmem:[#allocation34_spill] sm:$0xff] %v7383_v41 }
  0xd2   : > { %13683 = vst [vmem:[#allocation35_spill] sm:$0xff] %v7387_v50  ;;  %13684 = vst [vmem:[#allocation36_spill] sm:$0xff] %v7391_v42  ;;  %v7407_v50 = vmul.f32 %v7132_v57, %v7192_v22  ;;  %v7427_v57 = vmul.f32 %v7140_v61, %v7190_v21 }
  0xd3   : > { %v7291_v49 = vpop.permute.xlu0 %646  ;;  %v652_v25 = vpop.permute.xlu1 %651  ;;  %13685 = vst [vmem:[#allocation37_spill] sm:$0xff] %v7395_v51  ;;  %13686 = vst [vmem:[#allocation38_spill] sm:$0xff] %v7399_v45  ;;  %v7415_v51 = vmul.f32 %v7135_v58, %v7192_v22  ;;  %v7435_v58 = vmul.f32 %v7145_v63, %v7190_v21 }
  0xd4   : > { %13687 = vst [vmem:[#allocation39_spill] sm:$0xff] %v7403_v53  ;;  %13688 = vst [vmem:[#allocation40_spill] sm:$0xff] %v7407_v50  ;;  %v7423_v53 = vmul.f32 %v7137_v59, %v7192_v22  ;;  %v7443_v59 = vmul.f32 %v7147_v0, %v7190_v21 }
  0xd5   : > { %13689 = vst [vmem:[#allocation41_spill] sm:$0xff] %v7411_v54  ;;  %13690 = vst [vmem:[#allocation42_spill] sm:$0xff] %v7415_v51  ;;  %v7431_v54 = vmul.f32 %v7140_v61, %v7192_v22  ;;  %v7451_v61 = vmul.f32 %v7152_v1, %v7190_v21 }
  0xd6   : > { %13691 = vst [vmem:[#allocation43_spill] sm:$0xff] %v7419_v56  ;;  %13692 = vst [vmem:[#allocation44_spill] sm:$0xff] %v7423_v53  ;;  %v7439_v56 = vmul.f32 %v7145_v63, %v7192_v22  ;;  %v7447_v53 = vmul.f32 %v7147_v0, %v7192_v22  ;;  %v7459_v63 = vmul.f32 %v7154_v4, %v7190_v21 }
  0xd7   : > { %v657_v16 = vpop.permute.xlu0 %656  ;;  %v662_v41 = vpop.permute.xlu1 %661  ;;  %13693 = vst [vmem:[#allocation45_spill] sm:$0xff] %v7427_v57  ;;  %13694 = vst [vmem:[#allocation46_spill] sm:$0xff] %v7431_v54  ;;  %v7455_v54 = vmul.f32 %v7152_v1, %v7192_v22  ;;  %v7467_v0 = vmul.f32 %v7159_v6, %v7190_v21  ;;  %v7475_v1 = vmul.f32 %v7161_v8, %v7190_v21 }
  0xd8   : > { %13695 = vst [vmem:[#allocation47_spill] sm:$0xff] %v7435_v58  ;;  %13696 = vst [vmem:[#allocation48_spill] sm:$0xff] %v7439_v56  ;;  %v7463_v56 = vmul.f32 %v7154_v4, %v7192_v22  ;;  %v7483_v4 = vmul.f32 %v7166_v10, %v7190_v21 }
  0xd9   : > { %13697 = vst [vmem:[#allocation49_spill] sm:$0xff] %v7443_v59  ;;  %13698 = vst [vmem:[#allocation50_spill] sm:$0xff] %v7447_v53 }
  0xda   : > { %13699 = vst [vmem:[#allocation51_spill] sm:$0xff] %v7451_v61  ;;  %13700 = vst [vmem:[#allocation52_spill] sm:$0xff] %v7455_v54  ;;  %v7471_v61 = vmul.f32 %v7159_v6, %v7192_v22  ;;  %v7491_v6 = vmul.f32 %v7183_v18, %v7190_v21 }
  0xdb   : > { %v667_v45 = vpop.permute.xlu0 %666  ;;  %13701 = vst [vmem:[#allocation53_spill] sm:$0xff] %v7459_v63  ;;  %13702 = vst [vmem:[#allocation54_spill] sm:$0xff] %v7463_v56  ;;  %v672_v53 = vpop.permute.xlu1 %671  ;;  %v7479_v63 = vmul.f32 %v7161_v8, %v7192_v22  ;;  %v7499_v8 = vmul.f32 %v7185_v19, %v7190_v21 }
  0xdc   : > { %13703 = vst [vmem:[#allocation55_spill] sm:$0xff] %v7467_v0  ;;  %13704 = vst [vmem:[#allocation56_spill] sm:$0xff] %v7471_v61  ;;  %v7487_v0 = vmul.f32 %v7166_v10, %v7192_v22  ;;  %v7507_v10 = vmul.f32 %v7219_v43, %v7190_v21 }
  0xdd   : > { %13705 = vst [vmem:[#allocation57_spill] sm:$0xff] %v7475_v1  ;;  %13706 = vst [vmem:[#allocation58_spill] sm:$0xff] %v7479_v63  ;;  %v7495_v1 = vmul.f32 %v7183_v18, %v7192_v22  ;;  %v7515_v18 = vmul.f32 %v7229_v55, %v7190_v21 }
  0xde   : > { %13707 = vst [vmem:[#allocation59_spill] sm:$0xff] %v7483_v4  ;;  %13708 = vst [vmem:[#allocation60_spill] sm:$0xff] %v7487_v0  ;;  %v7503_v4 = vmul.f32 %v7185_v19, %v7192_v22  ;;  %v7511_v0 = vmul.f32 %v7219_v43, %v7192_v22  ;;  %v7523_v19 = vmul.f32 %v7267_v20, %v7190_v21 }
  0xdf   : > { %v677_v56 = vpop.permute.xlu0 %676  ;;  %13709 = vst [vmem:[#allocation61_spill] sm:$0xff] %v7491_v6  ;;  %13710 = vst [vmem:[#allocation62_spill] sm:$0xff] %v7495_v1  ;;  %v7519_v1 = vmul.f32 %v7229_v55, %v7192_v22  ;;  %v7531_v43 = vmul.f32 %v7291_v49, %v7190_v21  ;;  %v7538_v55 = vmul.f32 %v652_v25, %v7190_v21 }
  0xe0   : > { %13711 = vst [vmem:[#allocation63_spill] sm:$0xff] %v7499_v8  ;;  %13712 = vst [vmem:[#allocation64_spill] sm:$0xff] %v7503_v4  ;;  %v7527_v4 = vmul.f32 %v7267_v20, %v7192_v22  ;;  %v7545_v20 = vmul.f32 %v657_v16, %v7190_v21  ;;  %v7563_v8 = vmul.f32 %v672_v53, %v7190_v21 }
  0xe1   : > { %13713 = vst [vmem:[#allocation65_spill] sm:$0xff] %v7507_v10  ;;  %13714 = vst [vmem:[#allocation66_spill] sm:$0xff] %v7511_v0  ;;  %v682_v0 = vpop.permute.xlu1 %681 }
  0xe2   : > { %13715 = vst [vmem:[#allocation67_spill] sm:$0xff] %v7515_v18  ;;  %13716 = vst [vmem:[#allocation68_spill] sm:$0xff] %v7519_v1  ;;  %v7535_v18 = vmul.f32 %v7291_v49, %v7192_v22  ;;  %v7541_v1 = vmul.f32 %v652_v25, %v7192_v22  ;;  %v7554_v49 = vmul.f32 %v662_v41, %v7192_v22 }
  0xe3   : > { %13717 = vst [vmem:[#allocation69_spill] sm:$0xff] %v7523_v19  ;;  %13718 = vst [vmem:[#allocation70_spill] sm:$0xff] %v7527_v4  ;;  %v829_v19 = vmul.f32 %v677_v56, %v7190_v21  ;;  %v687_v10 = vpop.permute.xlu0 %686  ;;  %v7548_v4 = vmul.f32 %v657_v16, %v7192_v22  ;;  %v7557_v25 = vmul.f32 %v667_v45, %v7190_v21 }
  0xe4   : > { %13719 = vst [vmem:[#allocation71_spill] sm:$0xff] %v7531_v43  ;;  %13720 = vst [vmem:[#allocation72_spill] sm:$0xff] %v7535_v18  ;;  %v7551_v43 = vmul.f32 %v662_v41, %v7190_v21  ;;  %v830_v16 = vmul.f32 %v677_v56, %v7192_v22  ;;  %v831_v41 = vmul.f32 %v682_v0, %v7190_v21 }
  0xe5   : > { %13721 = vst [vmem:[#allocation73_spill] sm:$0xff] %v7538_v55  ;;  %13722 = vst [vmem:[#allocation74_spill] sm:$0xff] %v7541_v1  ;;  %v7560_v1 = vmul.f32 %v667_v45, %v7192_v22  ;;  %v7576_v56 = vmul.f32 %v687_v10, %v7192_v22 }
  0xe6   : > { %13723 = vst [vmem:[#allocation75_spill] sm:$0xff] %v7545_v20  ;;  %13724 = vst [vmem:[#allocation76_spill] sm:$0xff] %v7548_v4  ;;  %v692_v20 = vpop.permute.xlu1 %691 }
  0xe7   : > { %13725 = vst [vmem:[#allocation77_spill] sm:$0xff] %v7551_v43  ;;  %13726 = vst [vmem:[#allocation78_spill] sm:$0xff] %v7554_v49  ;;  %v7568_v43 = vmul.f32 %v672_v53, %v7192_v22  ;;  %v832_v49 = vmul.f32 %v682_v0, %v7192_v22 }
  0xe8   : > { %13727 = vst [vmem:[#allocation79_spill] sm:$0xff] %v7557_v25  ;;  %13728 = vst [vmem:[#allocation80_spill] sm:$0xff] %v7560_v1  ;;  %v697_v1 = vpop.permute.xlu0 %696 }
  0xe9   : > { %13729 = vst [vmem:[#allocation81_spill] sm:$0xff] %v7563_v8  ;;  %13730 = vst [vmem:[#allocation82_spill] sm:$0xff] %v7568_v43  ;;  %v833_v8 = vmul.f32 %v687_v10, %v7190_v21  ;;  %v7591_v10 = vmul.f32 %v697_v1, %v7190_v21  ;;  %v7594_v61 = vmul.f32 %v697_v1, %v7192_v22 }
  0xee   : > { %v1139_v18 = vpop.f32.mrf.mxu0  ;;  %v1339_v55 = vpop.f32.mrf.mxu1 }
  0xef   : > { %v1140_v4 = vadd.f32 %v1139_v18, %v7241_v5  ;;  %v7572_v45 = vadd.f32 %v1339_v55, %v829_v19  ;;  %v7579_v5 = vmul.f32 %v692_v20, %v7190_v21 }
  0xf0   : > { %v1141_v25 = vpop.f32.mrf.mxu0  ;;  %v1341_v6 = vpop.f32.mrf.mxu1 }
  0xf1   : > { %13731 = vst [vmem:[#allocation83_spill] sm:$0xff] %v7572_v45  ;;  %v1440_v53 = vmul.f32 %v7194_v23, %v1140_v4  ;;  %v1645_v18 = vmul.f32 %v7204_v27, %v1140_v4  ;;  %v2241_v0 = vmul.f32 %v7206_v28, %v1140_v4  ;;  %v1142_v43 = vadd.f32 %v1141_v25, %v7245_v7  ;;  %v7598_v25 = vpop.permute.xlu1 %701 }
  0xf2   : > { %v1143_v63 = vpop.f32.mrf.mxu0  ;;  %v1343_v19 = vpop.f32.mrf.mxu1  ;;  %v7585_v55 = vadd.f32 %v1341_v6, %v830_v16  ;;  %v7588_v45 = vmul.f32 %v692_v20, %v7192_v22  ;;  %13733 = vst [vmem:[#allocation85_spill] sm:$0xff] %v7598_v25 }
  0xf3   : > { %v1536_v54 = vadd.f32 %v1440_v53, %v7202_v26  ;;  %v1842_v59 = vrot.slane %v1645_v18, 1  ;;  %v2438_v4 = vrot.slane %v2241_v0, 2  ;;  %v1441_v7 = vmul.f32 %v7208_v29, %v1142_v43 }
  0xf4   : > { %13732 = vst [vmem:[#allocation84_spill] sm:$0xff] %v7585_v55  ;;  %v1646_v6 = vmul.f32 %v7215_v38, %v1142_v43  ;;  %v2242_v16 = vmul.f32 %v7217_v39, %v1142_v43  ;;  %v1144_v20 = vadd.f32 %v1143_v63, %v7265_v31  ;;  %v1145_v55 = vpop.f32.mrf.mxu0  ;;  %v1345_v58 = vpop.f32.mrf.mxu1  ;;  %v7603_v57 = vadd.f32 %v1343_v19, %v831_v41 }
  0xf5   : > { %v1537_v1 = vadd.f32 %v1441_v7, %v7213_v33  ;;  %v1146_v53 = vadd.f32 %v1145_v55, %v7277_v32  ;;  %v7607_v18 = vadd.f32 %v1345_v58, %v832_v49  ;;  %v7611_v0 = vmul.f32 %v7598_v25, %v7190_v21 }
  0xf6   : > { %13734 = vst [vmem:[#allocation86_spill] sm:$0xff] %v7603_v57  ;;  %v1845_v51 = vrot.slane %v1646_v6, 1  ;;  %v2441_v50 = vrot.slane %v2242_v16, 2  ;;  %v1442_v43 = vmul.f32 %v7194_v23, %v1144_v20  ;;  %v1647_v31 = vmul.f32 %v7204_v27, %v1144_v20  ;;  %v1149_v63 = vpop.f32.mrf.mxu0  ;;  %v1349_v42 = vpop.f32.mrf.mxu1 }
  0xf7   : > { %13735 = vst [vmem:[#allocation87_spill] sm:$0xff] %v7607_v18  ;;  %13736 = vst [vmem:[#allocation88_spill] sm:$0xff] %v7611_v0  ;;  %v2243_v41 = vmul.f32 %v7206_v28, %v1144_v20  ;;  %v1443_v19 = vmul.f32 %v7208_v29, %v1146_v53  ;;  %v7618_v32 = vmul.f32 %v7215_v38, %v1146_v53  ;;  %v6625_v20 = vld [vmem:[%s13032_s6] sm:$0xff]  }
  0xf8   : > { %v7621_v58 = vmul.f32 %v7217_v39, %v1146_v53  ;;  %v1538_v49 = vadd.f32 %v1442_v43, %v7202_v26  ;;  %v1843_v55 = vrot.slane %v1647_v31, 1  ;;  %v1150_v7 = vadd.f32 %v1149_v63, %v7253_v14  ;;  %v1151_v6 = vpop.f32.mrf.mxu0  ;;  %v1351_v16 = vpop.f32.mrf.mxu1  ;;  %6471 = vmatprep.subr.bf16.mxu1 %v6625_v20 }
  0xf9   : > { %v7625_v18 = vadd.f32 %v1349_v42, %v833_v8  ;;  %v2439_v57 = vrot.slane %v2243_v41, 2  ;;  %v1539_v48 = vadd.f32 %v1443_v19, %v7213_v33  ;;  %v1846_v47 = vrot.slane %v7618_v32, 1  ;;  %6472 = vmatpush3.bf16.msra.mxu1 %v6625_v20 }
  0xfa   : > { %v2442_v53 = vrot.slane %v7621_v58, 2  ;;  %v1844_v43 = vsel %vm1841_vm0, %v1842_v59, %v1843_v55  ;;  %v1444_v31 = vmul.f32 %v7194_v23, %v1150_v7  ;;  %v1649_v14 = vmul.f32 %v7204_v27, %v1150_v7  ;;  %v1153_v8 = vpop.f32.mrf.mxu0  ;;  %v7639_v63 = vpop.f32.mrf.mxu1 }
  0xfb   : > { %13737 = vst [vmem:[#allocation89_spill] sm:$0xff] %v7625_v18  ;;  %v7637_v42 = vmul.f32 %v7206_v28, %v1150_v7  ;;  %v2132_v41 = vadd.f32 %v1844_v43, %v1536_v54  ;;  %v2440_v19 = vsel %vm2437_vm1, %v2438_v4, %v2439_v57  ;;  %v1847_v32 = vsel %vm1841_vm0, %v1845_v51, %v1846_v47 }
  0xfc   : > { %v2443_v58 = vsel %vm2437_vm1, %v2441_v50, %v2442_v53  ;;  %v2133_v59 = vadd.f32 %v1847_v32, %v1537_v1  ;;  %v1540_v18 = vadd.f32 %v1444_v31, %v7202_v26  ;;  %v1848_v46 = vrot.slane %v1649_v14, 1  ;;  %v1155_v7 = vpop.f32.mrf.mxu0  ;;  %v7646_v37 = vpop.f32.mrf.mxu1 }
  0xfd   : > { %v13048_v40 = vrot.slane %v7637_v42, 2  ;;  %v2728_v21 = vadd.f32 %v2440_v19, %v2132_v41  ;;  %v1152_v0 = vadd.f32 %v1151_v6, %v7257_v15  ;;  %v1154_v54 = vadd.f32 %v1153_v8, %v7281_v12 }
  0xfe   : > { %v1156_v4 = vadd.f32 %v1155_v7, %v7285_v17  ;;  %v7651_v51 = vadd.f32 %v2443_v58, %v2133_v59  ;;  %v1849_v50 = vsel %vm1841_vm0, %v1843_v55, %v1848_v46  ;;  %v1159_v20 = vpop.f32.mrf.mxu0  ;;  %v7657_v43 = vpop.f32.mrf.mxu1  ;;  %v7660_v31 = vadd.f32 %v1351_v16, %v7576_v56 }
  0xff   : > { %v2445_v1 = vsel %vm2437_vm1, %v2439_v57, %v13048_v40  ;;  %v2134_v14 = vadd.f32 %v1849_v50, %v1538_v49  ;;  %v1445_v15 = vmul.f32 %v7208_v29, %v1152_v0  ;;  %v1650_v12 = vmul.f32 %v7215_v38, %v1152_v0 }
 0x100   : > { %13738 = vst [vmem:[#allocation90_spill] sm:$0xff] %v7651_v51  ;;  %13739 = vst [vmem:[#allocation91_spill] sm:$0xff] %v7660_v31  ;;  %v7665_v17 = vmul.f32 %v7217_v39, %v1152_v0  ;;  %v1446_v55 = vmul.f32 %v7194_v23, %v1154_v54  ;;  %v7669_v6 = vmul.f32 %v7204_v27, %v1154_v54  ;;  %v1161_v56 = vpop.f32.mrf.mxu0  ;;  %v7675_v16 = vpop.f32.mrf.mxu1 }
 0x101   : > { %v7672_v57 = vmul.f32 %v7206_v28, %v1154_v54  ;;  %v2837_v8 = vmul.f32 %v7221_v44, %v1154_v54  ;;  %v2730_v49 = vadd.f32 %v2445_v1, %v2134_v14  ;;  %v7678_v41 = vadd.f32 %v1445_v15, %v7213_v33 }
 0x102   : > { %v1850_v19 = vrot.slane %v1650_v12, 1  ;;  %v13050_v0 = vrot.slane %v7665_v17, 2  ;;  %v1542_v32 = vadd.f32 %v1446_v55, %v7202_v26  ;;  %v1852_v58 = vrot.slane %v7669_v6, 1  ;;  %v1163_v50 = vpop.f32.mrf.mxu0  ;;  %v7686_v40 = vpop.f32.mrf.mxu1 }
 0x103   : > { %v7684_v7 = vadd.f32 %v2837_v8, %v2728_v21  ;;  %13741 = vst [vmem:[#allocation93_spill] sm:$0xff] %v7686_v40  ;;  %v7693_v14 = vmul.f32 %v7231_v60, %v1154_v54  ;;  %v7696_v15 = vmul.f32 %v7233_v62, %v1154_v54  ;;  %v1447_v21 = vmul.f32 %v7208_v29, %v1156_v4 }
 0x104   : > { %v1851_v31 = vsel %vm1841_vm0, %v1846_v47, %v1850_v19  ;;  %v2447_v1 = vsel %vm2437_vm1, %v2442_v53, %v13050_v0  ;;  %v1853_v55 = vsel %vm1841_vm0, %v1848_v46, %v1852_v58  ;;  %v1652_v6 = vmul.f32 %v7215_v38, %v1156_v4  ;;  %v7701_v8 = vpop.f32.mrf.mxu0  ;;  %v7703_v47 = vpop.f32.mrf.mxu1 }
 0x105   : > { %13740 = vst [vmem:[#allocation92_spill] sm:$0xff] %v7684_v7  ;;  %13742 = vst [vmem:[#allocation94_spill] sm:$0xff] %v7693_v14  ;;  %v2135_v12 = vadd.f32 %v1851_v31, %v1539_v48  ;;  %v7708_v0 = vmul.f32 %v7217_v39, %v1156_v4  ;;  %v7711_v54 = vmul.f32 %v7235_v2, %v1156_v4 }
 0x106   : > { %13743 = vst [vmem:[#allocation95_spill] sm:$0xff] %v7696_v15  ;;  %13744 = vst [vmem:[#allocation96_spill] sm:$0xff] %v7703_v47  ;;  %v1543_v46 = vadd.f32 %v1447_v21, %v7213_v33  ;;  %v1854_v31 = vrot.slane %v1652_v6, 1  ;;  %v7717_v7 = vmul.f32 %v7237_v3, %v1156_v4  ;;  %v7719_v51 = vpop.f32.mrf.mxu0  ;;  %v7721_v47 = vpop.f32.mrf.mxu1  ;;  %v7725_v59 = vmul.f32 %v7247_v9, %v1156_v4 }
 0x107   : > { %13745 = vst [vmem:[#allocation97_spill] sm:$0xff] %v7711_v54  ;;  %v7713_v48 = vadd.f32 %v2447_v1, %v2135_v12  ;;  %13748 = vst [vmem:[#allocation100_spill] sm:$0xff] %v7721_v47  ;;  %v1160_v15 = vadd.f32 %v1159_v20, %v7289_v30  ;;  %v1162_v1 = vadd.f32 %v1161_v56, %v7295_v13 }
 0x108   : > { %13747 = vst [vmem:[#allocation99_spill] sm:$0xff] %v7717_v7  ;;  %13749 = vst [vmem:[#allocation101_spill] sm:$0xff] %v7725_v59  ;;  %v7730_v12 = vsel %vm1841_vm0, %v1850_v19, %v1854_v31  ;;  %v1164_v6 = vadd.f32 %v1163_v50, %v7299_v34  ;;  %v2136_v14 = vadd.f32 %v1853_v55, %v1540_v18  ;;  %v7736_v54 = vpop.f32.mrf.mxu1 }
 0x109   : > { %13746 = vst [vmem:[#allocation98_spill] sm:$0xff] %v7713_v48  ;;  %v7734_v48 = vpop.f32.mrf.mxu0  ;;  %13750 = vst [vmem:[#allocation102_spill] sm:$0xff] %v7736_v54  ;;  %v1448_v4 = vmul.f32 %v7194_v23, %v1160_v15  ;;  %v1653_v30 = vmul.f32 %v7204_v27, %v1160_v15  ;;  %v2249_v13 = vmul.f32 %v7206_v28, %v1160_v15 }
 0x10a   : > { %v2839_v20 = vmul.f32 %v7221_v44, %v1160_v15  ;;  %v7744_v56 = vmul.f32 %v7231_v60, %v1160_v15  ;;  %v7747_v34 = vmul.f32 %v7233_v62, %v1160_v15  ;;  %v1449_v18 = vmul.f32 %v7208_v29, %v1162_v1  ;;  %v7752_v50 = vpop.f32.mrf.mxu1 }
 0x10b   : > { %v7750_v19 = vpop.f32.mrf.mxu0  ;;  %13753 = vst [vmem:[#allocation105_spill] sm:$0xff] %v7752_v50  ;;  %v1544_v55 = vadd.f32 %v1448_v4, %v7202_v26  ;;  %v1856_v53 = vrot.slane %v1653_v30, 1  ;;  %v2452_v21 = vrot.slane %v2249_v13, 2  ;;  %v7756_v59 = vmul.f32 %v7215_v38, %v1162_v1 }
 0x10c   : > { %13751 = vst [vmem:[#allocation103_spill] sm:$0xff] %v7744_v56  ;;  %13752 = vst [vmem:[#allocation104_spill] sm:$0xff] %v7747_v34  ;;  %v7758_v7 = vadd.f32 %v2839_v20, %v2730_v49  ;;  %v7763_v47 = vadd.f32 %v1449_v18, %v7213_v33  ;;  %v7767_v25 = vpop.f32.mrf.mxu1  ;;  %v13758_v30 = vrot.slane %v7672_v57, 2  ;;  %v7775_v20 = vmul.f32 %v7217_v39, %v1162_v1  ;;  %v7798_v56 = vpop.permute.xlu0 %706 }
 0x10d   : > { %13754 = vst [vmem:[#allocation106_spill] sm:$0xff] %v7756_v59  ;;  %v7765_v40 = vpop.f32.mrf.mxu0  ;;  %13757 = vst [vmem:[#allocation109_spill] sm:$0xff] %v7767_v25  ;;  %v1857_v4 = vsel %vm1841_vm0, %v1852_v58, %v1856_v53  ;;  %v13061_v49 = vrot.slane %v7756_v59, 1  ;;  %v7778_v15 = vmul.f32 %v7235_v2, %v1162_v1  ;;  %v7781_v18 = vmul.f32 %v7237_v3, %v1162_v1 }
 0x10e   : > { %13755 = vst [vmem:[#allocation107_spill] sm:$0xff] %v7758_v7  ;;  %13756 = vst [vmem:[#allocation108_spill] sm:$0xff] %v7763_v47  ;;  %v2453_v13 = vsel %vm2437_vm1, %v13758_v30, %v2452_v21  ;;  %v2138_v54 = vadd.f32 %v1857_v4, %v1542_v32  ;;  %v7784_v47 = vmul.f32 %v7247_v9, %v1162_v1  ;;  %v7788_v34 = vpop.f32.mrf.mxu1  ;;  %v13065_v7 = vrot.slane %v7775_v20, 2 }
 0x10f   : > { %13759 = vst [vmem:[#allocation110_spill] sm:$0xff] %v7775_v20  ;;  %13760 = vst [vmem:[#allocation111_spill] sm:$0xff] %v7778_v15  ;;  %v7786_v58 = vpop.f32.mrf.mxu0  ;;  %v1859_v30 = vsel %vm1841_vm0, %v1854_v31, %v13061_v49  ;;  %v1450_v32 = vmul.f32 %v7194_v23, %v1164_v6  ;;  %v7796_v4 = vmul.f32 %v7204_v27, %v1164_v6  ;;  %v13766_v31 = vrot.slane %v7708_v0, 2 }
 0x110   : > { %13761 = vst [vmem:[#allocation112_spill] sm:$0xff] %v7781_v18  ;;  %13762 = vst [vmem:[#allocation113_spill] sm:$0xff] %v7784_v47  ;;  %v7800_v15 = vadd.f32 %v2453_v13, %v2138_v54  ;;  %v2139_v1 = vadd.f32 %v1859_v30, %v1543_v46  ;;  %v7804_v59 = vpop.f32.mrf.mxu1  ;;  %v7816_v46 = vmul.f32 %v7206_v28, %v1164_v6  ;;  %v13770_v30 = vrot.slane %v7672_v57, 2 }
 0x111   : > { %13763 = vst [vmem:[#allocation114_spill] sm:$0xff] %v7788_v34  ;;  %13764 = vst [vmem:[#allocation115_spill] sm:$0xff] %v7796_v4  ;;  %v1181_v50 = vpop.f32.mrf.mxu0  ;;  %v2455_v49 = vsel %vm2437_vm1, %v13766_v31, %v13065_v7  ;;  %v7812_v27 = vadd.f32 %v1450_v32, %v7202_v26  ;;  %v13070_v54 = vrot.slane %v7796_v4, 1  ;;  %v13771_v34 = vrot.slane %v7637_v42, 2  ;;  %v712_v42 = vpop.permute.xlu1 %711 }
 0x112   : > { %13765 = vst [vmem:[#allocation116_spill] sm:$0xff] %v7800_v15  ;;  %13768 = vst [vmem:[#allocation118_spill] sm:$0xff] %v7816_v46  ;;  %v7818_v13 = vadd.f32 %v2455_v49, %v2139_v1  ;;  %v2841_v20 = vmul.f32 %v7221_v44, %v1164_v6  ;;  %v7827_v31 = vmul.f32 %v7231_v60, %v1164_v6  ;;  %v7829_v7 = vpop.f32.mrf.mxu1  ;;  %v13069_v49 = vrot.slane %v7816_v46, 2 }
 0x113   : > { %13767 = vst [vmem:[#allocation117_spill] sm:$0xff] %v7812_v27  ;;  %v2449_v25 = vsel %vm2437_vm1, %v13771_v34, %v13770_v30  ;;  %v1183_v32 = vpop.f32.mrf.mxu0  ;;  %v1861_v27 = vsel %vm1841_vm0, %v1856_v53, %v13070_v54  ;;  %v7836_v57 = vmul.f32 %v7233_v62, %v1164_v6  ;;  %v2137_v15 = vadd.f32 %v7730_v12, %v7678_v41 }
 0x114   : > { %13769 = vst [vmem:[#allocation119_spill] sm:$0xff] %v7818_v13  ;;  %13772 = vst [vmem:[#allocation120_spill] sm:$0xff] %v7827_v31  ;;  %v2732_v1 = vadd.f32 %v2449_v25, %v2136_v14  ;;  %v7838_v34 = vadd.f32 %v1861_v27, %v1544_v55  ;;  %v1166_v13 = vadd.f32 %v7701_v8, %v7303_v52  ;;  %v7845_v47 = vpop.f32.mrf.mxu1  ;;  %v13777_v53 = vrot.slane %v7708_v0, 2  ;;  %v717_v8 = vpop.permute.xlu0 %716 }
 0x115   : > { %13773 = vst [vmem:[#allocation121_spill] sm:$0xff] %v7836_v57  ;;  %v1185_v4 = vpop.f32.mrf.mxu0  ;;  %v7850_v25 = vsel %vm2437_vm1, %v2452_v21, %v13069_v49  ;;  %v13778_v6 = vrot.slane %v7665_v17, 2  ;;  %v7887_v54 = vadd.f32 %v7734_v48, %v7311_v11  ;;  %v7903_v11 = vadd.f32 %v7639_v63, %v7579_v5 }
 0x116   : > { %13774 = vst [vmem:[#allocation122_spill] sm:$0xff] %v7838_v34  ;;  %13775 = vst [vmem:[#allocation123_spill] sm:$0xff] %v7850_v25  ;;  %v7852_v14 = vadd.f32 %v2841_v20, %v2732_v1  ;;  %v1451_v41 = vmul.f32 %v7208_v29, %v1166_v13  ;;  %v7862_v12 = vmul.f32 %v7215_v38, %v1166_v13  ;;  %v7867_v1 = vpop.f32.mrf.mxu1  ;;  %v13818_v34 = vld [vmem:[#allocation24_spill] sm:$0xff] }
 0x117   : > { %v2451_v52 = vsel %vm2437_vm1, %v13778_v6, %v13777_v53  ;;  %v7865_v55 = vmul.f32 %v7217_v39, %v1166_v13  ;;  %v1189_v20 = vpop.f32.mrf.mxu0  ;;  %v2842_v49 = vmul.f32 %v7235_v2, %v1166_v13  ;;  %v7871_v0 = vmul.f32 %v7237_v3, %v1166_v13  ;;  %13785 = vst [vmem:[#allocation131_spill] sm:$0xff] %v7887_v54 }
 0x118   : > { %13776 = vst [vmem:[#allocation124_spill] sm:$0xff] %v7852_v14  ;;  %13779 = vst [vmem:[#allocation125_spill] sm:$0xff] %v7862_v12  ;;  %v2733_v21 = vadd.f32 %v2451_v52, %v2137_v15  ;;  %v7874_v17 = vmul.f32 %v7247_v9, %v1166_v13  ;;  %v7878_v53 = vadd.f32 %v7719_v51, %v7307_v35  ;;  %v1391_v30 = vpop.f32.mrf.mxu1  ;;  %v13788_v15 = vld [vmem:[#allocation19_spill] sm:$0xff]  ;;  %v727_v63 = vpop.permute.xlu0 %726  ;;  %v13801_v13 = vld [vmem:[#allocation21_spill] sm:$0xff] }
 0x119   : > { %13780 = vst [vmem:[#allocation126_spill] sm:$0xff] %v7865_v55  ;;  %13781 = vst [vmem:[#allocation127_spill] sm:$0xff] %v7871_v0  ;;  %v7881_v6 = vadd.f32 %v1451_v41, %v7213_v33  ;;  %v1191_v27 = vpop.f32.mrf.mxu0  ;;  %v7895_v51 = vadd.f32 %v7750_v19, %v7315_v36  ;;  %v722_v41 = vpop.permute.xlu1 %721  ;;  %v7899_v52 = vadd.f32 %v7765_v40, %v13788_v15  ;;  %v13798_v15 = vld [vmem:[#allocation88_spill] sm:$0xff]  ;;  %v13822_v12 = vld [vmem:[#allocation25_spill] sm:$0xff] }
 0x11a   : > { %13782 = vst [vmem:[#allocation128_spill] sm:$0xff] %v7874_v17  ;;  %13783 = vst [vmem:[#allocation129_spill] sm:$0xff] %v7878_v53  ;;  %v7889_v46 = vadd.f32 %v2842_v49, %v2733_v21  ;;  %v7907_v48 = vadd.f32 %v7646_v37, %v7588_v45  ;;  %v13792_v49 = vld [vmem:[#allocation20_spill] sm:$0xff]  ;;  %v1393_v36 = vpop.f32.mrf.mxu1  ;;  %v7915_v19 = vadd.f32 %v7657_v43, %v7591_v10  ;;  %v13797_v37 = vld [vmem:[#allocation85_spill] sm:$0xff] }
 0x11b   : > { %13784 = vst [vmem:[#allocation130_spill] sm:$0xff] %v7881_v6  ;;  %13787 = vst [vmem:[#allocation133_spill] sm:$0xff] %v7895_v51  ;;  %v7911_v21 = vadd.f32 %v7786_v58, %v13792_v49  ;;  %v1193_v35 = vpop.f32.mrf.mxu0  ;;  %v7919_v40 = vadd.f32 %v7675_v16, %v7594_v61  ;;  %v7922_v5 = vadd.f32 %v1181_v50, %v7327_v24  ;;  %v13799_v58 = vld [vmem:[#allocation93_spill] sm:$0xff]  ;;  %v13803_v10 = vld [vmem:[#allocation2_spill] sm:$0xff] }
 0x11c   : > { %13786 = vst [vmem:[#allocation132_spill] sm:$0xff] %v7889_v46  ;;  %13789 = vst [vmem:[#allocation19_spill] sm:$0xff] %v7899_v52  ;;  %v840_v45 = vmul.f32 %v13797_v37, %v7192_v22  ;;  %v7928_v49 = vadd.f32 %v13799_v58, %v13798_v15  ;;  %v841_v43 = vmul.f32 %v7798_v56, %v13803_v10  ;;  %v1395_v24 = vpop.f32.mrf.mxu1  ;;  %v13804_v50 = vld [vmem:[#allocation96_spill] sm:$0xff]  ;;  %v13806_v37 = vld [vmem:[#allocation22_spill] sm:$0xff] }
 0x11d   : > { %13790 = vst [vmem:[#allocation134_spill] sm:$0xff] %v7903_v11  ;;  %13791 = vst [vmem:[#allocation135_spill] sm:$0xff] %v7907_v48  ;;  %v7931_v48 = vadd.f32 %v1183_v32, %v13801_v13  ;;  %v842_v61 = vmul.f32 %v7798_v56, %v7192_v22  ;;  %v1195_v16 = vpop.f32.mrf.mxu0  ;;  %v843_v15 = vmul.f32 %v712_v42, %v13803_v10  ;;  %v13808_v32 = vld [vmem:[#allocation100_spill] sm:$0xff]  ;;  %v13812_v6 = vld [vmem:[#allocation23_spill] sm:$0xff] }
 0x11e   : > { %13793 = vst [vmem:[#allocation20_spill] sm:$0xff] %v7911_v21  ;;  %13794 = vst [vmem:[#allocation136_spill] sm:$0xff] %v7915_v19  ;;  %v7941_v19 = vadd.f32 %v1185_v4, %v13806_v37  ;;  %v844_v58 = vmul.f32 %v712_v42, %v7192_v22  ;;  %v7946_v13 = vadd.f32 %v13808_v32, %v841_v43  ;;  %v13816_v4 = vld [vmem:[#allocation109_spill] sm:$0xff]  ;;  %v732_v32 = vpop.permute.xlu1 %731  ;;  %v13850_v17 = vld [vmem:[#allocation28_spill] sm:$0xff] }
 0x11f   : > { %13795 = vst [vmem:[#allocation137_spill] sm:$0xff] %v7919_v40  ;;  %13796 = vst [vmem:[#allocation138_spill] sm:$0xff] %v7922_v5  ;;  %v7938_v40 = vadd.f32 %v13804_v50, %v840_v45  ;;  %v7952_v56 = vadd.f32 %v1189_v20, %v13812_v6  ;;  %v845_v25 = vmul.f32 %v717_v8, %v13803_v10  ;;  %v1399_v45 = vpop.f32.mrf.mxu1  ;;  %v13814_v50 = vld [vmem:[#allocation105_spill] sm:$0xff] }
 0x120   : > { %13800 = vst [vmem:[#allocation85_spill] sm:$0xff] %v7928_v49  ;;  %13802 = vst [vmem:[#allocation88_spill] sm:$0xff] %v7931_v48  ;;  %v13810_v49 = vld [vmem:[#allocation102_spill] sm:$0xff]  ;;  %v7959_v37 = vadd.f32 %v13816_v4, %v844_v58  ;;  %v846_v42 = vmul.f32 %v717_v8, %v7192_v22  ;;  %v7963_v43 = vadd.f32 %v1191_v27, %v13818_v34 }
 0x121   : > { %13805 = vst [vmem:[#allocation93_spill] sm:$0xff] %v7938_v40  ;;  %13807 = vst [vmem:[#allocation21_spill] sm:$0xff] %v7941_v19  ;;  %v7949_v11 = vadd.f32 %v13810_v49, %v842_v61  ;;  %v7956_v40 = vadd.f32 %v13814_v50, %v843_v15  ;;  %v1199_v49 = vpop.f32.mrf.mxu0  ;;  %v13820_v61 = vld [vmem:[#allocation114_spill] sm:$0xff]  ;;  %v847_v20 = vmul.f32 %v722_v41, %v13803_v10  ;;  %v7973_v50 = vpop.f32.mrf.mxu1 }
 0x122   : > { %13809 = vst [vmem:[#allocation2_spill] sm:$0xff] %v7946_v13  ;;  %13813 = vst [vmem:[#allocation22_spill] sm:$0xff] %v7952_v56  ;;  %v7966_v55 = vadd.f32 %v13820_v61, %v845_v25  ;;  %v848_v6 = vmul.f32 %v722_v41, %v7192_v22  ;;  %v7971_v15 = vadd.f32 %v1193_v35, %v13822_v12  ;;  %v13825_v8 = vld [vmem:[#allocation26_spill] sm:$0xff]  ;;  %v737_v61 = vpop.permute.xlu0 %736 }
 0x123   : > { %13811 = vst [vmem:[#allocation96_spill] sm:$0xff] %v7949_v11  ;;  %13815 = vst [vmem:[#allocation100_spill] sm:$0xff] %v7956_v40  ;;  %v7976_v58 = vadd.f32 %v7804_v59, %v846_v42  ;;  %v849_v34 = vmul.f32 %v727_v63, %v13803_v10  ;;  %v850_v27 = vmul.f32 %v727_v63, %v7192_v22  ;;  %v7991_v59 = vpop.f32.mrf.mxu1 }
 0x124   : > { %13817 = vst [vmem:[#allocation102_spill] sm:$0xff] %v7959_v37  ;;  %13819 = vst [vmem:[#allocation23_spill] sm:$0xff] %v7963_v43  ;;  %v7981_v4 = vadd.f32 %v1195_v16, %v13825_v8  ;;  %v7984_v25 = vadd.f32 %v7829_v7, %v847_v20  ;;  %v7987_v41 = vadd.f32 %v7845_v47, %v848_v6  ;;  %v13831_v16 = vld [vmem:[#allocation27_spill] sm:$0xff]  ;;  %v1201_v20 = vpop.f32.mrf.mxu0 }
 0x125   : > { %13821 = vst [vmem:[#allocation105_spill] sm:$0xff] %v7966_v55  ;;  %13823 = vst [vmem:[#allocation109_spill] sm:$0xff] %v7971_v15  ;;  %v851_v12 = vmul.f32 %v732_v32, %v13803_v10  ;;  %v852_v35 = vmul.f32 %v732_v32, %v7192_v22  ;;  %v7994_v42 = vadd.f32 %v7867_v1, %v849_v34  ;;  %v8007_v15 = vpop.f32.mrf.mxu1 }
 0x126   : > { %13824 = vst [vmem:[#allocation24_spill] sm:$0xff] %v7976_v58  ;;  %13826 = vst [vmem:[#allocation114_spill] sm:$0xff] %v7981_v4  ;;  %v7996_v63 = vadd.f32 %v1391_v30, %v850_v27  ;;  %v7999_v8 = vadd.f32 %v1199_v49, %v13831_v16  ;;  %v853_v7 = vmul.f32 %v737_v61, %v13803_v10  ;;  %v13834_v30 = vld [vmem:[#allocation5_spill] sm:$0xff]  ;;  %v13840_v16 = vld [vmem:[#allocation14_spill] sm:$0xff]  ;;  %v8044_v19 = vpop.f32.mrf.mxu0 }
 0x127   : > { %13827 = vst [vmem:[#allocation25_spill] sm:$0xff] %v7984_v25  ;;  %13828 = vst [vmem:[#allocation26_spill] sm:$0xff] %v7987_v41  ;;  %v1394_v47 = vadd.f32 %v1393_v36, %v851_v12  ;;  %v8002_v6 = vadd.f32 %v1395_v24, %v852_v35  ;;  %v854_v4 = vmul.f32 %v737_v61, %v7192_v22  ;;  %v13837_v12 = vld [vmem:[#allocation13_spill] sm:$0xff]  ;;  %v8034_v61 = vpop.f32.mrf.mxu1 }
 0x128   : > { %13829 = vst [vmem:[#allocation139_spill] sm:$0xff] %v7994_v42  ;;  %13830 = vst [vmem:[#allocation140_spill] sm:$0xff] %v7996_v63  ;;  %v1532_v32 = vmul.f32 %v7194_v23, %v7946_v13  ;;  %v1400_v1 = vadd.f32 %v1399_v45, %v853_v7  ;;  %v8011_v34 = vmul.f32 %v13834_v30, %v7946_v13 }
 0x129   : > { %13832 = vst [vmem:[#allocation27_spill] sm:$0xff] %v7999_v8  ;;  %13833 = vst [vmem:[#allocation141_spill] sm:$0xff] %v8002_v6  ;;  %v8015_v49 = vmul.f32 %v13834_v30, %v7956_v40  ;;  %v8019_v36 = vmul.f32 %v7206_v28, %v7946_v13  ;;  %v8022_v24 = vmul.f32 %v7231_v60, %v1394_v47  ;;  %v13842_v13 = vld [vmem:[#allocation15_spill] sm:$0xff]  ;;  %v8053_v5 = vpop.f32.mrf.mxu1 }
 0x12a   : > { %13835 = vst [vmem:[#allocation5_spill] sm:$0xff] %v8011_v34  ;;  %v8026_v27 = vmul.f32 %v7237_v3, %v8002_v6  ;;  %v8029_v45 = vmul.f32 %v7233_v62, %v1394_v47  ;;  %v8032_v35 = vmul.f32 %v13837_v12, %v1394_v47  ;;  %13839 = vst [vmem:[#allocation144_spill] sm:$0xff] %v8034_v61  ;;  %v13846_v21 = vrot.slane %v8011_v34, 1 }
 0x12b   : > { %13836 = vst [vmem:[#allocation142_spill] sm:$0xff] %v8019_v36  ;;  %v8037_v7 = vmul.f32 %v13840_v16, %v1394_v47  ;;  %v8040_v8 = vmul.f32 %v13842_v13, %v1394_v47  ;;  %v1628_v43 = vadd.f32 %v1532_v32, %v7202_v26  ;;  %v13098_v46 = vrot.slane %v8015_v49, 1  ;;  %13844 = vst [vmem:[#allocation147_spill] sm:$0xff] %v8053_v5 }
 0x12c   : > { %13838 = vst [vmem:[#allocation143_spill] sm:$0xff] %v8032_v35  ;;  %v8050_v35 = vmul.f32 %v7206_v28, %v7956_v40  ;;  %v2929_v56 = vmul.f32 %v7221_v44, %v7984_v25  ;;  %v8061_v48 = vmul.f32 %v7231_v60, %v7984_v25  ;;  %v8071_v47 = vmul.f32 %v7231_v60, %v7994_v42 }
 0x12d   : > { %13841 = vst [vmem:[#allocation145_spill] sm:$0xff] %v8037_v7  ;;  %13843 = vst [vmem:[#allocation146_spill] sm:$0xff] %v8040_v8  ;;  %v2029_v52 = vsel %vm1841_vm0, %v13846_v21, %v13098_v46  ;;  %v8075_v32 = vmul.f32 %v7233_v62, %v7984_v25  ;;  %v1413_v8 = vpop.f32.mrf.mxu1  ;;  %v8080_v54 = vmul.f32 %v7233_v62, %v7994_v42  ;;  %v8083_v46 = vpop.f32.mrf.mxu0  ;;  %v13848_v34 = vrot.slane %v8019_v36, 2 }
 0x12e   : > { %13845 = vst [vmem:[#allocation148_spill] sm:$0xff] %v8061_v48  ;;  %v13111_v14 = vrot.slane %v8050_v35, 2  ;;  %v2224_v5 = vadd.f32 %v2029_v52, %v1628_v43  ;;  %v4324_v21 = vmul.f32 %v13837_v12, %v1400_v1  ;;  %v13114_v25 = vrot.slane %v8071_v47, 1 }
 0x12f   : > { %13847 = vst [vmem:[#allocation149_spill] sm:$0xff] %v8075_v32  ;;  %v8093_v43 = vmul.f32 %v13840_v16, %v1400_v1  ;;  %v1414_v8 = vpop.f32.mrf.mxu1  ;;  %v13113_v62 = vrot.slane %v8080_v54, 2  ;;  %v8097_v53 = vmul.f32 %v13842_v13, %v1400_v1  ;;  %v8100_v57 = vadd.f32 %v1201_v20, %v13850_v17 }
 0x130   : > { %v2625_v60 = vsel %vm2437_vm1, %v13848_v34, %v13111_v14  ;;  %v13852_v34 = vrot.slane %v8061_v48, 1  ;;  %v1402_v36 = vadd.f32 %v7973_v50, %v854_v4  ;;  %v13853_v1 = vrot.slane %v8075_v32, 2 }
 0x131   : > { %v2820_v51 = vadd.f32 %v2625_v60, %v2224_v5  ;;  %13849 = vst [vmem:[#allocation150_spill] sm:$0xff] %v8097_v53  ;;  %13851 = vst [vmem:[#allocation28_spill] sm:$0xff] %v8100_v57  ;;  %v13115_v52 = vrot.slane %v8093_v43, 1  ;;  %v1533_v60 = vmul.f32 %v7208_v29, %v7949_v11  ;;  %v8119_v8 = vmul.f32 %v7215_v38, %v7949_v11 }
 0x132   : > { %v3425_v14 = vsel %vm1841_vm0, %v13852_v34, %v13114_v25  ;;  %v4020_v17 = vsel %vm2437_vm1, %v13853_v1, %v13113_v62  ;;  %v8121_v34 = vpop.f32.mrf.mxu0  ;;  %v13856_v50 = vrot.slane %v8037_v7, 1  ;;  %v8133_v4 = vmul.f32 %v7215_v38, %v7959_v37  ;;  %v13864_v62 = vld [vmem:[#allocation16_spill] sm:$0xff] }
 0x133   : > { %v3025_v5 = vadd.f32 %v2929_v56, %v2820_v51  ;;  %13854 = vst [vmem:[#allocation151_spill] sm:$0xff] %v8119_v8  ;;  %13855 = vst [vmem:[#allocation152_spill] sm:$0xff] %v8121_v34  ;;  %v1629_v56 = vadd.f32 %v1533_v60, %v7213_v33  ;;  %v8137_v1 = vmul.f32 %v7217_v39, %v7949_v11  ;;  %v13863_v48 = vrot.slane %v8119_v8, 1  ;;  %v13867_v8 = vld [vmem:[#allocation17_spill] sm:$0xff] }
 0x134   : > { %v8128_v51 = vsel %vm1841_vm0, %v13856_v50, %v13115_v52  ;;  %v8142_v25 = vmul.f32 %v7217_v39, %v7959_v37  ;;  %v2930_v50 = vmul.f32 %v7235_v2, %v7987_v41  ;;  %v8159_v7 = vmul.f32 %v7247_v9, %v7987_v41  ;;  %v8165_v52 = vpop.f32.mrf.mxu0 }
 0x135   : > { %13857 = vst [vmem:[#allocation153_spill] sm:$0xff] %v8128_v51  ;;  %13858 = vst [vmem:[#allocation154_spill] sm:$0xff] %v8137_v1  ;;  %v3620_v20 = vadd.f32 %v3425_v14, %v3025_v5  ;;  %v8150_v51 = vmul.f32 %v7237_v3, %v7987_v41  ;;  %v8154_v14 = vmul.f32 %v7237_v3, %v7996_v63  ;;  %v13862_v32 = vrot.slane %v8133_v4, 1  ;;  %v742_v41 = vpop.permute.xlu1 %741 }
 0x136   : > { %13860 = vst [vmem:[#allocation156_spill] sm:$0xff] %v8159_v7  ;;  %v8163_v60 = vmul.f32 %v7247_v9, %v7996_v63  ;;  %13861 = vst [vmem:[#allocation157_spill] sm:$0xff] %v8165_v52  ;;  %v4325_v57 = vmul.f32 %v13864_v62, %v1402_v36  ;;  %v13865_v31 = vrot.slane %v8142_v25, 2  ;;  %v13866_v18 = vrot.slane %v8137_v1, 2 }
 0x137   : > { %13859 = vst [vmem:[#allocation155_spill] sm:$0xff] %v8150_v51  ;;  %v4215_v5 = vadd.f32 %v4020_v17, %v3620_v20  ;;  %v2031_v11 = vsel %vm1841_vm0, %v13863_v48, %v13862_v32  ;;  %v13134_v17 = vrot.slane %v8150_v51, 1  ;;  %v13135_v20 = vrot.slane %v8154_v14, 1 }
 0x138   : > { %v2225_v0 = vadd.f32 %v2031_v11, %v1629_v56  ;;  %v2627_v52 = vsel %vm2437_vm1, %v13866_v18, %v13865_v31  ;;  %v13138_v32 = vrot.slane %v8163_v60, 2  ;;  %v8192_v11 = vmul.f32 %v13867_v8, %v1402_v36  ;;  %v13871_v31 = vld [vmem:[#allocation29_spill] sm:$0xff] }
 0x139   : > { %v4420_v3 = vadd.f32 %v4324_v21, %v4215_v5  ;;  %v3427_v48 = vsel %vm1841_vm0, %v13134_v17, %v13135_v20  ;;  %v8189_v21 = vmul.f32 %v13867_v8, %v8002_v6  ;;  %v13869_v5 = vld [vmem:[#allocation18_spill] sm:$0xff]  ;;  %v8199_v61 = vadd.f32 %v8044_v19, %v13871_v31  ;;  %v8202_v17 = vpop.f32.mrf.mxu0 }
 0x13a   : > { %v2821_v56 = vadd.f32 %v2627_v52, %v2225_v0  ;;  %v8195_v18 = vmul.f32 %v13869_v5, %v1402_v36  ;;  %v855_v51 = vmul.f32 %v742_v41, %v13803_v10  ;;  %v13873_v20 = vrot.slane %v8159_v7, 2 }
 0x13b   : > { %13868 = vst [vmem:[#allocation158_spill] sm:$0xff] %v8189_v21  ;;  %13872 = vst [vmem:[#allocation29_spill] sm:$0xff] %v8199_v61  ;;  %v13141_v34 = vrot.slane %v8189_v21, 1  ;;  %v13142_v0 = vrot.slane %v8192_v11, 1  ;;  %v856_v36 = vmul.f32 %v742_v41, %v7192_v22  ;;  %v1534_v61 = vmul.f32 %v7194_v23, %v7956_v40 }
 0x13c   : > { %13870 = vst [vmem:[#allocation159_spill] sm:$0xff] %v8195_v18  ;;  %v4022_v1 = vsel %vm2437_vm1, %v13873_v20, %v13138_v32  ;;  %v3026_v52 = vadd.f32 %v2930_v50, %v2821_v56  ;;  %v1404_v31 = vadd.f32 %v7991_v59, %v855_v51  ;;  %v1741_v32 = vmul.f32 %v13834_v30, %v7966_v55  ;;  %v747_v59 = vpop.permute.xlu0 %746 }
 0x13d   : > { %v8221_v20 = vsel %vm1841_vm0, %v13141_v34, %v13142_v0  ;;  %v2337_v41 = vmul.f32 %v7206_v28, %v7966_v55  ;;  %v2931_v50 = vmul.f32 %v7221_v44, %v7994_v42  ;;  %v1630_v56 = vadd.f32 %v1534_v61, %v7202_v26 }
 0x13e   : > { %13874 = vst [vmem:[#allocation160_spill] sm:$0xff] %v8221_v20  ;;  %v3621_v51 = vadd.f32 %v3427_v48, %v3026_v52  ;;  %v13875_v19 = vrot.slane %v8022_v24, 1  ;;  %v13876_v18 = vrot.slane %v8071_v47, 1  ;;  %v4023_v0 = vrot.slane %v8029_v45, 2  ;;  %v1215_v20 = vpop.f32.mrf.mxu0 }
 0x13f   : > { %v2032_v21 = vrot.slane %v1741_v32, 1  ;;  %v2628_v7 = vrot.slane %v2337_v41, 2  ;;  %v4326_v55 = vmul.f32 %v13837_v12, %v1404_v31  ;;  %v8238_v40 = vmul.f32 %v13840_v16, %v1404_v31  ;;  %v13881_v41 = vld [vmem:[#allocation30_spill] sm:$0xff] }
 0x140   : > { %v3429_v34 = vsel %vm1841_vm0, %v13876_v18, %v13875_v19  ;;  %v4216_v42 = vadd.f32 %v4022_v1, %v3621_v51  ;;  %v13877_v48 = vrot.slane %v8080_v54, 2  ;;  %v8244_v24 = vmul.f32 %v13842_v13, %v1404_v31 }
 0x141   : > { %v857_v47 = vmul.f32 %v747_v59, %v13803_v10  ;;  %v13878_v45 = vrot.slane %v8015_v49, 1  ;;  %v13879_v18 = vrot.slane %v8050_v35, 2  ;;  %v4819_v19 = vrot.slane %v8238_v40, 1  ;;  %v1219_v49 = vpop.f32.mrf.mxu0 }
 0x142   : > { %v4024_v61 = vsel %vm2437_vm1, %v13877_v48, %v4023_v0  ;;  %v8255_v1 = vmul.f32 %v747_v59, %v7192_v22  ;;  %v8257_v54 = vadd.f32 %v4325_v57, %v4216_v42  ;;  %v5414_v31 = vrot.slane %v8244_v24, 2 }
 0x143   : > { %v2033_v32 = vsel %vm1841_vm0, %v13878_v45, %v2032_v21  ;;  %v2629_v52 = vsel %vm2437_vm1, %v13879_v18, %v2628_v7  ;;  %v8262_v10 = vadd.f32 %v8083_v46, %v13881_v41  ;;  %v13883_v21 = vrot.slane %v8093_v43, 1 }
 0x144   : > { %13880 = vst [vmem:[#allocation161_spill] sm:$0xff] %v8257_v54  ;;  %v2226_v0 = vadd.f32 %v2033_v32, %v1630_v56  ;;  %v1406_v7 = vadd.f32 %v8007_v15, %v856_v36  ;;  %v1535_v22 = vmul.f32 %v7208_v29, %v7959_v37  ;;  %v1742_v57 = vmul.f32 %v7215_v38, %v7976_v58  ;;  %v1221_v32 = vpop.f32.mrf.mxu0 }
 0x145   : > { %13882 = vst [vmem:[#allocation30_spill] sm:$0xff] %v8262_v10  ;;  %v4820_v35 = vsel %vm1841_vm0, %v13883_v21, %v4819_v19  ;;  %v13885_v59 = vrot.slane %v8097_v53, 2  ;;  %v2338_v43 = vmul.f32 %v7217_v39, %v7976_v58  ;;  %v2932_v36 = vmul.f32 %v7235_v2, %v7996_v63  ;;  %v13979_v10 = vld [vmem:[#allocation22_spill] sm:$0xff] }
 0x146   : > { %v2822_v40 = vadd.f32 %v2629_v52, %v2226_v0  ;;  %v8272_v42 = vadd.f32 %v4820_v35, %v4420_v3  ;;  %v1631_v51 = vadd.f32 %v1535_v22, %v7213_v33  ;;  %v2034_v15 = vrot.slane %v1742_v57, 1 }
 0x147   : > { %v8277_v46 = vsel %vm2437_vm1, %v13885_v59, %v5414_v31  ;;  %v3430_v56 = vrot.slane %v8026_v27, 1  ;;  %v2630_v24 = vrot.slane %v2338_v43, 2  ;;  %v3734_v3 = vmul.f32 %v7247_v9, %v8002_v6  ;;  %v13892_v43 = vld [vmem:[#allocation152_spill] sm:$0xff] }
 0x148   : > { %13884 = vst [vmem:[#allocation162_spill] sm:$0xff] %v8272_v42  ;;  %13886 = vst [vmem:[#allocation163_spill] sm:$0xff] %v8277_v46  ;;  %v3027_v48 = vadd.f32 %v2931_v50, %v2822_v40  ;;  %v4327_v45 = vmul.f32 %v13864_v62, %v1406_v7  ;;  %v13887_v18 = vrot.slane %v8133_v4, 1  ;;  %v13888_v0 = vrot.slane %v8154_v14, 1  ;;  %v13891_v14 = vld [vmem:[#allocation31_spill] sm:$0xff] }
 0x149   : > { %v8295_v21 = vmul.f32 %v13867_v8, %v1406_v7  ;;  %v8298_v27 = vmul.f32 %v13869_v5, %v1406_v7  ;;  %v13890_v22 = vrot.slane %v8142_v25, 2  ;;  %v4025_v40 = vrot.slane %v3734_v3, 2  ;;  %v13896_v25 = vld [vmem:[#allocation32_spill] sm:$0xff]  ;;  %v1223_v3 = vpop.f32.mrf.mxu0  ;;  %v13926_v46 = vld [vmem:[#allocation127_spill] sm:$0xff] }
 0x14a   : > { %v2035_v52 = vsel %vm1841_vm0, %v13887_v18, %v2034_v15  ;;  %v3431_v41 = vsel %vm1841_vm0, %v13888_v0, %v3430_v56  ;;  %v3622_v50 = vadd.f32 %v3429_v34, %v3027_v48  ;;  %v8307_v15 = vadd.f32 %v13892_v43, %v13891_v14  ;;  %v13894_v56 = vld [vmem:[#allocation144_spill] sm:$0xff]  ;;  %v13897_v48 = vld [vmem:[#allocation157_spill] sm:$0xff]  ;;  %v13905_v43 = vld [vmem:[#allocation35_spill] sm:$0xff] }
 0x14b   : > { %13889 = vst [vmem:[#allocation164_spill] sm:$0xff] %v8298_v27  ;;  %v2227_v35 = vadd.f32 %v2035_v52, %v1631_v51  ;;  %v2631_v57 = vsel %vm2437_vm1, %v13890_v22, %v2630_v24  ;;  %v13151_v4 = vrot.slane %v8295_v21, 1  ;;  %v1410_v18 = vadd.f32 %v13894_v56, %v857_v47  ;;  %v13930_v42 = vld [vmem:[#allocation107_spill] sm:$0xff] }
 0x14c   : > { %13893 = vst [vmem:[#allocation31_spill] sm:$0xff] %v8307_v15  ;;  %v4217_v0 = vadd.f32 %v4024_v61, %v3622_v50  ;;  %v13895_v34 = vrot.slane %v8163_v60, 2  ;;  %v8315_v24 = vadd.f32 %v13897_v48, %v13896_v25  ;;  %v13899_v52 = vrot.slane %v8192_v11, 1  ;;  %v13901_v50 = vld [vmem:[#allocation33_spill] sm:$0xff]  ;;  %v13907_v25 = vld [vmem:[#allocation36_spill] sm:$0xff] }
 0x14d   : > { %v2823_v7 = vadd.f32 %v2631_v57, %v2227_v35  ;;  %v4533_v47 = vmul.f32 %v13840_v16, %v1410_v18  ;;  %v5128_v61 = vmul.f32 %v13842_v13, %v1410_v18  ;;  %v8328_v60 = vadd.f32 %v8202_v17, %v13901_v50  ;;  %v13912_v17 = vld [vmem:[#allocation97_spill] sm:$0xff] }
 0x14e   : > { %v4026_v51 = vsel %vm2437_vm1, %v13895_v34, %v4025_v40  ;;  %13898 = vst [vmem:[#allocation152_spill] sm:$0xff] %v8315_v24  ;;  %v8322_v22 = vsel %vm1841_vm0, %v13899_v52, %v13151_v4  ;;  %v4422_v35 = vadd.f32 %v4326_v55, %v4217_v0  ;;  %v13903_v40 = vld [vmem:[#allocation34_spill] sm:$0xff]  ;;  %v8334_v56 = vadd.f32 %v1219_v49, %v13905_v43  ;;  %v13909_v52 = vld [vmem:[#allocation37_spill] sm:$0xff]  ;;  %v13919_v43 = vld [vmem:[#allocation112_spill] sm:$0xff] }
 0x14f   : > { %13900 = vst [vmem:[#allocation144_spill] sm:$0xff] %v8322_v22  ;;  %13902 = vst [vmem:[#allocation32_spill] sm:$0xff] %v8328_v60  ;;  %v3028_v57 = vadd.f32 %v2932_v36, %v2823_v7  ;;  %v8331_v14 = vadd.f32 %v1215_v20, %v13903_v40  ;;  %v4823_v11 = vrot.slane %v4533_v47, 1  ;;  %v5418_v34 = vrot.slane %v5128_v61, 2  ;;  %v13911_v4 = vld [vmem:[#allocation90_spill] sm:$0xff]  ;;  %v13914_v36 = vld [vmem:[#allocation111_spill] sm:$0xff] }
 0x150   : > { %13906 = vst [vmem:[#allocation33_spill] sm:$0xff] %v8334_v56  ;;  %v8337_v48 = vadd.f32 %v1221_v32, %v13907_v25  ;;  %v8340_v59 = vadd.f32 %v1223_v3, %v13909_v52  ;;  %v2934_v50 = vadd.f32 %v13912_v17, %v13911_v4  ;;  %v13913_v55 = vld [vmem:[#allocation98_spill] sm:$0xff]  ;;  %v13915_v20 = vld [vmem:[#allocation103_spill] sm:$0xff]  ;;  %v13920_v3 = vrot.slane %v13919_v43, 1  ;;  %v13923_v4 = vld [vmem:[#allocation120_spill] sm:$0xff] }
 0x151   : > { %13904 = vst [vmem:[#allocation157_spill] sm:$0xff] %v8331_v14  ;;  %v3623_v18 = vadd.f32 %v3431_v41, %v3028_v57  ;;  %v2936_v0 = vadd.f32 %v13914_v36, %v13913_v55  ;;  %v13916_v7 = vrot.slane %v13915_v20, 1  ;;  %v13917_v40 = vld [vmem:[#allocation94_spill] sm:$0xff]  ;;  %v4824_v61 = vsel %vm1841_vm0, %v4819_v19, %v4823_v11  ;;  %v13921_v25 = vld [vmem:[#allocation99_spill] sm:$0xff]  ;;  %v13929_v11 = vld [vmem:[#allocation92_spill] sm:$0xff] }
 0x152   : > { %13908 = vst [vmem:[#allocation34_spill] sm:$0xff] %v8337_v48  ;;  %13910 = vst [vmem:[#allocation35_spill] sm:$0xff] %v8340_v59  ;;  %v13918_v49 = vrot.slane %v13917_v40, 1  ;;  %v5419_v32 = vsel %vm2437_vm1, %v5414_v31, %v5418_v34  ;;  %v13922_v41 = vrot.slane %v13921_v25, 1  ;;  %v13924_v52 = vrot.slane %v13923_v4, 1  ;;  %v13931_v22 = vld [vmem:[#allocation104_spill] sm:$0xff] }
 0x153   : > { %v13925_v17 = vmov %v13916_v7  ;;  %v4218_v36 = vadd.f32 %v4026_v51, %v3623_v18  ;;  %v5017_v40 = vadd.f32 %v4824_v61, %v4422_v35  ;;  %v13928_v19 = vmov %v13920_v3  ;;  %v13933_v20 = vld [vmem:[#allocation95_spill] sm:$0xff]  ;;  %v13936_v61 = vld [vmem:[#allocation113_spill] sm:$0xff]  ;;  %v13952_v24 = vld [vmem:[#allocation38_spill] sm:$0xff] }
 0x154   : > { %v3240_v47 = vsel %vm1841_vm0, %v13918_v49, %v13916_v7  ;;  %v3243_v57 = vsel %vm1841_vm0, %v13922_v41, %v13920_v3  ;;  %v3245_v55 = vsel %vm1841_vm0, %v13925_v17, %v13924_v52  ;;  %v13927_v7 = vrot.slane %v13926_v46, 1  ;;  %v1225_v49 = vpop.f32.mrf.mxu0  ;;  %v13938_v52 = vld [vmem:[#allocation101_spill] sm:$0xff] }
 0x155   : > { %v3528_v34 = vadd.f32 %v3240_v47, %v13929_v11  ;;  %v3529_v25 = vadd.f32 %v3243_v57, %v2934_v50  ;;  %v3530_v3 = vadd.f32 %v3245_v55, %v13930_v42  ;;  %v13932_v54 = vrot.slane %v13931_v22, 2  ;;  %v13940_v50 = vld [vmem:[#allocation121_spill] sm:$0xff]  ;;  %v13943_v55 = vld [vmem:[#allocation128_spill] sm:$0xff] }
 0x156   : > { %v3247_v31 = vsel %vm1841_vm0, %v13928_v19, %v13927_v7  ;;  %v13934_v53 = vrot.slane %v13933_v20, 2  ;;  %v8375_v35 = vadd.f32 %v4327_v45, %v4218_v36  ;;  %v8377_v18 = vadd.f32 %v5419_v32, %v5017_v40  ;;  %v13947_v20 = vld [vmem:[#allocation131_spill] sm:$0xff] }
 0x157   : > { %v3531_v41 = vadd.f32 %v3247_v31, %v2936_v0  ;;  %v13937_v43 = vrot.slane %v13936_v61, 2  ;;  %v13939_v17 = vrot.slane %v13938_v52, 2  ;;  %v13941_v57 = vrot.slane %v13940_v50, 2  ;;  %v13946_v31 = vld [vmem:[#allocation129_spill] sm:$0xff] }
 0x158   : > { %v3835_v51 = vsel %vm2437_vm1, %v13934_v53, %v13932_v54  ;;  %13935 = vst [vmem:[#allocation36_spill] sm:$0xff] %v8377_v18  ;;  %v13942_v42 = vmov %v13932_v54  ;;  %v13944_v7 = vrot.slane %v13943_v55, 2  ;;  %v5709_v40 = vmul.f32 0.70710677, %v8377_v18  ;;  %v13948_v52 = vld [vmem:[#allocation133_spill] sm:$0xff] }
 0x159   : > { %v3838_v47 = vsel %vm2437_vm1, %v13939_v17, %v13937_v43  ;;  %v3840_v0 = vsel %vm2437_vm1, %v13942_v42, %v13941_v57  ;;  %v13945_v53 = vmov %v13937_v43  ;;  %v4123_v45 = vadd.f32 %v3835_v51, %v3528_v34  ;;  %v1229_v43 = vpop.f32.mrf.mxu0  ;;  %v13949_v57 = vld [vmem:[#allocation19_spill] sm:$0xff] }
 0x15a   : > { %v3842_v54 = vsel %vm2437_vm1, %v13945_v53, %v13944_v7  ;;  %v4124_v32 = vadd.f32 %v3838_v47, %v3529_v25  ;;  %v4125_v36 = vadd.f32 %v3840_v0, %v3530_v3  ;;  %v4232_v11 = vmul.f32 %v13837_v12, %v13946_v31  ;;  %v13950_v7 = vld [vmem:[#allocation20_spill] sm:$0xff] }
 0x15b   : > { %v4126_v19 = vadd.f32 %v3842_v54, %v3531_v41  ;;  %v4233_v22 = vmul.f32 %v13864_v62, %v13947_v20  ;;  %v4234_v17 = vmul.f32 %v13837_v12, %v13948_v52  ;;  %v4235_v61 = vmul.f32 %v13864_v62, %v13949_v57  ;;  %v13951_v54 = vld [vmem:[#allocation138_spill] sm:$0xff] }
 0x15c   : > { %v4437_v34 = vmul.f32 %v13840_v16, %v13946_v31  ;;  %v4438_v25 = vmul.f32 %v13867_v8, %v13947_v20  ;;  %6626 = verf.f32 %v5709_v40  ;;  %v4328_v3 = vadd.f32 %v4232_v11, %v4123_v45 }
 0x15d   : > { %v4329_v41 = vadd.f32 %v4233_v22, %v4124_v32  ;;  %v4439_v51 = vmul.f32 %v13840_v16, %v13948_v52  ;;  %v4330_v47 = vadd.f32 %v4234_v17, %v4125_v36  ;;  %v4331_v42 = vadd.f32 %v4235_v61, %v4126_v19  ;;  %v1231_v32 = vpop.f32.mrf.mxu0 }
 0x15e   : > { %v4440_v0 = vmul.f32 %v13867_v8, %v13949_v57  ;;  %v8413_v53 = vmul.f32 %v13840_v16, %v13950_v7  ;;  %v8417_v18 = vmul.f32 %v13867_v8, %v13951_v54  ;;  %v4633_v6 = vrot.slane %v4437_v34, 1 }
 0x15f   : > { %v4634_v40 = vrot.slane %v4439_v51, 1  ;;  %v4636_v45 = vrot.slane %v4438_v25, 1  ;;  %v5032_v36 = vmul.f32 %v13842_v13, %v13946_v31  ;;  %v5033_v19 = vmul.f32 %v13869_v5, %v13947_v20 }
 0x160   : > { %v4637_v11 = vrot.slane %v4440_v0, 1  ;;  %v13167_v22 = vrot.slane %v8413_v53, 1  ;;  %v13172_v61 = vrot.slane %v8417_v18, 1  ;;  %v5034_v63 = vmul.f32 %v13842_v13, %v13948_v52 }
 0x161   : > { %v4635_v17 = vsel %vm1841_vm0, %v4633_v6, %v4634_v40  ;;  %v5035_v34 = vmul.f32 %v13869_v5, %v13949_v57  ;;  %v8436_v58 = vmul.f32 %v13842_v13, %v13950_v7  ;;  %v8443_v48 = vmul.f32 %v13869_v5, %v13951_v54 }
 0x162   : > { %v4638_v25 = vsel %vm1841_vm0, %v4636_v45, %v4637_v11  ;;  %v4640_v51 = vsel %vm1841_vm0, %v4634_v40, %v13167_v22  ;;  %v4923_v0 = vadd.f32 %v4635_v17, %v4328_v3  ;;  %v4642_v6 = vsel %vm1841_vm0, %v4637_v11, %v13172_v61  ;;  %v1233_v45 = vpop.f32.mrf.mxu0 }
 0x163   : > { %v4924_v37 = vadd.f32 %v4638_v25, %v4329_v41  ;;  %v4925_v59 = vadd.f32 %v4640_v51, %v4330_v47  ;;  %v4926_v56 = vadd.f32 %v4642_v6, %v4331_v42  ;;  %v5228_v14 = vrot.slane %v5032_v36, 2  ;;  %v13954_v47 = vld [vmem:[#allocation39_spill] sm:$0xff]  ;;  %v13956_v25 = vld [vmem:[#allocation40_spill] sm:$0xff]  ;;  %v13958_v42 = vld [vmem:[#allocation41_spill] sm:$0xff] }
 0x164   : > { %v5229_v60 = vrot.slane %v5034_v63, 2  ;;  %v5231_v40 = vrot.slane %v5033_v19, 2  ;;  %v5232_v3 = vrot.slane %v5035_v34, 2  ;;  %v13171_v17 = vrot.slane %v8436_v58, 2 }
 0x165   : > { %v13170_v22 = vrot.slane %v8443_v48, 2  ;;  %v8448_v15 = vadd.f32 %v1225_v49, %v13952_v24  ;;  %v8452_v11 = vadd.f32 %v1229_v43, %v13954_v47  ;;  %v8455_v51 = vadd.f32 %v1231_v32, %v13956_v25  ;;  %v13960_v32 = vld [vmem:[#allocation147_spill] sm:$0xff] }
 0x166   : > { %v5230_v41 = vsel %vm2437_vm1, %v5228_v14, %v5229_v60  ;;  %v8458_v36 = vadd.f32 %v1233_v45, %v13958_v42  ;;  %v5233_v63 = vsel %vm2437_vm1, %v5231_v40, %v5232_v3  ;;  %v5235_v19 = vsel %vm2437_vm1, %v5229_v60, %v13171_v17 }
 0x167   : > { %13953 = vst [vmem:[#allocation37_spill] sm:$0xff] %v8448_v15  ;;  %13955 = vst [vmem:[#allocation90_spill] sm:$0xff] %v8452_v11  ;;  %v5237_v24 = vsel %vm2437_vm1, %v5232_v3, %v13170_v22  ;;  %v5518_v14 = vadd.f32 %v5230_v41, %v4923_v0  ;;  %v8467_v49 = vadd.f32 %v5233_v63, %v4924_v37  ;;  %v13963_v41 = vld [vmem:[#allocation119_spill] sm:$0xff]  ;;  %v13964_v63 = vld [vmem:[#allocation8_spill] sm:$0xff] }
 0x168   : > { %13957 = vst [vmem:[#allocation97_spill] sm:$0xff] %v8455_v51  ;;  %13959 = vst [vmem:[#allocation98_spill] sm:$0xff] %v8458_v36  ;;  %v5520_v43 = vadd.f32 %v5235_v19, %v4925_v59  ;;  %v8469_v34 = vadd.f32 %v5237_v24, %v4926_v56  ;;  %v1412_v6 = vadd.f32 %v13960_v32, %v8255_v1  ;;  %v13962_v1 = vld [vmem:[#allocation116_spill] sm:$0xff]  ;;  %v13965_v32 = vld [vmem:[#allocation11_spill] sm:$0xff]  ;;  %v1235_v36 = vpop.f32.mrf.mxu0  ;;  %v13975_v51 = vrot.slane %v13940_v50, 2 }
 0x169   : > { %v8473_v45 = vmul.f32 0.5, %v5518_v14  ;;  %v5662_v40 = vmul.f32 0.70710677, %v5518_v14  ;;  %v2843_v47 = vmul.f32 %v7221_v44, %v13946_v31  ;;  %v2844_v60 = vmul.f32 %v7235_v2, %v13947_v20  ;;  %v8479_v25 = vpop.eup %6626  ;;  %v13977_v50 = vld [vmem:[#allocation88_spill] sm:$0xff] }
 0x16a   : > { %13961 = vst [vmem:[#allocation111_spill] sm:$0xff] %v8479_v25  ;;  %v8481_v0 = vmul.f32 0.5, %v5520_v43  ;;  %v5663_v37 = vmul.f32 0.70710677, %v5520_v43  ;;  %v4534_v59 = vmul.f32 %v13867_v8, %v1412_v6  ;;  %v5129_v56 = vmul.f32 %v13869_v5, %v1412_v6 }
 0x16b   : > { %6628 = verf.f32 %v5662_v40  ;;  %v2939_v3 = vadd.f32 %v2843_v47, %v13962_v1  ;;  %v2940_v42 = vadd.f32 %v2844_v60, %v13963_v41  ;;  %v3048_v19 = vmul.f32 %v13964_v63, %v13946_v31  ;;  %v13966_v47 = vld [vmem:[#allocation9_spill] sm:$0xff] }
 0x16c   : > { %6630 = verf.f32 %v5663_v37  ;;  %v4825_v24 = vrot.slane %v4534_v59, 1  ;;  %v5420_v14 = vrot.slane %v5129_v56, 2  ;;  %v3049_v22 = vmul.f32 %v13965_v32, %v13947_v20 }
 0x16d   : > { %v8493_v43 = vmul.f32 %v13964_v63, %v13948_v52  ;;  %v8497_v6 = vmul.f32 %v13965_v32, %v13949_v57  ;;  %v3248_v40 = vrot.slane %v3048_v19, 1  ;;  %v3643_v60 = vmul.f32 %v13966_v47, %v13946_v31 }
 0x16e   : > { %v13967_v1 = vrot.slane %v8295_v21, 1  ;;  %v13968_v59 = vrot.slane %v8298_v27, 2  ;;  %v3250_v41 = vrot.slane %v3049_v22, 1  ;;  %v3644_v17 = vmul.f32 %v7247_v9, %v13947_v20 }
 0x16f   : > { %v13971_v19 = vrot.slane %v13923_v4, 1  ;;  %v13179_v21 = vrot.slane %v8493_v43, 1  ;;  %v8566_v33 = vmul.f32 %v13840_v16, %v13979_v10 }
 0x170   : > { %v4826_v37 = vsel %vm1841_vm0, %v13967_v1, %v4825_v24  ;;  %v8507_v56 = vsel %vm2437_vm1, %v13968_v59, %v5420_v14  ;;  %v13178_v24 = vrot.slane %v8497_v6, 1  ;;  %v13972_v1 = vrot.slane %v13926_v46, 1  ;;  %v13973_v59 = vld [vmem:[#allocation124_spill] sm:$0xff] }
 0x171   : > { %13969 = vst [vmem:[#allocation103_spill] sm:$0xff] %v8507_v56  ;;  %v8512_v61 = vadd.f32 %v4826_v37, %v8375_v35  ;;  %v3249_v25 = vsel %vm1841_vm0, %v13971_v19, %v3248_v40  ;;  %v8525_v56 = vmul.f32 %v13966_v47, %v13948_v52  ;;  %v8529_v35 = vmul.f32 %v7247_v9, %v13949_v57  ;;  %v13974_v37 = vld [vmem:[#allocation132_spill] sm:$0xff] }
 0x172   : > { %v3251_v14 = vsel %vm1841_vm0, %v13972_v1, %v3250_v41  ;;  %v3532_v22 = vadd.f32 %v3249_v25, %v13973_v59  ;;  %v3253_v4 = vsel %vm1841_vm0, %v3248_v40, %v13179_v21  ;;  %v3255_v46 = vsel %vm1841_vm0, %v3250_v41, %v13178_v24 }
 0x173   : > { %13970 = vst [vmem:[#allocation94_spill] sm:$0xff] %v8512_v61  ;;  %v3533_v19 = vadd.f32 %v3251_v14, %v13974_v37  ;;  %v3843_v1 = vrot.slane %v3643_v60, 2  ;;  %v3534_v25 = vadd.f32 %v3253_v4, %v2939_v3  ;;  %v3535_v59 = vadd.f32 %v3255_v46, %v2940_v42  ;;  %v13978_v37 = vld [vmem:[#allocation21_spill] sm:$0xff] }
 0x174   : > { %v3845_v61 = vrot.slane %v3644_v17, 2  ;;  %v13180_v27 = vrot.slane %v8525_v56, 2  ;;  %v13184_v15 = vrot.slane %v8529_v35, 2  ;;  %v4236_v40 = vmul.f32 %v13837_v12, %v13950_v7 }
 0x175   : > { %v3844_v11 = vsel %vm2437_vm1, %v13975_v51, %v3843_v1  ;;  %v4237_v41 = vmul.f32 %v13864_v62, %v13951_v54  ;;  %v13976_v60 = vrot.slane %v13943_v55, 2  ;;  %v4238_v51 = vmul.f32 %v13837_v12, %v13977_v50 }
 0x176   : > { %v3848_v17 = vsel %vm2437_vm1, %v3843_v1, %v13180_v27  ;;  %v4127_v42 = vadd.f32 %v3844_v11, %v3532_v22  ;;  %v3850_v14 = vsel %vm2437_vm1, %v3845_v61, %v13184_v15  ;;  %v4239_v24 = vmul.f32 %v13864_v62, %v13978_v37  ;;  %v1239_v22 = vpop.f32.mrf.mxu0 }
 0x177   : > { %v3846_v3 = vsel %vm2437_vm1, %v13976_v60, %v3845_v61  ;;  %v4129_v46 = vadd.f32 %v3848_v17, %v3534_v25  ;;  %v4130_v55 = vadd.f32 %v3850_v14, %v3535_v59  ;;  %v4443_v60 = vmul.f32 %v13840_v16, %v13977_v50  ;;  %v13980_v61 = vld [vmem:[#allocation23_spill] sm:$0xff] }
 0x178   : > { %v4128_v4 = vadd.f32 %v3846_v3, %v3533_v19  ;;  %v4332_v21 = vadd.f32 %v4236_v40, %v4127_v42  ;;  %v4444_v11 = vmul.f32 %v13867_v8, %v13978_v37  ;;  %v8570_v19 = vmul.f32 %v13867_v8, %v13980_v61  ;;  %v6629_v25 = vpop.eup %6628 }
 0x179   : > { %v4334_v27 = vadd.f32 %v4238_v51, %v4129_v46  ;;  %v4335_v59 = vadd.f32 %v4239_v24, %v4130_v55  ;;  %v4643_v40 = vrot.slane %v4443_v60, 1  ;;  %v5038_v17 = vmul.f32 %v13842_v13, %v13977_v50  ;;  %v6631_v42 = vpop.eup %6630 }
 0x17a   : > { %v4333_v1 = vadd.f32 %v4237_v41, %v4128_v4  ;;  %13981 = vst [vmem:[#allocation112_spill] sm:$0xff] %v8570_v19  ;;  %v4645_v3 = vrot.slane %v4444_v11, 1  ;;  %v5758_v14 = vadd.f32 1.0, %v6629_v25  ;;  %v13193_v41 = vrot.slane %v8566_v33, 1  ;;  %v1241_v11 = vpop.f32.mrf.mxu0 }
 0x17b   : > { %v5039_v4 = vmul.f32 %v13869_v5, %v13978_v37  ;;  %v5759_v46 = vadd.f32 1.0, %v6631_v42  ;;  %v13982_v15 = vrot.slane %v8413_v53, 1  ;;  %v13983_v24 = vrot.slane %v8417_v18, 1 }
 0x17c   : > { %v8586_v60 = vmul.f32 %v13842_v13, %v13979_v10  ;;  %v5806_v25 = vmul.f32 %v5758_v14, %v8473_v45  ;;  %v4648_v51 = vsel %vm1841_vm0, %v4643_v40, %v13193_v41  ;;  %v13984_v42 = vrot.slane %v8570_v19, 1  ;;  %v13985_v19 = vld [vmem:[#allocation42_spill] sm:$0xff] }
 0x17d   : > { %v4644_v26 = vsel %vm1841_vm0, %v13982_v15, %v4643_v40  ;;  %v4646_v55 = vsel %vm1841_vm0, %v13983_v24, %v4645_v3  ;;  %v5807_v18 = vmul.f32 %v5759_v46, %v8481_v0  ;;  %v4929_v24 = vadd.f32 %v4648_v51, %v4334_v27  ;;  %v1243_v27 = vpop.f32.mrf.mxu0  ;;  %v13993_v46 = vld [vmem:[#allocation45_spill] sm:$0xff] }
 0x17e   : > { %v4650_v53 = vsel %vm1841_vm0, %v4645_v3, %v13984_v42  ;;  %v4927_v15 = vadd.f32 %v4644_v26, %v4332_v21  ;;  %v4928_v29 = vadd.f32 %v4646_v55, %v4333_v1  ;;  %v5854_v13 = vmul.f32 %v5806_v25, %v8467_v49  ;;  %v13987_v26 = vld [vmem:[#allocation43_spill] sm:$0xff] }
 0x17f   : > { %v4930_v23 = vadd.f32 %v4650_v53, %v4335_v59  ;;  %v8599_v8 = vmul.f32 %v13869_v5, %v13980_v61  ;;  %v5238_v45 = vrot.slane %v5038_v17, 2  ;;  %v5240_v14 = vrot.slane %v5039_v4, 2 }
 0x180   : > { %v5855_v40 = vmul.f32 %v5807_v18, %v8469_v34  ;;  %v13199_v41 = vrot.slane %v8586_v60, 2  ;;  %v8604_v3 = vadd.f32 %v1235_v36, %v13985_v19  ;;  %v8607_v0 = vadd.f32 %v1239_v22, %v13987_v26  ;;  %v13991_v34 = vld [vmem:[#allocation44_spill] sm:$0xff]  ;;  %v13995_v18 = vld [vmem:[#allocation125_spill] sm:$0xff] }
 0x181   : > { %v13989_v21 = vrot.slane %v8436_v58, 2  ;;  %v13990_v1 = vrot.slane %v8443_v48, 2  ;;  %v13196_v17 = vrot.slane %v8599_v8, 2  ;;  %v8617_v51 = vadd.f32 %v1241_v11, %v13991_v34 }
 0x182   : > { %13986 = vst [vmem:[#allocation99_spill] sm:$0xff] %v8604_v3  ;;  %13988 = vst [vmem:[#allocation120_spill] sm:$0xff] %v8607_v0  ;;  %v5902_v4 = vpack.c.bf16 %v5855_v40, %v5854_v13  ;;  %v5243_v36 = vsel %vm2437_vm1, %v5238_v45, %v13199_v41  ;;  %v8628_v55 = vadd.f32 %v1243_v27, %v13993_v46  ;;  %v13999_v27 = vld [vmem:[#allocation108_spill] sm:$0xff] }
 0x183   : > { %v5239_v49 = vsel %vm2437_vm1, %v13989_v21, %v5238_v45  ;;  %v5241_v59 = vsel %vm2437_vm1, %v13990_v1, %v5240_v14  ;;  %13992 = vst [vmem:[#allocation127_spill] sm:$0xff] %v8617_v51  ;;  %v5245_v58 = vsel %vm2437_vm1, %v5240_v14, %v13196_v17  ;;  %v5524_v48 = vadd.f32 %v5243_v36, %v4929_v24  ;;  %v13997_v45 = vld [vmem:[#allocation106_spill] sm:$0xff]  ;;  %v14000_v1 = vld [vmem:[#allocation115_spill] sm:$0xff] }
 0x184   : > { %v5522_v22 = vadd.f32 %v5239_v49, %v4927_v15  ;;  %v8622_v19 = vadd.f32 %v5241_v59, %v4928_v29  ;;  %13994 = vst [vmem:[#allocation92_spill] sm:$0xff] %v8628_v55  ;;  %v8632_v11 = vmul.f32 %v13834_v30, %v13946_v31  ;;  %6473 = vmatprep.mubr.bf16.mxu1 %v5902_v4  ;;  %v13996_v24 = vrot.slane %v13995_v18, 1  ;;  %v14002_v36 = vld [vmem:[#allocation126_spill] sm:$0xff] }
 0x185   : > { %v8634_v13 = vadd.f32 %v5245_v58, %v4930_v23  ;;  %v8640_v29 = vmul.f32 %v7215_v38, %v13947_v20  ;;  %v8642_v53 = vmul.f32 0.5, %v5524_v48  ;;  %v5665_v15 = vmul.f32 0.70710677, %v5524_v48  ;;  %v14004_v58 = vld [vmem:[#allocation110_spill] sm:$0xff] }
 0x186   : > { %v8636_v25 = vmul.f32 0.5, %v5522_v22  ;;  %v5664_v42 = vmul.f32 0.70710677, %v5522_v22  ;;  %v13998_v14 = vrot.slane %v13997_v45, 1  ;;  %v13195_v26 = vrot.slane %v8632_v11, 1  ;;  %v14011_v18 = vld [vmem:[#allocation118_spill] sm:$0xff] }
 0x187   : > { %v13198_v23 = vrot.slane %v8640_v29, 1  ;;  %v8654_v49 = vmul.f32 %v7206_v28, %v13946_v31  ;;  %v14001_v59 = vrot.slane %v14000_v1, 1  ;;  %v8663_v4 = vmul.f32 %v7217_v39, %v13947_v20 }
 0x188   : > { %v1863_v40 = vsel %vm1841_vm0, %v13998_v14, %v13996_v24  ;;  %6632 = verf.f32 %v5664_v42  ;;  %v14003_v22 = vrot.slane %v14002_v36, 2  ;;  %v14005_v48 = vrot.slane %v14004_v58, 2 }
 0x189   : > { %v2141_v21 = vadd.f32 %v1863_v40, %v13999_v27  ;;  %6634 = verf.f32 %v5665_v15  ;;  %v1865_v34 = vsel %vm1841_vm0, %v14001_v59, %v13195_v26  ;;  %v14006_v42 = vmov %v13996_v24  ;;  %v14007_v24 = vld [vmem:[#allocation117_spill] sm:$0xff]  ;;  %v14008_v40 = vld [vmem:[#allocation122_spill] sm:$0xff]  ;;  %v14009_v27 = vld [vmem:[#allocation123_spill] sm:$0xff] }
 0x18a   : > { %v2459_v46 = vsel %vm2437_vm1, %v14005_v48, %v14003_v22  ;;  %v1867_v15 = vsel %vm1841_vm0, %v14006_v42, %v13198_v23  ;;  %v2142_v45 = vadd.f32 %v1865_v34, %v14007_v24  ;;  %v13197_v14 = vrot.slane %v8654_v49, 2  ;;  %v14010_v59 = vld [vmem:[#allocation130_spill] sm:$0xff] }
 0x18b   : > { %v2736_v1 = vadd.f32 %v14009_v27, %v14008_v40  ;;  %v2143_v26 = vadd.f32 %v1867_v15, %v14010_v59  ;;  %v13200_v17 = vrot.slane %v8663_v4, 2  ;;  %v2737_v58 = vadd.f32 %v2459_v46, %v2141_v21 }
 0x18c   : > { %v2845_v22 = vmul.f32 %v7221_v44, %v13948_v52  ;;  %v14012_v48 = vrot.slane %v14011_v18, 2  ;;  %v2846_v34 = vmul.f32 %v7235_v2, %v13949_v57  ;;  %v2847_v24 = vmul.f32 %v7221_v44, %v13950_v7 }
 0x18d   : > { %v2848_v15 = vmul.f32 %v7235_v2, %v13951_v54  ;;  %v14013_v21 = vrot.slane %v14002_v36, 2  ;;  %v3052_v59 = vmul.f32 %v13964_v63, %v13950_v7  ;;  %v8705_v23 = vmul.f32 %v13964_v63, %v13977_v50 }
 0x18e   : > { %v2461_v42 = vsel %vm2437_vm1, %v14012_v48, %v13197_v14  ;;  %v2941_v27 = vadd.f32 %v2845_v22, %v2736_v1  ;;  %v2942_v48 = vadd.f32 %v2846_v34, %v2737_v58  ;;  %v3053_v14 = vmul.f32 %v13965_v32, %v13951_v54 }
 0x18f   : > { %v2463_v46 = vsel %vm2437_vm1, %v14013_v21, %v13200_v17  ;;  %v2738_v40 = vadd.f32 %v2461_v42, %v2142_v45  ;;  %14014 = vst [vmem:[#allocation107_spill] sm:$0xff] %v8705_v23  ;;  %v8709_v36 = vmul.f32 %v13965_v32, %v13978_v37  ;;  %v3256_v21 = vrot.slane %v3052_v59, 1 }
 0x190   : > { %v2739_v18 = vadd.f32 %v2463_v46, %v2143_v26  ;;  %v3647_v45 = vmul.f32 %v13966_v47, %v13950_v7  ;;  %v3258_v22 = vrot.slane %v3053_v14, 1  ;;  %v13209_v26 = vrot.slane %v8705_v23, 1 }
 0x191   : > { %v2943_v41 = vadd.f32 %v2847_v24, %v2738_v40  ;;  %v3648_v58 = vmul.f32 %v7247_v9, %v13951_v54  ;;  %v14015_v42 = vrot.slane %v8493_v43, 1  ;;  %v13208_v24 = vrot.slane %v8709_v36, 1 }
 0x192   : > { %v2944_v1 = vadd.f32 %v2848_v15, %v2739_v18  ;;  %v8722_v46 = vmul.f32 %v13966_v47, %v13977_v50  ;;  %v8726_v40 = vmul.f32 %v7247_v9, %v13978_v37  ;;  %v14018_v14 = vrot.slane %v8497_v6, 1 }
 0x193   : > { %v3257_v34 = vsel %vm1841_vm0, %v14015_v42, %v3256_v21  ;;  %v3261_v43 = vsel %vm1841_vm0, %v3256_v21, %v13209_v26  ;;  %v3851_v18 = vrot.slane %v3647_v45, 2  ;;  %v1245_v42 = vpop.f32.mrf.mxu0  ;;  %v3263_v17 = vsel %vm1841_vm0, %v3258_v22, %v13208_v24  ;;  %v14022_v24 = vld [vmem:[#allocation114_spill] sm:$0xff] }
 0x194   : > { %14016 = vst [vmem:[#allocation104_spill] sm:$0xff] %v8722_v46  ;;  %14017 = vst [vmem:[#allocation95_spill] sm:$0xff] %v8726_v40  ;;  %v3259_v15 = vsel %vm1841_vm0, %v14018_v14, %v3258_v22  ;;  %v3536_v59 = vadd.f32 %v3257_v34, %v2941_v27  ;;  %v3538_v51 = vadd.f32 %v3261_v43, %v2943_v41  ;;  %v3853_v0 = vrot.slane %v3648_v58, 2 }
 0x195   : > { %v3537_v55 = vadd.f32 %v3259_v15, %v2942_v48  ;;  %v3539_v3 = vadd.f32 %v3263_v17, %v2944_v1  ;;  %v14019_v9 = vrot.slane %v8525_v56, 2  ;;  %v13211_v14 = vrot.slane %v8722_v46, 2  ;;  %v6633_v21 = vpop.eup %6632  ;;  %v1249_v22 = vpop.f32.mrf.mxu0 }
 0x196   : > { %v13212_v23 = vrot.slane %v8726_v40, 2  ;;  %v14020_v27 = vrot.slane %v8529_v35, 2  ;;  %v4240_v48 = vmul.f32 %v13837_v12, %v13979_v10  ;;  %v4241_v41 = vmul.f32 %v13864_v62, %v13980_v61  ;;  %v6635_v17 = vpop.eup %6634  ;;  %v14031_v40 = vld [vmem:[#allocation46_spill] sm:$0xff] }
 0x197   : > { %v3852_v6 = vsel %vm2437_vm1, %v14019_v9, %v3851_v18  ;;  %v5760_v56 = vadd.f32 1.0, %v6633_v21  ;;  %v3856_v9 = vsel %vm2437_vm1, %v3851_v18, %v13211_v14  ;;  %v5761_v58 = vadd.f32 1.0, %v6635_v17  ;;  %v14024_v17 = vld [vmem:[#allocation27_spill] sm:$0xff] }
 0x198   : > { %v3854_v45 = vsel %vm2437_vm1, %v14020_v27, %v3853_v0  ;;  %v4131_v34 = vadd.f32 %v3852_v6, %v3536_v59  ;;  %v3858_v1 = vsel %vm2437_vm1, %v3853_v0, %v13212_v23  ;;  %v4133_v15 = vadd.f32 %v3856_v9, %v3538_v51  ;;  %v14021_v59 = vld [vmem:[#allocation109_spill] sm:$0xff] }
 0x199   : > { %v4132_v35 = vadd.f32 %v3854_v45, %v3537_v55  ;;  %v4134_v43 = vadd.f32 %v3858_v1, %v3539_v3  ;;  %v4242_v6 = vmul.f32 %v13837_v12, %v14021_v59  ;;  %v5808_v27 = vmul.f32 %v5760_v56, %v8636_v25  ;;  %v14023_v55 = vld [vmem:[#allocation17_spill] sm:$0xff]  ;;  %v14026_v56 = vld [vmem:[#allocation28_spill] sm:$0xff]  ;;  %v14027_v1 = vld [vmem:[#allocation15_spill] sm:$0xff] }
 0x19a   : > { %v4243_v21 = vmul.f32 %v13864_v62, %v14022_v24  ;;  %v4336_v26 = vadd.f32 %v4240_v48, %v4131_v34  ;;  %v5809_v18 = vmul.f32 %v5761_v58, %v8642_v53  ;;  %v4447_v0 = vmul.f32 %v13840_v16, %v14021_v59  ;;  %v1251_v48 = vpop.f32.mrf.mxu0 }
 0x19b   : > { %v4337_v46 = vadd.f32 %v4241_v41, %v4132_v35  ;;  %v4338_v14 = vadd.f32 %v4242_v6, %v4133_v15  ;;  %v4448_v51 = vmul.f32 %v14023_v55, %v14022_v24  ;;  %v5856_v3 = vmul.f32 %v5808_v27, %v8622_v19 }
 0x19c   : > { %v4339_v45 = vadd.f32 %v4243_v21, %v4134_v43  ;;  %v8768_v25 = vmul.f32 %v13840_v16, %v14024_v17  ;;  %v8772_v34 = vmul.f32 %v14023_v55, %v14026_v56  ;;  %v5857_v53 = vmul.f32 %v5809_v18, %v8634_v13  ;;  %v14029_v21 = vld [vmem:[#allocation112_spill] sm:$0xff] }
 0x19d   : > { %v4651_v41 = vrot.slane %v4447_v0, 1  ;;  %v4653_v9 = vrot.slane %v4448_v51, 1  ;;  %v5042_v35 = vmul.f32 %v14027_v1, %v14021_v59  ;;  %v5043_v15 = vmul.f32 %v13869_v5, %v14022_v24 }
 0x19e   : > { %14025 = vst [vmem:[#allocation113_spill] sm:$0xff] %v8768_v25  ;;  %v13219_v58 = vrot.slane %v8768_v25, 1  ;;  %v13222_v19 = vrot.slane %v8772_v34, 1  ;;  %v8783_v43 = vmul.f32 %v14027_v1, %v14024_v17  ;;  %v5903_v6 = vpack.c.bf16 %v5857_v53, %v5856_v3  ;;  %v1253_v1 = vpop.f32.mrf.mxu0 }
 0x19f   : > { %v14028_v27 = vrot.slane %v8566_v33, 1  ;;  %v14030_v18 = vrot.slane %v14029_v21, 1  ;;  %v8793_v51 = vmul.f32 %v13869_v5, %v14026_v56  ;;  %v5246_v55 = vrot.slane %v5042_v35, 2  ;;  %v14039_v35 = vld [vmem:[#allocation49_spill] sm:$0xff] }
 0x1a0   : > { %v4656_v23 = vsel %vm1841_vm0, %v4651_v41, %v13219_v58  ;;  %v4658_v3 = vsel %vm1841_vm0, %v4653_v9, %v13222_v19  ;;  %6474 = vmatmul.mubr.bf16.vlgmr.msra.gmra.mxu1 %v5903_v6  ;;  %v13221_v16 = vrot.slane %v8783_v43, 2  ;;  %v8804_v25 = vadd.f32 %v1245_v42, %v14031_v40 }
 0x1a1   : > { %v4652_v13 = vsel %vm1841_vm0, %v14028_v27, %v4651_v41  ;;  %v4654_v0 = vsel %vm1841_vm0, %v14030_v18, %v4653_v9  ;;  %v4933_v27 = vadd.f32 %v4656_v23, %v4338_v14  ;;  %v4934_v21 = vadd.f32 %v4658_v3, %v4339_v45  ;;  %v14033_v41 = vld [vmem:[#allocation47_spill] sm:$0xff]  ;;  %v14037_v14 = vld [vmem:[#allocation48_spill] sm:$0xff] }
 0x1a2   : > { %v4931_v53 = vadd.f32 %v4652_v13, %v4336_v26  ;;  %v4932_v33 = vadd.f32 %v4654_v0, %v4337_v46  ;;  %v5248_v18 = vrot.slane %v5043_v15, 2  ;;  %v13220_v5 = vrot.slane %v8793_v51, 2  ;;  %14032 = vst [vmem:[#allocation101_spill] sm:$0xff] %v8804_v25 }
 0x1a3   : > { %v8807_v58 = vadd.f32 %v1249_v22, %v14033_v41  ;;  %v14035_v9 = vrot.slane %v8586_v60, 2  ;;  %v14036_v46 = vrot.slane %v8599_v8, 2  ;;  %v8816_v45 = vadd.f32 %v1251_v48, %v14037_v14  ;;  %v14041_v48 = vld [vmem:[#allocation3_spill] sm:$0xff] }
 0x1a4   : > { %v8819_v15 = vadd.f32 %v1253_v1, %v14039_v35  ;;  %v5251_v40 = vsel %vm2437_vm1, %v5246_v55, %v13221_v16  ;;  %v5253_v60 = vsel %vm2437_vm1, %v5248_v18, %v13220_v5  ;;  %v1452_v13 = vmul.f32 %v14041_v48, %v13946_v31  ;;  %v14042_v1 = vld [vmem:[#allocation6_spill] sm:$0xff] }
 0x1a5   : > { %14034 = vst [vmem:[#allocation121_spill] sm:$0xff] %v8807_v58  ;;  %v5247_v26 = vsel %vm2437_vm1, %v14035_v9, %v5246_v55  ;;  %v5249_v23 = vsel %vm2437_vm1, %v14036_v46, %v5248_v18  ;;  %14038 = vst [vmem:[#allocation128_spill] sm:$0xff] %v8816_v45  ;;  %v5528_v8 = vadd.f32 %v5251_v40, %v4933_v27  ;;  %v14044_v9 = vld [vmem:[#allocation7_spill] sm:$0xff]  ;;  %v14046_v5 = vrot.slane %v8640_v29, 1 }
 0x1a6   : > { %14040 = vst [vmem:[#allocation129_spill] sm:$0xff] %v8819_v15  ;;  %v5526_v42 = vadd.f32 %v5247_v26, %v4931_v53  ;;  %v8827_v22 = vadd.f32 %v5249_v23, %v4932_v33  ;;  %v8829_v6 = vadd.f32 %v5253_v60, %v4934_v21  ;;  %v1453_v0 = vmul.f32 %v14042_v1, %v13947_v20  ;;  %v14043_v21 = vld [vmem:[#allocation4_spill] sm:$0xff] }
 0x1a7   : > { %v1454_v55 = vmul.f32 %v14041_v48, %v13948_v52  ;;  %v1455_v53 = vmul.f32 %v14042_v1, %v13949_v57  ;;  %v8841_v33 = vmul.f32 0.5, %v5528_v8  ;;  %v5667_v27 = vmul.f32 0.70710677, %v5528_v8 }
 0x1a8   : > { %v8835_v3 = vmul.f32 0.5, %v5526_v42  ;;  %v5666_v41 = vmul.f32 0.70710677, %v5526_v42  ;;  %v1548_v18 = vadd.f32 %v1452_v13, %v14043_v21  ;;  %v1549_v26 = vadd.f32 %v1453_v0, %v14044_v9 }
 0x1a9   : > { %v1550_v31 = vadd.f32 %v1454_v55, %v14043_v21  ;;  %v1551_v20 = vadd.f32 %v1455_v53, %v14044_v9  ;;  %v1659_v46 = vmul.f32 %v13834_v30, %v13948_v52  ;;  %v1660_v23 = vmul.f32 %v7215_v38, %v13949_v57 }
 0x1aa   : > { %6636 = verf.f32 %v5666_v41  ;;  %v8853_v14 = vmul.f32 %v13834_v30, %v13950_v7  ;;  %v8857_v35 = vmul.f32 %v7215_v38, %v13951_v54  ;;  %v2255_v60 = vmul.f32 %v7206_v28, %v13948_v52 }
 0x1ab   : > { %6638 = verf.f32 %v5667_v27  ;;  %v1868_v40 = vrot.slane %v1659_v46, 1  ;;  %v2256_v42 = vmul.f32 %v7217_v39, %v13949_v57  ;;  %v8865_v8 = vmul.f32 %v7206_v28, %v13950_v7 }
 0x1ac   : > { %v1870_v13 = vrot.slane %v1660_v23, 1  ;;  %v13225_v0 = vrot.slane %v8853_v14, 1  ;;  %v13229_v41 = vrot.slane %v8857_v35, 1  ;;  %v8871_v55 = vmul.f32 %v7217_v39, %v13951_v54 }
 0x1ad   : > { %v14045_v53 = vrot.slane %v8632_v11, 1  ;;  %v2464_v27 = vrot.slane %v2255_v60, 2  ;;  %v2466_v46 = vrot.slane %v2256_v42, 2  ;;  %v13228_v57 = vrot.slane %v8865_v8, 2 }
 0x1ae   : > { %v1871_v23 = vsel %vm1841_vm0, %v14046_v5, %v1870_v13  ;;  %v1873_v16 = vsel %vm1841_vm0, %v1868_v40, %v13225_v0  ;;  %v1875_v19 = vsel %vm1841_vm0, %v1870_v13, %v13229_v41  ;;  %v14047_v60 = vrot.slane %v8654_v49, 2 }
 0x1af   : > { %v1869_v52 = vsel %vm1841_vm0, %v14045_v53, %v1868_v40  ;;  %v2145_v11 = vadd.f32 %v1871_v23, %v1549_v26  ;;  %v2146_v45 = vadd.f32 %v1873_v16, %v1550_v31  ;;  %v2147_v53 = vadd.f32 %v1875_v19, %v1551_v20 }
 0x1b0   : > { %v2144_v15 = vadd.f32 %v1869_v52, %v1548_v18  ;;  %v2465_v42 = vsel %vm2437_vm1, %v14047_v60, %v2464_v27  ;;  %v14048_v29 = vrot.slane %v8663_v4, 2  ;;  %v2469_v40 = vsel %vm2437_vm1, %v2464_v27, %v13228_v57 }
 0x1b1   : > { %v13227_v0 = vrot.slane %v8871_v55, 2  ;;  %v2742_v18 = vadd.f32 %v2469_v40, %v2146_v45  ;;  %v2849_v16 = vmul.f32 %v7221_v44, %v13977_v50  ;;  %v2850_v49 = vmul.f32 %v7235_v2, %v13978_v37  ;;  %v14052_v40 = vld [vmem:[#allocation107_spill] sm:$0xff] }
 0x1b2   : > { %v2467_v5 = vsel %vm2437_vm1, %v14048_v29, %v2466_v46  ;;  %v2740_v58 = vadd.f32 %v2465_v42, %v2144_v15  ;;  %v2851_v19 = vmul.f32 %v7221_v44, %v13979_v10  ;;  %v2852_v26 = vmul.f32 %v7235_v2, %v13980_v61 }
 0x1b3   : > { %v2741_v13 = vadd.f32 %v2467_v5, %v2145_v11  ;;  %v2471_v4 = vsel %vm2437_vm1, %v2466_v46, %v13227_v0  ;;  %v3056_v15 = vmul.f32 %v13964_v63, %v13979_v10  ;;  %v3057_v52 = vmul.f32 %v13965_v32, %v13980_v61 }
 0x1b4   : > { %v2743_v45 = vadd.f32 %v2471_v4, %v2147_v53  ;;  %v2945_v31 = vadd.f32 %v2849_v16, %v2740_v58  ;;  %v2947_v27 = vadd.f32 %v2851_v19, %v2742_v18  ;;  %v8913_v23 = vmul.f32 %v13964_v63, %v14021_v59  ;;  %v14051_v58 = vld [vmem:[#allocation12_spill] sm:$0xff] }
 0x1b5   : > { %v2946_v20 = vadd.f32 %v2850_v49, %v2741_v13  ;;  %v8917_v46 = vmul.f32 %v13965_v32, %v14022_v24  ;;  %v3264_v11 = vrot.slane %v3056_v15, 1  ;;  %v3266_v42 = vrot.slane %v3057_v52, 1 }
 0x1b6   : > { %14049 = vst [vmem:[#allocation131_spill] sm:$0xff] %v8913_v23  ;;  %v2948_v60 = vadd.f32 %v2852_v26, %v2743_v45  ;;  %v3651_v53 = vmul.f32 %v13966_v47, %v13979_v10  ;;  %v3652_v29 = vmul.f32 %v14051_v58, %v13980_v61  ;;  %v14053_v13 = vrot.slane %v14052_v40, 1 }
 0x1b7   : > { %14050 = vst [vmem:[#allocation133_spill] sm:$0xff] %v8917_v46  ;;  %v6637_v5 = vpop.eup %6636  ;;  %v13233_v16 = vrot.slane %v8913_v23, 1  ;;  %v13236_v49 = vrot.slane %v8917_v46, 1  ;;  %v8930_v4 = vmul.f32 %v13966_v47, %v14021_v59  ;;  %v14055_v15 = vrot.slane %v8709_v36, 1  ;;  %v1255_v23 = vpop.f32.mrf.mxu0 }
 0x1b8   : > { %v3265_v18 = vsel %vm1841_vm0, %v14053_v13, %v3264_v11  ;;  %v6639_v19 = vpop.eup %6638  ;;  %v5762_v26 = vadd.f32 1.0, %v6637_v5  ;;  %v8937_v40 = vmul.f32 %v14051_v58, %v14022_v24 }
 0x1b9   : > { %14054 = vst [vmem:[#allocation19_spill] sm:$0xff] %v8930_v4  ;;  %v3267_v45 = vsel %vm1841_vm0, %v14055_v15, %v3266_v42  ;;  %v3540_v52 = vadd.f32 %v3265_v18, %v2945_v31  ;;  %v5763_v13 = vadd.f32 1.0, %v6639_v19  ;;  %v3269_v0 = vsel %vm1841_vm0, %v3264_v11, %v13233_v16  ;;  %v14057_v16 = vld [vmem:[#allocation104_spill] sm:$0xff] }
 0x1ba   : > { %14056 = vst [vmem:[#allocation20_spill] sm:$0xff] %v8937_v40  ;;  %v3271_v57 = vsel %vm1841_vm0, %v3266_v42, %v13236_v49  ;;  %v3541_v41 = vadd.f32 %v3267_v45, %v2946_v20  ;;  %v5810_v5 = vmul.f32 %v5762_v26, %v8835_v3  ;;  %v3542_v36 = vadd.f32 %v3269_v0, %v2947_v27  ;;  %v14061_v45 = vld [vmem:[#allocation29_spill] sm:$0xff] }
 0x1bb   : > { %v3543_v25 = vadd.f32 %v3271_v57, %v2948_v60  ;;  %v3859_v15 = vrot.slane %v3651_v53, 2  ;;  %v5811_v31 = vmul.f32 %v5763_v13, %v8841_v33  ;;  %v3861_v18 = vrot.slane %v3652_v29, 2  ;;  %v14059_v57 = vld [vmem:[#allocation95_spill] sm:$0xff]  ;;  %v14062_v13 = vld [vmem:[#allocation30_spill] sm:$0xff]  ;;  %v14064_v49 = vld [vmem:[#allocation17_spill] sm:$0xff] }
 0x1bc   : > { %v13235_v58 = vrot.slane %v8930_v4, 2  ;;  %v13237_v19 = vrot.slane %v8937_v40, 2  ;;  %v5858_v11 = vmul.f32 %v5810_v5, %v8827_v22  ;;  %v14058_v46 = vrot.slane %v14057_v16, 2 }
 0x1bd   : > { %v4244_v3 = vmul.f32 %v13837_v12, %v14024_v17  ;;  %v4245_v0 = vmul.f32 %v13864_v62, %v14026_v56  ;;  %v5859_v33 = vmul.f32 %v5811_v31, %v8829_v6  ;;  %v14060_v20 = vrot.slane %v14059_v57, 2  ;;  %v14063_v31 = vld [vmem:[#allocation14_spill] sm:$0xff] }
 0x1be   : > { %v3860_v42 = vsel %vm2437_vm1, %v14058_v46, %v3859_v15  ;;  %v3864_v22 = vsel %vm2437_vm1, %v3859_v15, %v13235_v58  ;;  %v3866_v46 = vsel %vm2437_vm1, %v3861_v18, %v13237_v19  ;;  %v4246_v6 = vmul.f32 %v13837_v12, %v14061_v45 }
 0x1bf   : > { %v3862_v27 = vsel %vm2437_vm1, %v14060_v20, %v3861_v18  ;;  %v4135_v60 = vadd.f32 %v3860_v42, %v3540_v52  ;;  %v4137_v29 = vadd.f32 %v3864_v22, %v3542_v36  ;;  %v4138_v16 = vadd.f32 %v3866_v46, %v3543_v25  ;;  %v1259_v20 = vpop.f32.mrf.mxu0  ;;  %v14065_v52 = vld [vmem:[#allocation31_spill] sm:$0xff]  ;;  %v14069_v46 = vld [vmem:[#allocation18_spill] sm:$0xff] }
 0x1c0   : > { %v4136_v53 = vadd.f32 %v3862_v27, %v3541_v41  ;;  %v5904_v26 = vpack.c.bf16 %v5859_v33, %v5858_v11  ;;  %v4247_v5 = vmul.f32 %v13864_v62, %v14062_v13  ;;  %v4451_v57 = vmul.f32 %v14063_v31, %v14061_v45  ;;  %v14067_v11 = vld [vmem:[#allocation152_spill] sm:$0xff] }
 0x1c1   : > { %v4340_v15 = vadd.f32 %v4244_v3, %v4135_v60  ;;  %v4452_v18 = vmul.f32 %v14064_v49, %v14062_v13  ;;  %v8977_v41 = vmul.f32 %v14063_v31, %v14065_v52  ;;  %v4342_v25 = vadd.f32 %v4246_v6, %v4137_v29  ;;  %v14068_v3 = vld [vmem:[#allocation15_spill] sm:$0xff] }
 0x1c2   : > { %v4341_v58 = vadd.f32 %v4245_v0, %v4136_v53  ;;  %6477 = vmatprep.mubr.bf16.mxu1 %v5904_v26  ;;  %v4343_v36 = vadd.f32 %v4247_v5, %v4138_v16  ;;  %v8981_v42 = vmul.f32 %v14064_v49, %v14067_v11  ;;  %v4659_v33 = vrot.slane %v4451_v57, 1  ;;  %v14070_v53 = vld [vmem:[#allocation113_spill] sm:$0xff]  ;;  %v1261_v5 = vpop.f32.mrf.mxu0 }
 0x1c3   : > { %14066 = vst [vmem:[#allocation138_spill] sm:$0xff] %v8977_v41  ;;  %v4661_v27 = vrot.slane %v4452_v18, 1  ;;  %v13246_v22 = vrot.slane %v8977_v41, 1  ;;  %v5046_v0 = vmul.f32 %v14068_v3, %v14061_v45  ;;  %v5047_v60 = vmul.f32 %v14069_v46, %v14062_v13 }
 0x1c4   : > { %v14071_v19 = vrot.slane %v14070_v53, 1  ;;  %v13249_v29 = vrot.slane %v8981_v42, 1  ;;  %v8994_v16 = vmul.f32 %v14068_v3, %v14065_v52  ;;  %v8998_v6 = vmul.f32 %v14069_v46, %v14067_v11 }
 0x1c5   : > { %v14072_v57 = vrot.slane %v8772_v34, 1  ;;  %v4664_v53 = vsel %vm1841_vm0, %v4659_v33, %v13246_v22  ;;  %v5254_v49 = vrot.slane %v5046_v0, 2  ;;  %v5256_v4 = vrot.slane %v5047_v60, 2 }
 0x1c6   : > { %v4660_v26 = vsel %vm1841_vm0, %v14071_v19, %v4659_v33  ;;  %v4666_v3 = vsel %vm1841_vm0, %v4661_v27, %v13249_v29  ;;  %v4937_v40 = vadd.f32 %v4664_v53, %v4342_v25  ;;  %v14073_v62 = vrot.slane %v8783_v43, 2  ;;  %v14081_v53 = vld [vmem:[#allocation53_spill] sm:$0xff] }
 0x1c7   : > { %v4662_v18 = vsel %vm1841_vm0, %v14072_v57, %v4661_v27  ;;  %v4935_v19 = vadd.f32 %v4660_v26, %v4340_v15  ;;  %v4938_v46 = vadd.f32 %v4666_v3, %v4343_v36  ;;  %v13248_v57 = vrot.slane %v8994_v16, 2  ;;  %v14075_v26 = vld [vmem:[#allocation50_spill] sm:$0xff]  ;;  %v1263_v36 = vpop.f32.mrf.mxu0 }
 0x1c8   : > { %v4936_v31 = vadd.f32 %v4662_v18, %v4341_v58  ;;  %v5255_v34 = vsel %vm2437_vm1, %v14073_v62, %v5254_v49  ;;  %v13247_v41 = vrot.slane %v8998_v6, 2  ;;  %v14074_v33 = vrot.slane %v8793_v51, 2  ;;  %v14077_v58 = vld [vmem:[#allocation51_spill] sm:$0xff]  ;;  %v14079_v51 = vld [vmem:[#allocation52_spill] sm:$0xff] }
 0x1c9   : > { %v5530_v0 = vadd.f32 %v5255_v34, %v4935_v19  ;;  %v9018_v22 = vadd.f32 %v1255_v23, %v14075_v26  ;;  %v9021_v25 = vadd.f32 %v1259_v20, %v14077_v58  ;;  %v5259_v62 = vsel %vm2437_vm1, %v5254_v49, %v13248_v57 }
 0x1ca   : > { %v5257_v15 = vsel %vm2437_vm1, %v14074_v33, %v5256_v4  ;;  %v5261_v43 = vsel %vm2437_vm1, %v5256_v4, %v13247_v41  ;;  %v9032_v3 = vadd.f32 %v1261_v5, %v14079_v51  ;;  %v5532_v60 = vadd.f32 %v5259_v62, %v4937_v40 }
 0x1cb   : > { %14076 = vst [vmem:[#allocation38_spill] sm:$0xff] %v9018_v22  ;;  %14078 = vst [vmem:[#allocation39_spill] sm:$0xff] %v9021_v25  ;;  %v9029_v27 = vadd.f32 %v5257_v15, %v4936_v31  ;;  %v9034_v23 = vadd.f32 %v5261_v43, %v4938_v46  ;;  %v9036_v18 = vmul.f32 0.5, %v5530_v0  ;;  %v5668_v20 = vmul.f32 0.70710677, %v5530_v0 }
 0x1cc   : > { %14080 = vst [vmem:[#allocation40_spill] sm:$0xff] %v9032_v3  ;;  %v9039_v19 = vadd.f32 %v1263_v36, %v14081_v53  ;;  %v1456_v49 = vmul.f32 %v14041_v48, %v13950_v7  ;;  %v1457_v4 = vmul.f32 %v14042_v1, %v13951_v54  ;;  %v1458_v31 = vmul.f32 %v14041_v48, %v13977_v50 }
 0x1cd   : > { %v9047_v5 = vmul.f32 0.5, %v5532_v60  ;;  %v5669_v40 = vmul.f32 0.70710677, %v5532_v60  ;;  %6640 = verf.f32 %v5668_v20  ;;  %v1459_v46 = vmul.f32 %v14042_v1, %v13978_v37 }
 0x1ce   : > { %14082 = vst [vmem:[#allocation41_spill] sm:$0xff] %v9039_v19  ;;  %v1552_v34 = vadd.f32 %v1456_v49, %v14043_v21  ;;  %v1553_v33 = vadd.f32 %v1457_v4, %v14044_v9  ;;  %v1554_v15 = vadd.f32 %v1458_v31, %v14043_v21  ;;  %v1663_v7 = vmul.f32 %v13834_v30, %v13977_v50 }
 0x1cf   : > { %6642 = verf.f32 %v5669_v40  ;;  %v1555_v54 = vadd.f32 %v1459_v46, %v14044_v9  ;;  %v1664_v0 = vmul.f32 %v7215_v38, %v13978_v37  ;;  %v9061_v26 = vmul.f32 %v13834_v30, %v13979_v10 }
 0x1d0   : > { %v9065_v58 = vmul.f32 %v7215_v38, %v13980_v61  ;;  %v1876_v36 = vrot.slane %v1663_v7, 1  ;;  %v2259_v62 = vmul.f32 %v7206_v28, %v13977_v50  ;;  %v2260_v43 = vmul.f32 %v7217_v39, %v13978_v37 }
 0x1d1   : > { %v1878_v51 = vrot.slane %v1664_v0, 1  ;;  %v13250_v60 = vrot.slane %v9061_v26, 1  ;;  %v9074_v20 = vmul.f32 %v7206_v28, %v13979_v10  ;;  %v9078_v53 = vmul.f32 %v7217_v39, %v13980_v61 }
 0x1d2   : > { %v14083_v49 = vrot.slane %v8853_v14, 1  ;;  %v13253_v50 = vrot.slane %v9065_v58, 1  ;;  %v2472_v31 = vrot.slane %v2259_v62, 2  ;;  %v2474_v40 = vrot.slane %v2260_v43, 2 }
 0x1d3   : > { %v14084_v37 = vrot.slane %v8857_v35, 1  ;;  %v1881_v7 = vsel %vm1841_vm0, %v1876_v36, %v13250_v60  ;;  %v13252_v41 = vrot.slane %v9074_v20, 2  ;;  %v14085_v62 = vrot.slane %v8865_v8, 2 }
 0x1d4   : > { %v1877_v4 = vsel %vm1841_vm0, %v14083_v49, %v1876_v36  ;;  %v1883_v14 = vsel %vm1841_vm0, %v1878_v51, %v13253_v50  ;;  %v2150_v57 = vadd.f32 %v1881_v7, %v1554_v15  ;;  %v13251_v36 = vrot.slane %v9078_v53, 2 }
 0x1d5   : > { %v1879_v46 = vsel %vm1841_vm0, %v14084_v37, %v1878_v51  ;;  %v2148_v0 = vadd.f32 %v1877_v4, %v1552_v34  ;;  %v2473_v43 = vsel %vm2437_vm1, %v14085_v62, %v2472_v31  ;;  %v2151_v35 = vadd.f32 %v1883_v14, %v1555_v54 }
 0x1d6   : > { %v2149_v49 = vadd.f32 %v1879_v46, %v1553_v33  ;;  %v14086_v37 = vrot.slane %v8871_v55, 2  ;;  %v2477_v34 = vsel %vm2437_vm1, %v2472_v31, %v13252_v41  ;;  %v2853_v33 = vmul.f32 %v7221_v44, %v14021_v59  ;;  %v14091_v41 = vld [vmem:[#allocation133_spill] sm:$0xff] }
 0x1d7   : > { %v2744_v4 = vadd.f32 %v2473_v43, %v2148_v0  ;;  %v2746_v51 = vadd.f32 %v2477_v34, %v2150_v57  ;;  %v2479_v8 = vsel %vm2437_vm1, %v2474_v40, %v13251_v36  ;;  %v2854_v55 = vmul.f32 %v7235_v2, %v14022_v24 }
 0x1d8   : > { %v2475_v29 = vsel %vm2437_vm1, %v14086_v37, %v2474_v40  ;;  %v2855_v15 = vmul.f32 %v7221_v44, %v14024_v17  ;;  %v2856_v54 = vmul.f32 %v7235_v2, %v14026_v56  ;;  %v2747_v31 = vadd.f32 %v2479_v8, %v2151_v35 }
 0x1d9   : > { %v2745_v60 = vadd.f32 %v2475_v29, %v2149_v49  ;;  %v2949_v46 = vadd.f32 %v2853_v33, %v2744_v4  ;;  %v3060_v29 = vmul.f32 %v13964_v63, %v14024_v17  ;;  %v3061_v57 = vmul.f32 %v13965_v32, %v14026_v56 }
 0x1da   : > { %v2951_v0 = vadd.f32 %v2855_v15, %v2746_v51  ;;  %v9121_v40 = vmul.f32 %v13964_v63, %v14061_v45  ;;  %v9125_v14 = vmul.f32 %v13965_v32, %v14062_v13  ;;  %v6641_v49 = vpop.eup %6640  ;;  %v2952_v62 = vadd.f32 %v2856_v54, %v2747_v31  ;;  %v14088_v51 = vld [vmem:[#allocation12_spill] sm:$0xff] }
 0x1db   : > { %v2950_v7 = vadd.f32 %v2854_v55, %v2745_v60  ;;  %v3272_v43 = vrot.slane %v3060_v29, 1  ;;  %v3274_v35 = vrot.slane %v3061_v57, 1  ;;  %v3655_v37 = vmul.f32 %v13966_v47, %v14024_v17  ;;  %v14089_v55 = vld [vmem:[#allocation131_spill] sm:$0xff] }
 0x1dc   : > { %14087 = vst [vmem:[#allocation147_spill] sm:$0xff] %v9125_v14  ;;  %v5764_v34 = vadd.f32 1.0, %v6641_v49  ;;  %v13261_v4 = vrot.slane %v9121_v40, 1  ;;  %v13260_v60 = vrot.slane %v9125_v14, 1  ;;  %v3656_v33 = vmul.f32 %v14088_v51, %v14026_v56  ;;  %v6643_v8 = vpop.eup %6642 }
 0x1dd   : > { %v14090_v15 = vrot.slane %v14089_v55, 1  ;;  %v14092_v54 = vrot.slane %v14091_v41, 1  ;;  %v9141_v29 = vmul.f32 %v13966_v47, %v14061_v45  ;;  %v9145_v57 = vmul.f32 %v14088_v51, %v14062_v13 }
 0x1de   : > { %v5765_v49 = vadd.f32 1.0, %v6643_v8  ;;  %v5812_v50 = vmul.f32 %v5764_v34, %v9036_v18  ;;  %v3277_v55 = vsel %vm1841_vm0, %v3272_v43, %v13261_v4  ;;  %v3279_v41 = vsel %vm1841_vm0, %v3274_v35, %v13260_v60 }
 0x1df   : > { %v3273_v36 = vsel %vm1841_vm0, %v14090_v15, %v3272_v43  ;;  %v3275_v31 = vsel %vm1841_vm0, %v14092_v54, %v3274_v35  ;;  %14093 = vst [vmem:[#allocation116_spill] sm:$0xff] %v9141_v29  ;;  %14094 = vst [vmem:[#allocation119_spill] sm:$0xff] %v9145_v57  ;;  %v1265_v15 = vpop.f32.mrf.mxu0  ;;  %v3546_v3 = vadd.f32 %v3277_v55, %v2951_v0  ;;  %v3867_v8 = vrot.slane %v3655_v37, 2  ;;  %v14095_v35 = vld [vmem:[#allocation16_spill] sm:$0xff] }
 0x1e0   : > { %v3544_v54 = vadd.f32 %v3273_v36, %v2949_v46  ;;  %v3545_v19 = vadd.f32 %v3275_v31, %v2950_v7  ;;  %v3547_v25 = vadd.f32 %v3279_v41, %v2952_v62  ;;  %v5813_v22 = vmul.f32 %v5765_v49, %v9047_v5  ;;  %v14096_v46 = vld [vmem:[#allocation19_spill] sm:$0xff]  ;;  %v14098_v0 = vld [vmem:[#allocation20_spill] sm:$0xff] }
 0x1e1   : > { %v5860_v51 = vmul.f32 %v5812_v50, %v9029_v27  ;;  %v3869_v47 = vrot.slane %v3656_v33, 2  ;;  %v13265_v18 = vrot.slane %v9141_v29, 2  ;;  %v13267_v34 = vrot.slane %v9145_v57, 2  ;;  %v14100_v62 = vld [vmem:[#allocation32_spill] sm:$0xff]  ;;  %v1269_v33 = vpop.f32.mrf.mxu0  ;;  %v14103_v29 = vld [vmem:[#allocation17_spill] sm:$0xff] }
 0x1e2   : > { %v4248_v43 = vmul.f32 %v13837_v12, %v14065_v52  ;;  %v4249_v60 = vmul.f32 %v14095_v35, %v14067_v11  ;;  %v5861_v36 = vmul.f32 %v5813_v22, %v9034_v23  ;;  %v14097_v7 = vrot.slane %v14096_v46, 2 }
 0x1e3   : > { %v14099_v27 = vrot.slane %v14098_v0, 2  ;;  %v4250_v37 = vmul.f32 %v13837_v12, %v14100_v62  ;;  %v3872_v31 = vsel %vm2437_vm1, %v3867_v8, %v13265_v18  ;;  %v3874_v22 = vsel %vm2437_vm1, %v3869_v47, %v13267_v34  ;;  %v14102_v12 = vld [vmem:[#allocation14_spill] sm:$0xff] }
 0x1e4   : > { %v3868_v5 = vsel %vm2437_vm1, %v14097_v7, %v3867_v8  ;;  %v5905_v55 = vpack.c.bf16 %v5861_v36, %v5860_v51  ;;  %v4141_v41 = vadd.f32 %v3872_v31, %v3546_v3  ;;  %v4142_v46 = vadd.f32 %v3874_v22, %v3547_v25  ;;  %v14101_v7 = vld [vmem:[#allocation157_spill] sm:$0xff]  ;;  %v14105_v3 = vld [vmem:[#allocation34_spill] sm:$0xff]  ;;  %v1271_v51 = vpop.f32.mrf.mxu0 }
 0x1e5   : > { %v3870_v50 = vsel %vm2437_vm1, %v14099_v27, %v3869_v47  ;;  %v4139_v23 = vadd.f32 %v3868_v5, %v3544_v54  ;;  %v4251_v0 = vmul.f32 %v14095_v35, %v14101_v7  ;;  %v4455_v14 = vmul.f32 %v14102_v12, %v14100_v62  ;;  %v14104_v47 = vld [vmem:[#allocation33_spill] sm:$0xff]  ;;  %v14108_v5 = vld [vmem:[#allocation18_spill] sm:$0xff] }
 0x1e6   : > { %v4140_v49 = vadd.f32 %v3870_v50, %v3545_v19  ;;  %v4456_v8 = vmul.f32 %v14103_v29, %v14101_v7  ;;  %6478 = vmatmul.mubr.bf16.gmra.mxu1 %v5905_v55  ;;  %v4346_v18 = vadd.f32 %v4250_v37, %v4141_v41  ;;  %v9185_v19 = vmul.f32 %v14102_v12, %v14104_v47  ;;  %v1273_v12 = vpop.f32.mrf.mxu0 }
 0x1e7   : > { %v4344_v27 = vadd.f32 %v4248_v43, %v4139_v23  ;;  %v4347_v57 = vadd.f32 %v4251_v0, %v4142_v46  ;;  %v9189_v25 = vmul.f32 %v14103_v29, %v14105_v3  ;;  %v4667_v54 = vrot.slane %v4455_v14, 1  ;;  %v14107_v43 = vld [vmem:[#allocation15_spill] sm:$0xff]  ;;  %v14109_v14 = vld [vmem:[#allocation138_spill] sm:$0xff] }
 0x1e8   : > { %v4345_v4 = vadd.f32 %v4249_v60, %v4140_v49  ;;  %v4669_v60 = vrot.slane %v4456_v8, 1  ;;  %v5050_v36 = vmul.f32 %v14107_v43, %v14100_v62  ;;  %v5051_v50 = vmul.f32 %v14108_v5, %v14101_v7 }
 0x1e9   : > { %14106 = vst [vmem:[#allocation124_spill] sm:$0xff] %v9189_v25  ;;  %v13273_v37 = vrot.slane %v9185_v19, 1  ;;  %v13277_v31 = vrot.slane %v9189_v25, 1  ;;  %v9199_v22 = vmul.f32 %v14107_v43, %v14104_v47  ;;  %v9203_v23 = vmul.f32 %v14108_v5, %v14105_v3 }
 0x1ea   : > { %v14110_v49 = vrot.slane %v14109_v14, 1  ;;  %v14111_v41 = vrot.slane %v8981_v42, 1  ;;  %v5262_v0 = vrot.slane %v5050_v36, 2  ;;  %v5264_v8 = vrot.slane %v5051_v50, 2 }
 0x1eb   : > { %v4672_v34 = vsel %vm1841_vm0, %v4667_v54, %v13273_v37  ;;  %v4674_v43 = vsel %vm1841_vm0, %v4669_v60, %v13277_v31  ;;  %v14113_v36 = vrot.slane %v8998_v6, 2 }
 0x1ec   : > { %v4668_v55 = vsel %vm1841_vm0, %v14110_v49, %v4667_v54  ;;  %v4670_v46 = vsel %vm1841_vm0, %v14111_v41, %v4669_v60  ;;  %v4941_v14 = vadd.f32 %v4672_v34, %v4346_v18  ;;  %v4942_v35 = vadd.f32 %v4674_v43, %v4347_v57  ;;  %v14116_v18 = vld [vmem:[#allocation55_spill] sm:$0xff]  ;;  %v14120_v60 = vld [vmem:[#allocation57_spill] sm:$0xff] }
 0x1ed   : > { %v4939_v5 = vadd.f32 %v4668_v55, %v4344_v27  ;;  %v4940_v29 = vadd.f32 %v4670_v46, %v4345_v4  ;;  %v14112_v49 = vrot.slane %v8994_v16, 2  ;;  %v5265_v50 = vsel %vm2437_vm1, %v14113_v36, %v5264_v8  ;;  %v14114_v27 = vld [vmem:[#allocation54_spill] sm:$0xff]  ;;  %v14118_v16 = vld [vmem:[#allocation56_spill] sm:$0xff] }
 0x1ee   : > { %v13276_v41 = vrot.slane %v9199_v22, 2  ;;  %v13275_v54 = vrot.slane %v9203_v23, 2  ;;  %v9228_v4 = vadd.f32 %v1265_v15, %v14114_v27  ;;  %v9231_v57 = vadd.f32 %v1269_v33, %v14116_v18 }
 0x1ef   : > { %v5263_v42 = vsel %vm2437_vm1, %v14112_v49, %v5262_v0  ;;  %v9225_v25 = vadd.f32 %v5265_v50, %v4940_v29  ;;  %v9234_v34 = vadd.f32 %v1271_v51, %v14118_v16  ;;  %v9237_v6 = vadd.f32 %v1273_v12, %v14120_v60 }
 0x1f0   : > { %v5534_v37 = vadd.f32 %v5263_v42, %v4939_v5  ;;  %14115 = vst [vmem:[#allocation132_spill] sm:$0xff] %v9228_v4  ;;  %14117 = vst [vmem:[#allocation88_spill] sm:$0xff] %v9231_v57  ;;  %v5267_v43 = vsel %vm2437_vm1, %v5262_v0, %v13276_v41  ;;  %v5269_v29 = vsel %vm2437_vm1, %v5264_v8, %v13275_v54  ;;  %v14124_v54 = vrot.slane %v9074_v20, 2 }
 0x1f1   : > { %14119 = vst [vmem:[#allocation21_spill] sm:$0xff] %v9234_v34  ;;  %14121 = vst [vmem:[#allocation22_spill] sm:$0xff] %v9237_v6  ;;  %v5536_v55 = vadd.f32 %v5267_v43, %v4941_v14  ;;  %v9247_v33 = vadd.f32 %v5269_v29, %v4942_v35  ;;  %v1460_v51 = vmul.f32 %v14041_v48, %v13979_v10 }
 0x1f2   : > { %v9245_v5 = vmul.f32 0.5, %v5534_v37  ;;  %v5670_v15 = vmul.f32 0.70710677, %v5534_v37  ;;  %v1461_v12 = vmul.f32 %v14042_v1, %v13980_v61  ;;  %v1462_v46 = vmul.f32 %v14041_v48, %v14021_v59 }
 0x1f3   : > { %v1463_v0 = vmul.f32 %v14042_v1, %v14022_v24  ;;  %v1667_v8 = vmul.f32 %v13834_v30, %v14021_v59  ;;  %v9259_v37 = vmul.f32 0.5, %v5536_v55  ;;  %v5671_v35 = vmul.f32 0.70710677, %v5536_v55 }
 0x1f4   : > { %6644 = verf.f32 %v5670_v15  ;;  %v1556_v14 = vadd.f32 %v1460_v51, %v14043_v21  ;;  %v1557_v10 = vadd.f32 %v1461_v12, %v14044_v9  ;;  %v1558_v49 = vadd.f32 %v1462_v46, %v14043_v21 }
 0x1f5   : > { %v1559_v61 = vadd.f32 %v1463_v0, %v14044_v9  ;;  %v1668_v42 = vmul.f32 %v7215_v38, %v14022_v24  ;;  %v9269_v36 = vmul.f32 %v13834_v30, %v14024_v17  ;;  %6646 = verf.f32 %v5671_v35 }
 0x1f6   : > { %v9273_v50 = vmul.f32 %v7215_v38, %v14026_v56  ;;  %v1884_v27 = vrot.slane %v1667_v8, 1  ;;  %v2263_v18 = vmul.f32 %v7206_v28, %v14021_v59  ;;  %v2264_v43 = vmul.f32 %v7217_v39, %v14022_v24 }
 0x1f7   : > { %v1886_v16 = vrot.slane %v1668_v42, 1  ;;  %v13281_v60 = vrot.slane %v9269_v36, 1  ;;  %v9282_v29 = vmul.f32 %v7206_v28, %v14024_v17  ;;  %v14122_v15 = vrot.slane %v9061_v26, 1 }
 0x1f8   : > { %v13280_v51 = vrot.slane %v9273_v50, 1  ;;  %v9290_v12 = vmul.f32 %v7217_v39, %v14026_v56  ;;  %v2480_v59 = vrot.slane %v2263_v18, 2  ;;  %v14123_v46 = vrot.slane %v9065_v58, 1 }
 0x1f9   : > { %v1885_v55 = vsel %vm1841_vm0, %v14122_v15, %v1884_v27  ;;  %v1889_v24 = vsel %vm1841_vm0, %v1884_v27, %v13281_v60  ;;  %v2482_v35 = vrot.slane %v2264_v43, 2  ;;  %v14125_v58 = vrot.slane %v9078_v53, 2 }
 0x1fa   : > { %v1887_v0 = vsel %vm1841_vm0, %v14123_v46, %v1886_v16  ;;  %v2152_v8 = vadd.f32 %v1885_v55, %v1556_v14  ;;  %v1891_v26 = vsel %vm1841_vm0, %v1886_v16, %v13280_v51  ;;  %v2154_v15 = vadd.f32 %v1889_v24, %v1558_v49 }
 0x1fb   : > { %v2153_v42 = vadd.f32 %v1887_v0, %v1557_v10  ;;  %v2481_v18 = vsel %vm2437_vm1, %v14124_v54, %v2480_v59  ;;  %v2155_v41 = vadd.f32 %v1891_v26, %v1559_v61  ;;  %v2483_v46 = vsel %vm2437_vm1, %v14125_v58, %v2482_v35 }
 0x1fc   : > { %v13279_v31 = vrot.slane %v9282_v29, 2  ;;  %v13278_v14 = vrot.slane %v9290_v12, 2  ;;  %v2748_v27 = vadd.f32 %v2481_v18, %v2152_v8  ;;  %v2857_v16 = vmul.f32 %v7221_v44, %v14061_v45 }
 0x1fd   : > { %v2749_v43 = vadd.f32 %v2483_v46, %v2153_v42  ;;  %v2858_v10 = vmul.f32 %v7235_v2, %v14062_v13  ;;  %v2859_v54 = vmul.f32 %v7221_v44, %v14065_v52  ;;  %v2860_v49 = vmul.f32 %v7235_v2, %v14067_v11  ;;  %v14128_v46 = vld [vmem:[#allocation12_spill] sm:$0xff] }
 0x1fe   : > { %v2485_v20 = vsel %vm2437_vm1, %v2480_v59, %v13279_v31  ;;  %v2487_v53 = vsel %vm2437_vm1, %v2482_v35, %v13278_v14  ;;  %v2953_v0 = vadd.f32 %v2857_v16, %v2748_v27  ;;  %v3064_v8 = vmul.f32 %v13964_v63, %v14065_v52 }
 0x1ff   : > { %v2750_v61 = vadd.f32 %v2485_v20, %v2154_v15  ;;  %v2751_v55 = vadd.f32 %v2487_v53, %v2155_v41  ;;  %v2954_v24 = vadd.f32 %v2858_v10, %v2749_v43  ;;  %v3065_v59 = vmul.f32 %v13965_v32, %v14067_v11  ;;  %v14127_v41 = vld [vmem:[#allocation9_spill] sm:$0xff] }
 0x200   : > { %v9329_v26 = vmul.f32 %v13964_v63, %v14100_v62  ;;  %v9333_v35 = vmul.f32 %v13965_v32, %v14101_v7  ;;  %v3659_v58 = vmul.f32 %v14127_v41, %v14065_v52  ;;  %v3660_v27 = vmul.f32 %v14128_v46, %v14067_v11 }
 0x201   : > { %v6645_v42 = vpop.eup %6644  ;;  %v2955_v18 = vadd.f32 %v2859_v54, %v2750_v61  ;;  %v2956_v15 = vadd.f32 %v2860_v49, %v2751_v55  ;;  %v3280_v16 = vrot.slane %v3064_v8, 1  ;;  %v3282_v10 = vrot.slane %v3065_v59, 1  ;;  %v14132_v59 = vld [vmem:[#allocation147_spill] sm:$0xff] }
 0x202   : > { %14126 = vst [vmem:[#allocation23_spill] sm:$0xff] %v9329_v26  ;;  %v5766_v43 = vadd.f32 1.0, %v6645_v42  ;;  %v13288_v20 = vrot.slane %v9329_v26, 1  ;;  %v9343_v14 = vmul.f32 %v14127_v41, %v14100_v62  ;;  %v9347_v54 = vmul.f32 %v14128_v46, %v14101_v7  ;;  %v6647_v61 = vpop.eup %6646 }
 0x203   : > { %v3875_v49 = vrot.slane %v3659_v58, 2  ;;  %v14131_v42 = vrot.slane %v9121_v40, 1  ;;  %v14133_v31 = vrot.slane %v14132_v59, 1  ;;  %v5767_v53 = vadd.f32 1.0, %v6647_v61 }
 0x204   : > { %14129 = vst [vmem:[#allocation42_spill] sm:$0xff] %v9343_v14  ;;  %14130 = vst [vmem:[#allocation43_spill] sm:$0xff] %v9347_v54  ;;  %v5814_v55 = vmul.f32 %v5766_v43, %v9245_v5  ;;  %v3285_v60 = vsel %vm1841_vm0, %v3280_v16, %v13288_v20  ;;  %v14134_v6 = vrot.slane %v9333_v35, 1  ;;  %v3877_v46 = vrot.slane %v3660_v27, 2 }
 0x205   : > { %v3281_v8 = vsel %vm1841_vm0, %v14131_v42, %v3280_v16  ;;  %v3283_v51 = vsel %vm1841_vm0, %v14133_v31, %v3282_v10  ;;  %v3550_v40 = vadd.f32 %v3285_v60, %v2955_v18  ;;  %v14135_v42 = vld [vmem:[#allocation116_spill] sm:$0xff]  ;;  %v1275_v31 = vpop.f32.mrf.mxu0  ;;  %v5815_v26 = vmul.f32 %v5767_v53, %v9259_v37  ;;  %v14140_v18 = vld [vmem:[#allocation119_spill] sm:$0xff] }
 0x206   : > { %v3287_v58 = vsel %vm1841_vm0, %v3282_v10, %v14134_v6  ;;  %v3548_v34 = vadd.f32 %v3281_v8, %v2953_v0  ;;  %v3549_v57 = vadd.f32 %v3283_v51, %v2954_v24  ;;  %v5862_v5 = vmul.f32 %v5814_v55, %v9225_v25  ;;  %v14137_v6 = vld [vmem:[#allocation13_spill] sm:$0xff]  ;;  %v14138_v25 = vld [vmem:[#allocation16_spill] sm:$0xff]  ;;  %v14139_v0 = vld [vmem:[#allocation35_spill] sm:$0xff] }
 0x207   : > { %v3551_v43 = vadd.f32 %v3287_v58, %v2956_v15  ;;  %v14136_v4 = vrot.slane %v14135_v42, 2  ;;  %v13290_v16 = vrot.slane %v9343_v14, 2  ;;  %v13293_v61 = vrot.slane %v9347_v54, 2  ;;  %v14142_v8 = vld [vmem:[#allocation37_spill] sm:$0xff]  ;;  %v1279_v42 = vpop.f32.mrf.mxu0 }
 0x208   : > { %v4252_v51 = vmul.f32 %v14137_v6, %v14104_v47  ;;  %v4253_v60 = vmul.f32 %v14138_v25, %v14105_v3  ;;  %v4254_v24 = vmul.f32 %v14137_v6, %v14139_v0  ;;  %v14141_v15 = vrot.slane %v14140_v18, 2  ;;  %v14145_v6 = vld [vmem:[#allocation90_spill] sm:$0xff] }
 0x209   : > { %v3876_v59 = vsel %vm2437_vm1, %v14136_v4, %v3875_v49  ;;  %v5863_v4 = vmul.f32 %v5815_v26, %v9247_v33  ;;  %v3880_v27 = vsel %vm2437_vm1, %v3875_v49, %v13290_v16  ;;  %v4255_v58 = vmul.f32 %v14138_v25, %v14142_v8 }
 0x20a   : > { %v4143_v20 = vadd.f32 %v3876_v59, %v3548_v34  ;;  %v3878_v37 = vsel %vm2437_vm1, %v14141_v15, %v3877_v46  ;;  %v3882_v34 = vsel %vm2437_vm1, %v3877_v46, %v13293_v61  ;;  %v4145_v53 = vadd.f32 %v3880_v27, %v3550_v40  ;;  %v14143_v59 = vld [vmem:[#allocation14_spill] sm:$0xff]  ;;  %v14144_v15 = vld [vmem:[#allocation17_spill] sm:$0xff] }
 0x20b   : > { %v4144_v10 = vadd.f32 %v3878_v37, %v3549_v57  ;;  %v4146_v55 = vadd.f32 %v3882_v34, %v3551_v43  ;;  %v5906_v33 = vpack.c.bf16 %v5863_v4, %v5862_v5  ;;  %v4459_v18 = vmul.f32 %v14143_v59, %v14139_v0  ;;  %v14147_v46 = vld [vmem:[#allocation97_spill] sm:$0xff]  ;;  %v14148_v43 = vld [vmem:[#allocation15_spill] sm:$0xff]  ;;  %v1281_v34 = vpop.f32.mrf.mxu0 }
 0x20c   : > { %v4348_v26 = vadd.f32 %v4252_v51, %v4143_v20  ;;  %v4460_v14 = vmul.f32 %v14144_v15, %v14142_v8  ;;  %v4350_v16 = vadd.f32 %v4254_v24, %v4145_v53  ;;  %v9393_v57 = vmul.f32 %v14143_v59, %v14145_v6  ;;  %v14151_v53 = vld [vmem:[#allocation124_spill] sm:$0xff] }
 0x20d   : > { %v4349_v49 = vadd.f32 %v4253_v60, %v4144_v10  ;;  %v4351_v54 = vadd.f32 %v4255_v58, %v4146_v55  ;;  %6481 = vmatprep.mubr.bf16.mxu1 %v5906_v33  ;;  %v9397_v40 = vmul.f32 %v14144_v15, %v14147_v46  ;;  %v4675_v5 = vrot.slane %v4459_v18, 1  ;;  %v14149_v60 = vld [vmem:[#allocation18_spill] sm:$0xff] }
 0x20e   : > { %14146 = vst [vmem:[#allocation44_spill] sm:$0xff] %v9393_v57  ;;  %v4677_v20 = vrot.slane %v4460_v14, 1  ;;  %v5054_v51 = vmul.f32 %v14148_v43, %v14139_v0  ;;  %v13303_v4 = vrot.slane %v9393_v57, 1  ;;  %v5055_v24 = vmul.f32 %v14149_v60, %v14142_v8 }
 0x20f   : > { %v9406_v37 = vmul.f32 %v14148_v43, %v14145_v6  ;;  %v9410_v27 = vmul.f32 %v14149_v60, %v14147_v46  ;;  %v14150_v10 = vrot.slane %v9185_v19, 1  ;;  %v14152_v55 = vrot.slane %v14151_v53, 1 }
 0x210   : > { %v13302_v33 = vrot.slane %v9397_v40, 1  ;;  %v5270_v18 = vrot.slane %v5054_v51, 2  ;;  %v4680_v61 = vsel %vm1841_vm0, %v4675_v5, %v13303_v4  ;;  %v5272_v60 = vrot.slane %v5055_v24, 2  ;;  %v14157_v24 = vld [vmem:[#allocation59_spill] sm:$0xff] }
 0x211   : > { %v4676_v14 = vsel %vm1841_vm0, %v14150_v10, %v4675_v5  ;;  %v4678_v58 = vsel %vm1841_vm0, %v14152_v55, %v4677_v20  ;;  %v4945_v59 = vadd.f32 %v4680_v61, %v4350_v16  ;;  %v14153_v10 = vrot.slane %v9199_v22, 2  ;;  %v1283_v5 = vpop.f32.mrf.mxu0  ;;  %v14155_v22 = vld [vmem:[#allocation58_spill] sm:$0xff] }
 0x212   : > { %v4943_v43 = vadd.f32 %v4676_v14, %v4348_v26  ;;  %v4944_v15 = vadd.f32 %v4678_v58, %v4349_v49  ;;  %v4682_v19 = vsel %vm1841_vm0, %v4677_v20, %v13302_v33  ;;  %v13301_v55 = vrot.slane %v9406_v37, 2 }
 0x213   : > { %v5271_v53 = vsel %vm2437_vm1, %v14153_v10, %v5270_v18  ;;  %v4946_v25 = vadd.f32 %v4682_v19, %v4351_v54  ;;  %v14154_v51 = vrot.slane %v9203_v23, 2  ;;  %v13300_v26 = vrot.slane %v9410_v27, 2  ;;  %v14159_v10 = vld [vmem:[#allocation60_spill] sm:$0xff] }
 0x214   : > { %v5538_v49 = vadd.f32 %v5271_v53, %v4943_v43  ;;  %v5275_v20 = vsel %vm2437_vm1, %v5270_v18, %v13301_v55  ;;  %v9439_v61 = vadd.f32 %v1275_v31, %v14155_v22  ;;  %v9442_v14 = vadd.f32 %v1279_v42, %v14157_v24 }
 0x215   : > { %v5273_v57 = vsel %vm2437_vm1, %v14154_v51, %v5272_v60  ;;  %v5277_v23 = vsel %vm2437_vm1, %v5272_v60, %v13300_v26  ;;  %v5540_v54 = vadd.f32 %v5275_v20, %v4945_v59  ;;  %v9452_v18 = vadd.f32 %v1281_v34, %v14159_v10 }
 0x216   : > { %v9436_v16 = vadd.f32 %v5273_v57, %v4944_v15  ;;  %14156 = vst [vmem:[#allocation45_spill] sm:$0xff] %v9439_v61  ;;  %14158 = vst [vmem:[#allocation125_spill] sm:$0xff] %v9442_v14  ;;  %v9447_v58 = vmul.f32 0.5, %v5538_v49  ;;  %v5672_v43 = vmul.f32 0.70710677, %v5538_v49  ;;  %v9449_v19 = vadd.f32 %v5277_v23, %v4946_v25  ;;  %v14161_v15 = vld [vmem:[#allocation61_spill] sm:$0xff]  ;;  %v1285_v14 = vpop.f32.mrf.mxu0 }
 0x217   : > { %14160 = vst [vmem:[#allocation106_spill] sm:$0xff] %v9452_v18  ;;  %v9455_v57 = vadd.f32 %v1283_v5, %v14161_v15  ;;  %v1464_v31 = vmul.f32 %v14041_v48, %v14024_v17  ;;  %v9459_v42 = vmul.f32 0.5, %v5540_v54  ;;  %v5673_v53 = vmul.f32 0.70710677, %v5540_v54 }
 0x218   : > { %6648 = verf.f32 %v5672_v43  ;;  %v1465_v59 = vmul.f32 %v14042_v1, %v14026_v56  ;;  %v1466_v25 = vmul.f32 %v14041_v48, %v14061_v45  ;;  %v1467_v60 = vmul.f32 %v14042_v1, %v14062_v13 }
 0x219   : > { %14162 = vst [vmem:[#allocation108_spill] sm:$0xff] %v9455_v57  ;;  %v1560_v34 = vadd.f32 %v1464_v31, %v14043_v21  ;;  %v1671_v51 = vmul.f32 %v13834_v30, %v14061_v45  ;;  %6650 = verf.f32 %v5673_v53  ;;  %v1672_v49 = vmul.f32 %v7215_v38, %v14062_v13 }
 0x21a   : > { %v1561_v17 = vadd.f32 %v1465_v59, %v14044_v9  ;;  %v9475_v56 = vmul.f32 %v13834_v30, %v14065_v52  ;;  %v1562_v5 = vadd.f32 %v1466_v25, %v14043_v21  ;;  %v1563_v20 = vadd.f32 %v1467_v60, %v14044_v9 }
 0x21b   : > { %v9481_v22 = vmul.f32 %v7215_v38, %v14067_v11  ;;  %v1892_v24 = vrot.slane %v1671_v51, 1  ;;  %v1894_v23 = vrot.slane %v1672_v49, 1  ;;  %v2267_v43 = vmul.f32 %v7206_v28, %v14061_v45 }
 0x21c   : > { %v13308_v54 = vrot.slane %v9475_v56, 1  ;;  %v2268_v10 = vmul.f32 %v7217_v39, %v14062_v13  ;;  %v14163_v15 = vrot.slane %v9269_v36, 1  ;;  %v9494_v59 = vmul.f32 %v7206_v28, %v14065_v52 }
 0x21d   : > { %v13307_v53 = vrot.slane %v9481_v22, 1  ;;  %v9498_v25 = vmul.f32 %v7217_v39, %v14067_v11  ;;  %v14164_v60 = vrot.slane %v9273_v50, 1  ;;  %v2488_v51 = vrot.slane %v2267_v43, 2 }
 0x21e   : > { %v1893_v31 = vsel %vm1841_vm0, %v14163_v15, %v1892_v24  ;;  %v1897_v13 = vsel %vm1841_vm0, %v1892_v24, %v13308_v54  ;;  %v2490_v55 = vrot.slane %v2268_v10, 2  ;;  %v14165_v4 = vrot.slane %v9282_v29, 2 }
 0x21f   : > { %v1895_v45 = vsel %vm1841_vm0, %v14164_v60, %v1894_v23  ;;  %v2156_v36 = vadd.f32 %v1893_v31, %v1560_v34  ;;  %v1899_v49 = vsel %vm1841_vm0, %v1894_v23, %v13307_v53  ;;  %v2158_v26 = vadd.f32 %v1897_v13, %v1562_v5 }
 0x220   : > { %v2157_v15 = vadd.f32 %v1895_v45, %v1561_v17  ;;  %v2159_v33 = vadd.f32 %v1899_v49, %v1563_v20  ;;  %v2489_v50 = vsel %vm2437_vm1, %v14165_v4, %v2488_v51  ;;  %v13306_v60 = vrot.slane %v9494_v59, 2 }
 0x221   : > { %v13305_v57 = vrot.slane %v9498_v25, 2  ;;  %v14166_v24 = vrot.slane %v9290_v12, 2  ;;  %v2752_v43 = vadd.f32 %v2489_v50, %v2156_v36  ;;  %v2861_v23 = vmul.f32 %v7221_v44, %v14100_v62 }
 0x222   : > { %v2862_v17 = vmul.f32 %v7235_v2, %v14101_v7  ;;  %v2493_v29 = vsel %vm2437_vm1, %v2488_v51, %v13306_v60  ;;  %v2863_v12 = vmul.f32 %v7221_v44, %v14104_v47  ;;  %v2864_v31 = vmul.f32 %v7235_v2, %v14105_v3 }
 0x223   : > { %v2491_v34 = vsel %vm2437_vm1, %v14166_v24, %v2490_v55  ;;  %v2495_v4 = vsel %vm2437_vm1, %v2490_v55, %v13305_v57  ;;  %v2754_v20 = vadd.f32 %v2493_v29, %v2158_v26  ;;  %v2957_v45 = vadd.f32 %v2861_v23, %v2752_v43 }
 0x224   : > { %v2753_v5 = vadd.f32 %v2491_v34, %v2157_v15  ;;  %v2755_v10 = vadd.f32 %v2495_v4, %v2159_v33  ;;  %v3068_v36 = vmul.f32 %v13964_v63, %v14104_v47  ;;  %v3069_v51 = vmul.f32 %v13965_v32, %v14105_v3  ;;  %v14169_v4 = vld [vmem:[#allocation12_spill] sm:$0xff] }
 0x225   : > { %v9537_v55 = vmul.f32 %v13964_v63, %v14139_v0  ;;  %v6649_v49 = vpop.eup %6648  ;;  %v2959_v15 = vadd.f32 %v2863_v12, %v2754_v20  ;;  %v9541_v33 = vmul.f32 %v13965_v32, %v14142_v8  ;;  %v3663_v26 = vmul.f32 %v14127_v41, %v14104_v47 }
 0x226   : > { %v2958_v13 = vadd.f32 %v2862_v17, %v2753_v5  ;;  %v2960_v50 = vadd.f32 %v2864_v31, %v2755_v10  ;;  %v5768_v24 = vadd.f32 1.0, %v6649_v49  ;;  %v3288_v34 = vrot.slane %v3068_v36, 1  ;;  %v6651_v17 = vpop.eup %6650  ;;  %v14172_v36 = vld [vmem:[#allocation23_spill] sm:$0xff] }
 0x227   : > { %14167 = vst [vmem:[#allocation115_spill] sm:$0xff] %v9537_v55  ;;  %14168 = vst [vmem:[#allocation126_spill] sm:$0xff] %v9541_v33  ;;  %v3290_v43 = vrot.slane %v3069_v51, 1  ;;  %v13313_v23 = vrot.slane %v9537_v55, 1  ;;  %v13314_v29 = vrot.slane %v9541_v33, 1  ;;  %v3664_v5 = vmul.f32 %v14169_v4, %v14105_v3 }
 0x228   : > { %v9551_v12 = vmul.f32 %v14127_v41, %v14139_v0  ;;  %v9555_v20 = vmul.f32 %v14169_v4, %v14142_v8  ;;  %v5769_v10 = vadd.f32 1.0, %v6651_v17  ;;  %v5816_v31 = vmul.f32 %v5768_v24, %v9447_v58 }
 0x229   : > { %v14173_v51 = vrot.slane %v14172_v36, 1  ;;  %v14174_v57 = vrot.slane %v9333_v35, 1  ;;  %v3293_v53 = vsel %vm1841_vm0, %v3288_v34, %v13313_v23  ;;  %v3295_v54 = vsel %vm1841_vm0, %v3290_v43, %v13314_v29  ;;  %v14175_v23 = vld [vmem:[#allocation13_spill] sm:$0xff]  ;;  %v1289_v29 = vpop.f32.mrf.mxu0 }
 0x22a   : > { %14170 = vst [vmem:[#allocation110_spill] sm:$0xff] %v9551_v12  ;;  %14171 = vst [vmem:[#allocation117_spill] sm:$0xff] %v9555_v20  ;;  %v5817_v58 = vmul.f32 %v5769_v10, %v9459_v42  ;;  %v5864_v24 = vmul.f32 %v5816_v31, %v9436_v16  ;;  %v3554_v36 = vadd.f32 %v3293_v53, %v2959_v15  ;;  %v3883_v35 = vrot.slane %v3663_v26, 2  ;;  %v14177_v42 = vld [vmem:[#allocation98_spill] sm:$0xff]  ;;  %v14180_v15 = vld [vmem:[#allocation43_spill] sm:$0xff] }
 0x22b   : > { %v3289_v49 = vsel %vm1841_vm0, %v14173_v51, %v3288_v34  ;;  %v3291_v60 = vsel %vm1841_vm0, %v14174_v57, %v3290_v43  ;;  %v3555_v51 = vadd.f32 %v3295_v54, %v2960_v50  ;;  %v3885_v61 = vrot.slane %v3664_v5, 2  ;;  %v14178_v53 = vld [vmem:[#allocation42_spill] sm:$0xff] }
 0x22c   : > { %v3552_v18 = vadd.f32 %v3289_v49, %v2957_v45  ;;  %v3553_v17 = vadd.f32 %v3291_v60, %v2958_v13  ;;  %v13318_v57 = vrot.slane %v9551_v12, 2  ;;  %v13320_v55 = vrot.slane %v9555_v20, 2  ;;  %v14176_v60 = vld [vmem:[#allocation16_spill] sm:$0xff]  ;;  %v14184_v12 = vld [vmem:[#allocation17_spill] sm:$0xff] }
 0x22d   : > { %v5865_v34 = vmul.f32 %v5817_v58, %v9449_v19  ;;  %v4256_v43 = vmul.f32 %v14175_v23, %v14145_v6  ;;  %v4257_v45 = vmul.f32 %v14176_v60, %v14147_v46  ;;  %v4258_v16 = vmul.f32 %v14175_v23, %v14177_v42  ;;  %v14182_v23 = vld [vmem:[#allocation99_spill] sm:$0xff] }
 0x22e   : > { %v14179_v54 = vrot.slane %v14178_v53, 2  ;;  %v14181_v50 = vrot.slane %v14180_v15, 2  ;;  %v3888_v19 = vsel %vm2437_vm1, %v3883_v35, %v13318_v57  ;;  %v3890_v5 = vsel %vm2437_vm1, %v3885_v61, %v13320_v55  ;;  %v14183_v15 = vld [vmem:[#allocation14_spill] sm:$0xff] }
 0x22f   : > { %v5907_v10 = vpack.c.bf16 %v5865_v34, %v5864_v24  ;;  %v4149_v58 = vadd.f32 %v3888_v19, %v3554_v36  ;;  %v4150_v53 = vadd.f32 %v3890_v5, %v3555_v51  ;;  %v4464_v33 = vmul.f32 %v14184_v12, %v14182_v23  ;;  %v14187_v24 = vld [vmem:[#allocation127_spill] sm:$0xff]  ;;  %v1291_v5 = vpop.f32.mrf.mxu0 }
 0x230   : > { %v3884_v13 = vsel %vm2437_vm1, %v14179_v54, %v3883_v35  ;;  %v3886_v26 = vsel %vm2437_vm1, %v14181_v50, %v3885_v61  ;;  %v4259_v54 = vmul.f32 %v14176_v60, %v14182_v23  ;;  %v4463_v50 = vmul.f32 %v14183_v15, %v14177_v42  ;;  %v14185_v61 = vld [vmem:[#allocation120_spill] sm:$0xff] }
 0x231   : > { %v4147_v31 = vadd.f32 %v3884_v13, %v3552_v18  ;;  %v4148_v49 = vadd.f32 %v3886_v26, %v3553_v17  ;;  %6482 = vmatmul.mubr.bf16.gmra.mxu1 %v5907_v10  ;;  %v4354_v20 = vadd.f32 %v4258_v16, %v4149_v58  ;;  %v9601_v18 = vmul.f32 %v14183_v15, %v14185_v61  ;;  %v14188_v26 = vld [vmem:[#allocation15_spill] sm:$0xff]  ;;  %v14190_v10 = vld [vmem:[#allocation44_spill] sm:$0xff] }
 0x232   : > { %v4355_v17 = vadd.f32 %v4259_v54, %v4150_v53  ;;  %v9605_v36 = vmul.f32 %v14184_v12, %v14187_v24  ;;  %v4683_v51 = vrot.slane %v4463_v50, 1  ;;  %v4685_v34 = vrot.slane %v4464_v33, 1 }
 0x233   : > { %v4352_v35 = vadd.f32 %v4256_v43, %v4147_v31  ;;  %v4353_v57 = vadd.f32 %v4257_v45, %v4148_v49  ;;  %14186 = vst [vmem:[#allocation122_spill] sm:$0xff] %v9601_v18  ;;  %v13332_v13 = vrot.slane %v9601_v18, 1  ;;  %v5058_v19 = vmul.f32 %v14188_v26, %v14177_v42  ;;  %v14189_v43 = vld [vmem:[#allocation18_spill] sm:$0xff] }
 0x234   : > { %v5059_v45 = vmul.f32 %v14189_v43, %v14182_v23  ;;  %v9614_v16 = vmul.f32 %v14188_v26, %v14185_v61  ;;  %v14191_v31 = vrot.slane %v14190_v10, 1  ;;  %v14192_v58 = vrot.slane %v9397_v40, 1 }
 0x235   : > { %v13330_v53 = vrot.slane %v9605_v36, 1  ;;  %v9625_v54 = vmul.f32 %v14189_v43, %v14187_v24  ;;  %v4688_v50 = vsel %vm1841_vm0, %v4683_v51, %v13332_v13  ;;  %v5278_v12 = vrot.slane %v5058_v19, 2  ;;  %v14194_v24 = vld [vmem:[#allocation62_spill] sm:$0xff] }
 0x236   : > { %v4684_v49 = vsel %vm1841_vm0, %v14191_v31, %v4683_v51  ;;  %v4686_v33 = vsel %vm1841_vm0, %v14192_v58, %v4685_v34  ;;  %v4949_v40 = vadd.f32 %v4688_v50, %v4354_v20  ;;  %v5280_v31 = vrot.slane %v5059_v45, 2 }
 0x237   : > { %v4947_v55 = vadd.f32 %v4684_v49, %v4352_v35  ;;  %v4948_v26 = vadd.f32 %v4686_v33, %v4353_v57  ;;  %v4690_v10 = vsel %vm1841_vm0, %v4685_v34, %v13330_v53  ;;  %v13329_v58 = vrot.slane %v9614_v16, 2  ;;  %v1293_v57 = vpop.f32.mrf.mxu0 }
 0x238   : > { %v4950_v15 = vadd.f32 %v4690_v10, %v4355_v17  ;;  %v14193_v60 = vrot.slane %v9406_v37, 2  ;;  %v13328_v18 = vrot.slane %v9625_v54, 2  ;;  %v9639_v51 = vadd.f32 %v1285_v14, %v14194_v24  ;;  %v14197_v17 = vld [vmem:[#allocation63_spill] sm:$0xff]  ;;  %v14199_v24 = vld [vmem:[#allocation64_spill] sm:$0xff] }
 0x239   : > { %v14196_v35 = vrot.slane %v9410_v27, 2  ;;  %v5283_v20 = vsel %vm2437_vm1, %v5278_v12, %v13329_v58  ;;  %v9648_v45 = vadd.f32 %v1289_v29, %v14197_v17  ;;  %v9656_v49 = vadd.f32 %v1291_v5, %v14199_v24 }
 0x23a   : > { %v5279_v43 = vsel %vm2437_vm1, %v14193_v60, %v5278_v12  ;;  %14195 = vst [vmem:[#allocation123_spill] sm:$0xff] %v9639_v51  ;;  %v5285_v37 = vsel %vm2437_vm1, %v5280_v31, %v13328_v18  ;;  %v5544_v14 = vadd.f32 %v5283_v20, %v4949_v40  ;;  %v14201_v12 = vld [vmem:[#allocation65_spill] sm:$0xff]  ;;  %v1468_v10 = vmul.f32 %v14041_v48, %v14065_v52 }
 0x23b   : > { %v5281_v19 = vsel %vm2437_vm1, %v14196_v35, %v5280_v31  ;;  %v5542_v34 = vadd.f32 %v5279_v43, %v4947_v55  ;;  %14198 = vst [vmem:[#allocation130_spill] sm:$0xff] %v9648_v45  ;;  %14200 = vst [vmem:[#allocation118_spill] sm:$0xff] %v9656_v49  ;;  %v9658_v27 = vadd.f32 %v5285_v37, %v4950_v15  ;;  %v14221_v45 = vld [vmem:[#allocation101_spill] sm:$0xff] }
 0x23c   : > { %v9653_v60 = vadd.f32 %v5281_v19, %v4948_v26  ;;  %v9663_v55 = vadd.f32 %v1293_v57, %v14201_v12  ;;  %v9665_v29 = vmul.f32 0.5, %v5544_v14  ;;  %v5675_v43 = vmul.f32 0.70710677, %v5544_v14 }
 0x23d   : > { %v9660_v33 = vmul.f32 0.5, %v5542_v34  ;;  %v5674_v50 = vmul.f32 0.70710677, %v5542_v34  ;;  %v1469_v26 = vmul.f32 %v14042_v1, %v14067_v11  ;;  %v1470_v15 = vmul.f32 %v14041_v48, %v14100_v62 }
 0x23e   : > { %14202 = vst [vmem:[#allocation109_spill] sm:$0xff] %v9663_v55  ;;  %v1471_v5 = vmul.f32 %v14042_v1, %v14101_v7  ;;  %v1675_v40 = vmul.f32 %v13834_v30, %v14100_v62  ;;  %v1564_v31 = vadd.f32 %v1468_v10, %v14043_v21  ;;  %v1676_v52 = vmul.f32 %v7215_v38, %v14101_v7 }
 0x23f   : > { %6652 = verf.f32 %v5674_v50  ;;  %v1565_v57 = vadd.f32 %v1469_v26, %v14044_v9  ;;  %v1566_v11 = vadd.f32 %v1470_v15, %v14043_v21  ;;  %v9685_v19 = vmul.f32 %v13834_v30, %v14104_v47 }
 0x240   : > { %6654 = verf.f32 %v5675_v43  ;;  %v1567_v35 = vadd.f32 %v1471_v5, %v14044_v9  ;;  %v9689_v20 = vmul.f32 %v7215_v38, %v14105_v3  ;;  %v1900_v34 = vrot.slane %v1675_v40, 1 }
 0x241   : > { %v1902_v17 = vrot.slane %v1676_v52, 1  ;;  %v2271_v37 = vmul.f32 %v7206_v28, %v14100_v62  ;;  %v2272_v14 = vmul.f32 %v7217_v39, %v14101_v7  ;;  %v13331_v24 = vrot.slane %v9685_v19, 1 }
 0x242   : > { %v13336_v50 = vrot.slane %v9689_v20, 1  ;;  %v9699_v12 = vmul.f32 %v7206_v28, %v14104_v47  ;;  %v9703_v43 = vmul.f32 %v7217_v39, %v14105_v3  ;;  %v14203_v10 = vrot.slane %v9475_v56, 1 }
 0x243   : > { %v14204_v62 = vrot.slane %v9481_v22, 1  ;;  %v2496_v15 = vrot.slane %v2271_v37, 2  ;;  %v2498_v5 = vrot.slane %v2272_v14, 2  ;;  %v1905_v40 = vsel %vm1841_vm0, %v1900_v34, %v13331_v24 }
 0x244   : > { %v1901_v26 = vsel %vm1841_vm0, %v14203_v10, %v1900_v34  ;;  %v1907_v52 = vsel %vm1841_vm0, %v1902_v17, %v13336_v50  ;;  %v2162_v53 = vadd.f32 %v1905_v40, %v1566_v11  ;;  %v14205_v10 = vrot.slane %v9494_v59, 2 }
 0x245   : > { %v1903_v7 = vsel %vm1841_vm0, %v14204_v62, %v1902_v17  ;;  %v2160_v18 = vadd.f32 %v1901_v26, %v1564_v31  ;;  %v2163_v56 = vadd.f32 %v1907_v52, %v1567_v35  ;;  %v14206_v62 = vrot.slane %v9498_v25, 2 }
 0x246   : > { %v2161_v58 = vadd.f32 %v1903_v7, %v1565_v57  ;;  %v2497_v22 = vsel %vm2437_vm1, %v14205_v10, %v2496_v15  ;;  %v13334_v14 = vrot.slane %v9699_v12, 2  ;;  %v13333_v34 = vrot.slane %v9703_v43, 2 }
 0x247   : > { %v2499_v37 = vsel %vm2437_vm1, %v14206_v62, %v2498_v5  ;;  %v2756_v24 = vadd.f32 %v2497_v22, %v2160_v18  ;;  %v2865_v31 = vmul.f32 %v7221_v44, %v14139_v0  ;;  %v2866_v57 = vmul.f32 %v7235_v2, %v14142_v8 }
 0x248   : > { %v2757_v13 = vadd.f32 %v2499_v37, %v2161_v58  ;;  %v2867_v59 = vmul.f32 %v7221_v44, %v14145_v6  ;;  %v2868_v25 = vmul.f32 %v7235_v2, %v14147_v46  ;;  %v2501_v11 = vsel %vm2437_vm1, %v2496_v15, %v13334_v14 }
 0x249   : > { %v2503_v18 = vsel %vm2437_vm1, %v2498_v5, %v13333_v34  ;;  %v3072_v58 = vmul.f32 %v13964_v63, %v14145_v6  ;;  %v3073_v35 = vmul.f32 %v13965_v32, %v14147_v46  ;;  %v2758_v17 = vadd.f32 %v2501_v11, %v2162_v53  ;;  %v14209_v11 = vld [vmem:[#allocation126_spill] sm:$0xff] }
 0x24a   : > { %v2759_v26 = vadd.f32 %v2503_v18, %v2163_v56  ;;  %v2961_v7 = vadd.f32 %v2865_v31, %v2756_v24  ;;  %v2962_v40 = vadd.f32 %v2866_v57, %v2757_v13  ;;  %v9745_v52 = vmul.f32 %v13964_v63, %v14177_v42  ;;  %v14207_v56 = vld [vmem:[#allocation115_spill] sm:$0xff] }
 0x24b   : > { %v9749_v15 = vmul.f32 %v13965_v32, %v14182_v23  ;;  %v3296_v10 = vrot.slane %v3072_v58, 1  ;;  %v3298_v5 = vrot.slane %v3073_v35, 1  ;;  %v2963_v62 = vadd.f32 %v2867_v59, %v2758_v17 }
 0x24c   : > { %v6653_v22 = vpop.eup %6652  ;;  %v2964_v37 = vadd.f32 %v2868_v25, %v2759_v26  ;;  %v3667_v34 = vmul.f32 %v14127_v41, %v14145_v6  ;;  %v3668_v53 = vmul.f32 %v14169_v4, %v14147_v46  ;;  %v14208_v31 = vrot.slane %v14207_v56, 1 }
 0x24d   : > { %v6655_v13 = vpop.eup %6654  ;;  %v5770_v24 = vadd.f32 1.0, %v6653_v22  ;;  %v14210_v18 = vrot.slane %v14209_v11, 1  ;;  %v13335_v35 = vrot.slane %v9745_v52, 1  ;;  %v13339_v25 = vrot.slane %v9749_v15, 1  ;;  %v1295_v11 = vpop.f32.mrf.mxu0 }
 0x24e   : > { %v3297_v57 = vsel %vm1841_vm0, %v14208_v31, %v3296_v10  ;;  %v5771_v59 = vadd.f32 1.0, %v6655_v13  ;;  %v9769_v56 = vmul.f32 %v14127_v41, %v14177_v42  ;;  %v9773_v31 = vmul.f32 %v14169_v4, %v14182_v23 }
 0x24f   : > { %v3299_v58 = vsel %vm1841_vm0, %v14210_v18, %v3298_v5  ;;  %v3556_v17 = vadd.f32 %v3297_v57, %v2961_v7  ;;  %v5818_v14 = vmul.f32 %v5770_v24, %v9660_v33  ;;  %v3301_v22 = vsel %vm1841_vm0, %v3296_v10, %v13335_v35  ;;  %v14213_v35 = vld [vmem:[#allocation110_spill] sm:$0xff] }
 0x250   : > { %v3557_v26 = vadd.f32 %v3299_v58, %v2962_v40  ;;  %14211 = vst [vmem:[#allocation114_spill] sm:$0xff] %v9769_v56  ;;  %14212 = vst [vmem:[#allocation27_spill] sm:$0xff] %v9773_v31  ;;  %v5819_v13 = vmul.f32 %v5771_v59, %v9665_v29  ;;  %v3303_v7 = vsel %vm1841_vm0, %v3298_v5, %v13339_v25  ;;  %v3891_v40 = vrot.slane %v3667_v34, 2  ;;  %v14215_v59 = vld [vmem:[#allocation13_spill] sm:$0xff] }
 0x251   : > { %v3558_v33 = vadd.f32 %v3301_v22, %v2963_v62  ;;  %v5866_v24 = vmul.f32 %v5818_v14, %v9653_v60  ;;  %v3559_v10 = vadd.f32 %v3303_v7, %v2964_v37  ;;  %v3893_v57 = vrot.slane %v3668_v53, 2  ;;  %v14216_v5 = vld [vmem:[#allocation117_spill] sm:$0xff]  ;;  %v14218_v37 = vld [vmem:[#allocation127_spill] sm:$0xff] }
 0x252   : > { %v13342_v18 = vrot.slane %v9769_v56, 2  ;;  %v5867_v58 = vmul.f32 %v5819_v13, %v9658_v27  ;;  %v14214_v50 = vrot.slane %v14213_v35, 2  ;;  %v13344_v29 = vrot.slane %v9773_v31, 2  ;;  %v14219_v27 = vld [vmem:[#allocation16_spill] sm:$0xff]  ;;  %v1299_v35 = vpop.f32.mrf.mxu0  ;;  %v14224_v31 = vld [vmem:[#allocation121_spill] sm:$0xff] }
 0x253   : > { %v4260_v49 = vmul.f32 %v14215_v59, %v14185_v61  ;;  %v14217_v62 = vrot.slane %v14216_v5, 2  ;;  %v4261_v53 = vmul.f32 %v14219_v27, %v14218_v37  ;;  %v14220_v5 = vld [vmem:[#allocation92_spill] sm:$0xff]  ;;  %v4263_v51 = vmul.f32 %v14219_v27, %v14221_v45 }
 0x254   : > { %v3892_v55 = vsel %vm2437_vm1, %v14214_v50, %v3891_v40  ;;  %v3896_v60 = vsel %vm2437_vm1, %v3891_v40, %v13342_v18  ;;  %v5908_v22 = vpack.c.bf16 %v5867_v58, %v5866_v24  ;;  %v3898_v50 = vsel %vm2437_vm1, %v3893_v57, %v13344_v29  ;;  %v14223_v24 = vld [vmem:[#allocation17_spill] sm:$0xff] }
 0x255   : > { %v3894_v34 = vsel %vm2437_vm1, %v14217_v62, %v3893_v57  ;;  %v4151_v14 = vadd.f32 %v3892_v55, %v3556_v17  ;;  %v4153_v7 = vadd.f32 %v3896_v60, %v3558_v33  ;;  %v4154_v25 = vadd.f32 %v3898_v50, %v3559_v10  ;;  %v14222_v17 = vld [vmem:[#allocation14_spill] sm:$0xff]  ;;  %v14226_v57 = vld [vmem:[#allocation128_spill] sm:$0xff] }
 0x256   : > { %v4152_v13 = vadd.f32 %v3894_v34, %v3557_v26  ;;  %v4262_v62 = vmul.f32 %v14215_v59, %v14220_v5  ;;  %6485 = vmatprep.mubr.bf16.mxu1 %v5908_v22  ;;  %v4467_v18 = vmul.f32 %v14222_v17, %v14220_v5  ;;  %v4468_v58 = vmul.f32 %v14223_v24, %v14221_v45 }
 0x257   : > { %v4356_v40 = vadd.f32 %v4260_v49, %v4151_v14  ;;  %v9809_v26 = vmul.f32 %v14222_v17, %v14224_v31  ;;  %v4359_v10 = vadd.f32 %v4263_v51, %v4154_v25  ;;  %v9813_v34 = vmul.f32 %v14223_v24, %v14226_v57  ;;  %v14228_v49 = vld [vmem:[#allocation15_spill] sm:$0xff]  ;;  %v1301_v14 = vpop.f32.mrf.mxu0 }
 0x258   : > { %v4357_v55 = vadd.f32 %v4261_v53, %v4152_v13  ;;  %v4358_v33 = vadd.f32 %v4262_v62, %v4153_v7  ;;  %v5062_v60 = vmul.f32 %v14228_v49, %v14220_v5  ;;  %v4691_v53 = vrot.slane %v4467_v18, 1  ;;  %v14229_v13 = vld [vmem:[#allocation18_spill] sm:$0xff] }
 0x259   : > { %14225 = vst [vmem:[#allocation28_spill] sm:$0xff] %v9809_v26  ;;  %14227 = vst [vmem:[#allocation112_spill] sm:$0xff] %v9813_v34  ;;  %v4693_v22 = vrot.slane %v4468_v58, 1  ;;  %v5063_v29 = vmul.f32 %v14229_v13, %v14221_v45  ;;  %v9823_v51 = vmul.f32 %v14228_v49, %v14224_v31  ;;  %v9827_v25 = vmul.f32 %v14229_v13, %v14226_v57  ;;  %v14230_v62 = vld [vmem:[#allocation122_spill] sm:$0xff]  ;;  %v1303_v31 = vpop.f32.mrf.mxu0 }
 0x25a   : > { %v5286_v7 = vrot.slane %v5062_v60, 2  ;;  %v14231_v24 = vrot.slane %v14230_v62, 1  ;;  %v14232_v58 = vrot.slane %v9605_v36, 1  ;;  %v14233_v56 = vrot.slane %v9809_v26, 1 }
 0x25b   : > { %v5288_v27 = vrot.slane %v5063_v29, 2  ;;  %v14234_v49 = vrot.slane %v9813_v34, 1  ;;  %v13356_v29 = vrot.slane %v9827_v25, 2 }
 0x25c   : > { %v4692_v18 = vsel %vm1841_vm0, %v14231_v24, %v4691_v53  ;;  %v4694_v50 = vsel %vm1841_vm0, %v14232_v58, %v4693_v22  ;;  %v4696_v17 = vsel %vm1841_vm0, %v4691_v53, %v14233_v56  ;;  %v14235_v24 = vrot.slane %v9614_v16, 2 }
 0x25d   : > { %v4698_v59 = vsel %vm1841_vm0, %v4693_v22, %v14234_v49  ;;  %v4951_v13 = vadd.f32 %v4692_v18, %v4356_v40  ;;  %v4952_v57 = vadd.f32 %v4694_v50, %v4357_v55  ;;  %v4953_v60 = vadd.f32 %v4696_v17, %v4358_v33  ;;  %v14237_v40 = vld [vmem:[#allocation66_spill] sm:$0xff] }
 0x25e   : > { %v4954_v62 = vadd.f32 %v4698_v59, %v4359_v10  ;;  %v5287_v36 = vsel %vm2437_vm1, %v14235_v24, %v5286_v7  ;;  %v14236_v58 = vrot.slane %v9625_v54, 2  ;;  %v13361_v56 = vrot.slane %v9823_v51, 2  ;;  %v14239_v59 = vld [vmem:[#allocation67_spill] sm:$0xff]  ;;  %v14241_v54 = vld [vmem:[#allocation68_spill] sm:$0xff]  ;;  %v14243_v10 = vld [vmem:[#allocation69_spill] sm:$0xff] }
 0x25f   : > { %v5546_v53 = vadd.f32 %v5287_v36, %v4951_v13  ;;  %v9852_v55 = vadd.f32 %v1295_v11, %v14237_v40  ;;  %v9858_v17 = vadd.f32 %v1299_v35, %v14239_v59  ;;  %v9861_v33 = vadd.f32 %v1301_v14, %v14241_v54 }
 0x260   : > { %v5289_v26 = vsel %vm2437_vm1, %v14236_v58, %v5288_v27  ;;  %v5291_v16 = vsel %vm2437_vm1, %v5286_v7, %v13361_v56  ;;  %v9864_v49 = vadd.f32 %v1303_v31, %v14243_v10  ;;  %v1472_v35 = vmul.f32 %v14041_v48, %v14104_v47 }
 0x261   : > { %v9849_v34 = vadd.f32 %v5289_v26, %v4952_v57  ;;  %14238 = vst [vmem:[#allocation46_spill] sm:$0xff] %v9852_v55  ;;  %14240 = vst [vmem:[#allocation47_spill] sm:$0xff] %v9858_v17  ;;  %v5293_v26 = vsel %vm2437_vm1, %v5288_v27, %v13356_v29  ;;  %v5548_v57 = vadd.f32 %v5291_v16, %v4953_v60  ;;  %v9869_v11 = vmul.f32 0.5, %v5546_v53  ;;  %v14257_v55 = vld [vmem:[#allocation128_spill] sm:$0xff] }
 0x262   : > { %14242 = vst [vmem:[#allocation48_spill] sm:$0xff] %v9861_v33  ;;  %14244 = vst [vmem:[#allocation49_spill] sm:$0xff] %v9864_v49  ;;  %v5676_v22 = vmul.f32 0.70710677, %v5546_v53  ;;  %v9871_v50 = vadd.f32 %v5293_v26, %v4954_v62  ;;  %v1473_v14 = vmul.f32 %v14042_v1, %v14105_v3  ;;  %v1474_v31 = vmul.f32 %v14041_v48, %v14139_v0 }
 0x263   : > { %v9879_v13 = vmul.f32 0.5, %v5548_v57  ;;  %v5677_v7 = vmul.f32 0.70710677, %v5548_v57  ;;  %v1475_v27 = vmul.f32 %v14042_v1, %v14142_v8  ;;  %v1568_v18 = vadd.f32 %v1472_v35, %v14043_v21 }
 0x264   : > { %6656 = verf.f32 %v5676_v22  ;;  %v1569_v60 = vadd.f32 %v1473_v14, %v14044_v9  ;;  %v1570_v62 = vadd.f32 %v1474_v31, %v14043_v21  ;;  %v1679_v47 = vmul.f32 %v13834_v30, %v14139_v0 }
 0x265   : > { %6658 = verf.f32 %v5677_v7  ;;  %v1571_v3 = vadd.f32 %v1475_v27, %v14044_v9  ;;  %v1680_v24 = vmul.f32 %v7215_v38, %v14142_v8  ;;  %v9893_v36 = vmul.f32 %v13834_v30, %v14145_v6 }
 0x266   : > { %v9897_v58 = vmul.f32 %v7215_v38, %v14147_v46  ;;  %v1908_v53 = vrot.slane %v1679_v47, 1  ;;  %v2275_v40 = vmul.f32 %v7206_v28, %v14139_v0  ;;  %v2276_v16 = vmul.f32 %v7217_v39, %v14142_v8 }
 0x267   : > { %v1910_v59 = vrot.slane %v1680_v24, 1  ;;  %v13357_v54 = vrot.slane %v9893_v36, 1  ;;  %v9906_v10 = vmul.f32 %v7206_v28, %v14145_v6  ;;  %v9910_v26 = vmul.f32 %v7217_v39, %v14147_v46 }
 0x268   : > { %v14245_v57 = vrot.slane %v9685_v19, 1  ;;  %v13360_v0 = vrot.slane %v9897_v58, 1  ;;  %v2504_v35 = vrot.slane %v2275_v40, 2  ;;  %v2506_v14 = vrot.slane %v2276_v16, 2 }
 0x269   : > { %v14246_v8 = vrot.slane %v9689_v20, 1  ;;  %v1913_v7 = vsel %vm1841_vm0, %v1908_v53, %v13357_v54  ;;  %v13359_v47 = vrot.slane %v9906_v10, 2  ;;  %v14247_v40 = vrot.slane %v9699_v12, 2 }
 0x26a   : > { %v1909_v22 = vsel %vm1841_vm0, %v14245_v57, %v1908_v53  ;;  %v1915_v19 = vsel %vm1841_vm0, %v1910_v59, %v13360_v0  ;;  %v2166_v57 = vadd.f32 %v1913_v7, %v1570_v62  ;;  %v13358_v53 = vrot.slane %v9910_v26, 2 }
 0x26b   : > { %v1911_v31 = vsel %vm1841_vm0, %v14246_v8, %v1910_v59  ;;  %v2164_v27 = vadd.f32 %v1909_v22, %v1568_v18  ;;  %v2505_v16 = vsel %vm2437_vm1, %v14247_v40, %v2504_v35  ;;  %v2167_v20 = vadd.f32 %v1915_v19, %v1571_v3 }
 0x26c   : > { %v2165_v24 = vadd.f32 %v1911_v31, %v1569_v60  ;;  %v14248_v8 = vrot.slane %v9703_v43, 2  ;;  %v2509_v18 = vsel %vm2437_vm1, %v2504_v35, %v13359_v47  ;;  %v2869_v60 = vmul.f32 %v7221_v44, %v14177_v42 }
 0x26d   : > { %v2760_v22 = vadd.f32 %v2505_v16, %v2164_v27  ;;  %v2762_v59 = vadd.f32 %v2509_v18, %v2166_v57  ;;  %v2511_v12 = vsel %vm2437_vm1, %v2506_v14, %v13358_v53  ;;  %v2870_v43 = vmul.f32 %v7235_v2, %v14182_v23 }
 0x26e   : > { %v2507_v29 = vsel %vm2437_vm1, %v14248_v8, %v2506_v14  ;;  %v2871_v62 = vmul.f32 %v7221_v44, %v14185_v61  ;;  %v2872_v3 = vmul.f32 %v7235_v2, %v14218_v37  ;;  %v2763_v35 = vadd.f32 %v2511_v12, %v2167_v20 }
 0x26f   : > { %v2761_v54 = vadd.f32 %v2507_v29, %v2165_v24  ;;  %v2965_v31 = vadd.f32 %v2869_v60, %v2760_v22  ;;  %v3076_v29 = vmul.f32 %v13964_v63, %v14185_v61  ;;  %v3077_v7 = vmul.f32 %v13965_v32, %v14218_v37 }
 0x270   : > { %v2967_v19 = vadd.f32 %v2871_v62, %v2762_v59  ;;  %v9953_v14 = vmul.f32 %v13964_v63, %v14220_v5  ;;  %v9957_v24 = vmul.f32 %v13965_v32, %v14221_v45  ;;  %v2968_v40 = vadd.f32 %v2872_v3, %v2763_v35 }
 0x271   : > { %v2966_v27 = vadd.f32 %v2870_v43, %v2761_v54  ;;  %v6657_v57 = vpop.eup %6656  ;;  %v3304_v16 = vrot.slane %v3076_v29, 1  ;;  %v3306_v20 = vrot.slane %v3077_v7, 1  ;;  %v3671_v8 = vmul.f32 %v14127_v41, %v14185_v61 }
 0x272   : > { %14249 = vst [vmem:[#allocation3_spill] sm:$0xff] %v9953_v14  ;;  %14250 = vst [vmem:[#allocation6_spill] sm:$0xff] %v9957_v24  ;;  %v5772_v18 = vadd.f32 1.0, %v6657_v57  ;;  %v13364_v22 = vrot.slane %v9953_v14, 1  ;;  %v13367_v54 = vrot.slane %v9957_v24, 1  ;;  %v3672_v59 = vmul.f32 %v14169_v4, %v14218_v37  ;;  %v6659_v60 = vpop.eup %6658 }
 0x273   : > { %v14251_v12 = vrot.slane %v9745_v52, 1  ;;  %v14252_v62 = vrot.slane %v9749_v15, 1  ;;  %v9973_v35 = vmul.f32 %v14127_v41, %v14220_v5  ;;  %v9977_v29 = vmul.f32 %v14169_v4, %v14221_v45 }
 0x274   : > { %v5773_v7 = vadd.f32 1.0, %v6659_v60  ;;  %v5820_v57 = vmul.f32 %v5772_v18, %v9869_v11  ;;  %v3309_v52 = vsel %vm1841_vm0, %v3304_v16, %v13364_v22  ;;  %v3311_v15 = vsel %vm1841_vm0, %v3306_v20, %v13367_v54  ;;  %v14256_v22 = vld [vmem:[#allocation13_spill] sm:$0xff] }
 0x275   : > { %v3305_v43 = vsel %vm1841_vm0, %v14251_v12, %v3304_v16  ;;  %v3307_v3 = vsel %vm1841_vm0, %v14252_v62, %v3306_v20  ;;  %14253 = vst [vmem:[#allocation4_spill] sm:$0xff] %v9973_v35  ;;  %14254 = vst [vmem:[#allocation7_spill] sm:$0xff] %v9977_v29  ;;  %v1305_v12 = vpop.f32.mrf.mxu0  ;;  %v3562_v47 = vadd.f32 %v3309_v52, %v2967_v19  ;;  %v3899_v60 = vrot.slane %v3671_v8, 2  ;;  %v14255_v16 = vld [vmem:[#allocation121_spill] sm:$0xff]  ;;  %v14258_v20 = vld [vmem:[#allocation16_spill] sm:$0xff] }
 0x276   : > { %v3560_v62 = vadd.f32 %v3305_v43, %v2965_v31  ;;  %v3561_v53 = vadd.f32 %v3307_v3, %v2966_v27  ;;  %v3563_v0 = vadd.f32 %v3311_v15, %v2968_v40  ;;  %v5821_v56 = vmul.f32 %v5773_v7, %v9879_v13  ;;  %v14259_v27 = vld [vmem:[#allocation114_spill] sm:$0xff]  ;;  %v14261_v40 = vld [vmem:[#allocation27_spill] sm:$0xff] }
 0x277   : > { %v5868_v49 = vmul.f32 %v5820_v57, %v9849_v34  ;;  %v3901_v33 = vrot.slane %v3672_v59, 2  ;;  %v13372_v11 = vrot.slane %v9973_v35, 2  ;;  %v13374_v18 = vrot.slane %v9977_v29, 2  ;;  %v14263_v59 = vld [vmem:[#allocation129_spill] sm:$0xff]  ;;  %v1309_v3 = vpop.f32.mrf.mxu0 }
 0x278   : > { %v4264_v17 = vmul.f32 %v14256_v22, %v14255_v16  ;;  %v4265_v54 = vmul.f32 %v14258_v20, %v14257_v55  ;;  %v5869_v31 = vmul.f32 %v5821_v56, %v9871_v50  ;;  %v14260_v19 = vrot.slane %v14259_v27, 2  ;;  %v14266_v35 = vld [vmem:[#allocation17_spill] sm:$0xff] }
 0x279   : > { %v14262_v34 = vrot.slane %v14261_v40, 2  ;;  %v4266_v43 = vmul.f32 %v14256_v22, %v14263_v59  ;;  %v3904_v7 = vsel %vm2437_vm1, %v3899_v60, %v13372_v11  ;;  %v3906_v56 = vsel %vm2437_vm1, %v3901_v33, %v13374_v18  ;;  %v14265_v22 = vld [vmem:[#allocation14_spill] sm:$0xff] }
 0x27a   : > { %v3900_v13 = vsel %vm2437_vm1, %v14260_v19, %v3899_v60  ;;  %v5909_v52 = vpack.c.bf16 %v5869_v31, %v5868_v49  ;;  %v4157_v15 = vadd.f32 %v3904_v7, %v3562_v47  ;;  %v4158_v27 = vadd.f32 %v3906_v56, %v3563_v0  ;;  %v14264_v19 = vld [vmem:[#allocation38_spill] sm:$0xff]  ;;  %v14268_v49 = vld [vmem:[#allocation40_spill] sm:$0xff]  ;;  %v1311_v47 = vpop.f32.mrf.mxu0 }
 0x27b   : > { %v3902_v8 = vsel %vm2437_vm1, %v14262_v34, %v3901_v33  ;;  %v4155_v50 = vadd.f32 %v3900_v13, %v3560_v62  ;;  %v4267_v40 = vmul.f32 %v14258_v20, %v14264_v19  ;;  %v4471_v14 = vmul.f32 %v14265_v22, %v14263_v59  ;;  %v14267_v33 = vld [vmem:[#allocation39_spill] sm:$0xff]  ;;  %v14271_v13 = vld [vmem:[#allocation18_spill] sm:$0xff] }
 0x27c   : > { %v4156_v57 = vadd.f32 %v3902_v8, %v3561_v53  ;;  %v4472_v60 = vmul.f32 %v14266_v35, %v14264_v19  ;;  %6486 = vmatmul.mubr.bf16.gmra.mxu1 %v5909_v52  ;;  %v4362_v11 = vadd.f32 %v4266_v43, %v4157_v15  ;;  %v10017_v53 = vmul.f32 %v14265_v22, %v14267_v33  ;;  %v14270_v62 = vld [vmem:[#allocation15_spill] sm:$0xff]  ;;  %v14274_v15 = vld [vmem:[#allocation112_spill] sm:$0xff]  ;;  %v1313_v20 = vpop.f32.mrf.mxu0 }
 0x27d   : > { %v4360_v34 = vadd.f32 %v4264_v17, %v4155_v50  ;;  %v4363_v29 = vadd.f32 %v4267_v40, %v4158_v27  ;;  %v10021_v0 = vmul.f32 %v14266_v35, %v14268_v49  ;;  %v4699_v17 = vrot.slane %v4471_v14, 1  ;;  %v14272_v14 = vld [vmem:[#allocation28_spill] sm:$0xff] }
 0x27e   : > { %v4361_v24 = vadd.f32 %v4265_v54, %v4156_v57  ;;  %v4701_v54 = vrot.slane %v4472_v60, 1  ;;  %v5066_v31 = vmul.f32 %v14270_v62, %v14263_v59  ;;  %v5067_v8 = vmul.f32 %v14271_v13, %v14264_v19 }
 0x27f   : > { %14269 = vst [vmem:[#allocation107_spill] sm:$0xff] %v10021_v0  ;;  %v13381_v43 = vrot.slane %v10017_v53, 1  ;;  %v10031_v56 = vmul.f32 %v14270_v62, %v14267_v33  ;;  %v10035_v50 = vmul.f32 %v14271_v13, %v14268_v49  ;;  %v14273_v57 = vrot.slane %v14272_v14, 1 }
 0x280   : > { %v14275_v27 = vrot.slane %v14274_v15, 1  ;;  %v5294_v60 = vrot.slane %v5066_v31, 2  ;;  %v5296_v18 = vrot.slane %v5067_v8, 2  ;;  %v14276_v62 = vrot.slane %v10021_v0, 1 }
 0x281   : > { %v4700_v52 = vsel %vm1841_vm0, %v14273_v57, %v4699_v17  ;;  %v4704_v7 = vsel %vm1841_vm0, %v4699_v17, %v13381_v43  ;;  %v14277_v57 = vrot.slane %v9823_v51, 2  ;;  %v14278_v31 = vrot.slane %v9827_v25, 2  ;;  %v14283_v51 = vld [vmem:[#allocation72_spill] sm:$0xff] }
 0x282   : > { %v4702_v40 = vsel %vm1841_vm0, %v14275_v27, %v4701_v54  ;;  %v4706_v35 = vsel %vm1841_vm0, %v4701_v54, %v14276_v62  ;;  %v4955_v13 = vadd.f32 %v4700_v52, %v4360_v34  ;;  %v4957_v14 = vadd.f32 %v4704_v7, %v4362_v11  ;;  %v14279_v34 = vld [vmem:[#allocation70_spill] sm:$0xff]  ;;  %v14281_v11 = vld [vmem:[#allocation71_spill] sm:$0xff]  ;;  %v14285_v54 = vld [vmem:[#allocation73_spill] sm:$0xff] }
 0x283   : > { %v4956_v22 = vadd.f32 %v4702_v40, %v4361_v24  ;;  %v4958_v49 = vadd.f32 %v4706_v35, %v4363_v29  ;;  %v5295_v15 = vsel %vm2437_vm1, %v14277_v57, %v5294_v60  ;;  %v5297_v8 = vsel %vm2437_vm1, %v14278_v31, %v5296_v18 }
 0x284   : > { %v13384_v27 = vrot.slane %v10031_v56, 2  ;;  %v13383_v17 = vrot.slane %v10035_v50, 2  ;;  %v5550_v43 = vadd.f32 %v5295_v15, %v4955_v13  ;;  %v10060_v24 = vadd.f32 %v1305_v12, %v14279_v34 }
 0x285   : > { %v10057_v0 = vadd.f32 %v5297_v8, %v4956_v22  ;;  %v10063_v35 = vadd.f32 %v1309_v3, %v14281_v11  ;;  %v10066_v29 = vadd.f32 %v1311_v47, %v14283_v51  ;;  %v10069_v25 = vadd.f32 %v1313_v20, %v14285_v54 }
 0x286   : > { %14280 = vst [vmem:[#allocation104_spill] sm:$0xff] %v10060_v24  ;;  %v5299_v62 = vsel %vm2437_vm1, %v5294_v60, %v13384_v27  ;;  %v5301_v22 = vsel %vm2437_vm1, %v5296_v18, %v13383_v17  ;;  %v10077_v13 = vmul.f32 0.5, %v5550_v43  ;;  %v5678_v12 = vmul.f32 0.70710677, %v5550_v43 }
 0x287   : > { %14282 = vst [vmem:[#allocation95_spill] sm:$0xff] %v10063_v35  ;;  %14284 = vst [vmem:[#allocation29_spill] sm:$0xff] %v10066_v29  ;;  %v5552_v7 = vadd.f32 %v5299_v62, %v4957_v14  ;;  %v10079_v3 = vadd.f32 %v5301_v22, %v4958_v49  ;;  %v1476_v47 = vmul.f32 %v14041_v48, %v14145_v6  ;;  %v14287_v22 = vrot.slane %v9893_v36, 1 }
 0x288   : > { %14286 = vst [vmem:[#allocation30_spill] sm:$0xff] %v10069_v25  ;;  %v1477_v20 = vmul.f32 %v14042_v1, %v14147_v46  ;;  %6660 = verf.f32 %v5678_v12  ;;  %v1478_v52 = vmul.f32 %v14041_v48, %v14177_v42  ;;  %v1479_v40 = vmul.f32 %v14042_v1, %v14182_v23 }
 0x289   : > { %v1683_v18 = vmul.f32 %v13834_v30, %v14177_v42  ;;  %v10091_v43 = vmul.f32 0.5, %v5552_v7  ;;  %v5679_v49 = vmul.f32 0.70710677, %v5552_v7  ;;  %v1572_v60 = vadd.f32 %v1476_v47, %v14043_v21 }
 0x28a   : > { %v1573_v6 = vadd.f32 %v1477_v20, %v14044_v9  ;;  %v1574_v14 = vadd.f32 %v1478_v52, %v14043_v21  ;;  %v1575_v46 = vadd.f32 %v1479_v40, %v14044_v9  ;;  %v1684_v57 = vmul.f32 %v7215_v38, %v14182_v23 }
 0x28b   : > { %v10101_v15 = vmul.f32 %v13834_v30, %v14185_v61  ;;  %6662 = verf.f32 %v5679_v49  ;;  %v10105_v31 = vmul.f32 %v7215_v38, %v14218_v37  ;;  %v1916_v8 = vrot.slane %v1683_v18, 1 }
 0x28c   : > { %v2279_v34 = vmul.f32 %v7206_v28, %v14177_v42  ;;  %v1918_v11 = vrot.slane %v1684_v57, 1  ;;  %v2280_v54 = vmul.f32 %v7217_v39, %v14182_v23  ;;  %v10114_v62 = vmul.f32 %v7206_v28, %v14185_v61 }
 0x28d   : > { %v13388_v51 = vrot.slane %v10101_v15, 1  ;;  %v1917_v12 = vsel %vm1841_vm0, %v14287_v22, %v1916_v8  ;;  %v13387_v7 = vrot.slane %v10105_v31, 1  ;;  %v10122_v47 = vmul.f32 %v7217_v39, %v14218_v37 }
 0x28e   : > { %v2512_v42 = vrot.slane %v2279_v34, 2  ;;  %v14288_v20 = vrot.slane %v9897_v58, 1  ;;  %v2168_v40 = vadd.f32 %v1917_v12, %v1572_v60  ;;  %v2514_v18 = vrot.slane %v2280_v54, 2 }
 0x28f   : > { %v1921_v23 = vsel %vm1841_vm0, %v1916_v8, %v13388_v51  ;;  %v1923_v36 = vsel %vm1841_vm0, %v1918_v11, %v13387_v7  ;;  %v14289_v22 = vrot.slane %v9906_v10, 2  ;;  %v14290_v58 = vrot.slane %v9910_v26, 2 }
 0x290   : > { %v1919_v52 = vsel %vm1841_vm0, %v14288_v20, %v1918_v11  ;;  %v2170_v57 = vadd.f32 %v1921_v23, %v1574_v14  ;;  %v2171_v17 = vadd.f32 %v1923_v36, %v1575_v46  ;;  %v13386_v27 = vrot.slane %v10114_v62, 2 }
 0x291   : > { %v2169_v49 = vadd.f32 %v1919_v52, %v1573_v6  ;;  %v2513_v34 = vsel %vm2437_vm1, %v14289_v22, %v2512_v42  ;;  %v2515_v20 = vsel %vm2437_vm1, %v14290_v58, %v2514_v18  ;;  %v13385_v60 = vrot.slane %v10122_v47, 2 }
 0x292   : > { %v2764_v8 = vadd.f32 %v2513_v34, %v2168_v40  ;;  %v2873_v11 = vmul.f32 %v7221_v44, %v14220_v5  ;;  %v2874_v6 = vmul.f32 %v7235_v2, %v14221_v45  ;;  %v2517_v10 = vsel %vm2437_vm1, %v2512_v42, %v13386_v27 }
 0x293   : > { %v2765_v54 = vadd.f32 %v2515_v20, %v2169_v49  ;;  %v2519_v26 = vsel %vm2437_vm1, %v2514_v18, %v13385_v60  ;;  %v2875_v14 = vmul.f32 %v7221_v44, %v14255_v16  ;;  %v2876_v46 = vmul.f32 %v7235_v2, %v14257_v55 }
 0x294   : > { %v2766_v12 = vadd.f32 %v2517_v10, %v2170_v57  ;;  %v2767_v52 = vadd.f32 %v2519_v26, %v2171_v17  ;;  %v2969_v23 = vadd.f32 %v2873_v11, %v2764_v8  ;;  %v3080_v36 = vmul.f32 %v13964_v63, %v14255_v16 }
 0x295   : > { %v2970_v40 = vadd.f32 %v2874_v6, %v2765_v54  ;;  %v3081_v42 = vmul.f32 %v13965_v32, %v14257_v55  ;;  %v10161_v49 = vmul.f32 %v13964_v63, %v14263_v59  ;;  %v10165_v18 = vmul.f32 %v13965_v32, %v14264_v19  ;;  %v6661_v22 = vpop.eup %6660 }
 0x296   : > { %v2971_v34 = vadd.f32 %v2875_v14, %v2766_v12  ;;  %v2972_v57 = vadd.f32 %v2876_v46, %v2767_v52  ;;  %v3675_v17 = vmul.f32 %v14127_v41, %v14255_v16  ;;  %v3676_v58 = vmul.f32 %v14169_v4, %v14257_v55  ;;  %v14295_v52 = vld [vmem:[#allocation3_spill] sm:$0xff] }
 0x297   : > { %14291 = vst [vmem:[#allocation31_spill] sm:$0xff] %v10161_v49  ;;  %14292 = vst [vmem:[#allocation152_spill] sm:$0xff] %v10165_v18  ;;  %v5774_v20 = vadd.f32 1.0, %v6661_v22  ;;  %v3312_v8 = vrot.slane %v3080_v36, 1  ;;  %v3314_v54 = vrot.slane %v3081_v42, 1  ;;  %v13394_v11 = vrot.slane %v10161_v49, 1 }
 0x298   : > { %v13395_v6 = vrot.slane %v10165_v18, 1  ;;  %v10175_v10 = vmul.f32 %v14127_v41, %v14263_v59  ;;  %v10179_v26 = vmul.f32 %v14169_v4, %v14264_v19  ;;  %v3907_v14 = vrot.slane %v3675_v17, 2  ;;  %v6663_v46 = vpop.eup %6662  ;;  %v14297_v42 = vld [vmem:[#allocation6_spill] sm:$0xff]  ;;  %v14310_v18 = vld [vmem:[#allocation88_spill] sm:$0xff] }
 0x299   : > { %v5822_v12 = vmul.f32 %v5774_v20, %v10077_v13  ;;  %v14296_v22 = vrot.slane %v14295_v52, 1  ;;  %v14298_v60 = vrot.slane %v14297_v42, 1  ;;  %v3317_v7 = vsel %vm1841_vm0, %v3312_v8, %v13394_v11 }
 0x29a   : > { %14293 = vst [vmem:[#allocation113_spill] sm:$0xff] %v10175_v10  ;;  %14294 = vst [vmem:[#allocation50_spill] sm:$0xff] %v10179_v26  ;;  %v5775_v51 = vadd.f32 1.0, %v6663_v46  ;;  %v3319_v17 = vsel %vm1841_vm0, %v3314_v54, %v13395_v6  ;;  %v3566_v20 = vadd.f32 %v3317_v7, %v2971_v34  ;;  %v3909_v49 = vrot.slane %v3676_v58, 2  ;;  %v14304_v34 = vld [vmem:[#allocation41_spill] sm:$0xff] }
 0x29b   : > { %v3313_v36 = vsel %vm1841_vm0, %v14296_v22, %v3312_v8  ;;  %v3315_v27 = vsel %vm1841_vm0, %v14298_v60, %v3314_v54  ;;  %v5870_v13 = vmul.f32 %v5822_v12, %v10057_v0  ;;  %v3567_v52 = vadd.f32 %v3319_v17, %v2972_v57  ;;  %v14299_v22 = vld [vmem:[#allocation4_spill] sm:$0xff]  ;;  %v1315_v60 = vpop.f32.mrf.mxu0  ;;  %v14305_v54 = vld [vmem:[#allocation7_spill] sm:$0xff] }
 0x29c   : > { %v3564_v25 = vadd.f32 %v3313_v36, %v2969_v23  ;;  %v3565_v29 = vadd.f32 %v3315_v27, %v2970_v40  ;;  %v14300_v35 = vrot.slane %v14299_v22, 2  ;;  %v5823_v24 = vmul.f32 %v5775_v51, %v10091_v43  ;;  %v14301_v23 = vld [vmem:[#allocation13_spill] sm:$0xff]  ;;  %v14302_v40 = vld [vmem:[#allocation40_spill] sm:$0xff] }
 0x29d   : > { %v13398_v8 = vrot.slane %v10175_v10, 2  ;;  %v13401_v46 = vrot.slane %v10179_v26, 2  ;;  %v4268_v27 = vmul.f32 %v14301_v23, %v14267_v33  ;;  %v14303_v0 = vld [vmem:[#allocation16_spill] sm:$0xff]  ;;  %v4270_v57 = vmul.f32 %v14301_v23, %v14304_v34  ;;  %v1319_v6 = vpop.f32.mrf.mxu0  ;;  %v14309_v10 = vld [vmem:[#allocation17_spill] sm:$0xff] }
 0x29e   : > { %v3908_v42 = vsel %vm2437_vm1, %v14300_v35, %v3907_v14  ;;  %v4269_v7 = vmul.f32 %v14303_v0, %v14302_v40  ;;  %v5871_v35 = vmul.f32 %v5823_v24, %v10079_v3  ;;  %v14306_v12 = vrot.slane %v14305_v54, 2  ;;  %v14307_v22 = vld [vmem:[#allocation132_spill] sm:$0xff]  ;;  %v14308_v54 = vld [vmem:[#allocation14_spill] sm:$0xff] }
 0x29f   : > { %v4159_v11 = vadd.f32 %v3908_v42, %v3564_v25  ;;  %v3912_v51 = vsel %vm2437_vm1, %v3907_v14, %v13398_v8  ;;  %v3914_v25 = vsel %vm2437_vm1, %v3909_v49, %v13401_v46  ;;  %v4271_v42 = vmul.f32 %v14303_v0, %v14307_v22 }
 0x2a0   : > { %v3910_v43 = vsel %vm2437_vm1, %v14306_v12, %v3909_v49  ;;  %v4161_v36 = vadd.f32 %v3912_v51, %v3566_v20  ;;  %v4162_v17 = vadd.f32 %v3914_v25, %v3567_v52  ;;  %v5910_v24 = vpack.c.bf16 %v5871_v35, %v5870_v13  ;;  %v14312_v49 = vld [vmem:[#allocation21_spill] sm:$0xff]  ;;  %v14313_v52 = vld [vmem:[#allocation15_spill] sm:$0xff]  ;;  %v1321_v25 = vpop.f32.mrf.mxu0 }
 0x2a1   : > { %v4160_v58 = vadd.f32 %v3910_v43, %v3565_v29  ;;  %v4364_v3 = vadd.f32 %v4268_v27, %v4159_v11  ;;  %v4475_v12 = vmul.f32 %v14308_v54, %v14304_v34  ;;  %v4476_v23 = vmul.f32 %v14309_v10, %v14307_v22 }
 0x2a2   : > { %v4366_v8 = vadd.f32 %v4270_v57, %v4161_v36  ;;  %v4367_v26 = vadd.f32 %v4271_v42, %v4162_v17  ;;  %v10225_v29 = vmul.f32 %v14308_v54, %v14310_v18  ;;  %6489 = vmatprep.mubr.bf16.mxu1 %v5910_v24  ;;  %v10229_v20 = vmul.f32 %v14309_v10, %v14312_v49  ;;  %v14316_v36 = vld [vmem:[#allocation107_spill] sm:$0xff] }
 0x2a3   : > { %v4365_v14 = vadd.f32 %v4269_v7, %v4160_v58  ;;  %v4707_v13 = vrot.slane %v4475_v12, 1  ;;  %v4709_v11 = vrot.slane %v4476_v23, 1  ;;  %v5070_v27 = vmul.f32 %v14313_v52, %v14304_v34  ;;  %v14314_v7 = vld [vmem:[#allocation18_spill] sm:$0xff] }
 0x2a4   : > { %14311 = vst [vmem:[#allocation51_spill] sm:$0xff] %v10225_v29  ;;  %v13411_v35 = vrot.slane %v10225_v29, 1  ;;  %v5071_v57 = vmul.f32 %v14314_v7, %v14307_v22  ;;  %v10238_v43 = vmul.f32 %v14313_v52, %v14310_v18  ;;  %v10242_v51 = vmul.f32 %v14314_v7, %v14312_v49 }
 0x2a5   : > { %v14315_v58 = vrot.slane %v10017_v53, 1  ;;  %v14317_v17 = vrot.slane %v14316_v36, 1  ;;  %v13410_v24 = vrot.slane %v10229_v20, 1  ;;  %v5302_v12 = vrot.slane %v5070_v27, 2 }
 0x2a6   : > { %v4712_v46 = vsel %vm1841_vm0, %v4707_v13, %v13411_v35  ;;  %v5304_v7 = vrot.slane %v5071_v57, 2  ;;  %v14319_v27 = vrot.slane %v10035_v50, 2  ;;  %v14322_v57 = vld [vmem:[#allocation75_spill] sm:$0xff]  ;;  %v14330_v35 = vrot.slane %v10114_v62, 2 }
 0x2a7   : > { %v4708_v23 = vsel %vm1841_vm0, %v14315_v58, %v4707_v13  ;;  %v4710_v42 = vsel %vm1841_vm0, %v14317_v17, %v4709_v11  ;;  %v4714_v53 = vsel %vm1841_vm0, %v4709_v11, %v13410_v24  ;;  %v4961_v54 = vadd.f32 %v4712_v46, %v4366_v8  ;;  %v1323_v13 = vpop.f32.mrf.mxu0 }
 0x2a8   : > { %v4959_v52 = vadd.f32 %v4708_v23, %v4364_v3  ;;  %v4960_v10 = vadd.f32 %v4710_v42, %v4365_v14  ;;  %v14318_v58 = vrot.slane %v10031_v56, 2  ;;  %v13409_v17 = vrot.slane %v10238_v43, 2  ;;  %v14320_v56 = vld [vmem:[#allocation74_spill] sm:$0xff] }
 0x2a9   : > { %v4962_v0 = vadd.f32 %v4714_v53, %v4367_v26  ;;  %v5305_v29 = vsel %vm2437_vm1, %v14319_v27, %v5304_v7  ;;  %v13408_v3 = vrot.slane %v10242_v51, 2  ;;  %v10271_v46 = vadd.f32 %v1315_v60, %v14320_v56 }
 0x2aa   : > { %v5303_v36 = vsel %vm2437_vm1, %v14318_v58, %v5302_v12  ;;  %v5307_v11 = vsel %vm2437_vm1, %v5302_v12, %v13409_v17  ;;  %v10268_v8 = vadd.f32 %v5305_v29, %v4960_v10  ;;  %v10274_v23 = vadd.f32 %v1319_v6, %v14322_v57  ;;  %v14324_v58 = vld [vmem:[#allocation76_spill] sm:$0xff]  ;;  %v14326_v10 = vld [vmem:[#allocation77_spill] sm:$0xff] }
 0x2ab   : > { %v5554_v14 = vadd.f32 %v5303_v36, %v4959_v52  ;;  %14321 = vst [vmem:[#allocation52_spill] sm:$0xff] %v10271_v46  ;;  %v5309_v50 = vsel %vm2437_vm1, %v5304_v7, %v13408_v3  ;;  %v5556_v26 = vadd.f32 %v5307_v11, %v4961_v54  ;;  %v10284_v12 = vadd.f32 %v1321_v25, %v14324_v58 }
 0x2ac   : > { %14323 = vst [vmem:[#allocation53_spill] sm:$0xff] %v10274_v23  ;;  %v10281_v53 = vadd.f32 %v5309_v50, %v4962_v0  ;;  %v10287_v29 = vadd.f32 %v1323_v13, %v14326_v10  ;;  %v1480_v6 = vmul.f32 %v14041_v48, %v14185_v61  ;;  %v1481_v54 = vmul.f32 %v14042_v1, %v14218_v37  ;;  %v1325_v23 = vpop.f32.mrf.mxu0 }
 0x2ad   : > { %v10279_v42 = vmul.f32 0.5, %v5554_v14  ;;  %v5680_v52 = vmul.f32 0.70710677, %v5554_v14  ;;  %14325 = vst [vmem:[#allocation131_spill] sm:$0xff] %v10284_v12  ;;  %v10291_v60 = vmul.f32 0.5, %v5556_v26  ;;  %v1482_v0 = vmul.f32 %v14041_v48, %v14220_v5 }
 0x2ae   : > { %14327 = vst [vmem:[#allocation133_spill] sm:$0xff] %v10287_v29  ;;  %v5681_v36 = vmul.f32 0.70710677, %v5556_v26  ;;  %v1483_v7 = vmul.f32 %v14042_v1, %v14221_v45  ;;  %v1576_v25 = vadd.f32 %v1480_v6, %v14043_v21  ;;  %v1687_v27 = vmul.f32 %v13834_v30, %v14220_v5 }
 0x2af   : > { %6664 = verf.f32 %v5680_v52  ;;  %v1577_v61 = vadd.f32 %v1481_v54, %v14044_v9  ;;  %v1688_v14 = vmul.f32 %v7215_v38, %v14221_v45  ;;  %v10307_v37 = vmul.f32 %v13834_v30, %v14255_v16 }
 0x2b0   : > { %6666 = verf.f32 %v5681_v36  ;;  %v1578_v13 = vadd.f32 %v1482_v0, %v14043_v21  ;;  %v1579_v11 = vadd.f32 %v1483_v7, %v14044_v9  ;;  %v10313_v56 = vmul.f32 %v7215_v38, %v14257_v55 }
 0x2b1   : > { %v1924_v57 = vrot.slane %v1687_v27, 1  ;;  %v1926_v50 = vrot.slane %v1688_v14, 1  ;;  %v13416_v26 = vrot.slane %v10307_v37, 1  ;;  %v2283_v52 = vmul.f32 %v7206_v28, %v14220_v5 }
 0x2b2   : > { %v2284_v58 = vmul.f32 %v7217_v39, %v14221_v45  ;;  %v14328_v10 = vrot.slane %v10101_v15, 1  ;;  %v13415_v36 = vrot.slane %v10313_v56, 1  ;;  %v10326_v54 = vmul.f32 %v7206_v28, %v14255_v16 }
 0x2b3   : > { %v10330_v0 = vmul.f32 %v7217_v39, %v14257_v55  ;;  %v14329_v7 = vrot.slane %v10105_v31, 1  ;;  %v1929_v45 = vsel %vm1841_vm0, %v1924_v57, %v13416_v26  ;;  %v2520_v27 = vrot.slane %v2283_v52, 2 }
 0x2b4   : > { %v1925_v6 = vsel %vm1841_vm0, %v14328_v10, %v1924_v57  ;;  %v1931_v14 = vsel %vm1841_vm0, %v1926_v50, %v13415_v36  ;;  %v2174_v3 = vadd.f32 %v1929_v45, %v1578_v13  ;;  %v2522_v17 = vrot.slane %v2284_v58, 2 }
 0x2b5   : > { %v1927_v5 = vsel %vm1841_vm0, %v14329_v7, %v1926_v50  ;;  %v2172_v15 = vadd.f32 %v1925_v6, %v1576_v25  ;;  %v2175_v24 = vadd.f32 %v1931_v14, %v1579_v11  ;;  %v2521_v31 = vsel %vm2437_vm1, %v14330_v35, %v2520_v27 }
 0x2b6   : > { %v2173_v10 = vadd.f32 %v1927_v5, %v1577_v61  ;;  %v13414_v7 = vrot.slane %v10326_v54, 2  ;;  %v13413_v29 = vrot.slane %v10330_v0, 2  ;;  %v14331_v57 = vrot.slane %v10122_v47, 2 }
 0x2b7   : > { %v2768_v52 = vadd.f32 %v2521_v31, %v2172_v15  ;;  %v2877_v50 = vmul.f32 %v7221_v44, %v14263_v59  ;;  %v2878_v61 = vmul.f32 %v7235_v2, %v14264_v19  ;;  %v2879_v47 = vmul.f32 %v7221_v44, %v14267_v33 }
 0x2b8   : > { %v2523_v25 = vsel %vm2437_vm1, %v14331_v57, %v2522_v17  ;;  %v2525_v62 = vsel %vm2437_vm1, %v2520_v27, %v13414_v7  ;;  %v2527_v35 = vsel %vm2437_vm1, %v2522_v17, %v13413_v29  ;;  %v2880_v6 = vmul.f32 %v7235_v2, %v14302_v40 }
 0x2b9   : > { %v2769_v13 = vadd.f32 %v2523_v25, %v2173_v10  ;;  %v2770_v11 = vadd.f32 %v2525_v62, %v2174_v3  ;;  %v2771_v58 = vadd.f32 %v2527_v35, %v2175_v24  ;;  %v2973_v5 = vadd.f32 %v2877_v50, %v2768_v52 }
 0x2ba   : > { %v3084_v15 = vmul.f32 %v13964_v63, %v14267_v33  ;;  %v3085_v27 = vmul.f32 %v13965_v32, %v14302_v40  ;;  %v10369_v17 = vmul.f32 %v13964_v63, %v14304_v34  ;;  %v10373_v24 = vmul.f32 %v13965_v32, %v14307_v22 }
 0x2bb   : > { %v2974_v45 = vadd.f32 %v2878_v61, %v2769_v13  ;;  %v2975_v10 = vadd.f32 %v2879_v47, %v2770_v11  ;;  %v2976_v31 = vadd.f32 %v2880_v6, %v2771_v58  ;;  %v3679_v3 = vmul.f32 %v14127_v41, %v14267_v33  ;;  %v14336_v6 = vld [vmem:[#allocation31_spill] sm:$0xff] }
 0x2bc   : > { %14332 = vst [vmem:[#allocation19_spill] sm:$0xff] %v10369_v17  ;;  %v6665_v14 = vpop.eup %6664  ;;  %14333 = vst [vmem:[#allocation20_spill] sm:$0xff] %v10373_v24  ;;  %v3320_v25 = vrot.slane %v3084_v15, 1  ;;  %v3322_v52 = vrot.slane %v3085_v27, 1  ;;  %v13421_v50 = vrot.slane %v10369_v17, 1  ;;  %v13422_v62 = vrot.slane %v10373_v24, 1 }
 0x2bd   : > { %v5776_v57 = vadd.f32 1.0, %v6665_v14  ;;  %v6667_v61 = vpop.eup %6666  ;;  %v3680_v35 = vmul.f32 %v14169_v4, %v14302_v40  ;;  %v10383_v13 = vmul.f32 %v14127_v41, %v14304_v34  ;;  %v10387_v47 = vmul.f32 %v14169_v4, %v14307_v22  ;;  %v14338_v14 = vld [vmem:[#allocation152_spill] sm:$0xff] }
 0x2be   : > { %v5777_v11 = vadd.f32 1.0, %v6667_v61  ;;  %v14337_v15 = vrot.slane %v14336_v6, 1  ;;  %v14339_v29 = vrot.slane %v14338_v14, 1  ;;  %v3325_v36 = vsel %vm1841_vm0, %v3320_v25, %v13421_v50  ;;  %v14340_v50 = vld [vmem:[#allocation13_spill] sm:$0xff] }
 0x2bf   : > { %14334 = vst [vmem:[#allocation32_spill] sm:$0xff] %v10383_v13  ;;  %14335 = vst [vmem:[#allocation157_spill] sm:$0xff] %v10387_v47  ;;  %v5824_v58 = vmul.f32 %v5776_v57, %v10279_v42  ;;  %v3327_v26 = vsel %vm1841_vm0, %v3322_v52, %v13422_v62  ;;  %v3570_v6 = vadd.f32 %v3325_v36, %v2975_v10  ;;  %v3915_v14 = vrot.slane %v3679_v3, 2  ;;  %v14343_v36 = vld [vmem:[#allocation113_spill] sm:$0xff]  ;;  %v14345_v10 = vld [vmem:[#allocation50_spill] sm:$0xff]  ;;  %v1329_v62 = vpop.f32.mrf.mxu0 }
 0x2c0   : > { %v3321_v27 = vsel %vm1841_vm0, %v14337_v15, %v3320_v25  ;;  %v3323_v7 = vsel %vm1841_vm0, %v14339_v29, %v3322_v52  ;;  %v5825_v42 = vmul.f32 %v5777_v11, %v10291_v60  ;;  %v3571_v15 = vadd.f32 %v3327_v26, %v2976_v31  ;;  %v14342_v60 = vld [vmem:[#allocation22_spill] sm:$0xff] }
 0x2c1   : > { %v3568_v12 = vadd.f32 %v3321_v27, %v2973_v5  ;;  %v3569_v61 = vadd.f32 %v3323_v7, %v2974_v45  ;;  %v5872_v57 = vmul.f32 %v5824_v58, %v10268_v8  ;;  %v3917_v46 = vrot.slane %v3680_v35, 2  ;;  %v14341_v7 = vld [vmem:[#allocation16_spill] sm:$0xff] }
 0x2c2   : > { %v13426_v29 = vrot.slane %v10383_v13, 2  ;;  %v13428_v17 = vrot.slane %v10387_v47, 2  ;;  %v5873_v25 = vmul.f32 %v5825_v42, %v10281_v53  ;;  %v4272_v52 = vmul.f32 %v14340_v50, %v14310_v18  ;;  %v14349_v13 = vld [vmem:[#allocation17_spill] sm:$0xff] }
 0x2c3   : > { %v4273_v5 = vmul.f32 %v14341_v7, %v14312_v49  ;;  %v4274_v8 = vmul.f32 %v14340_v50, %v14342_v60  ;;  %v14344_v26 = vrot.slane %v14343_v36, 2  ;;  %v14346_v31 = vrot.slane %v14345_v10, 2  ;;  %v14347_v50 = vld [vmem:[#allocation45_spill] sm:$0xff]  ;;  %v14348_v10 = vld [vmem:[#allocation14_spill] sm:$0xff] }
 0x2c4   : > { %v3920_v53 = vsel %vm2437_vm1, %v3915_v14, %v13426_v29  ;;  %v3922_v35 = vsel %vm2437_vm1, %v3917_v46, %v13428_v17  ;;  %v5911_v11 = vpack.c.bf16 %v5873_v25, %v5872_v57  ;;  %v4480_v24 = vmul.f32 %v14349_v13, %v14347_v50  ;;  %v14352_v57 = vld [vmem:[#allocation106_spill] sm:$0xff] }
 0x2c5   : > { %v3916_v45 = vsel %vm2437_vm1, %v14344_v26, %v3915_v14  ;;  %v3918_v3 = vsel %vm2437_vm1, %v14346_v31, %v3917_v46  ;;  %v4165_v42 = vadd.f32 %v3920_v53, %v3570_v6  ;;  %v4166_v36 = vadd.f32 %v3922_v35, %v3571_v15  ;;  %v14350_v46 = vld [vmem:[#allocation125_spill] sm:$0xff]  ;;  %v1331_v35 = vpop.f32.mrf.mxu0 }
 0x2c6   : > { %v4163_v58 = vadd.f32 %v3916_v45, %v3568_v12  ;;  %v4164_v27 = vadd.f32 %v3918_v3, %v3569_v61  ;;  %v4275_v26 = vmul.f32 %v14341_v7, %v14347_v50  ;;  %v4479_v31 = vmul.f32 %v14348_v10, %v14342_v60  ;;  %6490 = vmatmul.mubr.bf16.gmra.mxu1 %v5911_v11  ;;  %v14353_v3 = vld [vmem:[#allocation15_spill] sm:$0xff] }
 0x2c7   : > { %v4370_v47 = vadd.f32 %v4274_v8, %v4165_v42  ;;  %v10433_v12 = vmul.f32 %v14348_v10, %v14350_v46  ;;  %v10437_v6 = vmul.f32 %v14349_v13, %v14352_v57  ;;  %v4717_v25 = vrot.slane %v4480_v24, 1  ;;  %v14355_v11 = vld [vmem:[#allocation51_spill] sm:$0xff] }
 0x2c8   : > { %v4368_v14 = vadd.f32 %v4272_v52, %v4163_v58  ;;  %v4369_v29 = vadd.f32 %v4273_v5, %v4164_v27  ;;  %v4371_v61 = vadd.f32 %v4275_v26, %v4166_v36  ;;  %v4715_v15 = vrot.slane %v4479_v31, 1  ;;  %v14354_v52 = vld [vmem:[#allocation18_spill] sm:$0xff] }
 0x2c9   : > { %14351 = vst [vmem:[#allocation33_spill] sm:$0xff] %v10433_v12  ;;  %v13440_v45 = vrot.slane %v10433_v12, 1  ;;  %v5074_v53 = vmul.f32 %v14353_v3, %v14342_v60  ;;  %v5075_v5 = vmul.f32 %v14354_v52, %v14347_v50  ;;  %v10446_v8 = vmul.f32 %v14353_v3, %v14350_v46 }
 0x2ca   : > { %v14356_v58 = vrot.slane %v14355_v11, 1  ;;  %v14357_v42 = vrot.slane %v10229_v20, 1  ;;  %v13438_v36 = vrot.slane %v10437_v6, 1  ;;  %v10457_v26 = vmul.f32 %v14354_v52, %v14352_v57  ;;  %v14359_v57 = vld [vmem:[#allocation78_spill] sm:$0xff] }
 0x2cb   : > { %v4720_v31 = vsel %vm1841_vm0, %v4715_v15, %v13440_v45  ;;  %v5310_v13 = vrot.slane %v5074_v53, 2  ;;  %v14358_v7 = vrot.slane %v10238_v43, 2 }
 0x2cc   : > { %v4716_v27 = vsel %vm1841_vm0, %v14356_v58, %v4715_v15  ;;  %v4718_v24 = vsel %vm1841_vm0, %v14357_v42, %v4717_v25  ;;  %v4722_v11 = vsel %vm1841_vm0, %v4717_v25, %v13438_v36  ;;  %v4965_v20 = vadd.f32 %v4720_v31, %v4370_v47 }
 0x2cd   : > { %v4963_v17 = vadd.f32 %v4716_v27, %v4368_v14  ;;  %v4964_v3 = vadd.f32 %v4718_v24, %v4369_v29  ;;  %v5312_v58 = vrot.slane %v5075_v5, 2  ;;  %v13437_v42 = vrot.slane %v10446_v8, 2  ;;  %v1333_v29 = vpop.f32.mrf.mxu0 }
 0x2ce   : > { %v4966_v10 = vadd.f32 %v4722_v11, %v4371_v61  ;;  %v5311_v52 = vsel %vm2437_vm1, %v14358_v7, %v5310_v13  ;;  %v13436_v12 = vrot.slane %v10457_v26, 2  ;;  %v10471_v15 = vadd.f32 %v1325_v23, %v14359_v57  ;;  %v14362_v61 = vld [vmem:[#allocation79_spill] sm:$0xff]  ;;  %v14364_v57 = vld [vmem:[#allocation80_spill] sm:$0xff] }
 0x2cf   : > { %v14361_v14 = vrot.slane %v10242_v51, 2  ;;  %v5315_v47 = vsel %vm2437_vm1, %v5310_v13, %v13437_v42  ;;  %v5558_v25 = vadd.f32 %v5311_v52, %v4963_v17  ;;  %v10480_v5 = vadd.f32 %v1329_v62, %v14362_v61  ;;  %v14366_v13 = vld [vmem:[#allocation81_spill] sm:$0xff] }
 0x2d0   : > { %14360 = vst [vmem:[#allocation34_spill] sm:$0xff] %v10471_v15  ;;  %v5317_v43 = vsel %vm2437_vm1, %v5312_v58, %v13436_v12  ;;  %v5560_v23 = vadd.f32 %v5315_v47, %v4965_v20  ;;  %v10488_v27 = vadd.f32 %v1331_v35, %v14364_v57  ;;  %v10495_v17 = vadd.f32 %v1333_v29, %v14366_v13 }
 0x2d1   : > { %v5313_v53 = vsel %vm2437_vm1, %v14361_v14, %v5312_v58  ;;  %14363 = vst [vmem:[#allocation138_spill] sm:$0xff] %v10480_v5  ;;  %v10490_v51 = vadd.f32 %v5317_v43, %v4966_v10  ;;  %v10492_v24 = vmul.f32 0.5, %v5558_v25  ;;  %v5682_v31 = vmul.f32 0.70710677, %v5558_v25 }
 0x2d2   : > { %v10485_v7 = vadd.f32 %v5313_v53, %v4964_v3  ;;  %14365 = vst [vmem:[#allocation54_spill] sm:$0xff] %v10488_v27  ;;  %14367 = vst [vmem:[#allocation55_spill] sm:$0xff] %v10495_v17  ;;  %v10497_v62 = vmul.f32 0.5, %v5560_v23  ;;  %v5683_v52 = vmul.f32 0.70710677, %v5560_v23  ;;  %v1484_v11 = vmul.f32 %v14041_v48, %v14255_v16 }
 0x2d3   : > { %v1485_v3 = vmul.f32 %v14042_v1, %v14257_v55  ;;  %6668 = verf.f32 %v5682_v31  ;;  %v1486_v10 = vmul.f32 %v14041_v48, %v14263_v59  ;;  %v1487_v35 = vmul.f32 %v14042_v1, %v14264_v19 }
 0x2d4   : > { %v1691_v20 = vmul.f32 %v13834_v30, %v14263_v59  ;;  %6670 = verf.f32 %v5683_v52  ;;  %v1580_v58 = vadd.f32 %v1484_v11, %v14043_v21  ;;  %v1692_v16 = vmul.f32 %v7215_v38, %v14264_v19 }
 0x2d5   : > { %v1581_v29 = vadd.f32 %v1485_v3, %v14044_v9  ;;  %v1582_v55 = vadd.f32 %v1486_v10, %v14043_v21  ;;  %v1583_v14 = vadd.f32 %v1487_v35, %v14044_v9  ;;  %v10517_v53 = vmul.f32 %v13834_v30, %v14267_v33 }
 0x2d6   : > { %v10521_v47 = vmul.f32 %v7215_v38, %v14302_v40  ;;  %v1932_v25 = vrot.slane %v1691_v20, 1  ;;  %v1934_v61 = vrot.slane %v1692_v16, 1  ;;  %v2287_v43 = vmul.f32 %v7206_v28, %v14263_v59 }
 0x2d7   : > { %v2288_v23 = vmul.f32 %v7217_v39, %v14264_v19  ;;  %v13439_v57 = vrot.slane %v10517_v53, 1  ;;  %v10531_v13 = vmul.f32 %v7206_v28, %v14267_v33  ;;  %v10535_v52 = vmul.f32 %v7217_v39, %v14302_v40 }
 0x2d8   : > { %v13444_v31 = vrot.slane %v10521_v47, 1  ;;  %v14368_v11 = vrot.slane %v10307_v37, 1  ;;  %v14369_v59 = vrot.slane %v10313_v56, 1  ;;  %v2528_v10 = vrot.slane %v2287_v43, 2 }
 0x2d9   : > { %v2530_v35 = vrot.slane %v2288_v23, 2  ;;  %v1937_v20 = vsel %vm1841_vm0, %v1932_v25, %v13439_v57  ;;  %v13442_v23 = vrot.slane %v10531_v13, 2 }
 0x2da   : > { %v1933_v3 = vsel %vm1841_vm0, %v14368_v11, %v1932_v25  ;;  %v1935_v19 = vsel %vm1841_vm0, %v14369_v59, %v1934_v61  ;;  %v1939_v16 = vsel %vm1841_vm0, %v1934_v61, %v13444_v31  ;;  %v2178_v36 = vadd.f32 %v1937_v20, %v1582_v55 }
 0x2db   : > { %v2176_v12 = vadd.f32 %v1933_v3, %v1580_v58  ;;  %v2177_v42 = vadd.f32 %v1935_v19, %v1581_v29  ;;  %v2179_v37 = vadd.f32 %v1939_v16, %v1583_v14  ;;  %v14370_v11 = vrot.slane %v10326_v54, 2 }
 0x2dc   : > { %v14371_v59 = vrot.slane %v10330_v0, 2  ;;  %v13441_v25 = vrot.slane %v10535_v52, 2  ;;  %v2881_v58 = vmul.f32 %v7221_v44, %v14304_v34  ;;  %v2882_v29 = vmul.f32 %v7235_v2, %v14307_v22 }
 0x2dd   : > { %v2529_v56 = vsel %vm2437_vm1, %v14370_v11, %v2528_v10  ;;  %v2883_v54 = vmul.f32 %v7221_v44, %v14310_v18  ;;  %v2884_v0 = vmul.f32 %v7235_v2, %v14312_v49  ;;  %v2533_v55 = vsel %vm2437_vm1, %v2528_v10, %v13442_v23 }
 0x2de   : > { %v2531_v43 = vsel %vm2437_vm1, %v14371_v59, %v2530_v35  ;;  %v2772_v57 = vadd.f32 %v2529_v56, %v2176_v12  ;;  %v2535_v12 = vsel %vm2437_vm1, %v2530_v35, %v13441_v25  ;;  %v3089_v14 = vmul.f32 %v13965_v32, %v14312_v49 }
 0x2df   : > { %v2773_v45 = vadd.f32 %v2531_v43, %v2177_v42  ;;  %v3088_v42 = vmul.f32 %v13964_v63, %v14310_v18  ;;  %v2774_v61 = vadd.f32 %v2533_v55, %v2178_v36  ;;  %v2775_v3 = vadd.f32 %v2535_v12, %v2179_v37  ;;  %v14372_v37 = vld [vmem:[#allocation19_spill] sm:$0xff]  ;;  %v14374_v55 = vld [vmem:[#allocation20_spill] sm:$0xff] }
 0x2e0   : > { %v2977_v19 = vadd.f32 %v2881_v58, %v2772_v57  ;;  %v10577_v16 = vmul.f32 %v13964_v63, %v14342_v60  ;;  %v10581_v10 = vmul.f32 %v13965_v32, %v14347_v50  ;;  %v3330_v35 = vrot.slane %v3089_v14, 1  ;;  %v6669_v56 = vpop.eup %6668 }
 0x2e1   : > { %v2978_v20 = vadd.f32 %v2882_v29, %v2773_v45  ;;  %v3328_v11 = vrot.slane %v3088_v42, 1  ;;  %v2979_v59 = vadd.f32 %v2883_v54, %v2774_v61  ;;  %v2980_v43 = vadd.f32 %v2884_v0, %v2775_v3  ;;  %v6671_v45 = vpop.eup %6670 }
 0x2e2   : > { %v3683_v25 = vmul.f32 %v14127_v41, %v14310_v18  ;;  %v3684_v36 = vmul.f32 %v14169_v4, %v14312_v49  ;;  %v5778_v57 = vadd.f32 1.0, %v6669_v56  ;;  %v14373_v58 = vrot.slane %v14372_v37, 1 }
 0x2e3   : > { %v14375_v12 = vrot.slane %v14374_v55, 1  ;;  %v13443_v14 = vrot.slane %v10577_v16, 1  ;;  %v5779_v54 = vadd.f32 1.0, %v6671_v45  ;;  %v13446_v0 = vrot.slane %v10581_v10, 1 }
 0x2e4   : > { %v3329_v29 = vsel %vm1841_vm0, %v14373_v58, %v3328_v11  ;;  %v5826_v23 = vmul.f32 %v5778_v57, %v10492_v24  ;;  %v10601_v37 = vmul.f32 %v14127_v41, %v14342_v60  ;;  %v10605_v58 = vmul.f32 %v14169_v4, %v14347_v50 }
 0x2e5   : > { %v3331_v42 = vsel %vm1841_vm0, %v14375_v12, %v3330_v35  ;;  %v3572_v61 = vadd.f32 %v3329_v29, %v2977_v19  ;;  %v3333_v56 = vsel %vm1841_vm0, %v3328_v11, %v13443_v14  ;;  %v5827_v45 = vmul.f32 %v5779_v54, %v10497_v62  ;;  %v14379_v54 = vld [vmem:[#allocation13_spill] sm:$0xff] }
 0x2e6   : > { %v3573_v3 = vadd.f32 %v3331_v42, %v2978_v20  ;;  %14376 = vst [vmem:[#allocation56_spill] sm:$0xff] %v10605_v58  ;;  %v3335_v19 = vsel %vm1841_vm0, %v3330_v35, %v13446_v0  ;;  %v3574_v20 = vadd.f32 %v3333_v56, %v2979_v59  ;;  %v3923_v24 = vrot.slane %v3683_v25, 2  ;;  %v14377_v42 = vld [vmem:[#allocation32_spill] sm:$0xff]  ;;  %v14380_v35 = vld [vmem:[#allocation157_spill] sm:$0xff] }
 0x2e7   : > { %v5874_v57 = vmul.f32 %v5826_v23, %v10485_v7  ;;  %v3575_v29 = vadd.f32 %v3335_v19, %v2980_v43  ;;  %v3925_v11 = vrot.slane %v3684_v36, 2  ;;  %v13449_v55 = vrot.slane %v10601_v37, 2  ;;  %v14382_v43 = vld [vmem:[#allocation106_spill] sm:$0xff]  ;;  %v14384_v0 = vld [vmem:[#allocation108_spill] sm:$0xff] }
 0x2e8   : > { %v5875_v12 = vmul.f32 %v5827_v45, %v10490_v51  ;;  %v14378_v14 = vrot.slane %v14377_v42, 2  ;;  %v13450_v62 = vrot.slane %v10605_v58, 2  ;;  %v4276_v17 = vmul.f32 %v14379_v54, %v14350_v46  ;;  %v14383_v51 = vld [vmem:[#allocation16_spill] sm:$0xff] }
 0x2e9   : > { %v14381_v59 = vrot.slane %v14380_v35, 2  ;;  %v3928_v7 = vsel %vm2437_vm1, %v3923_v24, %v13449_v55  ;;  %v4277_v36 = vmul.f32 %v14383_v51, %v14382_v43  ;;  %v4278_v35 = vmul.f32 %v14379_v54, %v14384_v0  ;;  %v14388_v55 = vld [vmem:[#allocation130_spill] sm:$0xff] }
 0x2ea   : > { %v3924_v31 = vsel %vm2437_vm1, %v14378_v14, %v3923_v24  ;;  %v5912_v56 = vpack.c.bf16 %v5875_v12, %v5874_v57  ;;  %v3930_v14 = vsel %vm2437_vm1, %v3925_v11, %v13450_v62  ;;  %v4169_v19 = vadd.f32 %v3928_v7, %v3574_v20  ;;  %v14387_v57 = vld [vmem:[#allocation17_spill] sm:$0xff] }
 0x2eb   : > { %v3926_v25 = vsel %vm2437_vm1, %v14381_v59, %v3925_v11  ;;  %v4167_v23 = vadd.f32 %v3924_v31, %v3572_v61  ;;  %v4170_v42 = vadd.f32 %v3930_v14, %v3575_v29  ;;  %v14385_v59 = vld [vmem:[#allocation123_spill] sm:$0xff]  ;;  %v14386_v61 = vld [vmem:[#allocation14_spill] sm:$0xff] }
 0x2ec   : > { %v4168_v45 = vadd.f32 %v3926_v25, %v3573_v3  ;;  %v4279_v27 = vmul.f32 %v14383_v51, %v14385_v59  ;;  %6493 = vmatprep.mubr.bf16.mxu1 %v5912_v56  ;;  %v4483_v24 = vmul.f32 %v14386_v61, %v14384_v0  ;;  %v4484_v12 = vmul.f32 %v14387_v57, %v14385_v59  ;;  %v14390_v11 = vld [vmem:[#allocation118_spill] sm:$0xff] }
 0x2ed   : > { %v4372_v5 = vadd.f32 %v4276_v17, %v4167_v23  ;;  %v10641_v3 = vmul.f32 %v14386_v61, %v14388_v55  ;;  %v4374_v20 = vadd.f32 %v4278_v35, %v4169_v19  ;;  %v10645_v25 = vmul.f32 %v14387_v57, %v14390_v11  ;;  %v14392_v17 = vld [vmem:[#allocation15_spill] sm:$0xff]  ;;  %v14393_v14 = vld [vmem:[#allocation18_spill] sm:$0xff]  ;;  %v14394_v35 = vld [vmem:[#allocation33_spill] sm:$0xff] }
 0x2ee   : > { %v4373_v31 = vadd.f32 %v4277_v36, %v4168_v45  ;;  %v4375_v29 = vadd.f32 %v4279_v27, %v4170_v42  ;;  %v5078_v7 = vmul.f32 %v14392_v17, %v14384_v0  ;;  %v4723_v23 = vrot.slane %v4483_v24, 1 }
 0x2ef   : > { %14389 = vst [vmem:[#allocation57_spill] sm:$0xff] %v10641_v3  ;;  %14391 = vst [vmem:[#allocation147_spill] sm:$0xff] %v10645_v25  ;;  %v4725_v36 = vrot.slane %v4484_v12, 1  ;;  %v5079_v45 = vmul.f32 %v14393_v14, %v14385_v59  ;;  %v10655_v19 = vmul.f32 %v14392_v17, %v14388_v55  ;;  %v10659_v27 = vmul.f32 %v14393_v14, %v14390_v11  ;;  %v1335_v17 = vpop.f32.mrf.mxu0 }
 0x2f0   : > { %v5318_v42 = vrot.slane %v5078_v7, 2  ;;  %v14395_v15 = vrot.slane %v14394_v35, 1  ;;  %v14396_v12 = vrot.slane %v10437_v6, 1  ;;  %v14397_v57 = vrot.slane %v10641_v3, 1 }
 0x2f1   : > { %v5320_v61 = vrot.slane %v5079_v45, 2  ;;  %v14398_v51 = vrot.slane %v10645_v25, 1 }
 0x2f2   : > { %v4724_v24 = vsel %vm1841_vm0, %v14395_v15, %v4723_v23  ;;  %v4726_v56 = vsel %vm1841_vm0, %v14396_v12, %v4725_v36  ;;  %v4728_v62 = vsel %vm1841_vm0, %v4723_v23, %v14397_v57  ;;  %v14399_v15 = vrot.slane %v10446_v8, 2 }
 0x2f3   : > { %v4730_v14 = vsel %vm1841_vm0, %v4725_v36, %v14398_v51  ;;  %v4967_v11 = vadd.f32 %v4724_v24, %v4372_v5  ;;  %v4968_v7 = vadd.f32 %v4726_v56, %v4373_v31  ;;  %v4969_v58 = vadd.f32 %v4728_v62, %v4374_v20  ;;  %v14401_v51 = vld [vmem:[#allocation82_spill] sm:$0xff] }
 0x2f4   : > { %v4970_v35 = vadd.f32 %v4730_v14, %v4375_v29  ;;  %v5319_v6 = vsel %vm2437_vm1, %v14399_v15, %v5318_v42  ;;  %v14400_v12 = vrot.slane %v10457_v26, 2  ;;  %v13463_v57 = vrot.slane %v10655_v19, 2 }
 0x2f5   : > { %v13461_v23 = vrot.slane %v10659_v27, 2  ;;  %v5562_v45 = vadd.f32 %v5319_v6, %v4967_v11  ;;  %v10684_v5 = vadd.f32 %v1335_v17, %v14401_v51  ;;  %v1488_v62 = vmul.f32 %v14041_v48, %v14267_v33 }
 0x2f6   : > { %v5321_v3 = vsel %vm2437_vm1, %v14400_v12, %v5320_v61  ;;  %v5323_v8 = vsel %vm2437_vm1, %v5318_v42, %v13463_v57  ;;  %v1489_v26 = vmul.f32 %v14042_v1, %v14302_v40  ;;  %v1490_v31 = vmul.f32 %v14041_v48, %v14304_v34 }
 0x2f7   : > { %v10681_v25 = vadd.f32 %v5321_v3, %v4968_v7  ;;  %14402 = vst [vmem:[#allocation116_spill] sm:$0xff] %v10684_v5  ;;  %v5325_v3 = vsel %vm2437_vm1, %v5320_v61, %v13461_v23  ;;  %v5564_v20 = vadd.f32 %v5323_v8, %v4969_v58  ;;  %v10698_v29 = vmul.f32 0.5, %v5562_v45 }
 0x2f8   : > { %v5684_v11 = vmul.f32 0.70710677, %v5562_v45  ;;  %v10700_v17 = vadd.f32 %v5325_v3, %v4970_v35  ;;  %v1491_v36 = vmul.f32 %v14042_v1, %v14307_v22  ;;  %v1584_v33 = vadd.f32 %v1488_v62, %v14043_v21 }
 0x2f9   : > { %v1585_v40 = vadd.f32 %v1489_v26, %v14044_v9  ;;  %v10706_v56 = vmul.f32 0.5, %v5564_v20  ;;  %v5685_v14 = vmul.f32 0.70710677, %v5564_v20  ;;  %v1586_v42 = vadd.f32 %v1490_v31, %v14043_v21 }
 0x2fa   : > { %6672 = verf.f32 %v5684_v11  ;;  %v1587_v58 = vadd.f32 %v1491_v36, %v14044_v9  ;;  %v1695_v61 = vmul.f32 %v13834_v30, %v14304_v34  ;;  %v1696_v24 = vmul.f32 %v7215_v38, %v14307_v22 }
 0x2fb   : > { %v10716_v7 = vmul.f32 %v13834_v30, %v14310_v18  ;;  %6674 = verf.f32 %v5685_v14  ;;  %v10720_v35 = vmul.f32 %v7215_v38, %v14312_v49  ;;  %v2291_v15 = vmul.f32 %v7206_v28, %v14304_v34 }
 0x2fc   : > { %v2292_v6 = vmul.f32 %v7217_v39, %v14307_v22  ;;  %v1940_v12 = vrot.slane %v1695_v61, 1  ;;  %v1942_v45 = vrot.slane %v1696_v24, 1  ;;  %v10729_v8 = vmul.f32 %v7206_v28, %v14310_v18 }
 0x2fd   : > { %v13462_v51 = vrot.slane %v10716_v7, 1  ;;  %v13470_v62 = vrot.slane %v10720_v35, 1  ;;  %v10734_v26 = vmul.f32 %v7217_v39, %v14312_v49  ;;  %v2536_v31 = vrot.slane %v2291_v15, 2 }
 0x2fe   : > { %v2538_v3 = vrot.slane %v2292_v6, 2  ;;  %v14403_v34 = vrot.slane %v10517_v53, 1  ;;  %v14404_v20 = vrot.slane %v10521_v47, 1  ;;  %v13465_v14 = vrot.slane %v10729_v8, 2 }
 0x2ff   : > { %v1945_v36 = vsel %vm1841_vm0, %v1940_v12, %v13462_v51  ;;  %v1947_v61 = vsel %vm1841_vm0, %v1942_v45, %v13470_v62  ;;  %v13464_v51 = vrot.slane %v10734_v26, 2  ;;  %v14423_v62 = vld [vmem:[#allocation57_spill] sm:$0xff] }
 0x300   : > { %v1941_v22 = vsel %vm1841_vm0, %v14403_v34, %v1940_v12  ;;  %v1943_v11 = vsel %vm1841_vm0, %v14404_v20, %v1942_v45  ;;  %v2182_v6 = vadd.f32 %v1945_v36, %v1586_v42  ;;  %v2183_v53 = vadd.f32 %v1947_v61, %v1587_v58 }
 0x301   : > { %v2180_v24 = vadd.f32 %v1941_v22, %v1584_v33  ;;  %v2181_v15 = vadd.f32 %v1943_v11, %v1585_v40  ;;  %v14405_v34 = vrot.slane %v10531_v13, 2  ;;  %v14406_v20 = vrot.slane %v10535_v52, 2 }
 0x302   : > { %v2541_v12 = vsel %vm2437_vm1, %v2536_v31, %v13465_v14  ;;  %v2885_v40 = vmul.f32 %v7221_v44, %v14342_v60  ;;  %v2886_v13 = vmul.f32 %v7235_v2, %v14347_v50  ;;  %v2887_v52 = vmul.f32 %v7221_v44, %v14350_v46 }
 0x303   : > { %v2537_v47 = vsel %vm2437_vm1, %v14405_v34, %v2536_v31  ;;  %v2539_v23 = vsel %vm2437_vm1, %v14406_v20, %v2538_v3  ;;  %v2778_v33 = vadd.f32 %v2541_v12, %v2182_v6  ;;  %v2888_v42 = vmul.f32 %v7235_v2, %v14382_v43 }
 0x304   : > { %v2776_v57 = vadd.f32 %v2537_v47, %v2180_v24  ;;  %v2777_v45 = vadd.f32 %v2539_v23, %v2181_v15  ;;  %v2543_v58 = vsel %vm2437_vm1, %v2538_v3, %v13464_v51  ;;  %v3092_v23 = vmul.f32 %v13964_v63, %v14350_v46 }
 0x305   : > { %v3093_v31 = vmul.f32 %v13965_v32, %v14382_v43  ;;  %v10776_v22 = vmul.f32 %v13964_v63, %v14384_v0  ;;  %v2779_v11 = vadd.f32 %v2543_v58, %v2183_v53  ;;  %v2983_v24 = vadd.f32 %v2887_v52, %v2778_v33 }
 0x306   : > { %v2981_v36 = vadd.f32 %v2885_v40, %v2776_v57  ;;  %v2982_v61 = vadd.f32 %v2886_v13, %v2777_v45  ;;  %v10780_v15 = vmul.f32 %v13965_v32, %v14385_v59  ;;  %v3336_v6 = vrot.slane %v3092_v23, 1 }
 0x307   : > { %v3338_v3 = vrot.slane %v3093_v31, 1  ;;  %v13469_v34 = vrot.slane %v10776_v22, 1  ;;  %v6673_v47 = vpop.eup %6672  ;;  %v2984_v20 = vadd.f32 %v2888_v42, %v2779_v11  ;;  %v3687_v12 = vmul.f32 %v14127_v41, %v14350_v46 }
 0x308   : > { %v3688_v51 = vmul.f32 %v14169_v4, %v14382_v43  ;;  %v10789_v57 = vmul.f32 %v14127_v41, %v14384_v0  ;;  %v5780_v53 = vadd.f32 1.0, %v6673_v47  ;;  %v14407_v45 = vrot.slane %v10577_v16, 1  ;;  %v6675_v42 = vpop.eup %6674 }
 0x309   : > { %v14408_v40 = vrot.slane %v10581_v10, 1  ;;  %v3341_v52 = vsel %vm1841_vm0, %v3336_v6, %v13469_v34  ;;  %v13467_v58 = vrot.slane %v10780_v15, 1  ;;  %v5781_v14 = vadd.f32 1.0, %v6675_v42 }
 0x30a   : > { %v3337_v33 = vsel %vm1841_vm0, %v14407_v45, %v3336_v6  ;;  %v3578_v11 = vadd.f32 %v3341_v52, %v2983_v24  ;;  %v5828_v47 = vmul.f32 %v5780_v53, %v10698_v29  ;;  %v10804_v16 = vmul.f32 %v14169_v4, %v14385_v59 }
 0x30b   : > { %v3339_v13 = vsel %vm1841_vm0, %v14408_v40, %v3338_v3  ;;  %v3576_v23 = vadd.f32 %v3337_v33, %v2981_v36  ;;  %v3931_v10 = vrot.slane %v3687_v12, 2  ;;  %v3343_v45 = vsel %vm1841_vm0, %v3338_v3, %v13467_v58  ;;  %v14410_v12 = vld [vmem:[#allocation56_spill] sm:$0xff] }
 0x30c   : > { %v3577_v31 = vadd.f32 %v3339_v13, %v2982_v61  ;;  %v3933_v40 = vrot.slane %v3688_v51, 2  ;;  %v13466_v6 = vrot.slane %v10789_v57, 2  ;;  %v4280_v36 = vmul.f32 %v14379_v54, %v14388_v55 }
 0x30d   : > { %v5829_v61 = vmul.f32 %v5781_v14, %v10706_v56  ;;  %v5876_v24 = vmul.f32 %v5828_v47, %v10681_v25  ;;  %v3579_v29 = vadd.f32 %v3343_v45, %v2984_v20  ;;  %v14409_v53 = vrot.slane %v10601_v37, 2  ;;  %v14412_v20 = vld [vmem:[#allocation118_spill] sm:$0xff]  ;;  %v14413_v47 = vld [vmem:[#allocation16_spill] sm:$0xff] }
 0x30e   : > { %v14411_v13 = vrot.slane %v14410_v12, 2  ;;  %v3936_v51 = vsel %vm2437_vm1, %v3931_v10, %v13466_v6  ;;  %v13468_v3 = vrot.slane %v10804_v16, 2  ;;  %v4281_v37 = vmul.f32 %v14413_v47, %v14412_v20 }
 0x30f   : > { %v3932_v33 = vsel %vm2437_vm1, %v14409_v53, %v3931_v10  ;;  %v5877_v56 = vmul.f32 %v5829_v61, %v10700_v17  ;;  %v4173_v25 = vadd.f32 %v3936_v51, %v3578_v11  ;;  %v14414_v53 = vld [vmem:[#allocation109_spill] sm:$0xff]  ;;  %v14416_v17 = vld [vmem:[#allocation14_spill] sm:$0xff]  ;;  %v14418_v51 = vld [vmem:[#allocation47_spill] sm:$0xff]  ;;  %v14424_v5 = vrot.slane %v14423_v62, 1 }
 0x310   : > { %v3934_v52 = vsel %vm2437_vm1, %v14411_v13, %v3933_v40  ;;  %v4171_v42 = vadd.f32 %v3932_v33, %v3576_v23  ;;  %v3938_v45 = vsel %vm2437_vm1, %v3933_v40, %v13468_v3  ;;  %v4282_v12 = vmul.f32 %v14379_v54, %v14414_v53  ;;  %v14415_v13 = vld [vmem:[#allocation46_spill] sm:$0xff]  ;;  %v14417_v61 = vld [vmem:[#allocation17_spill] sm:$0xff]  ;;  %v14419_v3 = vld [vmem:[#allocation48_spill] sm:$0xff] }
 0x311   : > { %v4172_v14 = vadd.f32 %v3934_v52, %v3577_v31  ;;  %v4283_v10 = vmul.f32 %v14413_v47, %v14415_v13  ;;  %v5913_v58 = vpack.c.bf16 %v5877_v56, %v5876_v24  ;;  %v4174_v23 = vadd.f32 %v3938_v45, %v3579_v29  ;;  %v14421_v29 = vld [vmem:[#allocation15_spill] sm:$0xff]  ;;  %v14422_v56 = vld [vmem:[#allocation18_spill] sm:$0xff] }
 0x312   : > { %v4376_v6 = vadd.f32 %v4280_v36, %v4171_v42  ;;  %v4487_v31 = vmul.f32 %v14416_v17, %v14414_v53  ;;  %v4378_v11 = vadd.f32 %v4282_v12, %v4173_v25  ;;  %v4488_v52 = vmul.f32 %v14417_v61, %v14415_v13 }
 0x313   : > { %v4377_v33 = vadd.f32 %v4281_v37, %v4172_v14  ;;  %v10840_v40 = vmul.f32 %v14416_v17, %v14418_v51  ;;  %v10844_v34 = vmul.f32 %v14417_v61, %v14419_v3  ;;  %6494 = vmatmul.mubr.bf16.gmra.mxu1 %v5913_v58  ;;  %v4379_v36 = vadd.f32 %v4283_v10, %v4174_v23  ;;  %v14425_v61 = vld [vmem:[#allocation147_spill] sm:$0xff] }
 0x314   : > { %v4731_v24 = vrot.slane %v4487_v31, 1  ;;  %v5082_v42 = vmul.f32 %v14421_v29, %v14414_v53  ;;  %v5083_v14 = vmul.f32 %v14422_v56, %v14415_v13  ;;  %v4733_v25 = vrot.slane %v4488_v52, 1 }
 0x315   : > { %14420 = vst [vmem:[#allocation35_spill] sm:$0xff] %v10844_v34  ;;  %v10854_v12 = vmul.f32 %v14421_v29, %v14418_v51  ;;  %v10861_v10 = vmul.f32 %v14422_v56, %v14419_v3  ;;  %v14426_v52 = vrot.slane %v14425_v61, 1  ;;  %v14427_v45 = vrot.slane %v10840_v40, 1 }
 0x316   : > { %v4732_v58 = vsel %vm1841_vm0, %v14424_v5, %v4731_v24  ;;  %v5326_v23 = vrot.slane %v5082_v42, 2  ;;  %v5328_v31 = vrot.slane %v5083_v14, 2  ;;  %v14428_v29 = vrot.slane %v10844_v34, 1 }
 0x317   : > { %v4734_v37 = vsel %vm1841_vm0, %v14426_v52, %v4733_v25  ;;  %v4736_v17 = vsel %vm1841_vm0, %v4731_v24, %v14427_v45  ;;  %v4971_v47 = vadd.f32 %v4732_v58, %v4376_v6  ;;  %v14429_v56 = vrot.slane %v10655_v19, 2 }
 0x318   : > { %v4738_v62 = vsel %vm1841_vm0, %v4733_v25, %v14428_v29  ;;  %v4972_v5 = vadd.f32 %v4734_v37, %v4377_v33  ;;  %v4973_v54 = vadd.f32 %v4736_v17, %v4378_v11  ;;  %v14430_v61 = vrot.slane %v10659_v27, 2 }
 0x319   : > { %v4974_v51 = vadd.f32 %v4738_v62, %v4379_v36  ;;  %v5327_v42 = vsel %vm2437_vm1, %v14429_v56, %v5326_v23  ;;  %v13489_v52 = vrot.slane %v10854_v12, 2  ;;  %v13480_v24 = vrot.slane %v10861_v10, 2 }
 0x31a   : > { %v5329_v14 = vsel %vm2437_vm1, %v14430_v61, %v5328_v31  ;;  %v5566_v45 = vadd.f32 %v5327_v42, %v4971_v47  ;;  %v1492_v6 = vmul.f32 %v14041_v48, %v14310_v18  ;;  %v1493_v33 = vmul.f32 %v14042_v1, %v14312_v49 }
 0x31b   : > { %v10880_v34 = vadd.f32 %v5329_v14, %v4972_v5  ;;  %v1494_v19 = vmul.f32 %v14041_v48, %v14342_v60  ;;  %v5331_v27 = vsel %vm2437_vm1, %v5326_v23, %v13489_v52  ;;  %v5333_v17 = vsel %vm2437_vm1, %v5328_v31, %v13480_v24 }
 0x31c   : > { %v10894_v47 = vmul.f32 0.5, %v5566_v45  ;;  %v5686_v11 = vmul.f32 0.70710677, %v5566_v45  ;;  %v5568_v36 = vadd.f32 %v5331_v27, %v4973_v54  ;;  %v10896_v29 = vadd.f32 %v5333_v17, %v4974_v51 }
 0x31d   : > { %v1495_v18 = vmul.f32 %v14042_v1, %v14347_v50  ;;  %v1588_v49 = vadd.f32 %v1492_v6, %v14043_v21  ;;  %v1589_v56 = vadd.f32 %v1493_v33, %v14044_v9  ;;  %v1590_v25 = vadd.f32 %v1494_v19, %v14043_v21 }
 0x31e   : > { %6676 = verf.f32 %v5686_v11  ;;  %v1699_v37 = vmul.f32 %v13834_v30, %v14342_v60  ;;  %v10905_v58 = vmul.f32 0.5, %v5568_v36  ;;  %v5687_v23 = vmul.f32 0.70710677, %v5568_v36 }
 0x31f   : > { %v1591_v54 = vadd.f32 %v1495_v18, %v14044_v9  ;;  %v1700_v51 = vmul.f32 %v7215_v38, %v14347_v50  ;;  %v10912_v31 = vmul.f32 %v13834_v30, %v14350_v46  ;;  %v10916_v62 = vmul.f32 %v7215_v38, %v14382_v43 }
 0x320   : > { %v1948_v5 = vrot.slane %v1699_v37, 1  ;;  %v2295_v42 = vmul.f32 %v7206_v28, %v14342_v60  ;;  %6678 = verf.f32 %v5687_v23  ;;  %v2296_v14 = vmul.f32 %v7217_v39, %v14347_v50 }
 0x321   : > { %v1950_v61 = vrot.slane %v1700_v51, 1  ;;  %v10924_v45 = vmul.f32 %v7206_v28, %v14350_v46  ;;  %v14431_v6 = vrot.slane %v10716_v7, 1  ;;  %v13484_v19 = vrot.slane %v10912_v31, 1 }
 0x322   : > { %v13483_v27 = vrot.slane %v10916_v62, 1  ;;  %v10933_v60 = vmul.f32 %v7217_v39, %v14382_v43  ;;  %v14432_v17 = vrot.slane %v10720_v35, 1  ;;  %v2544_v36 = vrot.slane %v2295_v42, 2 }
 0x323   : > { %v1949_v33 = vsel %vm1841_vm0, %v14431_v6, %v1948_v5  ;;  %v2546_v18 = vrot.slane %v2296_v14, 2  ;;  %v1953_v7 = vsel %vm1841_vm0, %v1948_v5, %v13484_v19  ;;  %v13482_v51 = vrot.slane %v10924_v45, 2 }
 0x324   : > { %v1951_v50 = vsel %vm1841_vm0, %v14432_v17, %v1950_v61  ;;  %v2184_v11 = vadd.f32 %v1949_v33, %v1588_v49  ;;  %v1955_v37 = vsel %vm1841_vm0, %v1950_v61, %v13483_v27  ;;  %v2186_v6 = vadd.f32 %v1953_v7, %v1590_v25 }
 0x325   : > { %v2185_v23 = vadd.f32 %v1951_v50, %v1589_v56  ;;  %v2187_v24 = vadd.f32 %v1955_v37, %v1591_v54  ;;  %v14433_v35 = vrot.slane %v10729_v8, 2  ;;  %v14434_v49 = vrot.slane %v10734_v26, 2 }
 0x326   : > { %v2549_v5 = vsel %vm2437_vm1, %v2544_v36, %v13482_v51  ;;  %v13481_v14 = vrot.slane %v10933_v60, 2  ;;  %v2889_v25 = vmul.f32 %v7221_v44, %v14384_v0  ;;  %v2890_v8 = vmul.f32 %v7235_v2, %v14385_v59 }
 0x327   : > { %v2545_v17 = vsel %vm2437_vm1, %v14433_v35, %v2544_v36  ;;  %v2547_v42 = vsel %vm2437_vm1, %v14434_v49, %v2546_v18  ;;  %v2782_v33 = vadd.f32 %v2549_v5, %v2186_v6  ;;  %v2891_v26 = vmul.f32 %v7221_v44, %v14388_v55 }
 0x328   : > { %v2780_v61 = vadd.f32 %v2545_v17, %v2184_v11  ;;  %v2781_v56 = vadd.f32 %v2547_v42, %v2185_v23  ;;  %v2551_v54 = vsel %vm2437_vm1, %v2546_v18, %v13481_v14  ;;  %v2892_v50 = vmul.f32 %v7235_v2, %v14412_v20 }
 0x329   : > { %v3096_v11 = vmul.f32 %v13964_v63, %v14388_v55  ;;  %v3097_v36 = vmul.f32 %v13965_v32, %v14412_v20  ;;  %v2783_v7 = vadd.f32 %v2551_v54, %v2187_v24  ;;  %v2987_v6 = vadd.f32 %v2891_v26, %v2782_v33 }
 0x32a   : > { %v2985_v37 = vadd.f32 %v2889_v25, %v2780_v61  ;;  %v2986_v23 = vadd.f32 %v2890_v8, %v2781_v56  ;;  %v10972_v35 = vmul.f32 %v13964_v63, %v14414_v53  ;;  %v10976_v18 = vmul.f32 %v13965_v32, %v14415_v13 }
 0x32b   : > { %v3344_v17 = vrot.slane %v3096_v11, 1  ;;  %v3346_v49 = vrot.slane %v3097_v36, 1  ;;  %v6677_v42 = vpop.eup %6676  ;;  %v2988_v5 = vadd.f32 %v2892_v50, %v2783_v7  ;;  %v3691_v14 = vmul.f32 %v14127_v41, %v14388_v55 }
 0x32c   : > { %v3692_v24 = vmul.f32 %v14169_v4, %v14412_v20  ;;  %v10984_v61 = vmul.f32 %v14127_v41, %v14414_v53  ;;  %v5782_v56 = vadd.f32 1.0, %v6677_v42  ;;  %v14435_v33 = vrot.slane %v10776_v22, 1 }
 0x32d   : > { %v14436_v8 = vrot.slane %v10780_v15, 1  ;;  %v13488_v54 = vrot.slane %v10972_v35, 1  ;;  %v13486_v50 = vrot.slane %v10976_v18, 1  ;;  %v10996_v7 = vmul.f32 %v14169_v4, %v14415_v13  ;;  %v6679_v51 = vpop.eup %6678 }
 0x32e   : > { %v3345_v25 = vsel %vm1841_vm0, %v14435_v33, %v3344_v17  ;;  %v5830_v42 = vmul.f32 %v5782_v56, %v10894_v47  ;;  %v3939_v15 = vrot.slane %v3691_v14, 2  ;;  %v3941_v33 = vrot.slane %v3692_v24, 2 }
 0x32f   : > { %v3347_v26 = vsel %vm1841_vm0, %v14436_v8, %v3346_v49  ;;  %v3580_v11 = vadd.f32 %v3345_v25, %v2985_v37  ;;  %14437 = vst [vmem:[#allocation119_spill] sm:$0xff] %v10996_v7  ;;  %v3349_v22 = vsel %vm1841_vm0, %v3344_v17, %v13488_v54  ;;  %v5783_v8 = vadd.f32 1.0, %v6679_v51  ;;  %v14449_v54 = vld [vmem:[#allocation29_spill] sm:$0xff] }
 0x330   : > { %v3581_v36 = vadd.f32 %v3347_v26, %v2986_v23  ;;  %v3351_v27 = vsel %vm1841_vm0, %v3346_v49, %v13486_v50  ;;  %v3582_v37 = vadd.f32 %v3349_v22, %v2987_v6  ;;  %v13485_v23 = vrot.slane %v10984_v61, 2  ;;  %v14443_v22 = vld [vmem:[#allocation49_spill] sm:$0xff]  ;;  %v14447_v50 = vld [vmem:[#allocation95_spill] sm:$0xff] }
 0x331   : > { %v5878_v25 = vmul.f32 %v5830_v42, %v10880_v34  ;;  %v3583_v26 = vadd.f32 %v3351_v27, %v2988_v5  ;;  %v14438_v19 = vrot.slane %v10789_v57, 2  ;;  %v14439_v56 = vrot.slane %v10804_v16, 2  ;;  %v14440_v27 = vld [vmem:[#allocation47_spill] sm:$0xff]  ;;  %v14441_v5 = vld [vmem:[#allocation13_spill] sm:$0xff] }
 0x332   : > { %v5831_v51 = vmul.f32 %v5783_v8, %v10905_v58  ;;  %v3944_v17 = vsel %vm2437_vm1, %v3939_v15, %v13485_v23  ;;  %v13487_v6 = vrot.slane %v10996_v7, 2  ;;  %v4284_v57 = vmul.f32 %v14441_v5, %v14440_v27  ;;  %v14444_v8 = vld [vmem:[#allocation104_spill] sm:$0xff] }
 0x333   : > { %v3940_v47 = vsel %vm2437_vm1, %v14438_v19, %v3939_v15  ;;  %v3942_v14 = vsel %vm2437_vm1, %v14439_v56, %v3941_v33  ;;  %v4177_v34 = vadd.f32 %v3944_v17, %v3582_v37  ;;  %v14442_v19 = vld [vmem:[#allocation16_spill] sm:$0xff]  ;;  %v4286_v15 = vmul.f32 %v14441_v5, %v14443_v22  ;;  %v14445_v56 = vld [vmem:[#allocation14_spill] sm:$0xff] }
 0x334   : > { %v4175_v49 = vadd.f32 %v3940_v47, %v3580_v11  ;;  %v4176_v24 = vadd.f32 %v3942_v14, %v3581_v36  ;;  %v4285_v42 = vmul.f32 %v14442_v19, %v14419_v3  ;;  %v5879_v16 = vmul.f32 %v5831_v51, %v10896_v29  ;;  %v14446_v29 = vld [vmem:[#allocation17_spill] sm:$0xff] }
 0x335   : > { %v3946_v58 = vsel %vm2437_vm1, %v3941_v33, %v13487_v6  ;;  %v4287_v11 = vmul.f32 %v14442_v19, %v14444_v8  ;;  %v4491_v14 = vmul.f32 %v14445_v56, %v14443_v22  ;;  %v4382_v23 = vadd.f32 %v4286_v15, %v4177_v34  ;;  %v14451_v34 = vld [vmem:[#allocation18_spill] sm:$0xff] }
 0x336   : > { %v4178_v36 = vadd.f32 %v3946_v58, %v3583_v26  ;;  %v4380_v37 = vadd.f32 %v4284_v57, %v4175_v49  ;;  %v4381_v47 = vadd.f32 %v4285_v42, %v4176_v24  ;;  %v5914_v17 = vpack.c.bf16 %v5879_v16, %v5878_v25  ;;  %v14450_v49 = vld [vmem:[#allocation15_spill] sm:$0xff] }
 0x337   : > { %v4492_v51 = vmul.f32 %v14446_v29, %v14444_v8  ;;  %v11036_v33 = vmul.f32 %v14445_v56, %v14447_v50  ;;  %v11040_v52 = vmul.f32 %v14446_v29, %v14449_v54  ;;  %v4739_v26 = vrot.slane %v4491_v14, 1 }
 0x338   : > { %v4383_v6 = vadd.f32 %v4287_v11, %v4178_v36  ;;  %v5086_v24 = vmul.f32 %v14450_v49, %v14443_v22  ;;  %6497 = vmatprep.mubr.bf16.mxu1 %v5914_v17  ;;  %v5087_v42 = vmul.f32 %v14451_v34, %v14444_v8  ;;  %v11049_v16 = vmul.f32 %v14450_v49, %v14447_v50  ;;  %v14453_v17 = vld [vmem:[#allocation35_spill] sm:$0xff] }
 0x339   : > { %14448 = vst [vmem:[#allocation37_spill] sm:$0xff] %v11036_v33  ;;  %v4741_v57 = vrot.slane %v4492_v51, 1  ;;  %v14452_v58 = vrot.slane %v10840_v40, 1  ;;  %v13501_v11 = vrot.slane %v11040_v52, 1  ;;  %v11057_v36 = vmul.f32 %v14451_v34, %v14449_v54 }
 0x33a   : > { %v5334_v14 = vrot.slane %v5086_v24, 2  ;;  %v14454_v51 = vrot.slane %v14453_v17, 1  ;;  %v14455_v29 = vrot.slane %v11036_v33, 1  ;;  %v5336_v19 = vrot.slane %v5087_v42, 2 }
 0x33b   : > { %v4740_v15 = vsel %vm1841_vm0, %v14452_v58, %v4739_v26  ;;  %v4746_v40 = vsel %vm1841_vm0, %v4741_v57, %v13501_v11  ;;  %v14456_v34 = vrot.slane %v10854_v12, 2  ;;  %v14457_v17 = vrot.slane %v10861_v10, 2 }
 0x33c   : > { %v4742_v25 = vsel %vm1841_vm0, %v14454_v51, %v4741_v57  ;;  %v4744_v49 = vsel %vm1841_vm0, %v4739_v26, %v14455_v29  ;;  %v4975_v56 = vadd.f32 %v4740_v15, %v4380_v37  ;;  %v4978_v54 = vadd.f32 %v4746_v40, %v4383_v6 }
 0x33d   : > { %v4976_v58 = vadd.f32 %v4742_v25, %v4381_v47  ;;  %v4977_v7 = vadd.f32 %v4744_v49, %v4382_v23  ;;  %v5335_v24 = vsel %vm2437_vm1, %v14456_v34, %v5334_v14  ;;  %v5337_v51 = vsel %vm2437_vm1, %v14457_v17, %v5336_v19 }
 0x33e   : > { %v13499_v33 = vrot.slane %v11049_v16, 2  ;;  %v13498_v37 = vrot.slane %v11057_v36, 2  ;;  %v5570_v29 = vadd.f32 %v5335_v24, %v4975_v56  ;;  %v1496_v47 = vmul.f32 %v14041_v48, %v14350_v46 }
 0x33f   : > { %v11076_v26 = vadd.f32 %v5337_v51, %v4976_v58  ;;  %v1497_v12 = vmul.f32 %v14042_v1, %v14382_v43  ;;  %v1498_v6 = vmul.f32 %v14041_v48, %v14384_v0  ;;  %v1499_v56 = vmul.f32 %v14042_v1, %v14385_v59 }
 0x340   : > { %v5339_v23 = vsel %vm2437_vm1, %v5334_v14, %v13499_v33  ;;  %v5341_v10 = vsel %vm2437_vm1, %v5336_v19, %v13498_v37  ;;  %v11094_v46 = vmul.f32 0.5, %v5570_v29  ;;  %v5688_v43 = vmul.f32 0.70710677, %v5570_v29 }
 0x341   : > { %v5572_v49 = vadd.f32 %v5339_v23, %v4977_v7  ;;  %v11092_v57 = vadd.f32 %v5341_v10, %v4978_v54  ;;  %v1592_v25 = vadd.f32 %v1496_v47, %v14043_v21  ;;  %v1593_v34 = vadd.f32 %v1497_v12, %v14044_v9 }
 0x342   : > { %v1594_v42 = vadd.f32 %v1498_v6, %v14043_v21  ;;  %v1595_v19 = vadd.f32 %v1499_v56, %v14044_v9  ;;  %6680 = verf.f32 %v5688_v43  ;;  %v1703_v7 = vmul.f32 %v13834_v30, %v14384_v0 }
 0x343   : > { %v11100_v15 = vmul.f32 0.5, %v5572_v49  ;;  %v5689_v14 = vmul.f32 0.70710677, %v5572_v49  ;;  %v1704_v54 = vmul.f32 %v7215_v38, %v14385_v59  ;;  %v11108_v40 = vmul.f32 %v13834_v30, %v14388_v55 }
 0x344   : > { %v11112_v58 = vmul.f32 %v7215_v38, %v14412_v20  ;;  %v2299_v24 = vmul.f32 %v7206_v28, %v14384_v0  ;;  %v1956_v17 = vrot.slane %v1703_v7, 1  ;;  %v2300_v51 = vmul.f32 %v7217_v39, %v14385_v59 }
 0x345   : > { %6682 = verf.f32 %v5689_v14  ;;  %v11120_v29 = vmul.f32 %v7206_v28, %v14388_v55  ;;  %v1958_v47 = vrot.slane %v1704_v54, 1  ;;  %v13500_v12 = vrot.slane %v11108_v40, 1 }
 0x346   : > { %v13504_v23 = vrot.slane %v11112_v58, 1  ;;  %v11126_v10 = vmul.f32 %v7217_v39, %v14412_v20  ;;  %v14458_v0 = vrot.slane %v10912_v31, 1  ;;  %v2552_v56 = vrot.slane %v2299_v24, 2 }
 0x347   : > { %v2554_v49 = vrot.slane %v2300_v51, 2  ;;  %v13503_v59 = vrot.slane %v11120_v29, 2  ;;  %v14459_v43 = vrot.slane %v10916_v62, 1  ;;  %v1961_v7 = vsel %vm1841_vm0, %v1956_v17, %v13500_v12 }
 0x348   : > { %v1957_v6 = vsel %vm1841_vm0, %v14458_v0, %v1956_v17  ;;  %v1963_v54 = vsel %vm1841_vm0, %v1958_v47, %v13504_v23  ;;  %v2190_v33 = vadd.f32 %v1961_v7, %v1594_v42  ;;  %v14460_v24 = vrot.slane %v10924_v45, 2 }
 0x349   : > { %v1959_v14 = vsel %vm1841_vm0, %v14459_v43, %v1958_v47  ;;  %v2188_v37 = vadd.f32 %v1957_v6, %v1592_v25  ;;  %v2191_v0 = vadd.f32 %v1963_v54, %v1595_v19  ;;  %v14461_v62 = vrot.slane %v10933_v60, 2 }
 0x34a   : > { %v2189_v31 = vadd.f32 %v1959_v14, %v1593_v34  ;;  %v2553_v51 = vsel %vm2437_vm1, %v14460_v24, %v2552_v56  ;;  %v2557_v17 = vsel %vm2437_vm1, %v2552_v56, %v13503_v59  ;;  %v13502_v12 = vrot.slane %v11126_v10, 2 }
 0x34b   : > { %v2555_v43 = vsel %vm2437_vm1, %v14461_v62, %v2554_v49  ;;  %v2784_v11 = vadd.f32 %v2553_v51, %v2188_v37  ;;  %v2786_v25 = vadd.f32 %v2557_v17, %v2190_v33  ;;  %v2893_v34 = vmul.f32 %v7221_v44, %v14414_v53 }
 0x34c   : > { %v2785_v47 = vadd.f32 %v2555_v43, %v2189_v31  ;;  %v2894_v45 = vmul.f32 %v7235_v2, %v14415_v13  ;;  %v2559_v60 = vsel %vm2437_vm1, %v2554_v49, %v13502_v12  ;;  %v2895_v42 = vmul.f32 %v7221_v44, %v14440_v27 }
 0x34d   : > { %v2896_v19 = vmul.f32 %v7235_v2, %v14419_v3  ;;  %v3100_v37 = vmul.f32 %v13964_v63, %v14440_v27  ;;  %v2787_v33 = vadd.f32 %v2559_v60, %v2191_v0  ;;  %v2989_v6 = vadd.f32 %v2893_v34, %v2784_v11 }
 0x34e   : > { %v2990_v56 = vadd.f32 %v2894_v45, %v2785_v47  ;;  %v3101_v14 = vmul.f32 %v13965_v32, %v14419_v3  ;;  %v2991_v7 = vadd.f32 %v2895_v42, %v2786_v25  ;;  %v11168_v54 = vmul.f32 %v13964_v63, %v14443_v22 }
 0x34f   : > { %v11172_v49 = vmul.f32 %v13965_v32, %v14444_v8  ;;  %v3352_v31 = vrot.slane %v3100_v37, 1  ;;  %v2992_v24 = vadd.f32 %v2896_v19, %v2787_v33  ;;  %v3695_v0 = vmul.f32 %v14127_v41, %v14440_v27  ;;  %v6681_v62 = vpop.eup %6680 }
 0x350   : > { %14462 = vst [vmem:[#allocation90_spill] sm:$0xff] %v11168_v54  ;;  %v3354_v51 = vrot.slane %v3101_v14, 1  ;;  %v3696_v11 = vmul.f32 %v14169_v4, %v14419_v3  ;;  %v14463_v43 = vrot.slane %v10972_v35, 1  ;;  %v13506_v47 = vrot.slane %v11168_v54, 1 }
 0x351   : > { %v13509_v25 = vrot.slane %v11172_v49, 1  ;;  %v11185_v34 = vmul.f32 %v14127_v41, %v14443_v22  ;;  %v5784_v45 = vadd.f32 1.0, %v6681_v62  ;;  %v14464_v60 = vrot.slane %v10976_v18, 1 }
 0x352   : > { %v3353_v17 = vsel %vm1841_vm0, %v14463_v43, %v3352_v31  ;;  %v11192_v37 = vmul.f32 %v14169_v4, %v14444_v8  ;;  %v6683_v35 = vpop.eup %6682  ;;  %v3357_v33 = vsel %vm1841_vm0, %v3352_v31, %v13506_v47  ;;  %v3947_v62 = vrot.slane %v3695_v0, 2 }
 0x353   : > { %v3355_v42 = vsel %vm1841_vm0, %v14464_v60, %v3354_v51  ;;  %v3584_v19 = vadd.f32 %v3353_v17, %v2989_v6  ;;  %v3359_v14 = vsel %vm1841_vm0, %v3354_v51, %v13509_v25  ;;  %v5785_v12 = vadd.f32 1.0, %v6683_v35  ;;  %v14470_v35 = vld [vmem:[#allocation30_spill] sm:$0xff]  ;;  %v14474_v25 = vld [vmem:[#allocation53_spill] sm:$0xff] }
 0x354   : > { %v3585_v43 = vadd.f32 %v3355_v42, %v2990_v56  ;;  %v5832_v18 = vmul.f32 %v5784_v45, %v11094_v46  ;;  %v3586_v60 = vadd.f32 %v3357_v33, %v2991_v7  ;;  %v3587_v6 = vadd.f32 %v3359_v14, %v2992_v24  ;;  %v14466_v46 = vld [vmem:[#allocation119_spill] sm:$0xff]  ;;  %v14468_v45 = vld [vmem:[#allocation29_spill] sm:$0xff]  ;;  %v14471_v14 = vld [vmem:[#allocation52_spill] sm:$0xff] }
 0x355   : > { %v14465_v17 = vrot.slane %v10984_v61, 2  ;;  %v3949_v23 = vrot.slane %v3696_v11, 2  ;;  %v13508_v54 = vrot.slane %v11185_v34, 2  ;;  %v13507_v31 = vrot.slane %v11192_v37, 2 }
 0x356   : > { %v5833_v47 = vmul.f32 %v5785_v12, %v11100_v15  ;;  %v5880_v51 = vmul.f32 %v5832_v18, %v11076_v26  ;;  %v4288_v0 = vmul.f32 %v14441_v5, %v14447_v50  ;;  %v14467_v7 = vrot.slane %v14466_v46, 2  ;;  %v14469_v15 = vld [vmem:[#allocation16_spill] sm:$0xff] }
 0x357   : > { %v3948_v59 = vsel %vm2437_vm1, %v14465_v17, %v3947_v62  ;;  %v3952_v61 = vsel %vm2437_vm1, %v3947_v62, %v13508_v54  ;;  %v3954_v11 = vsel %vm2437_vm1, %v3949_v23, %v13507_v31  ;;  %v4289_v12 = vmul.f32 %v14469_v15, %v14468_v45  ;;  %v14472_v62 = vld [vmem:[#allocation14_spill] sm:$0xff]  ;;  %v14473_v31 = vld [vmem:[#allocation17_spill] sm:$0xff] }
 0x358   : > { %v4179_v56 = vadd.f32 %v3948_v59, %v3584_v19  ;;  %v3950_v24 = vsel %vm2437_vm1, %v14467_v7, %v3949_v23  ;;  %v5881_v26 = vmul.f32 %v5833_v47, %v11092_v57  ;;  %v4181_v42 = vadd.f32 %v3952_v61, %v3586_v60  ;;  %v14476_v60 = vld [vmem:[#allocation131_spill] sm:$0xff] }
 0x359   : > { %v4180_v59 = vadd.f32 %v3950_v24, %v3585_v43  ;;  %v4182_v19 = vadd.f32 %v3954_v11, %v3587_v6  ;;  %v4290_v33 = vmul.f32 %v14441_v5, %v14470_v35  ;;  %v4291_v18 = vmul.f32 %v14469_v15, %v14471_v14  ;;  %v14478_v11 = vld [vmem:[#allocation18_spill] sm:$0xff] }
 0x35a   : > { %v4384_v17 = vadd.f32 %v4288_v0, %v4179_v56  ;;  %v4495_v46 = vmul.f32 %v14472_v62, %v14470_v35  ;;  %v5915_v7 = vpack.c.bf16 %v5881_v26, %v5880_v51  ;;  %v4496_v54 = vmul.f32 %v14473_v31, %v14471_v14  ;;  %v14477_v51 = vld [vmem:[#allocation15_spill] sm:$0xff]  ;;  %v14479_v26 = vld [vmem:[#allocation37_spill] sm:$0xff] }
 0x35b   : > { %v4385_v23 = vadd.f32 %v4289_v12, %v4180_v59  ;;  %v11232_v57 = vmul.f32 %v14472_v62, %v14474_v25  ;;  %v4386_v47 = vadd.f32 %v4290_v33, %v4181_v42  ;;  %v4387_v43 = vadd.f32 %v4291_v18, %v4182_v19 }
 0x35c   : > { %v11236_v6 = vmul.f32 %v14473_v31, %v14476_v60  ;;  %v4747_v24 = vrot.slane %v4495_v46, 1  ;;  %6498 = vmatmul.mubr.bf16.gmra.mxu1 %v5915_v7  ;;  %v4749_v56 = vrot.slane %v4496_v54, 1  ;;  %v5090_v61 = vmul.f32 %v14477_v51, %v14470_v35 }
 0x35d   : > { %14475 = vst [vmem:[#allocation97_spill] sm:$0xff] %v11232_v57  ;;  %v13521_v0 = vrot.slane %v11232_v57, 1  ;;  %v5091_v12 = vmul.f32 %v14478_v11, %v14471_v14  ;;  %v14480_v59 = vrot.slane %v14479_v26, 1  ;;  %v11249_v33 = vmul.f32 %v14477_v51, %v14474_v25 }
 0x35e   : > { %v13519_v19 = vrot.slane %v11236_v6, 1  ;;  %v11253_v54 = vmul.f32 %v14478_v11, %v14476_v60  ;;  %v14481_v18 = vrot.slane %v11040_v52, 1  ;;  %v14482_v11 = vrot.slane %v11049_v16, 2 }
 0x35f   : > { %v4748_v42 = vsel %vm1841_vm0, %v14480_v59, %v4747_v24  ;;  %v4752_v7 = vsel %vm1841_vm0, %v4747_v24, %v13521_v0  ;;  %v5342_v59 = vrot.slane %v5090_v61, 2  ;;  %v5344_v15 = vrot.slane %v5091_v12, 2 }
 0x360   : > { %v4750_v46 = vsel %vm1841_vm0, %v14481_v18, %v4749_v56  ;;  %v4979_v26 = vadd.f32 %v4748_v42, %v4384_v17  ;;  %v4754_v31 = vsel %vm1841_vm0, %v4749_v56, %v13519_v19  ;;  %v4981_v62 = vadd.f32 %v4752_v7, %v4386_v47 }
 0x361   : > { %v4980_v51 = vadd.f32 %v4750_v46, %v4385_v23  ;;  %v4982_v5 = vadd.f32 %v4754_v31, %v4387_v43  ;;  %v5343_v52 = vsel %vm2437_vm1, %v14482_v11, %v5342_v59  ;;  %v13518_v18 = vrot.slane %v11249_v33, 2 }
 0x362   : > { %v13517_v57 = vrot.slane %v11253_v54, 2  ;;  %v14483_v24 = vrot.slane %v11057_v36, 2  ;;  %v5574_v61 = vadd.f32 %v5343_v52, %v4979_v26  ;;  %v1500_v56 = vmul.f32 %v14041_v48, %v14388_v55 }
 0x363   : > { %v1501_v23 = vmul.f32 %v14042_v1, %v14412_v20  ;;  %v5347_v16 = vsel %vm2437_vm1, %v5342_v59, %v13518_v18  ;;  %v1502_v36 = vmul.f32 %v14041_v48, %v14414_v53  ;;  %v1503_v20 = vmul.f32 %v14042_v1, %v14415_v13 }
 0x364   : > { %v5345_v17 = vsel %vm2437_vm1, %v14483_v24, %v5344_v15  ;;  %v5349_v31 = vsel %vm2437_vm1, %v5344_v15, %v13517_v57  ;;  %v5576_v43 = vadd.f32 %v5347_v16, %v4981_v62  ;;  %v11288_v55 = vmul.f32 0.5, %v5574_v61 }
 0x365   : > { %v11282_v47 = vadd.f32 %v5345_v17, %v4980_v51  ;;  %v11286_v11 = vadd.f32 %v5349_v31, %v4982_v5  ;;  %v5690_v12 = vmul.f32 0.70710677, %v5574_v61  ;;  %v1596_v42 = vadd.f32 %v1500_v56, %v14043_v21 }
 0x366   : > { %v1597_v46 = vadd.f32 %v1501_v23, %v14044_v9  ;;  %v1598_v15 = vadd.f32 %v1502_v36, %v14043_v21  ;;  %v11295_v51 = vmul.f32 0.5, %v5576_v43  ;;  %v5691_v7 = vmul.f32 0.70710677, %v5576_v43 }
 0x367   : > { %6684 = verf.f32 %v5690_v12  ;;  %v1707_v5 = vmul.f32 %v13834_v30, %v14414_v53  ;;  %v1599_v62 = vadd.f32 %v1503_v20, %v14044_v9  ;;  %v1708_v26 = vmul.f32 %v7215_v38, %v14415_v13 }
 0x368   : > { %v11304_v59 = vmul.f32 %v13834_v30, %v14440_v27  ;;  %v11308_v52 = vmul.f32 %v7215_v38, %v14419_v3  ;;  %6686 = verf.f32 %v5691_v7  ;;  %v2303_v17 = vmul.f32 %v7206_v28, %v14414_v53 }
 0x369   : > { %v1964_v24 = vrot.slane %v1707_v5, 1  ;;  %v2304_v61 = vmul.f32 %v7217_v39, %v14415_v13  ;;  %v1966_v56 = vrot.slane %v1708_v26, 1  ;;  %v11318_v31 = vmul.f32 %v7206_v28, %v14440_v27 }
 0x36a   : > { %v13520_v23 = vrot.slane %v11304_v59, 1  ;;  %v13524_v16 = vrot.slane %v11308_v52, 1  ;;  %v14484_v36 = vrot.slane %v11108_v40, 1  ;;  %v11325_v12 = vmul.f32 %v7217_v39, %v14419_v3 }
 0x36b   : > { %v2560_v53 = vrot.slane %v2303_v17, 2  ;;  %v2562_v20 = vrot.slane %v2304_v61, 2  ;;  %v14485_v13 = vrot.slane %v11112_v58, 1  ;;  %v14486_v19 = vrot.slane %v11120_v29, 2 }
 0x36c   : > { %v1965_v43 = vsel %vm1841_vm0, %v14484_v36, %v1964_v24  ;;  %v1969_v5 = vsel %vm1841_vm0, %v1964_v24, %v13520_v23  ;;  %v1971_v40 = vsel %vm1841_vm0, %v1966_v56, %v13524_v16  ;;  %v14487_v58 = vrot.slane %v11126_v10, 2 }
 0x36d   : > { %v1967_v7 = vsel %vm1841_vm0, %v14485_v13, %v1966_v56  ;;  %v2192_v26 = vadd.f32 %v1965_v43, %v1596_v42  ;;  %v2194_v57 = vadd.f32 %v1969_v5, %v1598_v15  ;;  %v2195_v18 = vadd.f32 %v1971_v40, %v1599_v62 }
 0x36e   : > { %v2193_v36 = vadd.f32 %v1967_v7, %v1597_v46  ;;  %v2561_v17 = vsel %vm2437_vm1, %v14486_v19, %v2560_v53  ;;  %v2563_v61 = vsel %vm2437_vm1, %v14487_v58, %v2562_v20  ;;  %v13523_v13 = vrot.slane %v11318_v31, 2 }
 0x36f   : > { %v13522_v24 = vrot.slane %v11325_v12, 2  ;;  %v2788_v23 = vadd.f32 %v2561_v17, %v2192_v26  ;;  %v2897_v42 = vmul.f32 %v7221_v44, %v14443_v22  ;;  %v2898_v46 = vmul.f32 %v7235_v2, %v14444_v8 }
 0x370   : > { %v2789_v0 = vadd.f32 %v2563_v61, %v2193_v36  ;;  %v2899_v29 = vmul.f32 %v7221_v44, %v14447_v50  ;;  %v2565_v10 = vsel %vm2437_vm1, %v2560_v53, %v13523_v13  ;;  %v2900_v15 = vmul.f32 %v7235_v2, %v14468_v45 }
 0x371   : > { %v2567_v19 = vsel %vm2437_vm1, %v2562_v20, %v13522_v24  ;;  %v3104_v62 = vmul.f32 %v13964_v63, %v14447_v50  ;;  %v2790_v56 = vadd.f32 %v2565_v10, %v2194_v57  ;;  %v2993_v7 = vadd.f32 %v2897_v42, %v2788_v23  ;;  %v14489_v23 = vld [vmem:[#allocation90_spill] sm:$0xff] }
 0x372   : > { %v2791_v43 = vadd.f32 %v2567_v19, %v2195_v18  ;;  %v2994_v5 = vadd.f32 %v2898_v46, %v2789_v0  ;;  %v3105_v40 = vmul.f32 %v13965_v32, %v14468_v45  ;;  %v11364_v53 = vmul.f32 %v13964_v63, %v14470_v35 }
 0x373   : > { %v11368_v20 = vmul.f32 %v13965_v32, %v14471_v14  ;;  %v3360_v26 = vrot.slane %v3104_v62, 1  ;;  %v2995_v36 = vadd.f32 %v2899_v29, %v2790_v56  ;;  %v3699_v57 = vmul.f32 %v14127_v41, %v14447_v50 }
 0x374   : > { %14488 = vst [vmem:[#allocation124_spill] sm:$0xff] %v11364_v53  ;;  %v2996_v17 = vadd.f32 %v2900_v15, %v2791_v43  ;;  %v3700_v0 = vmul.f32 %v14169_v4, %v14468_v45  ;;  %v6685_v18 = vpop.eup %6684  ;;  %v14490_v58 = vrot.slane %v14489_v23, 1  ;;  %v3362_v42 = vrot.slane %v3105_v40, 1 }
 0x375   : > { %v13527_v46 = vrot.slane %v11364_v53, 1  ;;  %v13530_v10 = vrot.slane %v11368_v20, 1  ;;  %v5786_v19 = vadd.f32 1.0, %v6685_v18  ;;  %v11381_v29 = vmul.f32 %v14127_v41, %v14470_v35  ;;  %v6687_v56 = vpop.eup %6686 }
 0x376   : > { %v3361_v61 = vsel %vm1841_vm0, %v14490_v58, %v3360_v26  ;;  %v11385_v15 = vmul.f32 %v14169_v4, %v14471_v14  ;;  %v14491_v43 = vrot.slane %v11172_v49, 1  ;;  %v3955_v18 = vrot.slane %v3699_v57, 2 }
 0x377   : > { %v3588_v62 = vadd.f32 %v3361_v61, %v2993_v7  ;;  %v3365_v40 = vsel %vm1841_vm0, %v3360_v26, %v13527_v46  ;;  %v3367_v7 = vsel %vm1841_vm0, %v3362_v42, %v13530_v10  ;;  %v5787_v58 = vadd.f32 1.0, %v6687_v56 }
 0x378   : > { %v3363_v23 = vsel %vm1841_vm0, %v14491_v43, %v3362_v42  ;;  %v5834_v61 = vmul.f32 %v5786_v19, %v11288_v55  ;;  %v3590_v13 = vadd.f32 %v3365_v40, %v2995_v36  ;;  %v3591_v16 = vadd.f32 %v3367_v7, %v2996_v17  ;;  %v14495_v36 = vld [vmem:[#allocation16_spill] sm:$0xff]  ;;  %v14497_v40 = vld [vmem:[#allocation34_spill] sm:$0xff] }
 0x379   : > { %v3589_v24 = vadd.f32 %v3363_v23, %v2994_v5  ;;  %v14492_v4 = vrot.slane %v11185_v34, 2  ;;  %v3957_v43 = vrot.slane %v3700_v0, 2  ;;  %v13528_v53 = vrot.slane %v11381_v29, 2 }
 0x37a   : > { %v5835_v26 = vmul.f32 %v5787_v58, %v11295_v51  ;;  %v5882_v46 = vmul.f32 %v5834_v61, %v11282_v47  ;;  %v13529_v42 = vrot.slane %v11385_v15, 2  ;;  %v14493_v56 = vrot.slane %v11192_v37, 2 }
 0x37b   : > { %v3956_v49 = vsel %vm2437_vm1, %v14492_v4, %v3955_v18  ;;  %v3960_v34 = vsel %vm2437_vm1, %v3955_v18, %v13528_v53  ;;  %v14494_v4 = vld [vmem:[#allocation13_spill] sm:$0xff]  ;;  %v4293_v17 = vmul.f32 %v14495_v36, %v14476_v60  ;;  %v4295_v7 = vmul.f32 %v14495_v36, %v14497_v40 }
 0x37c   : > { %v4183_v57 = vadd.f32 %v3956_v49, %v3588_v62  ;;  %v3958_v55 = vsel %vm2437_vm1, %v14493_v56, %v3957_v43  ;;  %v4292_v5 = vmul.f32 %v14494_v4, %v14474_v25  ;;  %v5883_v51 = vmul.f32 %v5835_v26, %v11286_v11  ;;  %v14496_v62 = vld [vmem:[#allocation133_spill] sm:$0xff]  ;;  %v14498_v49 = vld [vmem:[#allocation14_spill] sm:$0xff] }
 0x37d   : > { %v3962_v47 = vsel %vm2437_vm1, %v3957_v43, %v13529_v42  ;;  %v4184_v0 = vadd.f32 %v3958_v55, %v3589_v24  ;;  %v4185_v37 = vadd.f32 %v3960_v34, %v3590_v13  ;;  %v4294_v23 = vmul.f32 %v14494_v4, %v14496_v62  ;;  %v14499_v11 = vld [vmem:[#allocation17_spill] sm:$0xff]  ;;  %v14500_v24 = vld [vmem:[#allocation138_spill] sm:$0xff]  ;;  %v14503_v34 = vld [vmem:[#allocation15_spill] sm:$0xff] }
 0x37e   : > { %v4186_v19 = vadd.f32 %v3962_v47, %v3591_v16  ;;  %v4388_v18 = vadd.f32 %v4292_v5, %v4183_v57  ;;  %v5916_v58 = vpack.c.bf16 %v5883_v51, %v5882_v46  ;;  %v4499_v56 = vmul.f32 %v14498_v49, %v14496_v62  ;;  %v14501_v13 = vld [vmem:[#allocation54_spill] sm:$0xff] }
 0x37f   : > { %v4389_v61 = vadd.f32 %v4293_v17, %v4184_v0  ;;  %v4500_v26 = vmul.f32 %v14499_v11, %v14497_v40  ;;  %v4390_v53 = vadd.f32 %v4294_v23, %v4185_v37  ;;  %v11428_v16 = vmul.f32 %v14498_v49, %v14500_v24  ;;  %v14504_v17 = vld [vmem:[#allocation18_spill] sm:$0xff]  ;;  %v14505_v23 = vld [vmem:[#allocation97_spill] sm:$0xff] }
 0x380   : > { %v4391_v43 = vadd.f32 %v4295_v7, %v4186_v19  ;;  %v11432_v55 = vmul.f32 %v14499_v11, %v14501_v13  ;;  %6501 = vmatprep.mubr.bf16.mxu1 %v5916_v58  ;;  %v4755_v57 = vrot.slane %v4499_v56, 1  ;;  %v5094_v5 = vmul.f32 %v14503_v34, %v14496_v62 }
 0x381   : > { %v4757_v46 = vrot.slane %v4500_v26, 1  ;;  %v5095_v51 = vmul.f32 %v14504_v17, %v14497_v40  ;;  %v13536_v47 = vrot.slane %v11428_v16, 1  ;;  %v11442_v37 = vmul.f32 %v14503_v34, %v14500_v24 }
 0x382   : > { %14502 = vst [vmem:[#allocation58_spill] sm:$0xff] %v11432_v55  ;;  %v11446_v19 = vmul.f32 %v14504_v17, %v14501_v13  ;;  %v14506_v7 = vrot.slane %v14505_v23, 1  ;;  %v14507_v56 = vrot.slane %v11236_v6, 1  ;;  %v5350_v42 = vrot.slane %v5094_v5, 2 }
 0x383   : > { %v5352_v10 = vrot.slane %v5095_v51, 2  ;;  %v4760_v0 = vsel %vm1841_vm0, %v4755_v57, %v13536_v47  ;;  %v14508_v34 = vrot.slane %v11432_v55, 1  ;;  %v13539_v51 = vrot.slane %v11442_v37, 2 }
 0x384   : > { %v4756_v58 = vsel %vm1841_vm0, %v14506_v7, %v4755_v57  ;;  %v4758_v26 = vsel %vm1841_vm0, %v14507_v56, %v4757_v46  ;;  %v4985_v36 = vadd.f32 %v4760_v0, %v4390_v53  ;;  %v14509_v7 = vrot.slane %v11249_v33, 2 }
 0x385   : > { %v4762_v11 = vsel %vm1841_vm0, %v4757_v46, %v14508_v34  ;;  %v4983_v17 = vadd.f32 %v4756_v58, %v4388_v18  ;;  %v4984_v49 = vadd.f32 %v4758_v26, %v4389_v61  ;;  %v14510_v56 = vrot.slane %v11253_v54, 2 }
 0x386   : > { %v4986_v23 = vadd.f32 %v4762_v11, %v4391_v43  ;;  %v5351_v6 = vsel %vm2437_vm1, %v14509_v7, %v5350_v42  ;;  %v13538_v57 = vrot.slane %v11446_v19, 2  ;;  %v1504_v18 = vmul.f32 %v14041_v48, %v14440_v27 }
 0x387   : > { %v5353_v5 = vsel %vm2437_vm1, %v14510_v56, %v5352_v10  ;;  %v5578_v47 = vadd.f32 %v5351_v6, %v4983_v17  ;;  %v1505_v53 = vmul.f32 %v14042_v1, %v14419_v3  ;;  %v1506_v33 = vmul.f32 %v14041_v48, %v14443_v22 }
 0x388   : > { %v11468_v55 = vadd.f32 %v5353_v5, %v4984_v49  ;;  %v1507_v54 = vmul.f32 %v14042_v1, %v14444_v8  ;;  %v5355_v61 = vsel %vm2437_vm1, %v5350_v42, %v13539_v51  ;;  %v5357_v49 = vsel %vm2437_vm1, %v5352_v10, %v13538_v57 }
 0x389   : > { %v11484_v11 = vmul.f32 0.5, %v5578_v47  ;;  %v5692_v27 = vmul.f32 0.70710677, %v5578_v47  ;;  %v5580_v43 = vadd.f32 %v5355_v61, %v4985_v36  ;;  %v11486_v46 = vadd.f32 %v5357_v49, %v4986_v23 }
 0x38a   : > { %v1600_v3 = vadd.f32 %v1504_v18, %v14043_v21  ;;  %v1601_v34 = vadd.f32 %v1505_v53, %v14044_v9  ;;  %v1602_v17 = vadd.f32 %v1506_v33, %v14043_v21  ;;  %v1603_v0 = vadd.f32 %v1507_v54, %v14044_v9 }
 0x38b   : > { %6688 = verf.f32 %v5692_v27  ;;  %v1711_v42 = vmul.f32 %v13834_v30, %v14443_v22  ;;  %v11494_v58 = vmul.f32 0.5, %v5580_v43  ;;  %v5693_v10 = vmul.f32 0.70710677, %v5580_v43 }
 0x38c   : > { %v1712_v36 = vmul.f32 %v7215_v38, %v14444_v8  ;;  %v11500_v47 = vmul.f32 %v13834_v30, %v14447_v50  ;;  %v11504_v26 = vmul.f32 %v7215_v38, %v14468_v45  ;;  %v2307_v7 = vmul.f32 %v7206_v28, %v14443_v22 }
 0x38d   : > { %v1972_v23 = vrot.slane %v1711_v42, 1  ;;  %v2308_v6 = vmul.f32 %v7217_v39, %v14444_v8  ;;  %6690 = verf.f32 %v5693_v10  ;;  %v11513_v18 = vmul.f32 %v7206_v28, %v14447_v50 }
 0x38e   : > { %v1974_v56 = vrot.slane %v1712_v36, 1  ;;  %v13543_v5 = vrot.slane %v11500_v47, 1  ;;  %v14511_v53 = vrot.slane %v11304_v59, 1  ;;  %v13542_v54 = vrot.slane %v11504_v26, 1 }
 0x38f   : > { %v11521_v22 = vmul.f32 %v7217_v39, %v14468_v45  ;;  %v2568_v61 = vrot.slane %v2307_v7, 2  ;;  %v14512_v8 = vrot.slane %v11308_v52, 1  ;;  %v2570_v42 = vrot.slane %v2308_v6, 2 }
 0x390   : > { %v1973_v33 = vsel %vm1841_vm0, %v14511_v53, %v1972_v23  ;;  %v1977_v27 = vsel %vm1841_vm0, %v1972_v23, %v13543_v5  ;;  %v1979_v59 = vsel %vm1841_vm0, %v1974_v56, %v13542_v54  ;;  %v14513_v53 = vrot.slane %v11318_v31, 2 }
 0x391   : > { %v1975_v49 = vsel %vm1841_vm0, %v14512_v8, %v1974_v56  ;;  %v2196_v43 = vadd.f32 %v1973_v33, %v1600_v3  ;;  %v2198_v36 = vadd.f32 %v1977_v27, %v1602_v17  ;;  %v2199_v57 = vadd.f32 %v1979_v59, %v1603_v0 }
 0x392   : > { %v2197_v10 = vadd.f32 %v1975_v49, %v1601_v34  ;;  %v2569_v7 = vsel %vm2437_vm1, %v14513_v53, %v2568_v61  ;;  %v14514_v52 = vrot.slane %v11325_v12, 2  ;;  %v13541_v51 = vrot.slane %v11513_v18, 2 }
 0x393   : > { %v13540_v3 = vrot.slane %v11521_v22, 2  ;;  %v2792_v23 = vadd.f32 %v2569_v7, %v2196_v43  ;;  %v2901_v56 = vmul.f32 %v7221_v44, %v14470_v35  ;;  %v2902_v34 = vmul.f32 %v7235_v2, %v14471_v14 }
 0x394   : > { %v2571_v8 = vsel %vm2437_vm1, %v14514_v52, %v2570_v42  ;;  %v2573_v31 = vsel %vm2437_vm1, %v2568_v61, %v13541_v51  ;;  %v2903_v17 = vmul.f32 %v7221_v44, %v14474_v25  ;;  %v2904_v0 = vmul.f32 %v7235_v2, %v14476_v60 }
 0x395   : > { %v2793_v6 = vadd.f32 %v2571_v8, %v2197_v10  ;;  %v2575_v12 = vsel %vm2437_vm1, %v2570_v42, %v13540_v3  ;;  %v2794_v33 = vadd.f32 %v2573_v31, %v2198_v36  ;;  %v2997_v27 = vadd.f32 %v2901_v56, %v2792_v23  ;;  %v14516_v36 = vld [vmem:[#allocation12_spill] sm:$0xff] }
 0x396   : > { %v2795_v49 = vadd.f32 %v2575_v12, %v2199_v57  ;;  %v3108_v59 = vmul.f32 %v13964_v63, %v14474_v25  ;;  %v3109_v61 = vmul.f32 %v13965_v32, %v14476_v60  ;;  %v11560_v10 = vmul.f32 %v13964_v63, %v14496_v62 }
 0x397   : > { %v2998_v43 = vadd.f32 %v2902_v34, %v2793_v6  ;;  %v11564_v42 = vmul.f32 %v13965_v32, %v14497_v40  ;;  %v2999_v53 = vadd.f32 %v2903_v17, %v2794_v33  ;;  %v3703_v57 = vmul.f32 %v14127_v41, %v14474_v25  ;;  %v14517_v33 = vld [vmem:[#allocation124_spill] sm:$0xff] }
 0x398   : > { %14515 = vst [vmem:[#allocation59_spill] sm:$0xff] %v11560_v10  ;;  %v3000_v7 = vadd.f32 %v2904_v0, %v2795_v49  ;;  %v3704_v52 = vmul.f32 %v14516_v36, %v14476_v60  ;;  %v6689_v8 = vpop.eup %6688  ;;  %v3368_v23 = vrot.slane %v3108_v59, 1  ;;  %v3370_v6 = vrot.slane %v3109_v61, 1 }
 0x399   : > { %v13548_v56 = vrot.slane %v11560_v10, 1  ;;  %v13549_v34 = vrot.slane %v11564_v42, 1  ;;  %v5788_v31 = vadd.f32 1.0, %v6689_v8  ;;  %v11574_v12 = vmul.f32 %v14127_v41, %v14496_v62 }
 0x39a   : > { %v11578_v17 = vmul.f32 %v14516_v36, %v14497_v40  ;;  %v3963_v0 = vrot.slane %v3703_v57, 2  ;;  %v14518_v49 = vrot.slane %v14517_v33, 1  ;;  %v14519_v59 = vrot.slane %v11368_v20, 1  ;;  %v6691_v54 = vpop.eup %6690 }
 0x39b   : > { %v3373_v8 = vsel %vm1841_vm0, %v3368_v23, %v13548_v56  ;;  %v3375_v51 = vsel %vm1841_vm0, %v3370_v6, %v13549_v34  ;;  %v5836_v5 = vmul.f32 %v5788_v31, %v11484_v11  ;;  %v5789_v41 = vadd.f32 1.0, %v6691_v54 }
 0x39c   : > { %v3369_v3 = vsel %vm1841_vm0, %v14518_v49, %v3368_v23  ;;  %v3371_v61 = vsel %vm1841_vm0, %v14519_v59, %v3370_v6  ;;  %v3594_v33 = vadd.f32 %v3373_v8, %v2999_v53  ;;  %v3595_v49 = vadd.f32 %v3375_v51, %v3000_v7  ;;  %v14524_v7 = vld [vmem:[#allocation116_spill] sm:$0xff]  ;;  %v14525_v8 = vld [vmem:[#allocation14_spill] sm:$0xff] }
 0x39d   : > { %v3592_v57 = vadd.f32 %v3369_v3, %v2997_v27  ;;  %v3593_v36 = vadd.f32 %v3371_v61, %v2998_v43  ;;  %v14520_v20 = vrot.slane %v11381_v29, 2  ;;  %v3965_v32 = vrot.slane %v3704_v52, 2  ;;  %v14522_v29 = vld [vmem:[#allocation16_spill] sm:$0xff] }
 0x39e   : > { %v5884_v10 = vmul.f32 %v5836_v5, %v11468_v55  ;;  %v13551_v23 = vrot.slane %v11574_v12, 2  ;;  %v13550_v56 = vrot.slane %v11578_v17, 2  ;;  %v5837_v34 = vmul.f32 %v5789_v41, %v11494_v58  ;;  %v14523_v41 = vld [vmem:[#allocation55_spill] sm:$0xff] }
 0x39f   : > { %v3964_v59 = vsel %vm2437_vm1, %v14520_v20, %v3963_v0  ;;  %v14521_v11 = vrot.slane %v11385_v15, 2  ;;  %v4296_v51 = vmul.f32 %v14494_v4, %v14500_v24  ;;  %v4297_v54 = vmul.f32 %v14522_v29, %v14501_v13 }
 0x3a0   : > { %v4187_v6 = vadd.f32 %v3964_v59, %v3592_v57  ;;  %v3968_v55 = vsel %vm2437_vm1, %v3963_v0, %v13551_v23  ;;  %v3970_v5 = vsel %vm2437_vm1, %v3965_v32, %v13550_v56  ;;  %v4298_v15 = vmul.f32 %v14494_v4, %v14523_v41  ;;  %v14526_v57 = vld [vmem:[#allocation17_spill] sm:$0xff] }
 0x3a1   : > { %v3966_v3 = vsel %vm2437_vm1, %v14521_v11, %v3965_v32  ;;  %v5885_v58 = vmul.f32 %v5837_v34, %v11486_v46  ;;  %v4189_v43 = vadd.f32 %v3968_v55, %v3594_v33  ;;  %v4190_v53 = vadd.f32 %v3970_v5, %v3595_v49  ;;  %v14527_v11 = vld [vmem:[#allocation83_spill] sm:$0xff]  ;;  %v14529_v46 = vld [vmem:[#allocation84_spill] sm:$0xff] }
 0x3a2   : > { %v4188_v27 = vadd.f32 %v3966_v3, %v3593_v36  ;;  %v4299_v52 = vmul.f32 %v14522_v29, %v14524_v7  ;;  %v4392_v31 = vadd.f32 %v4296_v51, %v4187_v6  ;;  %v4503_v0 = vmul.f32 %v14525_v8, %v14523_v41  ;;  %v14530_v6 = vld [vmem:[#allocation15_spill] sm:$0xff] }
 0x3a3   : > { %v4504_v20 = vmul.f32 %v14526_v57, %v14524_v7  ;;  %v5917_v32 = vpack.c.bf16 %v5885_v58, %v5884_v10  ;;  %v4394_v36 = vadd.f32 %v4298_v15, %v4189_v43  ;;  %v11624_v3 = vmul.f32 %v14525_v8, %v14527_v11  ;;  %v14531_v10 = vld [vmem:[#allocation18_spill] sm:$0xff] }
 0x3a4   : > { %v4393_v61 = vadd.f32 %v4297_v54, %v4188_v27  ;;  %v4395_v59 = vadd.f32 %v4299_v52, %v4190_v53  ;;  %v11628_v34 = vmul.f32 %v14526_v57, %v14529_v46  ;;  %v4763_v33 = vrot.slane %v4503_v0, 1  ;;  %v14533_v43 = vld [vmem:[#allocation58_spill] sm:$0xff] }
 0x3a5   : > { %14528 = vst [vmem:[#allocation60_spill] sm:$0xff] %v11624_v3  ;;  %v4765_v49 = vrot.slane %v4504_v20, 1  ;;  %v5098_v51 = vmul.f32 %v14530_v6, %v14523_v41  ;;  %6502 = vmatmul.mubr.bf16.gmra.mxu1 %v5917_v32  ;;  %v13560_v54 = vrot.slane %v11624_v3, 1  ;;  %v5099_v55 = vmul.f32 %v14531_v10, %v14524_v7 }
 0x3a6   : > { %v11637_v5 = vmul.f32 %v14530_v6, %v14527_v11  ;;  %v11641_v27 = vmul.f32 %v14531_v10, %v14529_v46  ;;  %v14532_v15 = vrot.slane %v11428_v16, 1  ;;  %v14534_v53 = vrot.slane %v14533_v43, 1 }
 0x3a7   : > { %v13558_v0 = vrot.slane %v11628_v34, 1  ;;  %v5358_v20 = vrot.slane %v5098_v51, 2  ;;  %v4768_v32 = vsel %vm1841_vm0, %v4763_v33, %v13560_v54  ;;  %v5360_v6 = vrot.slane %v5099_v55, 2 }
 0x3a8   : > { %v4764_v58 = vsel %vm1841_vm0, %v14532_v15, %v4763_v33  ;;  %v4766_v52 = vsel %vm1841_vm0, %v14534_v53, %v4765_v49  ;;  %v4989_v10 = vadd.f32 %v4768_v32, %v4394_v36  ;;  %v14535_v15 = vrot.slane %v11442_v37, 2 }
 0x3a9   : > { %v4987_v56 = vadd.f32 %v4764_v58, %v4392_v31  ;;  %v4988_v23 = vadd.f32 %v4766_v52, %v4393_v61  ;;  %v4770_v16 = vsel %vm1841_vm0, %v4765_v49, %v13558_v0  ;;  %v13557_v53 = vrot.slane %v11637_v5, 2 }
 0x3aa   : > { %v5359_v43 = vsel %vm2437_vm1, %v14535_v15, %v5358_v20  ;;  %v4990_v57 = vadd.f32 %v4770_v16, %v4395_v59  ;;  %v14536_v51 = vrot.slane %v11446_v19, 2  ;;  %v13556_v31 = vrot.slane %v11641_v27, 2 }
 0x3ab   : > { %v5582_v61 = vadd.f32 %v5359_v43, %v4987_v56  ;;  %v5363_v33 = vsel %vm2437_vm1, %v5358_v20, %v13557_v53  ;;  %v1508_v37 = vmul.f32 %v14041_v48, %v14447_v50  ;;  %v1509_v36 = vmul.f32 %v14042_v1, %v14468_v45 }
 0x3ac   : > { %v5361_v3 = vsel %vm2437_vm1, %v14536_v51, %v5360_v6  ;;  %v5365_v19 = vsel %vm2437_vm1, %v5360_v6, %v13556_v31  ;;  %v5584_v59 = vadd.f32 %v5363_v33, %v4989_v10  ;;  %v1716_v32 = vmul.f32 %v7215_v38, %v14471_v14 }
 0x3ad   : > { %v11667_v49 = vadd.f32 %v5361_v3, %v4988_v23  ;;  %v11676_v55 = vmul.f32 0.5, %v5582_v61  ;;  %v5694_v56 = vmul.f32 0.70710677, %v5582_v61  ;;  %v11678_v58 = vadd.f32 %v5365_v19, %v4990_v57 }
 0x3ae   : > { %v1510_v23 = vmul.f32 %v14041_v48, %v14470_v35  ;;  %v1511_v3 = vmul.f32 %v14042_v1, %v14471_v14  ;;  %v1604_v50 = vadd.f32 %v1508_v37, %v14043_v21  ;;  %v11685_v52 = vmul.f32 0.5, %v5584_v59 }
 0x3af   : > { %v5695_v45 = vmul.f32 0.70710677, %v5584_v59  ;;  %6692 = verf.f32 %v5694_v56  ;;  %v1605_v6 = vadd.f32 %v1509_v36, %v14044_v9  ;;  %v1715_v57 = vmul.f32 %v13834_v30, %v14470_v35 }
 0x3b0   : > { %v1606_v10 = vadd.f32 %v1510_v23, %v14043_v21  ;;  %v1607_v20 = vadd.f32 %v1511_v3, %v14044_v9  ;;  %v11696_v16 = vmul.f32 %v13834_v30, %v14474_v25  ;;  %v11700_v15 = vmul.f32 %v7215_v38, %v14476_v60 }
 0x3b1   : > { %6694 = verf.f32 %v5695_v45  ;;  %v2311_v43 = vmul.f32 %v7206_v28, %v14470_v35  ;;  %v1980_v51 = vrot.slane %v1715_v57, 1  ;;  %v1982_v61 = vrot.slane %v1716_v32, 1 }
 0x3b2   : > { %v2312_v33 = vmul.f32 %v7217_v39, %v14471_v14  ;;  %v11708_v37 = vmul.f32 %v7206_v28, %v14474_v25  ;;  %v13559_v36 = vrot.slane %v11696_v16, 1  ;;  %v13563_v19 = vrot.slane %v11700_v15, 1 }
 0x3b3   : > { %v11714_v59 = vmul.f32 %v7217_v39, %v14476_v60  ;;  %v2576_v56 = vrot.slane %v2311_v43, 2  ;;  %v14537_v35 = vrot.slane %v11500_v47, 1  ;;  %v14538_v3 = vrot.slane %v11504_v26, 1 }
 0x3b4   : > { %v2578_v45 = vrot.slane %v2312_v33, 2  ;;  %v13562_v57 = vrot.slane %v11708_v37, 2  ;;  %v1985_v32 = vsel %vm1841_vm0, %v1980_v51, %v13559_v36  ;;  %v1987_v31 = vsel %vm1841_vm0, %v1982_v61, %v13563_v19 }
 0x3b5   : > { %v1981_v23 = vsel %vm1841_vm0, %v14537_v35, %v1980_v51  ;;  %v1983_v14 = vsel %vm1841_vm0, %v14538_v3, %v1982_v61  ;;  %v2202_v47 = vadd.f32 %v1985_v32, %v1606_v10  ;;  %v2203_v0 = vadd.f32 %v1987_v31, %v1607_v20  ;;  %v14541_v20 = vld [vmem:[#allocation11_spill] sm:$0xff] }
 0x3b6   : > { %v2200_v43 = vadd.f32 %v1981_v23, %v1604_v50  ;;  %v2201_v53 = vadd.f32 %v1983_v14, %v1605_v6  ;;  %v14539_v35 = vrot.slane %v11513_v18, 2  ;;  %v14540_v33 = vrot.slane %v11521_v22, 2 }
 0x3b7   : > { %v2581_v51 = vsel %vm2437_vm1, %v2576_v56, %v13562_v57  ;;  %v13561_v36 = vrot.slane %v11714_v59, 2  ;;  %v2905_v31 = vmul.f32 %v7221_v44, %v14496_v62  ;;  %v2906_v18 = vmul.f32 %v7235_v2, %v14497_v40 }
 0x3b8   : > { %v2577_v26 = vsel %vm2437_vm1, %v14539_v35, %v2576_v56  ;;  %v2579_v3 = vsel %vm2437_vm1, %v14540_v33, %v2578_v45  ;;  %v2798_v50 = vadd.f32 %v2581_v51, %v2202_v47  ;;  %v2907_v22 = vmul.f32 %v7221_v44, %v14500_v24  ;;  %v14542_v51 = vld [vmem:[#allocation9_spill] sm:$0xff] }
 0x3b9   : > { %v2796_v54 = vadd.f32 %v2577_v26, %v2200_v43  ;;  %v2797_v61 = vadd.f32 %v2579_v3, %v2201_v53  ;;  %v2583_v6 = vsel %vm2437_vm1, %v2578_v45, %v13561_v36  ;;  %v2908_v10 = vmul.f32 %v7235_v2, %v14501_v13 }
 0x3ba   : > { %v3112_v53 = vmul.f32 %v13964_v63, %v14500_v24  ;;  %v3113_v56 = vmul.f32 %v14541_v20, %v14501_v13  ;;  %v2799_v23 = vadd.f32 %v2583_v6, %v2203_v0  ;;  %v3003_v43 = vadd.f32 %v2907_v22, %v2798_v50  ;;  %v14543_v0 = vld [vmem:[#allocation12_spill] sm:$0xff] }
 0x3bb   : > { %v3001_v14 = vadd.f32 %v2905_v31, %v2796_v54  ;;  %v3002_v32 = vadd.f32 %v2906_v18, %v2797_v61  ;;  %v11756_v47 = vmul.f32 %v13964_v63, %v14523_v41  ;;  %v11760_v45 = vmul.f32 %v14541_v20, %v14524_v7  ;;  %v14544_v31 = vld [vmem:[#allocation59_spill] sm:$0xff] }
 0x3bc   : > { %v3376_v35 = vrot.slane %v3112_v53, 1  ;;  %v3378_v26 = vrot.slane %v3113_v56, 1  ;;  %v6693_v33 = vpop.eup %6692  ;;  %v3004_v3 = vadd.f32 %v2908_v10, %v2799_v23  ;;  %v3707_v36 = vmul.f32 %v14542_v51, %v14500_v24 }
 0x3bd   : > { %v3708_v54 = vmul.f32 %v14543_v0, %v14501_v13  ;;  %v11768_v61 = vmul.f32 %v14542_v51, %v14523_v41  ;;  %v5790_v50 = vadd.f32 1.0, %v6693_v33  ;;  %v14545_v18 = vrot.slane %v14544_v31, 1 }
 0x3be   : > { %v14546_v6 = vrot.slane %v11564_v42, 1  ;;  %v13570_v10 = vrot.slane %v11756_v47, 1  ;;  %v6695_v56 = vpop.eup %6694  ;;  %v13569_v23 = vrot.slane %v11760_v45, 1  ;;  %v11780_v51 = vmul.f32 %v14543_v0, %v14524_v7 }
 0x3bf   : > { %v3377_v22 = vsel %vm1841_vm0, %v14545_v18, %v3376_v35  ;;  %v5791_v33 = vadd.f32 1.0, %v6695_v56  ;;  %v5838_v31 = vmul.f32 %v5790_v50, %v11676_v55  ;;  %v3971_v18 = vrot.slane %v3707_v36, 2 }
 0x3c0   : > { %v3379_v53 = vsel %vm1841_vm0, %v14546_v6, %v3378_v26  ;;  %v3596_v57 = vadd.f32 %v3377_v22, %v3001_v14  ;;  %v3381_v42 = vsel %vm1841_vm0, %v3376_v35, %v13570_v10  ;;  %v3383_v6 = vsel %vm1841_vm0, %v3378_v26, %v13569_v23 }
 0x3c1   : > { %v3597_v19 = vadd.f32 %v3379_v53, %v3002_v32  ;;  %v3598_v20 = vadd.f32 %v3381_v42, %v3003_v43  ;;  %v3973_v63 = vrot.slane %v3708_v54, 2  ;;  %v13568_v14 = vrot.slane %v11768_v61, 2  ;;  %v14550_v42 = vld [vmem:[#allocation87_spill] sm:$0xff] }
 0x3c2   : > { %v5839_v32 = vmul.f32 %v5791_v33, %v11685_v52  ;;  %v5886_v22 = vmul.f32 %v5838_v31, %v11667_v49  ;;  %v3599_v53 = vadd.f32 %v3383_v6, %v3004_v3  ;;  %v14547_v55 = vrot.slane %v11574_v12, 2  ;;  %v14549_v33 = vld [vmem:[#allocation86_spill] sm:$0xff] }
 0x3c3   : > { %v14548_v35 = vrot.slane %v11578_v17, 2  ;;  %v3976_v43 = vsel %vm2437_vm1, %v3971_v18, %v13568_v14  ;;  %v13567_v26 = vrot.slane %v11780_v51, 2  ;;  %v4300_v12 = vmul.f32 %v14494_v4, %v14527_v11 }
 0x3c4   : > { %v3972_v50 = vsel %vm2437_vm1, %v14547_v55, %v3971_v18  ;;  %v5887_v52 = vmul.f32 %v5839_v32, %v11678_v58  ;;  %v4193_v49 = vadd.f32 %v3976_v43, %v3598_v20  ;;  %v4301_v3 = vmul.f32 %v14522_v29, %v14529_v46  ;;  %v14551_v55 = vld [vmem:[#allocation17_spill] sm:$0xff]  ;;  %v14554_v43 = vld [vmem:[#allocation91_spill] sm:$0xff] }
 0x3c5   : > { %v3974_v36 = vsel %vm2437_vm1, %v14548_v35, %v3973_v63  ;;  %v4191_v54 = vadd.f32 %v3972_v50, %v3596_v57  ;;  %v3978_v17 = vsel %vm2437_vm1, %v3973_v63, %v13567_v26  ;;  %v4302_v31 = vmul.f32 %v14494_v4, %v14549_v33  ;;  %v14552_v50 = vld [vmem:[#allocation89_spill] sm:$0xff] }
 0x3c6   : > { %v4192_v56 = vadd.f32 %v3974_v36, %v3597_v19  ;;  %v4303_v57 = vmul.f32 %v14522_v29, %v14550_v42  ;;  %v5918_v18 = vpack.c.bf16 %v5887_v52, %v5886_v22  ;;  %v4194_v58 = vadd.f32 %v3978_v17, %v3599_v53  ;;  %v14555_v53 = vld [vmem:[#allocation15_spill] sm:$0xff] }
 0x3c7   : > { %v4396_v19 = vadd.f32 %v4300_v12, %v4191_v54  ;;  %v4507_v20 = vmul.f32 %v14525_v8, %v14549_v33  ;;  %v4398_v32 = vadd.f32 %v4302_v31, %v4193_v49  ;;  %v4508_v63 = vmul.f32 %v14551_v55, %v14550_v42  ;;  %v14556_v49 = vld [vmem:[#allocation18_spill] sm:$0xff] }
 0x3c8   : > { %v4397_v6 = vadd.f32 %v4301_v3, %v4192_v56  ;;  %v11820_v35 = vmul.f32 %v14525_v8, %v14552_v50  ;;  %6505 = vmatprep.mubr.bf16.mxu1 %v5918_v18  ;;  %v4399_v36 = vadd.f32 %v4303_v57, %v4194_v58  ;;  %v11824_v26 = vmul.f32 %v14551_v55, %v14554_v43  ;;  %v14557_v3 = vld [vmem:[#allocation60_spill] sm:$0xff] }
 0x3c9   : > { %v4771_v22 = vrot.slane %v4507_v20, 1  ;;  %v5102_v54 = vmul.f32 %v14555_v53, %v14549_v33  ;;  %v4773_v52 = vrot.slane %v4508_v63, 1  ;;  %v5103_v12 = vmul.f32 %v14556_v49, %v14550_v42 }
 0x3ca   : > { %14553 = vst [vmem:[#allocation61_spill] sm:$0xff] %v11820_v35  ;;  %v13580_v56 = vrot.slane %v11820_v35, 1  ;;  %v11833_v17 = vmul.f32 %v14555_v53, %v14552_v50  ;;  %v14558_v31 = vrot.slane %v14557_v3, 1  ;;  %v13578_v18 = vrot.slane %v11824_v26, 1 }
 0x3cb   : > { %v11841_v58 = vmul.f32 %v14556_v49, %v14554_v43  ;;  %v5366_v20 = vrot.slane %v5102_v54, 2  ;;  %v14559_v63 = vrot.slane %v11628_v34, 1  ;;  %v5368_v53 = vrot.slane %v5103_v12, 2 }
 0x3cc   : > { %v4772_v57 = vsel %vm1841_vm0, %v14558_v31, %v4771_v22  ;;  %v4776_v23 = vsel %vm1841_vm0, %v4771_v22, %v13580_v56  ;;  %v4778_v3 = vsel %vm1841_vm0, %v4773_v52, %v13578_v18  ;;  %v14560_v49 = vrot.slane %v11637_v5, 2 }
 0x3cd   : > { %v4774_v14 = vsel %vm1841_vm0, %v14559_v63, %v4773_v52  ;;  %v4991_v10 = vadd.f32 %v4772_v57, %v4396_v19  ;;  %v4993_v55 = vadd.f32 %v4776_v23, %v4398_v32  ;;  %v4994_v8 = vadd.f32 %v4778_v3, %v4399_v36 }
 0x3ce   : > { %v4992_v31 = vadd.f32 %v4774_v14, %v4397_v6  ;;  %v5367_v54 = vsel %vm2437_vm1, %v14560_v49, %v5366_v20  ;;  %v14561_v34 = vrot.slane %v11641_v27, 2  ;;  %v13577_v35 = vrot.slane %v11833_v17, 2 }
 0x3cf   : > { %v13576_v19 = vrot.slane %v11841_v58, 2  ;;  %v5586_v22 = vadd.f32 %v5367_v54, %v4991_v10  ;;  %v1512_v14 = vmul.f32 %v14041_v48, %v14474_v25  ;;  %v1513_v5 = vmul.f32 %v14042_v1, %v14476_v60 }
 0x3d0   : > { %v5369_v63 = vsel %vm2437_vm1, %v14561_v34, %v5368_v53  ;;  %v5371_v23 = vsel %vm2437_vm1, %v5366_v20, %v13577_v35  ;;  %v1514_v6 = vmul.f32 %v14041_v48, %v14496_v62  ;;  %v1515_v10 = vmul.f32 %v14042_v1, %v14497_v40 }
 0x3d1   : > { %v11860_v12 = vadd.f32 %v5369_v63, %v4992_v31  ;;  %v5373_v27 = vsel %vm2437_vm1, %v5368_v53, %v13576_v19  ;;  %v5588_v32 = vadd.f32 %v5371_v23, %v4993_v55  ;;  %v11878_v25 = vmul.f32 0.5, %v5586_v22 }
 0x3d2   : > { %v11876_v36 = vadd.f32 %v5373_v27, %v4994_v8  ;;  %v5696_v60 = vmul.f32 0.70710677, %v5586_v22  ;;  %v1608_v52 = vadd.f32 %v1512_v14, %v14043_v21  ;;  %v1609_v49 = vadd.f32 %v1513_v5, %v14044_v9 }
 0x3d3   : > { %v1610_v57 = vadd.f32 %v1514_v6, %v14043_v21  ;;  %v1611_v53 = vadd.f32 %v1515_v10, %v14044_v9  ;;  %v11884_v20 = vmul.f32 0.5, %v5588_v32  ;;  %v5697_v3 = vmul.f32 0.70710677, %v5588_v32 }
 0x3d4   : > { %6696 = verf.f32 %v5696_v60  ;;  %v1719_v55 = vmul.f32 %v13834_v30, %v14496_v62  ;;  %v1720_v8 = vmul.f32 %v7215_v38, %v14497_v40  ;;  %v11892_v31 = vmul.f32 %v13834_v30, %v14500_v24 }
 0x3d5   : > { %v11896_v54 = vmul.f32 %v7215_v38, %v14501_v13  ;;  %v2315_v34 = vmul.f32 %v7206_v28, %v14496_v62  ;;  %6698 = verf.f32 %v5697_v3  ;;  %v2316_v22 = vmul.f32 %v7217_v39, %v14497_v40 }
 0x3d6   : > { %v1988_v63 = vrot.slane %v1719_v55, 1  ;;  %v11904_v14 = vmul.f32 %v7206_v28, %v14500_v24  ;;  %v1990_v5 = vrot.slane %v1720_v8, 1  ;;  %v13579_v23 = vrot.slane %v11892_v31, 1 }
 0x3d7   : > { %v13583_v27 = vrot.slane %v11896_v54, 1  ;;  %v11910_v6 = vmul.f32 %v7217_v39, %v14501_v13  ;;  %v14562_v62 = vrot.slane %v11696_v16, 1  ;;  %v2584_v32 = vrot.slane %v2315_v34, 2 }
 0x3d8   : > { %v2586_v60 = vrot.slane %v2316_v22, 2  ;;  %v13582_v40 = vrot.slane %v11904_v14, 2  ;;  %v14563_v3 = vrot.slane %v11700_v15, 1  ;;  %v1993_v8 = vsel %vm1841_vm0, %v1988_v63, %v13579_v23 }
 0x3d9   : > { %v1989_v10 = vsel %vm1841_vm0, %v14562_v62, %v1988_v63  ;;  %v1995_v19 = vsel %vm1841_vm0, %v1990_v5, %v13583_v27  ;;  %v2206_v18 = vadd.f32 %v1993_v8, %v1610_v57  ;;  %v14564_v34 = vrot.slane %v11708_v37, 2 }
 0x3da   : > { %v1991_v55 = vsel %vm1841_vm0, %v14563_v3, %v1990_v5  ;;  %v2204_v35 = vadd.f32 %v1989_v10, %v1608_v52  ;;  %v2207_v62 = vadd.f32 %v1995_v19, %v1611_v53  ;;  %v14565_v15 = vrot.slane %v11714_v59, 2 }
 0x3db   : > { %v2205_v16 = vadd.f32 %v1991_v55, %v1609_v49  ;;  %v2585_v22 = vsel %vm2437_vm1, %v14564_v34, %v2584_v32  ;;  %v2589_v63 = vsel %vm2437_vm1, %v2584_v32, %v13582_v40  ;;  %v13581_v23 = vrot.slane %v11910_v6, 2  ;;  %v14567_v55 = vld [vmem:[#allocation11_spill] sm:$0xff] }
 0x3dc   : > { %v2587_v3 = vsel %vm2437_vm1, %v14565_v15, %v2586_v60  ;;  %v2800_v56 = vadd.f32 %v2585_v22, %v2204_v35  ;;  %v2802_v52 = vadd.f32 %v2589_v63, %v2206_v18  ;;  %v2909_v19 = vmul.f32 %v7221_v44, %v14523_v41  ;;  %v14566_v35 = vld [vmem:[#allocation8_spill] sm:$0xff]  ;;  %v14569_v63 = vld [vmem:[#allocation9_spill] sm:$0xff] }
 0x3dd   : > { %v2801_v5 = vadd.f32 %v2587_v3, %v2205_v16  ;;  %v2910_v37 = vmul.f32 %v7235_v2, %v14524_v7  ;;  %v2591_v59 = vsel %vm2437_vm1, %v2586_v60, %v13581_v23  ;;  %v2911_v49 = vmul.f32 %v7221_v44, %v14527_v11 }
 0x3de   : > { %v2912_v57 = vmul.f32 %v7235_v2, %v14529_v46  ;;  %v3116_v53 = vmul.f32 %v14566_v35, %v14527_v11  ;;  %v2803_v18 = vadd.f32 %v2591_v59, %v2207_v62  ;;  %v3005_v10 = vadd.f32 %v2909_v19, %v2800_v56 }
 0x3df   : > { %v3006_v32 = vadd.f32 %v2910_v37, %v2801_v5  ;;  %v3117_v8 = vmul.f32 %v14567_v55, %v14529_v46  ;;  %v3007_v16 = vadd.f32 %v2911_v49, %v2802_v52  ;;  %v11952_v34 = vmul.f32 %v14566_v35, %v14549_v33 }
 0x3e0   : > { %v11956_v60 = vmul.f32 %v14567_v55, %v14550_v42  ;;  %v3384_v22 = vrot.slane %v3116_v53, 1  ;;  %v3008_v15 = vadd.f32 %v2912_v57, %v2803_v18  ;;  %v3711_v62 = vmul.f32 %v14569_v63, %v14527_v11 }
 0x3e1   : > { %14568 = vst [vmem:[#allocation23_spill] sm:$0xff] %v11952_v34  ;;  %v3386_v3 = vrot.slane %v3117_v8, 1  ;;  %v3712_v56 = vmul.f32 %v14543_v0, %v14529_v46  ;;  %v6697_v5 = vpop.eup %6696  ;;  %v14570_v52 = vrot.slane %v11756_v47, 1  ;;  %v13588_v37 = vrot.slane %v11952_v34, 1 }
 0x3e2   : > { %v13591_v59 = vrot.slane %v11956_v60, 1  ;;  %v11969_v49 = vmul.f32 %v14569_v63, %v14549_v33  ;;  %v5792_v57 = vadd.f32 1.0, %v6697_v5  ;;  %v14571_v53 = vrot.slane %v11760_v45, 1  ;;  %v6699_v47 = vpop.eup %6698 }
 0x3e3   : > { %v3385_v19 = vsel %vm1841_vm0, %v14570_v52, %v3384_v22  ;;  %v11976_v23 = vmul.f32 %v14543_v0, %v14550_v42  ;;  %v3389_v52 = vsel %vm1841_vm0, %v3384_v22, %v13588_v37  ;;  %v3979_v5 = vrot.slane %v3711_v62, 2 }
 0x3e4   : > { %v3387_v18 = vsel %vm1841_vm0, %v14571_v53, %v3386_v3  ;;  %v3600_v8 = vadd.f32 %v3385_v19, %v3005_v10  ;;  %v3391_v40 = vsel %vm1841_vm0, %v3386_v3, %v13591_v59  ;;  %v5793_v63 = vadd.f32 1.0, %v6699_v47  ;;  %v14576_v47 = vld [vmem:[#allocation14_spill] sm:$0xff] }
 0x3e5   : > { %v3601_v27 = vadd.f32 %v3387_v18, %v3006_v32  ;;  %v5840_v45 = vmul.f32 %v5792_v57, %v11878_v25  ;;  %v3602_v53 = vadd.f32 %v3389_v52, %v3007_v16  ;;  %v3603_v10 = vadd.f32 %v3391_v40, %v3008_v15  ;;  %v14575_v57 = vld [vmem:[#allocation135_spill] sm:$0xff] }
 0x3e6   : > { %v14572_v19 = vrot.slane %v11768_v61, 2  ;;  %v3981_v55 = vrot.slane %v3712_v56, 2  ;;  %v13590_v34 = vrot.slane %v11969_v49, 2  ;;  %v13589_v22 = vrot.slane %v11976_v23, 2  ;;  %v14574_v56 = vld [vmem:[#allocation134_spill] sm:$0xff] }
 0x3e7   : > { %v5841_v37 = vmul.f32 %v5793_v63, %v11884_v20  ;;  %v5888_v3 = vmul.f32 %v5840_v45, %v11860_v12  ;;  %v4304_v62 = vmul.f32 %v14494_v4, %v14552_v50  ;;  %v14573_v25 = vrot.slane %v11780_v51, 2  ;;  %v14577_v45 = vld [vmem:[#allocation17_spill] sm:$0xff] }
 0x3e8   : > { %v3980_v0 = vsel %vm2437_vm1, %v14572_v19, %v3979_v5  ;;  %v3984_v61 = vsel %vm2437_vm1, %v3979_v5, %v13590_v34  ;;  %v3986_v16 = vsel %vm2437_vm1, %v3981_v55, %v13589_v22  ;;  %v4305_v20 = vmul.f32 %v14522_v29, %v14554_v43 }
 0x3e9   : > { %v4195_v32 = vadd.f32 %v3980_v0, %v3600_v8  ;;  %v3982_v40 = vsel %vm2437_vm1, %v14573_v25, %v3981_v55  ;;  %v5889_v0 = vmul.f32 %v5841_v37, %v11876_v36  ;;  %v4197_v15 = vadd.f32 %v3984_v61, %v3602_v53  ;;  %v14578_v25 = vld [vmem:[#allocation136_spill] sm:$0xff]  ;;  %v14580_v53 = vld [vmem:[#allocation137_spill] sm:$0xff] }
 0x3ea   : > { %v4196_v12 = vadd.f32 %v3982_v40, %v3601_v27  ;;  %v4198_v63 = vadd.f32 %v3986_v16, %v3603_v10  ;;  %v4306_v51 = vmul.f32 %v14494_v4, %v14574_v56  ;;  %v4307_v18 = vmul.f32 %v14522_v29, %v14575_v57  ;;  %v14582_v16 = vld [vmem:[#allocation18_spill] sm:$0xff] }
 0x3eb   : > { %v4400_v8 = vadd.f32 %v4304_v62, %v4195_v32  ;;  %v4511_v52 = vmul.f32 %v14576_v47, %v14574_v56  ;;  %v5919_v5 = vpack.c.bf16 %v5889_v0, %v5888_v3  ;;  %v4512_v19 = vmul.f32 %v14577_v45, %v14575_v57  ;;  %v14581_v3 = vld [vmem:[#allocation15_spill] sm:$0xff]  ;;  %v14583_v0 = vld [vmem:[#allocation61_spill] sm:$0xff] }
 0x3ec   : > { %v4401_v55 = vadd.f32 %v4305_v20, %v4196_v12  ;;  %v12016_v36 = vmul.f32 %v14576_v47, %v14578_v25  ;;  %v4402_v27 = vadd.f32 %v4306_v51, %v4197_v15  ;;  %v4403_v37 = vadd.f32 %v4307_v18, %v4198_v63 }
 0x3ed   : > { %v12020_v10 = vmul.f32 %v14577_v45, %v14580_v53  ;;  %v4779_v40 = vrot.slane %v4511_v52, 1  ;;  %6506 = vmatmul.mubr.bf16.gmra.mxu1 %v5919_v5  ;;  %v4781_v32 = vrot.slane %v4512_v19, 1  ;;  %v5106_v61 = vmul.f32 %v14581_v3, %v14574_v56 }
 0x3ee   : > { %14579 = vst [vmem:[#allocation98_spill] sm:$0xff] %v12016_v36  ;;  %v13600_v62 = vrot.slane %v12016_v36, 1  ;;  %v5107_v20 = vmul.f32 %v14582_v16, %v14575_v57  ;;  %v14584_v12 = vrot.slane %v14583_v0, 1  ;;  %v12033_v51 = vmul.f32 %v14581_v3, %v14578_v25 }
 0x3ef   : > { %v13598_v63 = vrot.slane %v12020_v10, 1  ;;  %v12037_v18 = vmul.f32 %v14582_v16, %v14580_v53  ;;  %v14585_v52 = vrot.slane %v11824_v26, 1  ;;  %v14586_v16 = vrot.slane %v11833_v17, 2 }
 0x3f0   : > { %v4780_v15 = vsel %vm1841_vm0, %v14584_v12, %v4779_v40  ;;  %v4784_v19 = vsel %vm1841_vm0, %v4779_v40, %v13600_v62  ;;  %v5374_v12 = vrot.slane %v5106_v61, 2  ;;  %v5376_v3 = vrot.slane %v5107_v20, 2 }
 0x3f1   : > { %v4782_v5 = vsel %vm1841_vm0, %v14585_v52, %v4781_v32  ;;  %v4995_v0 = vadd.f32 %v4780_v15, %v4400_v8  ;;  %v4786_v22 = vsel %vm1841_vm0, %v4781_v32, %v13598_v63  ;;  %v4997_v59 = vadd.f32 %v4784_v19, %v4402_v27 }
 0x3f2   : > { %v4996_v34 = vadd.f32 %v4782_v5, %v4401_v55  ;;  %v4998_v45 = vadd.f32 %v4786_v22, %v4403_v37  ;;  %v5375_v26 = vsel %vm2437_vm1, %v14586_v16, %v5374_v12  ;;  %v13597_v52 = vrot.slane %v12033_v51, 2 }
 0x3f3   : > { %v13596_v36 = vrot.slane %v12037_v18, 2  ;;  %v14587_v40 = vrot.slane %v11841_v58, 2  ;;  %v5590_v61 = vadd.f32 %v5375_v26, %v4995_v0  ;;  %v1516_v32 = vmul.f32 %v14041_v48, %v14500_v24 }
 0x3f4   : > { %v1517_v55 = vmul.f32 %v14042_v1, %v14501_v13  ;;  %v5379_v17 = vsel %vm2437_vm1, %v5374_v12, %v13597_v52  ;;  %v1518_v58 = vmul.f32 %v14041_v48, %v14523_v41  ;;  %v1519_v13 = vmul.f32 %v14042_v1, %v14524_v7 }
 0x3f5   : > { %v5377_v8 = vsel %vm2437_vm1, %v14587_v40, %v5376_v3  ;;  %v5381_v22 = vsel %vm2437_vm1, %v5376_v3, %v13596_v36  ;;  %v5592_v37 = vadd.f32 %v5379_v17, %v4997_v59  ;;  %v12072_v24 = vmul.f32 0.5, %v5590_v61 }
 0x3f6   : > { %v12066_v27 = vadd.f32 %v5377_v8, %v4996_v34  ;;  %v12070_v16 = vadd.f32 %v5381_v22, %v4998_v45  ;;  %v5698_v20 = vmul.f32 0.70710677, %v5590_v61  ;;  %v1612_v15 = vadd.f32 %v1516_v32, %v14043_v21 }
 0x3f7   : > { %v1613_v5 = vadd.f32 %v1517_v55, %v14044_v9  ;;  %v1614_v3 = vadd.f32 %v1518_v58, %v14043_v21  ;;  %v12079_v34 = vmul.f32 0.5, %v5592_v37  ;;  %v5699_v19 = vmul.f32 0.70710677, %v5592_v37 }
 0x3f8   : > { %6700 = verf.f32 %v5698_v20  ;;  %v1723_v59 = vmul.f32 %v13834_v30, %v14523_v41  ;;  %v1615_v45 = vadd.f32 %v1519_v13, %v14044_v9  ;;  %v1724_v0 = vmul.f32 %v7215_v38, %v14524_v7 }
 0x3f9   : > { %v12088_v12 = vmul.f32 %v13834_v30, %v14527_v11  ;;  %v12092_v26 = vmul.f32 %v7215_v38, %v14529_v46  ;;  %6702 = verf.f32 %v5699_v19  ;;  %v2319_v8 = vmul.f32 %v7206_v28, %v14523_v41 }
 0x3fa   : > { %v1996_v40 = vrot.slane %v1723_v59, 1  ;;  %v2320_v61 = vmul.f32 %v7217_v39, %v14524_v7  ;;  %v1998_v32 = vrot.slane %v1724_v0, 1  ;;  %v12102_v22 = vmul.f32 %v7206_v28, %v14527_v11 }
 0x3fb   : > { %v13599_v55 = vrot.slane %v12088_v12, 1  ;;  %v13603_v17 = vrot.slane %v12092_v26, 1  ;;  %v14588_v58 = vrot.slane %v11892_v31, 1  ;;  %v12109_v20 = vmul.f32 %v7217_v39, %v14529_v46 }
 0x3fc   : > { %v2592_v41 = vrot.slane %v2319_v8, 2  ;;  %v2594_v13 = vrot.slane %v2320_v61, 2  ;;  %v14589_v7 = vrot.slane %v11896_v54, 1  ;;  %v14590_v63 = vrot.slane %v11904_v14, 2 }
 0x3fd   : > { %v1997_v37 = vsel %vm1841_vm0, %v14588_v58, %v1996_v40  ;;  %v2001_v59 = vsel %vm1841_vm0, %v1996_v40, %v13599_v55  ;;  %v2003_v31 = vsel %vm1841_vm0, %v1998_v32, %v13603_v17  ;;  %v14591_v54 = vrot.slane %v11910_v6, 2 }
 0x3fe   : > { %v1999_v19 = vsel %vm1841_vm0, %v14589_v7, %v1998_v32  ;;  %v2208_v0 = vadd.f32 %v1997_v37, %v1612_v15  ;;  %v2210_v36 = vadd.f32 %v2001_v59, %v1614_v3  ;;  %v2211_v52 = vadd.f32 %v2003_v31, %v1615_v45  ;;  %v14592_v31 = vld [vmem:[#allocation11_spill] sm:$0xff] }
 0x3ff   : > { %v2209_v58 = vadd.f32 %v1999_v19, %v1613_v5  ;;  %v2593_v8 = vsel %vm2437_vm1, %v14590_v63, %v2592_v41  ;;  %v2595_v61 = vsel %vm2437_vm1, %v14591_v54, %v2594_v13  ;;  %v13602_v7 = vrot.slane %v12102_v22, 2 }
 0x400   : > { %v13601_v40 = vrot.slane %v12109_v20, 2  ;;  %v2804_v55 = vadd.f32 %v2593_v8, %v2208_v0  ;;  %v2913_v15 = vmul.f32 %v7221_v44, %v14549_v33  ;;  %v2914_v5 = vmul.f32 %v7235_v2, %v14550_v42 }
 0x401   : > { %v2805_v62 = vadd.f32 %v2595_v61, %v2209_v58  ;;  %v2915_v14 = vmul.f32 %v7221_v44, %v14552_v50  ;;  %v2597_v6 = vsel %vm2437_vm1, %v2592_v41, %v13602_v7  ;;  %v2916_v3 = vmul.f32 %v7235_v2, %v14554_v43  ;;  %v14594_v61 = vld [vmem:[#allocation9_spill] sm:$0xff] }
 0x402   : > { %v2599_v63 = vsel %vm2437_vm1, %v2594_v13, %v13601_v40  ;;  %v3120_v45 = vmul.f32 %v14566_v35, %v14552_v50  ;;  %v2806_v32 = vadd.f32 %v2597_v6, %v2210_v36  ;;  %v3009_v19 = vadd.f32 %v2913_v15, %v2804_v55  ;;  %v14596_v15 = vld [vmem:[#allocation23_spill] sm:$0xff] }
 0x403   : > { %v2807_v37 = vadd.f32 %v2599_v63, %v2211_v52  ;;  %v3010_v59 = vadd.f32 %v2914_v5, %v2805_v62  ;;  %v3121_v0 = vmul.f32 %v14592_v31, %v14554_v43  ;;  %v12148_v41 = vmul.f32 %v14566_v35, %v14574_v56  ;;  %v14595_v52 = vld [vmem:[#allocation12_spill] sm:$0xff] }
 0x404   : > { %v12152_v13 = vmul.f32 %v14592_v31, %v14575_v57  ;;  %v3392_v58 = vrot.slane %v3120_v45, 1  ;;  %v3011_v8 = vadd.f32 %v2915_v14, %v2806_v32  ;;  %v3715_v36 = vmul.f32 %v14594_v61, %v14552_v50 }
 0x405   : > { %14593 = vst [vmem:[#allocation42_spill] sm:$0xff] %v12148_v41  ;;  %v3012_v54 = vadd.f32 %v2916_v3, %v2807_v37  ;;  %v3716_v62 = vmul.f32 %v14595_v52, %v14554_v43  ;;  %v6701_v55 = vpop.eup %6700  ;;  %v14597_v5 = vrot.slane %v14596_v15, 1  ;;  %v3394_v63 = vrot.slane %v3121_v0, 1 }
 0x406   : > { %v13609_v40 = vrot.slane %v12148_v41, 1  ;;  %v13612_v7 = vrot.slane %v12152_v13, 1  ;;  %v5794_v17 = vadd.f32 1.0, %v6701_v55  ;;  %v12165_v14 = vmul.f32 %v14594_v61, %v14574_v56  ;;  %v6703_v32 = vpop.eup %6702 }
 0x407   : > { %v3393_v6 = vsel %vm1841_vm0, %v14597_v5, %v3392_v58  ;;  %v12169_v3 = vmul.f32 %v14595_v52, %v14575_v57  ;;  %v14598_v37 = vrot.slane %v11956_v60, 1  ;;  %v3987_v55 = vrot.slane %v3715_v36, 2 }
 0x408   : > { %v3604_v45 = vadd.f32 %v3393_v6, %v3009_v19  ;;  %v3397_v0 = vsel %vm1841_vm0, %v3392_v58, %v13609_v40  ;;  %v3399_v19 = vsel %vm1841_vm0, %v3394_v63, %v13612_v7  ;;  %v5795_v5 = vadd.f32 1.0, %v6703_v32 }
 0x409   : > { %v3395_v15 = vsel %vm1841_vm0, %v14598_v37, %v3394_v63  ;;  %v5842_v6 = vmul.f32 %v5794_v17, %v12072_v24  ;;  %v3606_v52 = vadd.f32 %v3397_v0, %v3011_v8  ;;  %v3607_v31 = vadd.f32 %v3399_v19, %v3012_v54  ;;  %v14601_v54 = vld [vmem:[#allocation85_spill] sm:$0xff] }
 0x40a   : > { %v3605_v61 = vadd.f32 %v3395_v15, %v3010_v59  ;;  %v14599_v35 = vrot.slane %v11969_v49, 2  ;;  %v3989_v37 = vrot.slane %v3716_v62, 2  ;;  %v13611_v41 = vrot.slane %v12165_v14, 2 }
 0x40b   : > { %v5843_v58 = vmul.f32 %v5795_v5, %v12079_v34  ;;  %v5890_v40 = vmul.f32 %v5842_v6, %v12066_v27  ;;  %v13610_v63 = vrot.slane %v12169_v3, 2  ;;  %v14600_v32 = vrot.slane %v11976_v23, 2 }
 0x40c   : > { %v3988_v60 = vsel %vm2437_vm1, %v14599_v35, %v3987_v55  ;;  %v3992_v49 = vsel %vm2437_vm1, %v3987_v55, %v13611_v41  ;;  %v4308_v35 = vmul.f32 %v14494_v4, %v14578_v25  ;;  %v4309_v17 = vmul.f32 %v14522_v29, %v14580_v53 }
 0x40d   : > { %v4199_v36 = vadd.f32 %v3988_v60, %v3604_v45  ;;  %v3990_v24 = vsel %vm2437_vm1, %v14600_v32, %v3989_v37  ;;  %v5891_v34 = vmul.f32 %v5843_v58, %v12070_v16  ;;  %v3994_v27 = vsel %vm2437_vm1, %v3989_v37, %v13610_v63  ;;  %v14602_v45 = vld [vmem:[#allocation93_spill] sm:$0xff]  ;;  %v12210_v60 = vpop.f32.mrf.mxu1  ;;  %v14606_v58 = vld [vmem:[#allocation96_spill] sm:$0xff] }
 0x40e   : > { %v4200_v59 = vadd.f32 %v3990_v24, %v3605_v61  ;;  %v4201_v23 = vadd.f32 %v3992_v49, %v3606_v52  ;;  %v4202_v8 = vadd.f32 %v3994_v27, %v3607_v31  ;;  %v4310_v62 = vmul.f32 %v14494_v4, %v14601_v54  ;;  %v14603_v16 = vld [vmem:[#allocation17_spill] sm:$0xff]  ;;  %14604 = vst [vmem:[#allocation43_spill] sm:$0xff] %v12210_v60  ;;  %v14605_v31 = vld [vmem:[#allocation2_spill] sm:$0xff]  ;;  %v14608_v24 = vld [vmem:[#allocation15_spill] sm:$0xff] }
 0x40f   : > { %v4311_v15 = vmul.f32 %v14522_v29, %v14602_v45  ;;  %v4404_v0 = vadd.f32 %v4308_v35, %v4199_v36  ;;  %v5920_v19 = vpack.c.bf16 %v5891_v34, %v5890_v40  ;;  %v4515_v5 = vmul.f32 %v14576_v47, %v14601_v54  ;;  %v14609_v35 = vld [vmem:[#allocation18_spill] sm:$0xff] }
 0x410   : > { %v4405_v55 = vadd.f32 %v4309_v17, %v4200_v59  ;;  %v4516_v6 = vmul.f32 %v14603_v16, %v14602_v45  ;;  %v4406_v61 = vadd.f32 %v4310_v62, %v4201_v23  ;;  %v12214_v37 = vmul.f32 %v14576_v47, %v14605_v31  ;;  %v14611_v62 = vld [vmem:[#allocation98_spill] sm:$0xff] }
 0x411   : > { %v4407_v52 = vadd.f32 %v4311_v15, %v4202_v8  ;;  %v12218_v32 = vmul.f32 %v14603_v16, %v14606_v58  ;;  %6509 = vmatprep.mubr.bf16.mxu1 %v5920_v19  ;;  %v4787_v40 = vrot.slane %v4515_v5, 1  ;;  %v5110_v49 = vmul.f32 %v14608_v24, %v14601_v54  ;;  %v12234_v8 = vpop.f32.mrf.mxu1 }
 0x412   : > { %v4789_v36 = vrot.slane %v4516_v6, 1  ;;  %v5111_v17 = vmul.f32 %v14609_v35, %v14602_v45  ;;  %v13615_v34 = vrot.slane %v12214_v37, 1  ;;  %v12228_v59 = vmul.f32 %v14608_v24, %v14605_v31  ;;  %14610 = vst [vmem:[#allocation120_spill] sm:$0xff] %v12234_v8 }
 0x413   : > { %14607 = vst [vmem:[#allocation99_spill] sm:$0xff] %v12218_v32  ;;  %v13619_v27 = vrot.slane %v12218_v32, 1  ;;  %v12232_v23 = vmul.f32 %v14609_v35, %v14606_v58  ;;  %v14612_v15 = vrot.slane %v14611_v62, 1  ;;  %v14613_v5 = vrot.slane %v12020_v10, 1 }
 0x414   : > { %v5382_v63 = vrot.slane %v5110_v49, 2  ;;  %v5384_v41 = vrot.slane %v5111_v17, 2  ;;  %v4792_v7 = vsel %vm1841_vm0, %v4787_v40, %v13615_v34  ;;  %v13618_v17 = vrot.slane %v12228_v59, 2 }
 0x415   : > { %v4788_v19 = vsel %vm1841_vm0, %v14612_v15, %v4787_v40  ;;  %v4790_v6 = vsel %vm1841_vm0, %v14613_v5, %v4789_v36  ;;  %v4794_v60 = vsel %vm1841_vm0, %v4789_v36, %v13619_v27  ;;  %v5001_v24 = vadd.f32 %v4792_v7, %v4406_v61  ;;  %v12258_v36 = vpop.f32.mrf.mxu1 }
 0x416   : > { %v4999_v35 = vadd.f32 %v4788_v19, %v4404_v0  ;;  %v5000_v8 = vadd.f32 %v4790_v6, %v4405_v55  ;;  %v5002_v62 = vadd.f32 %v4794_v60, %v4407_v52  ;;  %v14614_v15 = vrot.slane %v12033_v51, 2  ;;  %14616 = vst [vmem:[#allocation44_spill] sm:$0xff] %v12258_v36 }
 0x417   : > { %v14615_v5 = vrot.slane %v12037_v18, 2  ;;  %v13617_v40 = vrot.slane %v12232_v23, 2  ;;  %v1520_v7 = vmul.f32 %v14041_v48, %v14527_v11  ;;  %v1521_v51 = vmul.f32 %v14042_v1, %v14529_v46 }
 0x418   : > { %v5383_v10 = vsel %vm2437_vm1, %v14614_v15, %v5382_v63  ;;  %v1522_v18 = vmul.f32 %v14041_v48, %v14549_v33  ;;  %v1523_v0 = vmul.f32 %v14042_v1, %v14550_v42  ;;  %v5387_v55 = vsel %vm2437_vm1, %v5382_v63, %v13618_v17  ;;  %v12284_v15 = vpop.f32.mrf.mxu1 }
 0x419   : > { %v5385_v49 = vsel %vm2437_vm1, %v14615_v5, %v5384_v41  ;;  %v5594_v34 = vadd.f32 %v5383_v10, %v4999_v35  ;;  %v5389_v60 = vsel %vm2437_vm1, %v5384_v41, %v13617_v40  ;;  %v5596_v52 = vadd.f32 %v5387_v55, %v5001_v24  ;;  %14617 = vst [vmem:[#allocation62_spill] sm:$0xff] %v12284_v15 }
 0x41a   : > { %v12256_v32 = vadd.f32 %v5385_v49, %v5000_v8  ;;  %v12276_v35 = vadd.f32 %v5389_v60, %v5002_v62  ;;  %v1616_v46 = vadd.f32 %v1520_v7, %v14043_v21  ;;  %v1617_v8 = vadd.f32 %v1521_v51, %v14044_v9  ;;  %v12302_v51 = vpop.f32.mrf.mxu1 }
 0x41b   : > { %v12274_v61 = vmul.f32 0.5, %v5594_v34  ;;  %v5700_v11 = vmul.f32 0.70710677, %v5594_v34  ;;  %v1618_v19 = vadd.f32 %v1522_v18, %v14043_v21  ;;  %v1619_v6 = vadd.f32 %v1523_v0, %v14044_v9  ;;  %14618 = vst [vmem:[#allocation63_spill] sm:$0xff] %v12302_v51 }
 0x41c   : > { %v1727_v63 = vmul.f32 %v13834_v30, %v14549_v33  ;;  %v12286_v41 = vmul.f32 0.5, %v5596_v52  ;;  %v5701_v34 = vmul.f32 0.70710677, %v5596_v52  ;;  %v1728_v24 = vmul.f32 %v7215_v38, %v14550_v42  ;;  %v12329_v15 = vpop.f32.mrf.mxu1 }
 0x41d   : > { %6704 = verf.f32 %v5700_v11  ;;  %v12292_v62 = vmul.f32 %v13834_v30, %v14552_v50  ;;  %v12296_v10 = vmul.f32 %v7215_v38, %v14554_v43  ;;  %v2323_v49 = vmul.f32 %v7206_v28, %v14549_v33  ;;  %14622 = vst [vmem:[#allocation64_spill] sm:$0xff] %v12329_v15 }
 0x41e   : > { %v2004_v5 = vrot.slane %v1727_v63, 1  ;;  %v2324_v7 = vmul.f32 %v7217_v39, %v14550_v42  ;;  %6706 = verf.f32 %v5701_v34  ;;  %v2006_v18 = vrot.slane %v1728_v24, 1 }
 0x41f   : > { %v13623_v0 = vrot.slane %v12292_v62, 1  ;;  %v12307_v55 = vmul.f32 %v7206_v28, %v14552_v50  ;;  %v14619_v60 = vrot.slane %v12088_v12, 1  ;;  %v13622_v52 = vrot.slane %v12296_v10, 1 }
 0x420   : > { %v12315_v33 = vmul.f32 %v7217_v39, %v14554_v43  ;;  %v2600_v42 = vrot.slane %v2323_v49, 2  ;;  %v14620_v63 = vrot.slane %v12092_v26, 1  ;;  %v2602_v17 = vrot.slane %v2324_v7, 2 }
 0x421   : > { %v2005_v11 = vsel %vm1841_vm0, %v14619_v60, %v2004_v5  ;;  %v2009_v24 = vsel %vm1841_vm0, %v2004_v5, %v13623_v0  ;;  %v2011_v12 = vsel %vm1841_vm0, %v2006_v18, %v13622_v52  ;;  %v14621_v51 = vrot.slane %v12102_v22, 2 }
 0x422   : > { %v2007_v34 = vsel %vm1841_vm0, %v14620_v63, %v2006_v18  ;;  %v2212_v40 = vadd.f32 %v2005_v11, %v1616_v46  ;;  %v2214_v27 = vadd.f32 %v2009_v24, %v1618_v19  ;;  %v2215_v26 = vadd.f32 %v2011_v12, %v1619_v6  ;;  %v12350_v24 = vpop.f32.mrf.mxu1  ;;  %v14625_v12 = vld [vmem:[#allocation8_spill] sm:$0xff] }
 0x423   : > { %v2213_v60 = vadd.f32 %v2007_v34, %v1617_v8  ;;  %v2601_v49 = vsel %vm2437_vm1, %v14621_v51, %v2600_v42  ;;  %v14623_v63 = vrot.slane %v12109_v20, 2  ;;  %v13621_v46 = vrot.slane %v12307_v55, 2  ;;  %14624 = vst [vmem:[#allocation65_spill] sm:$0xff] %v12350_v24 }
 0x424   : > { %v13620_v5 = vrot.slane %v12315_v33, 2  ;;  %v2808_v7 = vadd.f32 %v2601_v49, %v2212_v40  ;;  %v2917_v8 = vmul.f32 %v7221_v44, %v14574_v56  ;;  %v2918_v22 = vmul.f32 %v7235_v2, %v14575_v57 }
 0x425   : > { %v2603_v36 = vsel %vm2437_vm1, %v14623_v63, %v2602_v17  ;;  %v2605_v19 = vsel %vm2437_vm1, %v2600_v42, %v13621_v46  ;;  %v2919_v6 = vmul.f32 %v7221_v44, %v14578_v25  ;;  %v2920_v40 = vmul.f32 %v7235_v2, %v14580_v53  ;;  %v14626_v42 = vld [vmem:[#allocation11_spill] sm:$0xff] }
 0x426   : > { %v2809_v11 = vadd.f32 %v2603_v36, %v2213_v60  ;;  %v2607_v20 = vsel %vm2437_vm1, %v2602_v17, %v13620_v5  ;;  %v2810_v36 = vadd.f32 %v2605_v19, %v2214_v27  ;;  %v3013_v18 = vadd.f32 %v2917_v8, %v2808_v7  ;;  %v14628_v7 = vld [vmem:[#allocation9_spill] sm:$0xff]  ;;  %v14629_v8 = vld [vmem:[#allocation12_spill] sm:$0xff] }
 0x427   : > { %v2811_v51 = vadd.f32 %v2607_v20, %v2215_v26  ;;  %v3124_v60 = vmul.f32 %v14625_v12, %v14578_v25  ;;  %v3125_v49 = vmul.f32 %v14626_v42, %v14580_v53  ;;  %v12358_v17 = vmul.f32 %v14625_v12, %v14601_v54 }
 0x428   : > { %v3014_v34 = vadd.f32 %v2918_v22, %v2809_v11  ;;  %v12362_v63 = vmul.f32 %v14626_v42, %v14602_v45  ;;  %v3015_v27 = vadd.f32 %v2919_v6, %v2810_v36  ;;  %v3719_v11 = vmul.f32 %v14628_v7, %v14578_v25  ;;  %v12378_v36 = vpop.f32.mrf.mxu1 }
 0x429   : > { %14627 = vst [vmem:[#allocation115_spill] sm:$0xff] %v12358_v17  ;;  %v3016_v26 = vadd.f32 %v2920_v40, %v2811_v51  ;;  %v3720_v22 = vmul.f32 %v14629_v8, %v14580_v53  ;;  %v3400_v20 = vrot.slane %v3124_v60, 1  ;;  %v3402_v5 = vrot.slane %v3125_v49, 1  ;;  %14630 = vst [vmem:[#allocation126_spill] sm:$0xff] %v12378_v36  ;;  %v14631_v51 = vld [vmem:[#allocation42_spill] sm:$0xff] }
 0x42a   : > { %v6705_v19 = vpop.eup %6704  ;;  %v13632_v46 = vrot.slane %v12358_v17, 1  ;;  %v12372_v24 = vmul.f32 %v14628_v7, %v14601_v54  ;;  %v12376_v6 = vmul.f32 %v14629_v8, %v14602_v45  ;;  %v3995_v40 = vrot.slane %v3719_v11, 2  ;;  %v12393_v2 = vpop.f32.mrf.mxu1 }
 0x42b   : > { %v5796_v0 = vadd.f32 1.0, %v6705_v19  ;;  %v14632_v15 = vrot.slane %v14631_v51, 1  ;;  %v14633_v49 = vrot.slane %v12152_v13, 1  ;;  %v14634_v7 = vrot.slane %v12362_v63, 1  ;;  %v6707_v42 = vpop.eup %6706  ;;  %14635 = vst [vmem:[#allocation110_spill] sm:$0xff] %v12393_v2 }
 0x42c   : > { %v3405_v19 = vsel %vm1841_vm0, %v3400_v20, %v13632_v46  ;;  %v3997_v45 = vrot.slane %v3720_v22, 2  ;;  %v13634_v46 = vrot.slane %v12372_v24, 2  ;;  %v14640_v22 = vld [vmem:[#allocation102_spill] sm:$0xff] }
 0x42d   : > { %v3401_v60 = vsel %vm1841_vm0, %v14632_v15, %v3400_v20  ;;  %v3403_v52 = vsel %vm1841_vm0, %v14633_v49, %v3402_v5  ;;  %v3407_v8 = vsel %vm1841_vm0, %v3402_v5, %v14634_v7  ;;  %v5844_v11 = vmul.f32 %v5796_v0, %v12274_v61 }
 0x42e   : > { %v3608_v36 = vadd.f32 %v3401_v60, %v3013_v18  ;;  %v3609_v12 = vadd.f32 %v3403_v52, %v3014_v34  ;;  %v3610_v51 = vadd.f32 %v3405_v19, %v3015_v27  ;;  %v5797_v15 = vadd.f32 1.0, %v6707_v42 }
 0x42f   : > { %v3611_v13 = vadd.f32 %v3407_v8, %v3016_v26  ;;  %v14636_v49 = vrot.slane %v12165_v14, 2  ;;  %v5892_v20 = vmul.f32 %v5844_v11, %v12256_v32  ;;  %v13633_v5 = vrot.slane %v12376_v6, 2 }
 0x430   : > { %v5845_v61 = vmul.f32 %v5797_v15, %v12286_v41  ;;  %v14637_v0 = vrot.slane %v12169_v3, 2  ;;  %v4312_v18 = vmul.f32 %v14494_v4, %v14605_v31  ;;  %v4313_v14 = vmul.f32 %v14522_v29, %v14606_v58  ;;  %v14638_v41 = vld [vmem:[#allocation100_spill] sm:$0xff] }
 0x431   : > { %v3996_v17 = vsel %vm2437_vm1, %v14636_v49, %v3995_v40  ;;  %v4000_v32 = vsel %vm2437_vm1, %v3995_v40, %v13634_v46  ;;  %v4002_v34 = vsel %vm2437_vm1, %v3997_v45, %v13633_v5  ;;  %v4314_v3 = vmul.f32 %v14494_v4, %v14638_v41  ;;  %v14641_v49 = vld [vmem:[#allocation105_spill] sm:$0xff] }
 0x432   : > { %v4203_v7 = vadd.f32 %v3996_v17, %v3608_v36  ;;  %v3998_v52 = vsel %vm2437_vm1, %v14637_v0, %v3997_v45  ;;  %v12417_v17 = vpop.f32.mrf.mxu1  ;;  %v5893_v27 = vmul.f32 %v5845_v61, %v12276_v35  ;;  %v4205_v26 = vadd.f32 %v4000_v32, %v3610_v51  ;;  %v14643_v35 = vld [vmem:[#allocation24_spill] sm:$0xff]  ;;  %v14644_v61 = vld [vmem:[#allocation15_spill] sm:$0xff] }
 0x433   : > { %v4204_v42 = vadd.f32 %v3998_v52, %v3609_v12  ;;  %14639 = vst [vmem:[#allocation117_spill] sm:$0xff] %v12417_v17  ;;  %v4206_v8 = vadd.f32 %v4002_v34, %v3611_v13  ;;  %v4315_v36 = vmul.f32 %v14522_v29, %v14640_v22  ;;  %v4519_v40 = vmul.f32 %v14576_v47, %v14638_v41 }
 0x434   : > { %v4408_v60 = vadd.f32 %v4312_v18, %v4203_v7  ;;  %v4520_v45 = vmul.f32 %v14603_v16, %v14640_v22  ;;  %v5921_v12 = vpack.c.bf16 %v5893_v27, %v5892_v20  ;;  %v4410_v11 = vadd.f32 %v4314_v3, %v4205_v26  ;;  %v12436_v18 = vpop.f32.mrf.mxu1  ;;  %v14648_v26 = vld [vmem:[#allocation99_spill] sm:$0xff] }
 0x435   : > { %v4409_v19 = vadd.f32 %v4313_v14, %v4204_v42  ;;  %v4411_v15 = vadd.f32 %v4315_v36, %v4206_v8  ;;  %v12428_v0 = vmul.f32 %v14576_v47, %v14641_v49  ;;  %v12432_v51 = vmul.f32 %v14603_v16, %v14643_v35  ;;  %14645 = vst [vmem:[#allocation92_spill] sm:$0xff] %v12436_v18  ;;  %v14646_v14 = vld [vmem:[#allocation18_spill] sm:$0xff] }
 0x436   : > { %v4795_v13 = vrot.slane %v4519_v40, 1  ;;  %v4797_v7 = vrot.slane %v4520_v45, 1  ;;  %v5114_v52 = vmul.f32 %v14644_v61, %v14638_v41  ;;  %6510 = vmatmul.mubr.bf16.gmra.mxu1 %v5921_v12  ;;  %v5115_v32 = vmul.f32 %v14646_v14, %v14640_v22  ;;  %v12466_v2 = vpop.f32.mrf.mxu1 }
 0x437   : > { %14642 = vst [vmem:[#allocation127_spill] sm:$0xff] %v12428_v0  ;;  %v13639_v20 = vrot.slane %v12428_v0, 1  ;;  %v12443_v34 = vmul.f32 %v14644_v61, %v14641_v49  ;;  %v12447_v42 = vmul.f32 %v14646_v14, %v14643_v35  ;;  %v14647_v3 = vrot.slane %v12214_v37, 1  ;;  %14651 = vst [vmem:[#allocation101_spill] sm:$0xff] %v12466_v2 }
 0x438   : > { %v14649_v8 = vrot.slane %v14648_v26, 1  ;;  %v13638_v40 = vrot.slane %v12432_v51, 1  ;;  %v5390_v45 = vrot.slane %v5114_v52, 2  ;;  %v5392_v18 = vrot.slane %v5115_v32, 2 }
 0x439   : > { %v4796_v27 = vsel %vm1841_vm0, %v14647_v3, %v4795_v13  ;;  %v4800_v12 = vsel %vm1841_vm0, %v4795_v13, %v13639_v20  ;;  %v14650_v3 = vrot.slane %v12228_v59, 2  ;;  %v14652_v0 = vrot.slane %v12232_v23, 2 }
 0x43a   : > { %v4798_v36 = vsel %vm1841_vm0, %v14649_v8, %v4797_v7  ;;  %v5003_v5 = vadd.f32 %v4796_v27, %v4408_v60  ;;  %v4802_v37 = vsel %vm1841_vm0, %v4797_v7, %v13638_v40  ;;  %v5005_v17 = vadd.f32 %v4800_v12, %v4410_v11 }
 0x43b   : > { %v5004_v46 = vadd.f32 %v4798_v36, %v4409_v19  ;;  %v5391_v26 = vsel %vm2437_vm1, %v14650_v3, %v5390_v45  ;;  %v13637_v8 = vrot.slane %v12443_v34, 2  ;;  %v5006_v52 = vadd.f32 %v4802_v37, %v4411_v15  ;;  %v12481_v15 = vpop.f32.mrf.mxu1 }
 0x43c   : > { %v5393_v60 = vsel %vm2437_vm1, %v14652_v0, %v5392_v18  ;;  %v13636_v19 = vrot.slane %v12447_v42, 2  ;;  %v5598_v13 = vadd.f32 %v5391_v26, %v5003_v5  ;;  %v1524_v59 = vmul.f32 %v14041_v48, %v14552_v50  ;;  %14653 = vst [vmem:[#allocation122_spill] sm:$0xff] %v12481_v15 }
 0x43d   : > { %v5395_v11 = vsel %vm2437_vm1, %v5390_v45, %v13637_v8  ;;  %v12475_v7 = vadd.f32 %v5393_v60, %v5004_v46  ;;  %v1525_v32 = vmul.f32 %v14042_v1, %v14554_v43  ;;  %v1526_v46 = vmul.f32 %v14041_v48, %v14574_v56 }
 0x43e   : > { %v5397_v23 = vsel %vm2437_vm1, %v5392_v18, %v13636_v19  ;;  %v5600_v0 = vadd.f32 %v5395_v11, %v5005_v17  ;;  %v12486_v5 = vmul.f32 0.5, %v5598_v13  ;;  %v5702_v27 = vmul.f32 0.70710677, %v5598_v13 }
 0x43f   : > { %v12488_v36 = vadd.f32 %v5397_v23, %v5006_v52  ;;  %v1527_v50 = vmul.f32 %v14042_v1, %v14575_v57  ;;  %v1620_v43 = vadd.f32 %v1524_v59, %v14043_v21  ;;  %v1621_v18 = vadd.f32 %v1525_v32, %v14044_v9  ;;  %v12504_v52 = vpop.f32.mrf.mxu1 }
 0x440   : > { %v12495_v45 = vmul.f32 0.5, %v5600_v0  ;;  %v5703_v12 = vmul.f32 0.70710677, %v5600_v0  ;;  %6708 = verf.f32 %v5702_v27  ;;  %v1622_v17 = vadd.f32 %v1526_v46, %v14043_v21  ;;  %14654 = vst [vmem:[#allocation66_spill] sm:$0xff] %v12504_v52 }
 0x441   : > { %v1623_v37 = vadd.f32 %v1527_v50, %v14044_v9  ;;  %v1731_v3 = vmul.f32 %v13834_v30, %v14574_v56  ;;  %v1732_v26 = vmul.f32 %v7215_v38, %v14575_v57  ;;  %v12508_v60 = vmul.f32 %v13834_v30, %v14578_v25  ;;  %v12535_v40 = vpop.f32.mrf.mxu1 }
 0x442   : > { %6710 = verf.f32 %v5703_v12  ;;  %v12512_v13 = vmul.f32 %v7215_v38, %v14580_v53  ;;  %v2327_v11 = vmul.f32 %v7206_v28, %v14574_v56  ;;  %v2328_v23 = vmul.f32 %v7217_v39, %v14575_v57  ;;  %14659 = vst [vmem:[#allocation69_spill] sm:$0xff] %v12535_v40 }
 0x443   : > { %v2012_v59 = vrot.slane %v1731_v3, 1  ;;  %v2014_v32 = vrot.slane %v1732_v26, 1  ;;  %v12520_v0 = vmul.f32 %v7206_v28, %v14578_v25  ;;  %v13640_v27 = vrot.slane %v12508_v60, 1 }
 0x444   : > { %v13642_v46 = vrot.slane %v12512_v13, 1  ;;  %v12526_v50 = vmul.f32 %v7217_v39, %v14580_v53  ;;  %v2608_v12 = vrot.slane %v2327_v11, 2  ;;  %v14657_v56 = vrot.slane %v12292_v62, 1 }
 0x445   : > { %14655 = vst [vmem:[#allocation67_spill] sm:$0xff] %v12520_v0  ;;  %v14658_v26 = vrot.slane %v12296_v10, 1  ;;  %v2610_v19 = vrot.slane %v2328_v23, 2  ;;  %v2017_v20 = vsel %vm1841_vm0, %v2012_v59, %v13640_v27  ;;  %v14660_v10 = vrot.slane %v12307_v55, 2  ;;  %v14664_v55 = vld [vmem:[#allocation10_spill] sm:$0xff] }
 0x446   : > { %14656 = vst [vmem:[#allocation68_spill] sm:$0xff] %v12526_v50  ;;  %v2013_v3 = vsel %vm1841_vm0, %v14657_v56, %v2012_v59  ;;  %v2019_v11 = vsel %vm1841_vm0, %v2014_v32, %v13642_v46  ;;  %v2218_v56 = vadd.f32 %v2017_v20, %v1622_v17  ;;  %v14662_v40 = vrot.slane %v12520_v0, 2 }
 0x447   : > { %v2015_v57 = vsel %vm1841_vm0, %v14658_v26, %v2014_v32  ;;  %v2216_v62 = vadd.f32 %v2013_v3, %v1620_v43  ;;  %v2219_v15 = vadd.f32 %v2019_v11, %v1623_v37  ;;  %v2609_v23 = vsel %vm2437_vm1, %v14660_v10, %v2608_v12  ;;  %v12559_v37 = vpop.f32.mrf.mxu1  ;;  %v14667_v3 = vld [vmem:[#allocation11_spill] sm:$0xff] }
 0x448   : > { %v2217_v52 = vadd.f32 %v2015_v57, %v1621_v18  ;;  %v14661_v26 = vrot.slane %v12315_v33, 2  ;;  %v2613_v59 = vsel %vm2437_vm1, %v2608_v12, %v14662_v40  ;;  %v13641_v27 = vrot.slane %v12526_v50, 2  ;;  %v14663_v18 = vld [vmem:[#allocation93_spill] sm:$0xff]  ;;  %14665 = vst [vmem:[#allocation121_spill] sm:$0xff] %v12559_v37 }
 0x449   : > { %v2812_v2 = vadd.f32 %v2609_v23, %v2216_v62  ;;  %v2814_v43 = vadd.f32 %v2613_v59, %v2218_v56  ;;  %v2921_v20 = vmul.f32 %v7221_v44, %v14601_v54  ;;  %v2922_v17 = vmul.f32 %v14664_v55, %v14663_v18  ;;  %v12570_v23 = vpop.f32.mrf.mxu1  ;;  %v14669_v50 = vld [vmem:[#allocation9_spill] sm:$0xff] }
 0x44a   : > { %v2611_v8 = vsel %vm2437_vm1, %v14661_v26, %v2610_v19  ;;  %v2923_v33 = vmul.f32 %v7221_v44, %v14605_v31  ;;  %v2615_v40 = vsel %vm2437_vm1, %v2610_v19, %v13641_v27  ;;  %v2924_v12 = vmul.f32 %v14664_v55, %v14606_v58  ;;  %14668 = vst [vmem:[#allocation128_spill] sm:$0xff] %v12570_v23 }
 0x44b   : > { %v2813_v32 = vadd.f32 %v2611_v8, %v2217_v52  ;;  %v14666_v8 = vld [vmem:[#allocation8_spill] sm:$0xff]  ;;  %v3129_v57 = vmul.f32 %v14667_v3, %v14606_v58  ;;  %v2815_v11 = vadd.f32 %v2615_v40, %v2219_v15  ;;  %v3017_v62 = vadd.f32 %v2921_v20, %v2812_v2 }
 0x44c   : > { %v3128_v52 = vmul.f32 %v14666_v8, %v14605_v31  ;;  %v3019_v10 = vadd.f32 %v2923_v33, %v2814_v43  ;;  %v12574_v26 = vmul.f32 %v14666_v8, %v14638_v41  ;;  %v12578_v19 = vmul.f32 %v14667_v3, %v14640_v22  ;;  %v14670_v2 = vld [vmem:[#allocation12_spill] sm:$0xff] }
 0x44d   : > { %v3018_v56 = vadd.f32 %v2922_v17, %v2813_v32  ;;  %v3410_v27 = vrot.slane %v3129_v57, 1  ;;  %v6709_v46 = vpop.eup %6708  ;;  %v3020_v37 = vadd.f32 %v2924_v12, %v2815_v11  ;;  %v3723_v15 = vmul.f32 %v14669_v50, %v14605_v31  ;;  %v14671_v17 = vld [vmem:[#allocation115_spill] sm:$0xff] }
 0x44e   : > { %v3408_v59 = vrot.slane %v3128_v52, 1  ;;  %v3724_v32 = vmul.f32 %v14670_v2, %v14606_v58  ;;  %v12586_v43 = vmul.f32 %v14669_v50, %v14638_v41  ;;  %v5798_v20 = vadd.f32 1.0, %v6709_v46  ;;  %v12600_v46 = vpop.f32.mrf.mxu1 }
 0x44f   : > { %v14672_v33 = vrot.slane %v14671_v17, 1  ;;  %v14673_v52 = vrot.slane %v12362_v63, 1  ;;  %v13649_v12 = vrot.slane %v12574_v26, 1  ;;  %v6711_v11 = vpop.eup %6710  ;;  %v13648_v31 = vrot.slane %v12578_v19, 1  ;;  %14674 = vst [vmem:[#allocation114_spill] sm:$0xff] %v12600_v46 }
 0x450   : > { %v12598_v50 = vmul.f32 %v14670_v2, %v14640_v22  ;;  %v5799_v17 = vadd.f32 1.0, %v6711_v11 }
 0x451   : > { %v3409_v40 = vsel %vm1841_vm0, %v14672_v33, %v3408_v59  ;;  %v3411_v57 = vsel %vm1841_vm0, %v14673_v52, %v3410_v27  ;;  %v5846_v33 = vmul.f32 %v5798_v20, %v12486_v5  ;;  %v3413_v63 = vsel %vm1841_vm0, %v3408_v59, %v13649_v12 }
 0x452   : > { %v3612_v23 = vadd.f32 %v3409_v40, %v3017_v62  ;;  %v3613_v58 = vadd.f32 %v3411_v57, %v3018_v56  ;;  %v4003_v52 = vrot.slane %v3723_v15, 2  ;;  %v3415_v0 = vsel %vm1841_vm0, %v3410_v27, %v13648_v31 }
 0x453   : > { %v3614_v62 = vadd.f32 %v3413_v63, %v3019_v10  ;;  %v4005_v56 = vrot.slane %v3724_v32, 2  ;;  %v13647_v40 = vrot.slane %v12586_v43, 2  ;;  %v5847_v57 = vmul.f32 %v5799_v17, %v12495_v45  ;;  %v12622_v63 = vpop.f32.mrf.mxu1  ;;  %v14677_v17 = vld [vmem:[#allocation25_spill] sm:$0xff] }
 0x454   : > { %v5894_v46 = vmul.f32 %v5846_v33, %v12475_v7  ;;  %v3615_v11 = vadd.f32 %v3415_v0, %v3020_v37  ;;  %v14675_v5 = vrot.slane %v12372_v24, 2  ;;  %v14676_v59 = vrot.slane %v12376_v6, 2 }
 0x455   : > { %v4008_v27 = vsel %vm2437_vm1, %v4003_v52, %v13647_v40  ;;  %v13646_v10 = vrot.slane %v12598_v50, 2  ;;  %v5895_v7 = vmul.f32 %v5847_v57, %v12488_v36  ;;  %v4316_v24 = vmul.f32 %v14494_v4, %v14641_v49  ;;  %v14680_v40 = vld [vmem:[#allocation140_spill] sm:$0xff] }
 0x456   : > { %v4004_v20 = vsel %vm2437_vm1, %v14675_v5, %v4003_v52  ;;  %v4006_v15 = vsel %vm2437_vm1, %v14676_v59, %v4005_v56  ;;  %v4209_v0 = vadd.f32 %v4008_v27, %v3614_v62  ;;  %v4317_v37 = vmul.f32 %v14522_v29, %v14643_v35  ;;  %v14679_v59 = vld [vmem:[#allocation139_spill] sm:$0xff]  ;;  %v12644_v27 = vpop.f32.mrf.mxu1 }
 0x457   : > { %v4207_v32 = vadd.f32 %v4004_v20, %v3612_v23  ;;  %v4208_v45 = vadd.f32 %v4006_v15, %v3613_v58  ;;  %v4010_v6 = vsel %vm2437_vm1, %v4005_v56, %v13646_v10  ;;  %v4318_v33 = vmul.f32 %v14494_v4, %v14677_v17  ;;  %v14678_v23 = vld [vmem:[#allocation26_spill] sm:$0xff] }
 0x458   : > { %v4319_v52 = vmul.f32 %v14522_v29, %v14678_v23  ;;  %v5922_v5 = vpack.c.bf16 %v5895_v7, %v5894_v46  ;;  %v4210_v36 = vadd.f32 %v4010_v6, %v3615_v11  ;;  %v4523_v62 = vmul.f32 %v14576_v47, %v14677_v17  ;;  %v14682_v6 = vld [vmem:[#allocation127_spill] sm:$0xff] }
 0x459   : > { %v4412_v58 = vadd.f32 %v4316_v24, %v4207_v32  ;;  %v4413_v57 = vadd.f32 %v4317_v37, %v4208_v45  ;;  %v4414_v20 = vadd.f32 %v4318_v33, %v4209_v0  ;;  %v4524_v56 = vmul.f32 %v14603_v16, %v14678_v23  ;;  %v12659_v24 = vpop.f32.mrf.mxu1 }
 0x45a   : > { %v12642_v15 = vmul.f32 %v14576_v47, %v14679_v59  ;;  %6513 = vmatprep.mubr.bf16.mxu1 %v5922_v5  ;;  %v4415_v10 = vadd.f32 %v4319_v52, %v4210_v36  ;;  %v12648_v46 = vmul.f32 %v14603_v16, %v14680_v40  ;;  %v4803_v11 = vrot.slane %v4523_v62, 1  ;;  %14681 = vst [vmem:[#allocation27_spill] sm:$0xff] %v12659_v24 }
 0x45b   : > { %v5118_v32 = vmul.f32 %v14644_v61, %v14677_v17  ;;  %v4805_v7 = vrot.slane %v4524_v56, 1  ;;  %v5119_v0 = vmul.f32 %v14646_v14, %v14678_v23  ;;  %v12657_v47 = vmul.f32 %v14644_v61, %v14679_v59 }
 0x45c   : > { %v4807_v45 = vrot.slane %v12642_v15, 1  ;;  %v14683_v37 = vrot.slane %v14682_v6, 1  ;;  %v4809_v33 = vrot.slane %v12648_v46, 1  ;;  %v12667_v17 = vmul.f32 %v14646_v14, %v14680_v40  ;;  %v14720_v15 = vld [vmem:[#allocation146_spill] sm:$0xff] }
 0x45d   : > { %v5398_v52 = vrot.slane %v5118_v32, 2  ;;  %v14684_v5 = vrot.slane %v12432_v51, 1  ;;  %v5400_v62 = vrot.slane %v5119_v0, 2  ;;  %v14685_v31 = vrot.slane %v12443_v34, 2 }
 0x45e   : > { %v4804_v16 = vsel %vm1841_vm0, %v14683_v37, %v4803_v11  ;;  %v4808_v61 = vsel %vm1841_vm0, %v4803_v11, %v4807_v45  ;;  %v4810_v56 = vsel %vm1841_vm0, %v4805_v7, %v4809_v33  ;;  %v14686_v51 = vrot.slane %v12447_v42, 2  ;;  %v12686_v11 = vpop.f32.mrf.mxu1 }
 0x45f   : > { %v4806_v23 = vsel %vm1841_vm0, %v14684_v5, %v4805_v7  ;;  %v5007_v36 = vadd.f32 %v4804_v16, %v4412_v58  ;;  %v5009_v37 = vadd.f32 %v4808_v61, %v4414_v20  ;;  %v5399_v32 = vsel %vm2437_vm1, %v14685_v31, %v5398_v52 }
 0x460   : > { %v5008_v6 = vadd.f32 %v4806_v23, %v4413_v57  ;;  %v5010_v12 = vadd.f32 %v4810_v56, %v4415_v10  ;;  %v5401_v5 = vsel %vm2437_vm1, %v14686_v51, %v5400_v62  ;;  %v5402_v24 = vrot.slane %v12657_v47, 2  ;;  %v12712_v56 = vpop.f32.mrf.mxu1 }
 0x461   : > { %v5404_v58 = vrot.slane %v12667_v17, 2  ;;  %v5602_v0 = vadd.f32 %v5399_v32, %v5007_v36  ;;  %v1528_v57 = vmul.f32 %v14041_v48, %v14578_v25  ;;  %v1529_v34 = vmul.f32 %v14042_v1, %v14580_v53 }
 0x462   : > { %v12688_v16 = vadd.f32 %v5401_v5, %v5008_v6  ;;  %v5403_v42 = vsel %vm2437_vm1, %v5398_v52, %v5402_v24  ;;  %v1530_v10 = vmul.f32 %v14041_v48, %v14601_v54  ;;  %v1531_v20 = vmul.f32 %v14042_v1, %v14663_v18 }
 0x463   : > { %v5405_v31 = vsel %vm2437_vm1, %v5400_v62, %v5404_v58  ;;  %v5604_v7 = vadd.f32 %v5403_v42, %v5009_v37  ;;  %v12706_v25 = vmul.f32 0.5, %v5602_v0  ;;  %v5704_v53 = vmul.f32 0.70710677, %v5602_v0 }
 0x464   : > { %v12704_v23 = vadd.f32 %v5405_v31, %v5010_v12  ;;  %v1624_v61 = vadd.f32 %v1528_v57, %v14043_v21  ;;  %v1625_v52 = vadd.f32 %v1529_v34, %v14044_v9  ;;  %v1626_v36 = vadd.f32 %v1530_v10, %v14043_v21  ;;  %v14691_v31 = vld [vmem:[#allocation151_spill] sm:$0xff] }
 0x465   : > { %v1627_v62 = vadd.f32 %v1531_v20, %v14044_v9  ;;  %v12714_v48 = vmul.f32 0.5, %v5604_v7  ;;  %v5705_v6 = vmul.f32 0.70710677, %v5604_v7  ;;  %6712 = verf.f32 %v5704_v53 }
 0x466   : > { %v1735_v1 = vmul.f32 %v13834_v30, %v14601_v54  ;;  %v1736_v12 = vmul.f32 %v7215_v38, %v14663_v18  ;;  %v2331_v37 = vmul.f32 %v7206_v28, %v14601_v54  ;;  %v2332_v21 = vmul.f32 %v7217_v39, %v14663_v18  ;;  %v12732_v54 = vpop.f32.mrf.mxu1  ;;  %v14688_v18 = vld [vmem:[#allocation5_spill] sm:$0xff] }
 0x467   : > { %v2925_v9 = vmul.f32 %v7221_v44, %v14638_v41  ;;  %6714 = verf.f32 %v5705_v6  ;;  %v2926_v51 = vmul.f32 %v14664_v55, %v14640_v22  ;;  %v2927_v30 = vmul.f32 %v7221_v44, %v14641_v49 }
 0x468   : > { %v2020_v32 = vrot.slane %v1735_v1, 1  ;;  %v2022_v5 = vrot.slane %v1736_v12, 1  ;;  %v2616_v0 = vrot.slane %v2331_v37, 2  ;;  %v2618_v38 = vrot.slane %v2332_v21, 2  ;;  %v12750_v53 = vpop.f32.mrf.mxu1  ;;  %v14693_v12 = vld [vmem:[#allocation67_spill] sm:$0xff]  ;;  %v14695_v21 = vld [vmem:[#allocation68_spill] sm:$0xff] }
 0x469   : > { %v2928_v28 = vmul.f32 %v14664_v55, %v14643_v35  ;;  %v14687_v39 = vrot.slane %v12508_v60, 1  ;;  %v14689_v57 = vrot.slane %v14688_v18, 1  ;;  %v3132_v22 = vmul.f32 %v14666_v8, %v14641_v49 }
 0x46a   : > { %v3133_v44 = vmul.f32 %v14667_v3, %v14643_v35  ;;  %v14690_v42 = vrot.slane %v12512_v13, 1  ;;  %v14692_v10 = vrot.slane %v14691_v31, 1  ;;  %v14694_v37 = vrot.slane %v14693_v12, 2 }
 0x46b   : > { %v2021_v41 = vsel %vm1841_vm0, %v14687_v39, %v2020_v32  ;;  %v2025_v34 = vsel %vm1841_vm0, %v2020_v32, %v14689_v57  ;;  %v14696_v3 = vrot.slane %v14695_v21, 2  ;;  %v14697_v32 = vld [vmem:[#allocation142_spill] sm:$0xff]  ;;  %v14701_v31 = vrot.slane %v12574_v26, 1 }
 0x46c   : > { %v2023_v55 = vsel %vm1841_vm0, %v14690_v42, %v2022_v5  ;;  %v2027_v60 = vsel %vm1841_vm0, %v2022_v5, %v14692_v10  ;;  %v2220_v20 = vadd.f32 %v2021_v41, %v1624_v61  ;;  %v2222_v7 = vadd.f32 %v2025_v34, %v1626_v36  ;;  %v14699_v57 = vld [vmem:[#allocation154_spill] sm:$0xff] }
 0x46d   : > { %v2221_v6 = vadd.f32 %v2023_v55, %v1625_v52  ;;  %v2223_v1 = vadd.f32 %v2027_v60, %v1627_v62  ;;  %v2617_v8 = vsel %vm2437_vm1, %v14694_v37, %v2616_v0  ;;  %v2619_v13 = vsel %vm2437_vm1, %v14696_v3, %v2618_v38  ;;  %v14702_v60 = vld [vmem:[#allocation148_spill] sm:$0xff]  ;;  %v12772_v3 = vpop.f32.mrf.mxu1 }
 0x46e   : > { %v14698_v39 = vrot.slane %v14697_v32, 2  ;;  %v14700_v5 = vrot.slane %v14699_v57, 2  ;;  %v2816_v36 = vadd.f32 %v2617_v8, %v2220_v20  ;;  %v3416_v41 = vrot.slane %v3132_v22, 1  ;;  %v14709_v57 = vld [vmem:[#allocation149_spill] sm:$0xff] }
 0x46f   : > { %v2817_v52 = vadd.f32 %v2619_v13, %v2221_v6  ;;  %v3418_v42 = vrot.slane %v3133_v44, 1  ;;  %v14703_v12 = vrot.slane %v14702_v60, 1  ;;  %v14706_v44 = vld [vmem:[#allocation155_spill] sm:$0xff]  ;;  %v3728_v8 = vmul.f32 %v14670_v2, %v14643_v35  ;;  %v12792_v2 = vpop.f32.mrf.mxu1 }
 0x470   : > { %v2621_v18 = vsel %vm2437_vm1, %v2616_v0, %v14698_v39  ;;  %v2623_v61 = vsel %vm2437_vm1, %v2618_v38, %v14700_v5  ;;  %v3021_v55 = vadd.f32 %v2925_v9, %v2816_v36  ;;  %v3417_v10 = vsel %vm1841_vm0, %v14701_v31, %v3416_v41  ;;  %v14704_v0 = vld [vmem:[#allocation9_spill] sm:$0xff] }
 0x471   : > { %v2818_v62 = vadd.f32 %v2621_v18, %v2222_v7  ;;  %v2819_v34 = vadd.f32 %v2623_v61, %v2223_v1  ;;  %v3421_v37 = vsel %vm1841_vm0, %v3416_v41, %v14703_v12  ;;  %v3727_v21 = vmul.f32 %v14704_v0, %v14641_v49  ;;  %v14717_v12 = vld [vmem:[#allocation158_spill] sm:$0xff] }
 0x472   : > { %v3022_v38 = vadd.f32 %v2926_v51, %v2817_v52  ;;  %v14705_v7 = vrot.slane %v12578_v19, 1  ;;  %v14707_v26 = vrot.slane %v14706_v44, 1  ;;  %v3616_v1 = vadd.f32 %v3417_v10, %v3021_v55  ;;  %v14715_v10 = vld [vmem:[#allocation145_spill] sm:$0xff] }
 0x473   : > { %v3023_v22 = vadd.f32 %v2927_v30, %v2818_v62  ;;  %v3024_v20 = vadd.f32 %v2928_v28, %v2819_v34  ;;  %v4011_v13 = vrot.slane %v3727_v21, 2  ;;  %v4320_v51 = vmul.f32 %v14494_v4, %v14679_v59  ;;  %v6713_v30 = vpop.eup %6712  ;;  %v14711_v62 = vld [vmem:[#allocation141_spill] sm:$0xff] }
 0x474   : > { %v3419_v9 = vsel %vm1841_vm0, %v14705_v7, %v3418_v42  ;;  %v3423_v6 = vsel %vm1841_vm0, %v3418_v42, %v14707_v26  ;;  %v14708_v19 = vrot.slane %v12586_v43, 2  ;;  %v4013_v18 = vrot.slane %v3728_v8, 2  ;;  %v6715_v59 = vpop.eup %6714  ;;  %v14713_v42 = vld [vmem:[#allocation156_spill] sm:$0xff]  ;;  %v14722_v8 = vld [vmem:[#allocation153_spill] sm:$0xff] }
 0x475   : > { %v3617_v32 = vadd.f32 %v3419_v9, %v3022_v38  ;;  %v3618_v49 = vadd.f32 %v3421_v37, %v3023_v22  ;;  %v3619_v39 = vadd.f32 %v3423_v6, %v3024_v20  ;;  %v14710_v5 = vrot.slane %v14709_v57, 2  ;;  %v14719_v20 = vld [vmem:[#allocation143_spill] sm:$0xff] }
 0x476   : > { %v4012_v28 = vsel %vm2437_vm1, %v14708_v19, %v4011_v13  ;;  %v4321_v35 = vmul.f32 %v14522_v29, %v14680_v40  ;;  %v5800_v36 = vadd.f32 1.0, %v6713_v30  ;;  %v4323_v4 = vmul.f32 %v14522_v29, %v14711_v62 }
 0x477   : > { %v4016_v61 = vsel %vm2437_vm1, %v4011_v13, %v14710_v5  ;;  %v4211_v41 = vadd.f32 %v4012_v28, %v3616_v1  ;;  %v14712_v43 = vrot.slane %v12598_v50, 2  ;;  %v14714_v55 = vrot.slane %v14713_v42, 2  ;;  %v14728_v28 = vld [vmem:[#allocation144_spill] sm:$0xff]  ;;  %v14729_v5 = vld [vmem:[#allocation159_spill] sm:$0xff] }
 0x478   : > { %v4213_v52 = vadd.f32 %v4016_v61, %v3618_v49  ;;  %v14716_v60 = vrot.slane %v14715_v10, 1  ;;  %v14718_v37 = vrot.slane %v14717_v12, 1  ;;  %v5801_v0 = vadd.f32 1.0, %v6715_v59  ;;  %v14735_v10 = vld [vmem:[#allocation163_spill] sm:$0xff]  ;;  %v14736_v12 = vld [vmem:[#allocation94_spill] sm:$0xff] }
 0x479   : > { %v4014_v34 = vsel %vm2437_vm1, %v14712_v43, %v4013_v18  ;;  %v4018_v31 = vsel %vm2437_vm1, %v4013_v18, %v14714_v55  ;;  %v5848_v50 = vmul.f32 %v5800_v36, %v12706_v25  ;;  %v4416_v22 = vadd.f32 %v4320_v51, %v4211_v41 }
 0x47a   : > { %v4812_v40 = vsel %vm1841_vm0, %v4807_v45, %v14716_v60  ;;  %v4814_v29 = vsel %vm1841_vm0, %v4809_v33, %v14718_v37  ;;  %v4212_v21 = vadd.f32 %v4014_v34, %v3617_v32  ;;  %v4214_v38 = vadd.f32 %v4018_v31, %v3619_v39  ;;  %v12821_v45 = vpop.f32.mrf.mxu1  ;;  %v14734_v31 = vld [vmem:[#allocation162_spill] sm:$0xff]  ;;  %v14737_v37 = vld [vmem:[#allocation103_spill] sm:$0xff] }
 0x47b   : > { %v4418_v7 = vadd.f32 %v14719_v20, %v4213_v52  ;;  %v5123_v9 = vmul.f32 %v14646_v14, %v14711_v62  ;;  %v14721_v44 = vrot.slane %v14720_v15, 2  ;;  %v5849_v33 = vmul.f32 %v5801_v0, %v12714_v48  ;;  %v14723_v14 = vld [vmem:[#allocation150_spill] sm:$0xff]  ;;  %v14726_v48 = vld [vmem:[#allocation160_spill] sm:$0xff] }
 0x47c   : > { %v5896_v25 = vmul.f32 %v5848_v50, %v12688_v16  ;;  %v4417_v26 = vadd.f32 %v4321_v35, %v4212_v21  ;;  %v4419_v6 = vadd.f32 %v4323_v4, %v4214_v38  ;;  %v5011_v1 = vadd.f32 %v4812_v40, %v4416_v22  ;;  %v12831_v51 = vpop.f32.mrf.mxu1  ;;  %v14727_v16 = vld [vmem:[#allocation161_spill] sm:$0xff]  ;;  %v14731_v4 = vld [vmem:[#allocation164_spill] sm:$0xff]  ;;  %v14739_v21 = vld [vmem:[#allocation111_spill] sm:$0xff] }
 0x47d   : > { %v5407_v46 = vsel %vm2437_vm1, %v5402_v24, %v14721_v44  ;;  %v5013_v13 = vadd.f32 %v14722_v8, %v4418_v7  ;;  %v5408_v32 = vrot.slane %v5123_v9, 2  ;;  %v14724_v49 = vrot.slane %v14723_v14, 2  ;;  %v14738_v0 = vld [vmem:[#allocation36_spill] sm:$0xff]  ;;  %v14740_v22 = vld [vmem:[#allocation43_spill] sm:$0xff]  ;;  %v14746_v14 = vld [vmem:[#allocation65_spill] sm:$0xff] }
 0x47e   : > { %v14725_v39 = vmov %v14721_v44  ;;  %v5897_v24 = vmul.f32 %v5849_v33, %v12704_v23  ;;  %v5012_v30 = vadd.f32 %v4814_v29, %v4417_v26  ;;  %v5014_v19 = vadd.f32 %v14726_v48, %v4419_v6  ;;  %v12864_v55 = vpop.f32.mrf.mxu1  ;;  %v14741_v7 = vld [vmem:[#allocation120_spill] sm:$0xff]  ;;  %v14744_v6 = vld [vmem:[#allocation63_spill] sm:$0xff] }
 0x47f   : > { %v5411_v47 = vsel %vm2437_vm1, %v14725_v39, %v14724_v49  ;;  %v5016_v18 = vadd.f32 %v14728_v28, %v14727_v16  ;;  %v5409_v57 = vsel %vm2437_vm1, %v5404_v58, %v5408_v32  ;;  %v14730_v61 = vrot.slane %v14729_v5, 2  ;;  %v12860_v58 = vld [vmem:[%s13033_s7] ss:$0 sm:$0xff]  ;;  %v14742_v44 = vld [vmem:[#allocation44_spill] sm:$0xff] }
 0x480   : > { %v12844_v36 = vadd.f32 %v5407_v46, %v5011_v1  ;;  %v12846_v41 = vadd.f32 %v5411_v47, %v5013_v13  ;;  %v5923_v23 = vpack.c.bf16 %v5897_v24, %v5896_v25  ;;  %v12848_v52 = vadd.f32 %v5409_v57, %v5012_v30  ;;  %v14743_v25 = vld [vmem:[#allocation62_spill] sm:$0xff]  ;;  %v14745_v8 = vld [vmem:[#allocation64_spill] sm:$0xff]  ;;  %v14751_v57 = vld [vmem:[#allocation101_spill] sm:$0xff] }
 0x481   : > { %v5413_v35 = vsel %vm2437_vm1, %v5408_v32, %v14730_v61  ;;  %v14732_v59 = vrot.slane %v14731_v4, 2  ;;  %v14733_v43 = vmov %v14730_v61  ;;  %v12868_v60 = vadd.f32 %v14735_v10, %v14734_v31  ;;  %v6504_v32 = vpop.f32.mrf.mxu1  ;;  %v14747_v39 = vld [vmem:[#allocation126_spill] sm:$0xff]  ;;  %v14750_v28 = vld [vmem:[#allocation92_spill] sm:$0xff] }
 0x482   : > { %v12850_v62 = vadd.f32 %v5413_v35, %v5014_v19  ;;  %v5706_v34 = vmul.f32 0.70710677, %v12844_v36  ;;  %v5707_v42 = vmul.f32 0.70710677, %v12846_v41  ;;  %6514 = vmatmul.mubr.bf16.gmra.mxu1 %v5923_v23  ;;  %v5613_v29 = vadd.f32 %v14737_v37, %v14736_v12  ;;  %v14748_v24 = vld [vmem:[#allocation110_spill] sm:$0xff]  ;;  %v14749_v19 = vld [vmem:[#allocation117_spill] sm:$0xff] }
 0x483   : > { %v5417_v17 = vsel %vm2437_vm1, %v14733_v43, %v14732_v59  ;;  %v5661_v50 = vmul.f32 0.5, %v14738_v0  ;;  %v5805_v38 = vadd.f32 1.0, %v14739_v21  ;;  %v6040_v20 = vadd.f32 %v14740_v22, %v12860_v58  ;;  %v14752_v61 = vld [vmem:[#allocation122_spill] sm:$0xff]  ;;  %v14754_v59 = vld [vmem:[#allocation69_spill] sm:$0xff]  ;;  %v6146_v0 = vpop.f32.mrf.mxu1 }
 0x484   : > { %v12870_v40 = vadd.f32 %v5417_v17, %v5016_v18  ;;  %6716 = verf.f32 %v5706_v34  ;;  %v6032_v9 = vadd.f32 %v12860_v58, %v14741_v7  ;;  %v5708_v15 = vmul.f32 0.70710677, %v12868_v60  ;;  %v14753_v23 = vld [vmem:[#allocation66_spill] sm:$0xff]  ;;  %v14755_v17 = vld [vmem:[#allocation121_spill] sm:$0xff] }
 0x485   : > { %6718 = verf.f32 %v5707_v42  ;;  %v6043_v46 = vadd.f32 %v14742_v44, %v12860_v58  ;;  %v5853_v33 = vmul.f32 %v5805_v38, %v5661_v50  ;;  %6224 = vst [vmem:[%s12878_s24 + $0x10] sm:$0xff] %v6040_v20  ;;  %v6035_v26 = vadd.f32 %v12860_v58, %v14743_v25  ;;  %v14756_v42 = vld [vmem:[#allocation128_spill] sm:$0xff]  ;;  %v14757_v10 = vld [vmem:[#allocation114_spill] sm:$0xff]  ;;  %v14758_v50 = vld [vmem:[#allocation27_spill] sm:$0xff] }
 0x486   : > { %6222 = vst [vmem:[%s12878_s24] sm:$0xff] %v6032_v9  ;;  %v6056_v1 = vadd.f32 %v14744_v6, %v12860_v58  ;;  %v6048_v13 = vadd.f32 %v12860_v58, %v14745_v8  ;;  %6720 = verf.f32 %v5708_v15  ;;  %v6059_v49 = vadd.f32 %v14746_v14, %v12860_v58 }
 0x487   : > { %6225 = vst [vmem:[%s12878_s24 + $0x18] sm:$0xff] %v6043_v46  ;;  %v6051_v47 = vadd.f32 %v12860_v58, %v14747_v39  ;;  %v6072_v30 = vadd.f32 %v14748_v24, %v12860_v58  ;;  %v12903_v48 = vmul.f32 %v5853_v33, %v5613_v29  ;;  %6223 = vst [vmem:[%s12878_s24 + $0x8] sm:$0xff] %v6035_v26  ;;  %v5660_v44 = vmul.f32 0.5, %v12868_v60 }
 0x488   : > { %6228 = vst [vmem:[%s12878_s24 + $0x30] sm:$0xff] %v6056_v1  ;;  %6226 = vst [vmem:[%s12878_s24 + $0x20] sm:$0xff] %v6048_v13  ;;  %v6064_v16 = vadd.f32 %v12860_v58, %v14749_v19  ;;  %v6075_v18 = vadd.f32 %v14750_v28, %v12860_v58  ;;  %v6067_v5 = vadd.f32 %v12860_v58, %v14751_v57 }
 0x489   : > { %6229 = vst [vmem:[%s12878_s24 + $0x38] sm:$0xff] %v6059_v49  ;;  %6227 = vst [vmem:[%s12878_s24 + $0x28] sm:$0xff] %v6051_v47  ;;  %v6088_v35 = vadd.f32 %v14752_v61, %v12860_v58  ;;  %v6080_v4 = vadd.f32 %v12860_v58, %v14753_v23  ;;  %v6091_v43 = vadd.f32 %v14754_v59, %v12860_v58 }
 0x48a   : > { %6232 = vst [vmem:[%s12878_s24 + $0x50] sm:$0xff] %v6072_v30  ;;  %v6083_v34 = vadd.f32 %v12860_v58, %v14755_v17  ;;  %6230 = vst [vmem:[%s12878_s24 + $0x40] sm:$0xff] %v6064_v16  ;;  %v6104_v31 = vadd.f32 %v14756_v42, %v12860_v58  ;;  %v6096_v12 = vadd.f32 %v12860_v58, %v14757_v10 }
 0x48b   : > { %6233 = vst [vmem:[%s12878_s24 + $0x58] sm:$0xff] %v6075_v18  ;;  %6231 = vst [vmem:[%s12878_s24 + $0x48] sm:$0xff] %v6067_v5  ;;  %v6107_v37 = vadd.f32 %v12622_v63, %v12860_v58  ;;  %v6099_v29 = vadd.f32 %v12860_v58, %v12644_v27  ;;  %v6120_v21 = vadd.f32 %v14758_v50, %v12860_v58 }
 0x48c   : > { %6236 = vst [vmem:[%s12878_s24 + $0x70] sm:$0xff] %v6088_v35  ;;  %6234 = vst [vmem:[%s12878_s24 + $0x60] sm:$0xff] %v6080_v4  ;;  %v6112_v38 = vadd.f32 %v12860_v58, %v12686_v11  ;;  %v6123_v63 = vadd.f32 %v12712_v56, %v12860_v58  ;;  %v6115_v27 = vadd.f32 %v12860_v58, %v12732_v54 }
 0x48d   : > { %6237 = vst [vmem:[%s12878_s24 + $0x78] sm:$0xff] %v6091_v43  ;;  %6235 = vst [vmem:[%s12878_s24 + $0x68] sm:$0xff] %v6083_v34  ;;  %v6136_v22 = vadd.f32 %v12750_v53, %v12860_v58  ;;  %v6128_v11 = vadd.f32 %v12860_v58, %v12772_v3  ;;  %v6139_v56 = vadd.f32 %v12792_v2, %v12860_v58  ;;  %v5658_v2 = vmul.f32 0.5, %v12844_v36 }
 0x48e   : > { %6240 = vst [vmem:[%s12878_s24 + $0x90] sm:$0xff] %v6104_v31  ;;  %6238 = vst [vmem:[%s12878_s24 + $0x80] sm:$0xff] %v6096_v12  ;;  %v6131_v54 = vadd.f32 %v12860_v58, %v12821_v45  ;;  %v6152_v53 = vadd.f32 %v12831_v51, %v12860_v58  ;;  %v6144_v20 = vadd.f32 %v12860_v58, %v12864_v55  ;;  %v5659_v51 = vmul.f32 0.5, %v12846_v41 }
 0x48f   : > { %6241 = vst [vmem:[%s12878_s24 + $0x98] sm:$0xff] %v6107_v37  ;;  %6239 = vst [vmem:[%s12878_s24 + $0x88] sm:$0xff] %v6099_v29  ;;  %v6155_v3 = vadd.f32 %v6504_v32, %v12860_v58  ;;  %v6147_v7 = vadd.f32 %v12860_v58, %v6146_v0 }
 0x490   : > { %6244 = vst [vmem:[%s12878_s24 + $0xb0] sm:$0xff] %v6120_v21  ;;  %6242 = vst [vmem:[%s12878_s24 + $0xa0] sm:$0xff] %v6112_v38 }
 0x491   : > { %6245 = vst [vmem:[%s12878_s24 + $0xb8] sm:$0xff] %v6123_v63  ;;  %6243 = vst [vmem:[%s12878_s24 + $0xa8] sm:$0xff] %v6115_v27  ;;  %v6717_v45 = vpop.eup %6716 }
 0x492   : > { %6248 = vst [vmem:[%s12878_s24 + $0xd0] sm:$0xff] %v6136_v22  ;;  %6246 = vst [vmem:[%s12878_s24 + $0xc0] sm:$0xff] %v6128_v11  ;;  %v6719_v9 = vpop.eup %6718  ;;  %v5802_v15 = vadd.f32 1.0, %v6717_v45 }
 0x493   : > { %6249 = vst [vmem:[%s12878_s24 + $0xd8] sm:$0xff] %v6139_v56  ;;  %6247 = vst [vmem:[%s12878_s24 + $0xc8] sm:$0xff] %v6131_v54  ;;  %v5803_v55 = vadd.f32 1.0, %v6719_v9  ;;  %v6721_v46 = vpop.eup %6720 }
 0x494   : > { %6252 = vst [vmem:[%s12878_s24 + $0xf0] sm:$0xff] %v6152_v53  ;;  %6250 = vst [vmem:[%s12878_s24 + $0xe0] sm:$0xff] %v6144_v20  ;;  %v5850_v33 = vmul.f32 %v5802_v15, %v5658_v2  ;;  %v5804_v26 = vadd.f32 1.0, %v6721_v46 }
 0x495   : > { %6253 = vst [vmem:[%s12878_s24 + $0xf8] sm:$0xff] %v6155_v3  ;;  %6251 = vst [vmem:[%s12878_s24 + $0xe8] sm:$0xff] %v6147_v7  ;;  %v5851_v25 = vmul.f32 %v5803_v55, %v5659_v51 }
 0x496   : > { %v5898_v6 = vmul.f32 %v5850_v33, %v12848_v52  ;;  %v5852_v36 = vmul.f32 %v5804_v26, %v5660_v44 }
 0x497   : > { %v5899_v1 = vmul.f32 %v5851_v25, %v12850_v62 }
 0x498   : > { %v5900_v41 = vmul.f32 %v5852_v36, %v12870_v40 }
 0x499   : > { %v5924_v8 = vpack.c.bf16 %v5899_v1, %v5898_v6 }
 0x49a   : > { %v5925_v13 = vpack.c.bf16 %v12903_v48, %v5900_v41 }
 0x49b   : > { %6517 = vmatprep.mubr.bf16.mxu1 %v5924_v8 }
 0x49c   : > { %6518 = vmatmul.mubr.bf16.gmra.mxu1 %v5925_v13 }
 0x4ad   : > { %v6507_v60 = vpop.f32.mrf.mxu1 }
 0x4ae   : > { %v6168_v32 = vadd.f32 %v6507_v60, %v12860_v58 }
 0x4af   : > { %v6159_v14 = vpop.f32.mrf.mxu1 }
 0x4b0   : > { %6256 = vst [vmem:[%s12878_s24 + $0x110] sm:$0xff] %v6168_v32  ;;  %v6160_v52 = vadd.f32 %v12860_v58, %v6159_v14 }
 0x4b1   : > { %v6508_v62 = vpop.f32.mrf.mxu1 }
 0x4b2   : > { %6254 = vst [vmem:[%s12878_s24 + $0x100] sm:$0xff] %v6160_v52  ;;  %v6171_v49 = vadd.f32 %v6508_v62, %v12860_v58 }
 0x4b3   : > { %v6162_v40 = vpop.f32.mrf.mxu1 }
 0x4b4   : > { %6257 = vst [vmem:[%s12878_s24 + $0x118] sm:$0xff] %v6171_v49  ;;  %v6163_v39 = vadd.f32 %v12860_v58, %v6162_v40 }
 0x4b6   : > { %6255 = vst [vmem:[%s12878_s24 + $0x108] sm:$0xff] %v6163_v39 }
 0x4f6   : > { %v6511_v47 = vpop.f32.mrf.mxu1 }
 0x4f7   : > { %v6184_v24 = vadd.f32 %v6511_v47, %v12860_v58 }
 0x4f8   : > { %v6175_v30 = vpop.f32.mrf.mxu1 }
 0x4f9   : > { %6260 = vst [vmem:[%s12878_s24 + $0x130] sm:$0xff] %v6184_v24  ;;  %v6176_v48 = vadd.f32 %v12860_v58, %v6175_v30 }
 0x4fa   : > { %v6512_v19 = vpop.f32.mrf.mxu1 }
 0x4fb   : > { %6258 = vst [vmem:[%s12878_s24 + $0x120] sm:$0xff] %v6176_v48  ;;  %v6187_v16 = vadd.f32 %v6512_v19, %v12860_v58 }
 0x4fc   : > { %v6178_v28 = vpop.f32.mrf.mxu1 }
 0x4fd   : > { %6261 = vst [vmem:[%s12878_s24 + $0x138] sm:$0xff] %v6187_v16  ;;  %v6179_v18 = vadd.f32 %v12860_v58, %v6178_v28 }
 0x4ff   : > { %6259 = vst [vmem:[%s12878_s24 + $0x128] sm:$0xff] %v6179_v18 }
 0x542   : > { %v6515_v57 = vpop.f32.mrf.mxu1 }
 0x543   : > { %v6200_v5 = vadd.f32 %v6515_v57, %v12860_v58 }
 0x544   : > { %v6191_v61 = vpop.f32.mrf.mxu1 }
 0x545   : > { %6264 = vst [vmem:[%s12878_s24 + $0x150] sm:$0xff] %v6200_v5  ;;  %v6192_v35 = vadd.f32 %v12860_v58, %v6191_v61 }
 0x546   : > { %v6516_v23 = vpop.f32.mrf.mxu1 }
 0x547   : > { %6262 = vst [vmem:[%s12878_s24 + $0x140] sm:$0xff] %v6192_v35  ;;  %v6203_v4 = vadd.f32 %v6516_v23, %v12860_v58 }
 0x548   : > { %v6194_v59 = vpop.f32.mrf.mxu1 }
 0x549   : > { %6265 = vst [vmem:[%s12878_s24 + $0x158] sm:$0xff] %v6203_v4  ;;  %v6195_v43 = vadd.f32 %v12860_v58, %v6194_v59 }
 0x54b   : > { %6263 = vst [vmem:[%s12878_s24 + $0x148] sm:$0xff] %v6195_v43 }
 0x55c   : > { %v6519_v17 = vpop.f32.mrf.mxu1 }
 0x55d   : > { %v6216_v34 = vadd.f32 %v6519_v17, %v12860_v58 }
 0x55e   : > { %v6207_v42 = vpop.f32.mrf.mxu1 }
 0x55f   : > { %6268 = vst [vmem:[%s12878_s24 + $0x170] sm:$0xff] %v6216_v34  ;;  %v6208_v31 = vadd.f32 %v12860_v58, %v6207_v42 }
 0x560   : > { %v6520_v10 = vpop.f32.mrf.mxu1 }
 0x561   : > { %6266 = vst [vmem:[%s12878_s24 + $0x160] sm:$0xff] %v6208_v31  ;;  %v6219_v12 = vadd.f32 %v6520_v10, %v12860_v58 }
 0x562   : > { %v6210_v37 = vpop.f32.mrf.mxu1 }
 0x563   : > { %6269 = vst [vmem:[%s12878_s24 + $0x178] sm:$0xff] %v6219_v12  ;;  %v6211_v29 = vadd.f32 %v12860_v58, %v6210_v37 }
 0x565   : > { %6267 = vst [vmem:[%s12878_s24 + $0x168] sm:$0xff] %v6211_v29 }
 0x566 PF: > { %s18_s29 = sadd.s32 1, %s6744_s29   ;;  %s14759_s27 = smov %s6740_s28 }
 0x567   : > { %p15_p5 = scmp.ge.s32.totalorder %s18_s29, 4   ;;  %s14760_s28 = smov %s14762_s30 }
 0x569   :  { %17 = sbr.rel (!%p15_p5) target bundleno = 2 (0x2), region = 92 }

</bundles_post_ra>
